<compile_context>
chip_gen: v7x
topology: tpu7x:2x2x1
jax: 0.10.0
libtpu: 0.0.40
codegen_flags: <defaults>
</compile_context>

<pallas_src>
import functools

import numpy as np
import jax
import jax.numpy as jnp
from jax.experimental import pallas as pl
from jax.experimental.pallas import tpu as pltpu


# ----------------------------------------------------------------------------
# small helpers
# ----------------------------------------------------------------------------

def _round_up(x, m):
    return ((x + m - 1) // m) * m


def get_pad(size, kernel_size, stride=1, dilation=1):
    padding = ((size - 1) * (stride - 1) + dilation * (kernel_size - 1)) // 2
    return (padding, padding)


# ----------------------------------------------------------------------------
# fused Pallas kernel
# ----------------------------------------------------------------------------

def _conv_layer(act, w_flat, bias, K, p0, slope, highest):
    """1D conv on a lane-stacked frame: K XLU rolls + one im2col matmul.

    act:    (Cin, W)   W is a multiple of 128; valid data sits in per-segment
                       windows, surrounding columns are zeros (MLP stage) or
                       harmless finite garbage (backbone, 'valid' conv).
    w_flat: (Cout, K*Cin)  flattened k-major (row index = k*Cin + c).
    Output column j = sum_{k,c} w[o, c, k] * act[c, j - p0 + k].
    """
    W = act.shape[1]
    cols = []
    for k in range(K):
        sh = (p0 - k) % W
        cols.append(act if sh == 0 else pltpu.roll(act, shift=sh, axis=1))
    xcol = jnp.concatenate(cols, axis=0)                     # (K*Cin, W)
    prec = (jax.lax.Precision.HIGHEST if highest
            else jax.lax.Precision.DEFAULT)
    out = jnp.dot(w_flat, xcol, preferred_element_type=jnp.float32,
                  precision=prec) + bias
    if slope is not None:
        out = jnp.maximum(out, slope * out)                  # LeakyReLU (VPU)
    return out


def _ngcc_fused_kernel(x_ref, cfsf_ref, idft_ref, mask_ref, *refs,
                       metas, n_backbone, NB, c_bb, LSEG, T_pad, n_freq,
                       NLSEG, P0MAX, nlags, eps):
    """One grid step == NB batch elements (their x1/x2 pairs), whole network.

    x_ref:    (1, 1, 2*NB*LSEG)  stream-major segments on a 128-aligned stride
    cfsf_ref: (T_pad, 2F)        forward real-DFT basis [cos | sin], zero rows
                                 past T so garbage time columns contribute 0
    idft_ref: (2F, nlags)        inverse basis restricted to the output lags
    mask_ref: (1, NB*NLSEG)      1 on valid lag windows, 0 on gaps
    refs:     w0,b0, ..., w7,b7, out_ref
    """
    out_ref = refs[-1]
    w_refs = refs[:-1]
    nb = 2 * NB

    # ---- backbone ('valid' convs) on the lane-stacked frame ----
    act = x_ref[0]                                           # (1, nb*LSEG)
    for i in range(n_backbone):
        m = metas[i]
        act = _conv_layer(act, w_refs[2 * i][...], w_refs[2 * i + 1][...],
                          m['K'], 0, m['slope'], m['highest'])

    # restack segments lanes -> sublanes: row = stream*NB*C + b*C + c
    y_all = jnp.concatenate(
        [act[:, s * LSEG: s * LSEG + T_pad] for s in range(nb)], axis=0)

    # ---- GCC-PHAT: forward real DFT as one stacked matmul ----
    FA = jnp.dot(y_all, cfsf_ref[...], preferred_element_type=jnp.float32,
                 precision=jax.lax.Precision.HIGHEST)        # (2*NB*C, 2F)
    half = NB * c_bb
    Xc, Xs = FA[:half, :n_freq], FA[:half, n_freq:]          # X = Xc - i*Xs
    Yc, Ys = FA[half:, :n_freq], FA[half:, n_freq:]
    Gr = Xc * Yc + Xs * Ys                                   # Gxy = X*conj(Y)
    Gi = Xc * Ys - Xs * Yc
    mag = jnp.sqrt(Gr * Gr + Gi * Gi)                        # |Gxy| (EUP)
    phi = pl.reciprocal(mag + eps, approx=True)              # PHAT weight (EUP)
    WRI = jnp.concatenate([Gr * phi, Gi * phi], axis=1)      # (NB*C, 2F)
    cc = jnp.dot(WRI, idft_ref[...], preferred_element_type=jnp.float32,
                 precision=jax.lax.Precision.HIGHEST)        # (NB*C, nlags)

    # ---- MLP conv stack on a lane-stacked frame; zero gaps == 'same' pad ----
    gap_r = NLSEG - P0MAX - nlags
    pieces = []
    for b in range(NB):
        pieces.append(jnp.zeros((c_bb, P0MAX), jnp.float32))
        pieces.append(cc[b * c_bb:(b + 1) * c_bb, :])
        pieces.append(jnp.zeros((c_bb, gap_r), jnp.float32))
    frame = jnp.concatenate(pieces, axis=1)                  # (C, NB*NLSEG)

    mask = mask_ref[...]
    n_layers = len(metas)
    for i in range(n_backbone, n_layers):
        m = metas[i]
        frame = _conv_layer(frame, w_refs[2 * i][...], w_refs[2 * i + 1][...],
                            m['K'], m['p0'], m['slope'], m['highest'])
        if i < n_layers - 1:
            frame = frame * mask     # re-zero gaps: padding for the next layer

    # final conv has Cout=1 -> (1, NB*NLSEG); emit lane-dense (NB, NLSEG)
    out_ref[0] = jnp.concatenate(
        [frame[:, b * NLSEG:(b + 1) * NLSEG] for b in range(NB)], axis=0)


# ----------------------------------------------------------------------------
# host-side setup: DFT bases, weight flattening, the single pallas_call
# ----------------------------------------------------------------------------

def _dft_matrices(T, T_pad, n, max_shift):
    """Forward real-DFT basis (T_pad, 2F) and lag-restricted inverse (2F, nlags)."""
    F = n // 2 + 1
    t = np.arange(T, dtype=np.float64)[:, None]
    f = np.arange(F, dtype=np.float64)[None, :]
    ang = 2.0 * np.pi * t * f / n
    cfsf = np.concatenate([np.cos(ang), np.sin(ang)], axis=1)           # (T, 2F)
    cfsf = np.concatenate([cfsf, np.zeros((T_pad - T, 2 * F))], axis=0)  # pad rows
    # output lags in the module's final concat order: [n-ms .. n-1, 0 .. ms]
    lags = np.concatenate([np.arange(n - max_shift, n),
                           np.arange(0, max_shift + 1)]).astype(np.float64)
    ff = np.arange(F, dtype=np.float64)[:, None]
    iang = 2.0 * np.pi * ff * lags[None, :] / n
    w = np.full((F, 1), 2.0)
    w[0, 0] = 1.0
    if n % 2 == 0:
        w[-1, 0] = 1.0
    icos = w * np.cos(iang) / n
    isin = -w * np.sin(iang) / n
    idft = np.concatenate([icos, isin], axis=0)                         # (2F, nlags)
    return jnp.asarray(cfsf, jnp.float32), jnp.asarray(idft, jnp.float32)


def _prep_layers(params, cfg, nlags):
    metas, ws, bs = [], [], []

    def add(p, p0, slope, highest):
        w = p['w']                                    # (Cout, Cin, K)
        cout, cin, kk = w.shape
        ws.append(jnp.transpose(w, (0, 2, 1)).reshape(cout, kk * cin))
        bs.append(p['b'].reshape(cout, 1))
        metas.append(dict(K=kk, p0=p0, slope=slope, highest=highest))

    for i, p in enumerate(params['backbone']):
        slope = 0.2 if cfg['backbone_acts'][i] == 'leaky_relu' else None
        add(p, 0, slope, True)                        # feeds PHAT -> HIGHEST
    for i, p in enumerate(params['mlp']):
        k = cfg['mlp_kernels'][i]
        assert k % 2 == 1
        add(p, get_pad(nlags, k)[0], 0.2, False)
        # TODO(synk): nn.Dropout(0.5) is identity in eval mode; training-mode
        # stochastic dropout is not implemented.
    kf = cfg['final_kernel']
    assert kf % 2 == 1
    add(params['final'], get_pad(nlags, kf)[0], None, False)
    return metas, ws, bs


def _pick_nb(B, c_bb, m_cap=256):
    """Batch elements per grid step: grow the stacked DFT M-dim toward the MXU
    sweet spot while keeping >= 2 grid steps so both v7x TensorCores get work."""
    if B < 2:
        return max(B, 1)
    best = 1
    for d in range(1, B + 1):
        if B % d == 0 and B // d >= 2 and 2 * d * c_bb <= m_cap:
            best = d
    return best


def ngcc_phat_forward(params, x1, x2, cfg):
    """Fused Pallas forward pass.  x1, x2: (B, 1, sig_len) -> (B, 2*max_tau+1)."""
    B, _, L0 = x1.shape
    T = L0
    for k in cfg['backbone_kernels']:
        T -= (k - 1)
    n = 2 * T
    n_freq = n // 2 + 1
    max_shift = int(min(cfg['max_tau'], n // 2))
    nlags = 2 * max_shift + 1
    c_bb = cfg['backbone_filts'][-1]

    NB = _pick_nb(B, c_bb)
    S = B // NB
    nb = 2 * NB

    # lane-aligned per-segment strides (vreg-boundary segment splits)
    LSEG = _round_up(L0, 128)
    T_pad = min(LSEG, _round_up(T, 128))
    pads = [get_pad(nlags, k)[0] for k in cfg['mlp_kernels']]
    pads.append(get_pad(nlags, cfg['final_kernel'])[0])
    P0MAX = max(pads)
    NLSEG = _round_up(2 * P0MAX + nlags, 128)
    WM = NB * NLSEG

    cfsf, idft = _dft_matrices(T, T_pad, n, max_shift)
    metas, ws, bs = _prep_layers(params, cfg, nlags)

    # gap mask: 1 on each item's nlags-wide valid window, 0 elsewhere (the zero
    # gaps double as the MLP convs' 'same' zero padding).
    col = np.arange(WM)
    valid = (col % NLSEG >= P0MAX) & (col % NLSEG < P0MAX + nlags)
    mlp_mask = jnp.asarray(valid.astype(np.float32)[None, :])           # (1, WM)

    # input frames: per grid step, 2*NB streams lane-stacked stream-major
    # (x1 items, then x2 items), each on a 128-aligned LSEG stride.
    x1r = x1.reshape(S, NB, L0)
    x2r = x2.reshape(S, NB, L0)
    xs = jnp.concatenate([x1r, x2r], axis=1)                            # (S, 2NB, L0)
    xs = jnp.pad(xs, ((0, 0), (0, 0), (0, LSEG - L0)))
    x_frames = xs.reshape(S, 1, nb * LSEG)

    kernel = functools.partial(
        _ngcc_fused_kernel, metas=tuple(metas),
        n_backbone=len(params['backbone']), NB=NB, c_bb=c_bb,
        LSEG=LSEG, T_pad=T_pad, n_freq=n_freq,
        NLSEG=NLSEG, P0MAX=P0MAX, nlags=nlags, eps=0.001)

    wb_inputs = []
    for w, b in zip(ws, bs):
        wb_inputs += [w, b]

    def _const_spec(shape, single_buffer):
        idx_map = lambda s: (0, 0)
        if single_buffer:
            # constant index_map -> DMA'd once; single buffer halves VMEM use
            return pl.BlockSpec(shape, idx_map, pipeline_mode=pl.Buffered(1))
        return pl.BlockSpec(shape, idx_map)

    def _call(single_buffer):
        in_specs = [pl.BlockSpec((1, 1, nb * LSEG), lambda s: (s, 0, 0)),
                    _const_spec(cfsf.shape, single_buffer),
                    _const_spec(idft.shape, single_buffer),
                    _const_spec(mlp_mask.shape, single_buffer)]
        for arr in wb_inputs:
            in_specs.append(_const_spec(arr.shape, single_buffer))
        return pl.pallas_call(
            kernel,
            grid=(S,),
            in_specs=in_specs,
            out_specs=pl.BlockSpec((1, NB, NLSEG), lambda s: (s, 0, 0)),
            out_shape=jax.ShapeDtypeStruct((S, NB, NLSEG), jnp.float32),
            compiler_params=pltpu.CompilerParams(
                dimension_semantics=("parallel",),
                vmem_limit_bytes=32 * 1024 * 1024),
        )(x_frames, cfsf, idft, mlp_mask, *wb_inputs)

    try:
        out = _call(True)
    except Exception:      # pl.Buffered(1) unsupported -> default double-buffering
        out = _call(False)

    out = out.reshape(B, NLSEG)[:, P0MAX:P0MAX + nlags]
    return out                                   # head == 'classifier'
    # TODO(synk): head == 'regression' (BatchNorm + LeakyReLU + Linear) not used.


# ----------------------------------------------------------------------------
# parameter init (BatchNorm folded into the convs, eval mode)
# ----------------------------------------------------------------------------

def fold_bn(w, b, gamma, beta, mean, var, eps=1e-5):
    scale = gamma / jnp.sqrt(var + eps)
    return w * scale[:, None, None], (b - mean) * scale + beta


def init_params(key, cfg):
    keys = iter(jax.random.split(key, 128))

    def conv_bn(in_c, out_c, k, use_bn=True):
        w = 0.1 * jax.random.normal(next(keys), (out_c, in_c, k), jnp.float32)
        b = 0.05 * jax.random.normal(next(keys), (out_c,), jnp.float32)
        if use_bn:
            gamma = 1.0 + 0.1 * jax.random.normal(next(keys), (out_c,), jnp.float32)
            beta = 0.05 * jax.random.normal(next(keys), (out_c,), jnp.float32)
            mean = 0.05 * jax.random.normal(next(keys), (out_c,), jnp.float32)
            var = jnp.ones((out_c,), jnp.float32)
            w, b = fold_bn(w, b, gamma, beta, mean, var)
        return {'w': w, 'b': b}

    # TODO(synk): SincNet class definition was not provided; the backbone is the
    # Conv1d+BatchNorm+LeakyReLU stack described by sincnet_params (pool_len=1,
    # last act linear); sinc-parameterized filters are not reproduced.
    params = {'backbone': [], 'mlp': []}
    in_c = 1
    for out_c, k in zip(cfg['backbone_filts'], cfg['backbone_kernels']):
        params['backbone'].append(conv_bn(in_c, out_c, k))
        in_c = out_c
    ch = cfg['mlp_channels']
    for i, k in enumerate(cfg['mlp_kernels']):
        params['mlp'].append(conv_bn(ch[i], ch[i + 1], k))
    params['final'] = conv_bn(ch[-1], 1, cfg['final_kernel'], use_bn=False)
    return params


# ----------------------------------------------------------------------------
# pure-JAX reference (lax.conv + FFT) for verification
# ----------------------------------------------------------------------------

def _ref_conv(x, w, b, neg):
    out = jax.lax.conv_general_dilated(
        x, w, (1,), 'VALID', dimension_numbers=('NCH', 'OIH', 'NCH'),
        precision=jax.lax.Precision.HIGHEST)
    out = out + b[None, :, None]
    if neg is not None:
        out = jnp.where(out >= 0, out, neg * out)
    return out


def _ref_gcc(y1, y2, max_tau, eps=0.001):
    n = y1.shape[-1] + y2.shape[-1]
    X = jnp.fft.rfft(y1, n=n)
    Y = jnp.fft.rfft(y2, n=n)
    Gxy = X * jnp.conj(Y)
    phi = 1.0 / (jnp.abs(Gxy) + eps)
    cc = jnp.fft.irfft(Gxy * phi, n=n)
    max_shift = int(np.minimum(max_tau, int(n / 2)))
    return jnp.concatenate([cc[:, :, -max_shift:], cc[:, :, :max_shift + 1]],
                           axis=-1)


def ref_forward(params, x1, x2, cfg):
    def backbone(x):
        h = x
        for i, layer in enumerate(params['backbone']):
            act = 0.2 if cfg['backbone_acts'][i] == 'leaky_relu' else None
            h = _ref_conv(h, layer['w'], layer['b'], act)
        return h

    y1 = backbone(x1)
    y2 = backbone(x2)
    cc = _ref_gcc(y1, y2, cfg['max_tau'])
    for k, layer in enumerate(params['mlp']):
        pad = get_pad(cc.shape[2], cfg['mlp_kernels'][k], 1, 1)
        cc = jnp.pad(cc, ((0, 0), (0, 0), pad))
        cc = _ref_conv(cc, layer['w'], layer['b'], 0.2)
    pad = get_pad(cc.shape[2], cfg['final_kernel'], 1, 1)
    cc = jnp.pad(cc, ((0, 0), (0, 0), pad))
    cc = _ref_conv(cc, params['final']['w'], params['final']['b'], None)
    return cc.reshape(x1.shape[0], -1)


# ----------------------------------------------------------------------------

if __name__ == "__main__":
    # Scaled-down configuration mirroring NGCCPHAT(max_tau, sig_len, ...)
    cfg = dict(
        sig_len=64,
        backbone_filts=[8, 8, 8, 8],                 # cnn_N_filt (scaled)
        backbone_kernels=[15, 7, 5, 3],              # cnn_len_filt (scaled)
        backbone_acts=['leaky_relu', 'leaky_relu', 'leaky_relu', 'linear'],
        mlp_channels=[8, 16, 16, 16],                # self.channels (scaled)
        mlp_kernels=[11, 9, 7],
        final_kernel=5,
        max_tau=6,
    )
    B = 4                                            # -> NB=2, grid=(2,)
    key = jax.random.PRNGKey(0)
    k1, k2, kp = jax.random.split(key, 3)
    x1 = jax.random.normal(k1, (B, 1, cfg['sig_len']), jnp.float32)
    x2 = jax.random.normal(k2, (B, 1, cfg['sig_len']), jnp.float32)
    params = init_params(kp, cfg)

    out = jax.block_until_ready(ngcc_phat_forward(params, x1, x2, cfg))
    ref = jax.block_until_ready(ref_forward(params, x1, x2, cfg))

    assert out.shape == (B, 2 * cfg['max_tau'] + 1), out.shape
    err = float(jnp.max(jnp.abs(out - ref)))
    scale = float(jnp.max(jnp.abs(ref))) + 1e-6
    # Tolerance covers DEFAULT-precision MXU passes in the post-GCC layers and
    # the approximate EUP reciprocal; structural errors would give O(scale)
    # mismatches and still be caught.
    assert err <= 2e-2 * scale + 1e-3, f"mismatch: max|diff|={err}, scale={scale}"
    print("KERNEL_OK")
</pallas_src>

<mosaic_0001>
module attributes {stable_mosaic.version = 11 : i64} {
  func.func @_ngcc_fused_kernel(%arg0: i32, %arg1: memref<1x1x512xf32, #tpu.memory_space<vmem>>, %arg2: memref<128x78xf32, #tpu.memory_space<vmem>>, %arg3: memref<78x13xf32, #tpu.memory_space<vmem>>, %arg4: memref<1x256xf32, #tpu.memory_space<vmem>>, %arg5: memref<8x15xf32, #tpu.memory_space<vmem>>, %arg6: memref<8x1xf32, #tpu.memory_space<vmem>>, %arg7: memref<8x56xf32, #tpu.memory_space<vmem>>, %arg8: memref<8x1xf32, #tpu.memory_space<vmem>>, %arg9: memref<8x40xf32, #tpu.memory_space<vmem>>, %arg10: memref<8x1xf32, #tpu.memory_space<vmem>>, %arg11: memref<8x24xf32, #tpu.memory_space<vmem>>, %arg12: memref<8x1xf32, #tpu.memory_space<vmem>>, %arg13: memref<16x88xf32, #tpu.memory_space<vmem>>, %arg14: memref<16x1xf32, #tpu.memory_space<vmem>>, %arg15: memref<16x144xf32, #tpu.memory_space<vmem>>, %arg16: memref<16x1xf32, #tpu.memory_space<vmem>>, %arg17: memref<16x112xf32, #tpu.memory_space<vmem>>, %arg18: memref<16x1xf32, #tpu.memory_space<vmem>>, %arg19: memref<1x80xf32, #tpu.memory_space<vmem>>, %arg20: memref<1x1xf32, #tpu.memory_space<vmem>>, %arg21: memref<1x2x128xf32, #tpu.memory_space<vmem>>) attributes {dimension_semantics = [#tpu.dimension_semantics<parallel>], iteration_bounds = array<i64: 2>, scalar_prefetch = 0 : i64, scratch_operands = 0 : i64, tpu.core_type = #tpu.core_type<tc>, window_params = [{transform_indices = @transform_0, window_bounds = array<i64: 1, 1, 512>}, {pipeline_mode = #tpu.pipeline_mode<synchronous>, transform_indices = @transform_1, window_bounds = array<i64: 128, 78>}, {pipeline_mode = #tpu.pipeline_mode<synchronous>, transform_indices = @transform_2, window_bounds = array<i64: 78, 13>}, {pipeline_mode = #tpu.pipeline_mode<synchronous>, transform_indices = @transform_3, window_bounds = array<i64: 1, 256>}, {pipeline_mode = #tpu.pipeline_mode<synchronous>, transform_indices = @transform_4, window_bounds = array<i64: 8, 15>}, {pipeline_mode = #tpu.pipeline_mode<synchronous>, transform_indices = @transform_5, window_bounds = array<i64: 8, 1>}, {pipeline_mode = #tpu.pipeline_mode<synchronous>, transform_indices = @transform_6, window_bounds = array<i64: 8, 56>}, {pipeline_mode = #tpu.pipeline_mode<synchronous>, transform_indices = @transform_7, window_bounds = array<i64: 8, 1>}, {pipeline_mode = #tpu.pipeline_mode<synchronous>, transform_indices = @transform_8, window_bounds = array<i64: 8, 40>}, {pipeline_mode = #tpu.pipeline_mode<synchronous>, transform_indices = @transform_9, window_bounds = array<i64: 8, 1>}, {pipeline_mode = #tpu.pipeline_mode<synchronous>, transform_indices = @transform_10, window_bounds = array<i64: 8, 24>}, {pipeline_mode = #tpu.pipeline_mode<synchronous>, transform_indices = @transform_11, window_bounds = array<i64: 8, 1>}, {pipeline_mode = #tpu.pipeline_mode<synchronous>, transform_indices = @transform_12, window_bounds = array<i64: 16, 88>}, {pipeline_mode = #tpu.pipeline_mode<synchronous>, transform_indices = @transform_13, window_bounds = array<i64: 16, 1>}, {pipeline_mode = #tpu.pipeline_mode<synchronous>, transform_indices = @transform_14, window_bounds = array<i64: 16, 144>}, {pipeline_mode = #tpu.pipeline_mode<synchronous>, transform_indices = @transform_15, window_bounds = array<i64: 16, 1>}, {pipeline_mode = #tpu.pipeline_mode<synchronous>, transform_indices = @transform_16, window_bounds = array<i64: 16, 112>}, {pipeline_mode = #tpu.pipeline_mode<synchronous>, transform_indices = @transform_17, window_bounds = array<i64: 16, 1>}, {pipeline_mode = #tpu.pipeline_mode<synchronous>, transform_indices = @transform_18, window_bounds = array<i64: 1, 80>}, {pipeline_mode = #tpu.pipeline_mode<synchronous>, transform_indices = @transform_19, window_bounds = array<i64: 1, 1>}, {transform_indices = @transform_20, window_bounds = array<i64: 1, 2, 128>}]} {
    %c0 = arith.constant 0 : index
    %c0_0 = arith.constant 0 : index
    %c0_1 = arith.constant 0 : index
    %0 = vector.load %arg1[%c0, %c0_0, %c0_1] : memref<1x1x512xf32, #tpu.memory_space<vmem>>, vector<1x1x512xf32>
    %1 = vector.shape_cast %0 : vector<1x1x512xf32> to vector<1x512xf32>
    %c0_2 = arith.constant 0 : index
    %c0_3 = arith.constant 0 : index
    %2 = vector.load %arg5[%c0_2, %c0_3] : memref<8x15xf32, #tpu.memory_space<vmem>>, vector<8x15xf32>
    %c0_4 = arith.constant 0 : index
    %c0_5 = arith.constant 0 : index
    %3 = vector.load %arg6[%c0_4, %c0_5] : memref<8x1xf32, #tpu.memory_space<vmem>>, vector<8x1xf32>
    %c511_i32 = arith.constant 511 : i32
    %4 = tpu.dynamic_rotate %1 by %c511_i32 dim 1 : vector<1x512xf32>, i32 -> vector<1x512xf32>
    %c510_i32 = arith.constant 510 : i32
    %5 = tpu.dynamic_rotate %1 by %c510_i32 dim 1 : vector<1x512xf32>, i32 -> vector<1x512xf32>
    %c509_i32 = arith.constant 509 : i32
    %6 = tpu.dynamic_rotate %1 by %c509_i32 dim 1 : vector<1x512xf32>, i32 -> vector<1x512xf32>
    %c508_i32 = arith.constant 508 : i32
    %7 = tpu.dynamic_rotate %1 by %c508_i32 dim 1 : vector<1x512xf32>, i32 -> vector<1x512xf32>
    %c507_i32 = arith.constant 507 : i32
    %8 = tpu.dynamic_rotate %1 by %c507_i32 dim 1 : vector<1x512xf32>, i32 -> vector<1x512xf32>
    %c506_i32 = arith.constant 506 : i32
    %9 = tpu.dynamic_rotate %1 by %c506_i32 dim 1 : vector<1x512xf32>, i32 -> vector<1x512xf32>
    %c505_i32 = arith.constant 505 : i32
    %10 = tpu.dynamic_rotate %1 by %c505_i32 dim 1 : vector<1x512xf32>, i32 -> vector<1x512xf32>
    %c504_i32 = arith.constant 504 : i32
    %11 = tpu.dynamic_rotate %1 by %c504_i32 dim 1 : vector<1x512xf32>, i32 -> vector<1x512xf32>
    %c503_i32 = arith.constant 503 : i32
    %12 = tpu.dynamic_rotate %1 by %c503_i32 dim 1 : vector<1x512xf32>, i32 -> vector<1x512xf32>
    %c502_i32 = arith.constant 502 : i32
    %13 = tpu.dynamic_rotate %1 by %c502_i32 dim 1 : vector<1x512xf32>, i32 -> vector<1x512xf32>
    %c501_i32 = arith.constant 501 : i32
    %14 = tpu.dynamic_rotate %1 by %c501_i32 dim 1 : vector<1x512xf32>, i32 -> vector<1x512xf32>
    %c500_i32 = arith.constant 500 : i32
    %15 = tpu.dynamic_rotate %1 by %c500_i32 dim 1 : vector<1x512xf32>, i32 -> vector<1x512xf32>
    %c499_i32 = arith.constant 499 : i32
    %16 = tpu.dynamic_rotate %1 by %c499_i32 dim 1 : vector<1x512xf32>, i32 -> vector<1x512xf32>
    %c498_i32 = arith.constant 498 : i32
    %17 = tpu.dynamic_rotate %1 by %c498_i32 dim 1 : vector<1x512xf32>, i32 -> vector<1x512xf32>
    %18 = tpu.concatenate %1, %4, %5, %6, %7, %8, %9, %10, %11, %12, %13, %14, %15, %16, %17 in 0 : vector<1x512xf32>, vector<1x512xf32>, vector<1x512xf32>, vector<1x512xf32>, vector<1x512xf32>, vector<1x512xf32>, vector<1x512xf32>, vector<1x512xf32>, vector<1x512xf32>, vector<1x512xf32>, vector<1x512xf32>, vector<1x512xf32>, vector<1x512xf32>, vector<1x512xf32>, vector<1x512xf32> -> vector<15x512xf32>
    %cst = arith.constant dense<0.000000e+00> : vector<8x512xf32>
    %19 = tpu.matmul %2, %18, %cst {dimension_numbers = #tpu.dot_dimension_numbers<[1], [0], [0], [1], [0, 0, 1, 1], [], []>, precision = #tpu.contract_precision<fp32>} : vector<8x15xf32>, vector<15x512xf32>, vector<8x512xf32> -> vector<8x512xf32>
    %20 = vector.broadcast %3 : vector<8x1xf32> to vector<8x512xf32>
    %21 = arith.addf %19, %20 : vector<8x512xf32>
    %cst_6 = arith.constant 2.000000e-01 : f32
    %22 = vector.broadcast %cst_6 : f32 to vector<8x512xf32>
    %23 = arith.mulf %22, %21 : vector<8x512xf32>
    %24 = arith.maximumf %21, %23 : vector<8x512xf32>
    %c0_7 = arith.constant 0 : index
    %c0_8 = arith.constant 0 : index
    %25 = vector.load %arg7[%c0_7, %c0_8] : memref<8x56xf32, #tpu.memory_space<vmem>>, vector<8x56xf32>
    %c0_9 = arith.constant 0 : index
    %c0_10 = arith.constant 0 : index
    %26 = vector.load %arg8[%c0_9, %c0_10] : memref<8x1xf32, #tpu.memory_space<vmem>>, vector<8x1xf32>
    %c511_i32_11 = arith.constant 511 : i32
    %27 = tpu.dynamic_rotate %24 by %c511_i32_11 dim 1 : vector<8x512xf32>, i32 -> vector<8x512xf32>
    %c510_i32_12 = arith.constant 510 : i32
    %28 = tpu.dynamic_rotate %24 by %c510_i32_12 dim 1 : vector<8x512xf32>, i32 -> vector<8x512xf32>
    %c509_i32_13 = arith.constant 509 : i32
    %29 = tpu.dynamic_rotate %24 by %c509_i32_13 dim 1 : vector<8x512xf32>, i32 -> vector<8x512xf32>
    %c508_i32_14 = arith.constant 508 : i32
    %30 = tpu.dynamic_rotate %24 by %c508_i32_14 dim 1 : vector<8x512xf32>, i32 -> vector<8x512xf32>
    %c507_i32_15 = arith.constant 507 : i32
    %31 = tpu.dynamic_rotate %24 by %c507_i32_15 dim 1 : vector<8x512xf32>, i32 -> vector<8x512xf32>
    %c506_i32_16 = arith.constant 506 : i32
    %32 = tpu.dynamic_rotate %24 by %c506_i32_16 dim 1 : vector<8x512xf32>, i32 -> vector<8x512xf32>
    %33 = tpu.concatenate %24, %27, %28, %29, %30, %31, %32 in 0 : vector<8x512xf32>, vector<8x512xf32>, vector<8x512xf32>, vector<8x512xf32>, vector<8x512xf32>, vector<8x512xf32>, vector<8x512xf32> -> vector<56x512xf32>
    %cst_17 = arith.constant dense<0.000000e+00> : vector<8x512xf32>
    %34 = tpu.matmul %25, %33, %cst_17 {dimension_numbers = #tpu.dot_dimension_numbers<[1], [0], [0], [1], [0, 0, 1, 1], [], []>, precision = #tpu.contract_precision<fp32>} : vector<8x56xf32>, vector<56x512xf32>, vector<8x512xf32> -> vector<8x512xf32>
    %35 = vector.broadcast %26 : vector<8x1xf32> to vector<8x512xf32>
    %36 = arith.addf %34, %35 : vector<8x512xf32>
    %cst_18 = arith.constant 2.000000e-01 : f32
    %37 = vector.broadcast %cst_18 : f32 to vector<8x512xf32>
    %38 = arith.mulf %37, %36 : vector<8x512xf32>
    %39 = arith.maximumf %36, %38 : vector<8x512xf32>
    %c0_19 = arith.constant 0 : index
    %c0_20 = arith.constant 0 : index
    %40 = vector.load %arg9[%c0_19, %c0_20] : memref<8x40xf32, #tpu.memory_space<vmem>>, vector<8x40xf32>
    %c0_21 = arith.constant 0 : index
    %c0_22 = arith.constant 0 : index
    %41 = vector.load %arg10[%c0_21, %c0_22] : memref<8x1xf32, #tpu.memory_space<vmem>>, vector<8x1xf32>
    %c511_i32_23 = arith.constant 511 : i32
    %42 = tpu.dynamic_rotate %39 by %c511_i32_23 dim 1 : vector<8x512xf32>, i32 -> vector<8x512xf32>
    %c510_i32_24 = arith.constant 510 : i32
    %43 = tpu.dynamic_rotate %39 by %c510_i32_24 dim 1 : vector<8x512xf32>, i32 -> vector<8x512xf32>
    %c509_i32_25 = arith.constant 509 : i32
    %44 = tpu.dynamic_rotate %39 by %c509_i32_25 dim 1 : vector<8x512xf32>, i32 -> vector<8x512xf32>
    %c508_i32_26 = arith.constant 508 : i32
    %45 = tpu.dynamic_rotate %39 by %c508_i32_26 dim 1 : vector<8x512xf32>, i32 -> vector<8x512xf32>
    %46 = tpu.concatenate %39, %42, %43, %44, %45 in 0 : vector<8x512xf32>, vector<8x512xf32>, vector<8x512xf32>, vector<8x512xf32>, vector<8x512xf32> -> vector<40x512xf32>
    %cst_27 = arith.constant dense<0.000000e+00> : vector<8x512xf32>
    %47 = tpu.matmul %40, %46, %cst_27 {dimension_numbers = #tpu.dot_dimension_numbers<[1], [0], [0], [1], [0, 0, 1, 1], [], []>, precision = #tpu.contract_precision<fp32>} : vector<8x40xf32>, vector<40x512xf32>, vector<8x512xf32> -> vector<8x512xf32>
    %48 = vector.broadcast %41 : vector<8x1xf32> to vector<8x512xf32>
    %49 = arith.addf %47, %48 : vector<8x512xf32>
    %cst_28 = arith.constant 2.000000e-01 : f32
    %50 = vector.broadcast %cst_28 : f32 to vector<8x512xf32>
    %51 = arith.mulf %50, %49 : vector<8x512xf32>
    %52 = arith.maximumf %49, %51 : vector<8x512xf32>
    %c0_29 = arith.constant 0 : index
    %c0_30 = arith.constant 0 : index
    %53 = vector.load %arg11[%c0_29, %c0_30] : memref<8x24xf32, #tpu.memory_space<vmem>>, vector<8x24xf32>
    %c0_31 = arith.constant 0 : index
    %c0_32 = arith.constant 0 : index
    %54 = vector.load %arg12[%c0_31, %c0_32] : memref<8x1xf32, #tpu.memory_space<vmem>>, vector<8x1xf32>
    %c511_i32_33 = arith.constant 511 : i32
    %55 = tpu.dynamic_rotate %52 by %c511_i32_33 dim 1 : vector<8x512xf32>, i32 -> vector<8x512xf32>
    %c510_i32_34 = arith.constant 510 : i32
    %56 = tpu.dynamic_rotate %52 by %c510_i32_34 dim 1 : vector<8x512xf32>, i32 -> vector<8x512xf32>
    %57 = tpu.concatenate %52, %55, %56 in 0 : vector<8x512xf32>, vector<8x512xf32>, vector<8x512xf32> -> vector<24x512xf32>
    %cst_35 = arith.constant dense<0.000000e+00> : vector<8x512xf32>
    %58 = tpu.matmul %53, %57, %cst_35 {dimension_numbers = #tpu.dot_dimension_numbers<[1], [0], [0], [1], [0, 0, 1, 1], [], []>, precision = #tpu.contract_precision<fp32>} : vector<8x24xf32>, vector<24x512xf32>, vector<8x512xf32> -> vector<8x512xf32>
    %59 = vector.broadcast %54 : vector<8x1xf32> to vector<8x512xf32>
    %60 = arith.addf %58, %59 : vector<8x512xf32>
    %61 = vector.extract_strided_slice %60 {offsets = [0, 0], sizes = [8, 128], strides = [1, 1]} : vector<8x512xf32> to vector<8x128xf32>
    %62 = vector.extract_strided_slice %60 {offsets = [0, 128], sizes = [8, 128], strides = [1, 1]} : vector<8x512xf32> to vector<8x128xf32>
    %63 = vector.extract_strided_slice %60 {offsets = [0, 256], sizes = [8, 128], strides = [1, 1]} : vector<8x512xf32> to vector<8x128xf32>
    %64 = vector.extract_strided_slice %60 {offsets = [0, 384], sizes = [8, 128], strides = [1, 1]} : vector<8x512xf32> to vector<8x128xf32>
    %65 = tpu.concatenate %61, %62, %63, %64 in 0 : vector<8x128xf32>, vector<8x128xf32>, vector<8x128xf32>, vector<8x128xf32> -> vector<32x128xf32>
    %c0_36 = arith.constant 0 : index
    %c0_37 = arith.constant 0 : index
    %66 = vector.load %arg2[%c0_36, %c0_37] : memref<128x78xf32, #tpu.memory_space<vmem>>, vector<128x78xf32>
    %cst_38 = arith.constant dense<0.000000e+00> : vector<32x78xf32>
    %67 = tpu.matmul %65, %66, %cst_38 {dimension_numbers = #tpu.dot_dimension_numbers<[1], [0], [0], [1], [0, 0, 1, 1], [], []>, precision = #tpu.contract_precision<fp32>} : vector<32x128xf32>, vector<128x78xf32>, vector<32x78xf32> -> vector<32x78xf32>
    %68 = vector.extract_strided_slice %67 {offsets = [0, 0], sizes = [16, 39], strides = [1, 1]} : vector<32x78xf32> to vector<16x39xf32>
    %69 = vector.extract_strided_slice %67 {offsets = [0, 39], sizes = [16, 39], strides = [1, 1]} : vector<32x78xf32> to vector<16x39xf32>
    %70 = vector.extract_strided_slice %67 {offsets = [16, 0], sizes = [16, 39], strides = [1, 1]} : vector<32x78xf32> to vector<16x39xf32>
    %71 = vector.extract_strided_slice %67 {offsets = [16, 39], sizes = [16, 39], strides = [1, 1]} : vector<32x78xf32> to vector<16x39xf32>
    %72 = arith.mulf %68, %70 : vector<16x39xf32>
    %73 = arith.mulf %69, %71 : vector<16x39xf32>
    %74 = arith.addf %72, %73 : vector<16x39xf32>
    %75 = arith.mulf %68, %71 : vector<16x39xf32>
    %76 = arith.mulf %69, %70 : vector<16x39xf32>
    %77 = arith.subf %75, %76 : vector<16x39xf32>
    %78 = arith.mulf %74, %74 : vector<16x39xf32>
    %79 = arith.mulf %77, %77 : vector<16x39xf32>
    %80 = arith.addf %78, %79 : vector<16x39xf32>
    %81 = math.sqrt %80 : vector<16x39xf32>
    %cst_39 = arith.constant 1.000000e-03 : f32
    %82 = vector.broadcast %cst_39 : f32 to vector<16x39xf32>
    %83 = arith.addf %81, %82 : vector<16x39xf32>
    %84 = tpu.reciprocal %83 {approx = true} : vector<16x39xf32> -> vector<16x39xf32>
    %85 = arith.mulf %74, %84 : vector<16x39xf32>
    %86 = arith.mulf %77, %84 : vector<16x39xf32>
    %87 = tpu.concatenate %85, %86 in 1 : vector<16x39xf32>, vector<16x39xf32> -> vector<16x78xf32>
    %c0_40 = arith.constant 0 : index
    %c0_41 = arith.constant 0 : index
    %88 = vector.load %arg3[%c0_40, %c0_41] : memref<78x13xf32, #tpu.memory_space<vmem>>, vector<78x13xf32>
    %cst_42 = arith.constant dense<0.000000e+00> : vector<16x13xf32>
    %89 = tpu.matmul %87, %88, %cst_42 {dimension_numbers = #tpu.dot_dimension_numbers<[1], [0], [0], [1], [0, 0, 1, 1], [], []>, precision = #tpu.contract_precision<fp32>} : vector<16x78xf32>, vector<78x13xf32>, vector<16x13xf32> -> vector<16x13xf32>
    %cst_43 = arith.constant 0.000000e+00 : f32
    %90 = vector.broadcast %cst_43 : f32 to vector<8x5xf32>
    %91 = vector.extract_strided_slice %89 {offsets = [0, 0], sizes = [8, 13], strides = [1, 1]} : vector<16x13xf32> to vector<8x13xf32>
    %cst_44 = arith.constant 0.000000e+00 : f32
    %92 = vector.broadcast %cst_44 : f32 to vector<8x110xf32>
    %cst_45 = arith.constant 0.000000e+00 : f32
    %93 = vector.broadcast %cst_45 : f32 to vector<8x5xf32>
    %94 = vector.extract_strided_slice %89 {offsets = [8, 0], sizes = [8, 13], strides = [1, 1]} : vector<16x13xf32> to vector<8x13xf32>
    %cst_46 = arith.constant 0.000000e+00 : f32
    %95 = vector.broadcast %cst_46 : f32 to vector<8x110xf32>
    %96 = tpu.concatenate %90, %91, %92, %93, %94, %95 in 1 : vector<8x5xf32>, vector<8x13xf32>, vector<8x110xf32>, vector<8x5xf32>, vector<8x13xf32>, vector<8x110xf32> -> vector<8x256xf32>
    %c0_47 = arith.constant 0 : index
    %c0_48 = arith.constant 0 : index
    %97 = vector.load %arg4[%c0_47, %c0_48] : memref<1x256xf32, #tpu.memory_space<vmem>>, vector<1x256xf32>
    %c0_49 = arith.constant 0 : index
    %c0_50 = arith.constant 0 : index
    %98 = vector.load %arg13[%c0_49, %c0_50] : memref<16x88xf32, #tpu.memory_space<vmem>>, vector<16x88xf32>
    %c0_51 = arith.constant 0 : index
    %c0_52 = arith.constant 0 : index
    %99 = vector.load %arg14[%c0_51, %c0_52] : memref<16x1xf32, #tpu.memory_space<vmem>>, vector<16x1xf32>
    %c5_i32 = arith.constant 5 : i32
    %100 = tpu.dynamic_rotate %96 by %c5_i32 dim 1 : vector<8x256xf32>, i32 -> vector<8x256xf32>
    %c4_i32 = arith.constant 4 : i32
    %101 = tpu.dynamic_rotate %96 by %c4_i32 dim 1 : vector<8x256xf32>, i32 -> vector<8x256xf32>
    %c3_i32 = arith.constant 3 : i32
    %102 = tpu.dynamic_rotate %96 by %c3_i32 dim 1 : vector<8x256xf32>, i32 -> vector<8x256xf32>
    %c2_i32 = arith.constant 2 : i32
    %103 = tpu.dynamic_rotate %96 by %c2_i32 dim 1 : vector<8x256xf32>, i32 -> vector<8x256xf32>
    %c1_i32 = arith.constant 1 : i32
    %104 = tpu.dynamic_rotate %96 by %c1_i32 dim 1 : vector<8x256xf32>, i32 -> vector<8x256xf32>
    %c255_i32 = arith.constant 255 : i32
    %105 = tpu.dynamic_rotate %96 by %c255_i32 dim 1 : vector<8x256xf32>, i32 -> vector<8x256xf32>
    %c254_i32 = arith.constant 254 : i32
    %106 = tpu.dynamic_rotate %96 by %c254_i32 dim 1 : vector<8x256xf32>, i32 -> vector<8x256xf32>
    %c253_i32 = arith.constant 253 : i32
    %107 = tpu.dynamic_rotate %96 by %c253_i32 dim 1 : vector<8x256xf32>, i32 -> vector<8x256xf32>
    %c252_i32 = arith.constant 252 : i32
    %108 = tpu.dynamic_rotate %96 by %c252_i32 dim 1 : vector<8x256xf32>, i32 -> vector<8x256xf32>
    %c251_i32 = arith.constant 251 : i32
    %109 = tpu.dynamic_rotate %96 by %c251_i32 dim 1 : vector<8x256xf32>, i32 -> vector<8x256xf32>
    %110 = tpu.concatenate %100, %101, %102, %103, %104, %96, %105, %106, %107, %108, %109 in 0 : vector<8x256xf32>, vector<8x256xf32>, vector<8x256xf32>, vector<8x256xf32>, vector<8x256xf32>, vector<8x256xf32>, vector<8x256xf32>, vector<8x256xf32>, vector<8x256xf32>, vector<8x256xf32>, vector<8x256xf32> -> vector<88x256xf32>
    %cst_53 = arith.constant dense<0.000000e+00> : vector<16x256xf32>
    %111 = tpu.matmul %98, %110, %cst_53 {dimension_numbers = #tpu.dot_dimension_numbers<[1], [0], [0], [1], [0, 0, 1, 1], [], []>} : vector<16x88xf32>, vector<88x256xf32>, vector<16x256xf32> -> vector<16x256xf32>
    %112 = vector.broadcast %99 : vector<16x1xf32> to vector<16x256xf32>
    %113 = arith.addf %111, %112 : vector<16x256xf32>
    %cst_54 = arith.constant 2.000000e-01 : f32
    %114 = vector.broadcast %cst_54 : f32 to vector<16x256xf32>
    %115 = arith.mulf %114, %113 : vector<16x256xf32>
    %116 = arith.maximumf %113, %115 : vector<16x256xf32>
    %117 = vector.broadcast %97 : vector<1x256xf32> to vector<16x256xf32>
    %118 = arith.mulf %116, %117 : vector<16x256xf32>
    %c0_55 = arith.constant 0 : index
    %c0_56 = arith.constant 0 : index
    %119 = vector.load %arg15[%c0_55, %c0_56] : memref<16x144xf32, #tpu.memory_space<vmem>>, vector<16x144xf32>
    %c0_57 = arith.constant 0 : index
    %c0_58 = arith.constant 0 : index
    %120 = vector.load %arg16[%c0_57, %c0_58] : memref<16x1xf32, #tpu.memory_space<vmem>>, vector<16x1xf32>
    %c4_i32_59 = arith.constant 4 : i32
    %121 = tpu.dynamic_rotate %118 by %c4_i32_59 dim 1 : vector<16x256xf32>, i32 -> vector<16x256xf32>
    %c3_i32_60 = arith.constant 3 : i32
    %122 = tpu.dynamic_rotate %118 by %c3_i32_60 dim 1 : vector<16x256xf32>, i32 -> vector<16x256xf32>
    %c2_i32_61 = arith.constant 2 : i32
    %123 = tpu.dynamic_rotate %118 by %c2_i32_61 dim 1 : vector<16x256xf32>, i32 -> vector<16x256xf32>
    %c1_i32_62 = arith.constant 1 : i32
    %124 = tpu.dynamic_rotate %118 by %c1_i32_62 dim 1 : vector<16x256xf32>, i32 -> vector<16x256xf32>
    %c255_i32_63 = arith.constant 255 : i32
    %125 = tpu.dynamic_rotate %118 by %c255_i32_63 dim 1 : vector<16x256xf32>, i32 -> vector<16x256xf32>
    %c254_i32_64 = arith.constant 254 : i32
    %126 = tpu.dynamic_rotate %118 by %c254_i32_64 dim 1 : vector<16x256xf32>, i32 -> vector<16x256xf32>
    %c253_i32_65 = arith.constant 253 : i32
    %127 = tpu.dynamic_rotate %118 by %c253_i32_65 dim 1 : vector<16x256xf32>, i32 -> vector<16x256xf32>
    %c252_i32_66 = arith.constant 252 : i32
    %128 = tpu.dynamic_rotate %118 by %c252_i32_66 dim 1 : vector<16x256xf32>, i32 -> vector<16x256xf32>
    %129 = tpu.concatenate %121, %122, %123, %124, %118, %125, %126, %127, %128 in 0 : vector<16x256xf32>, vector<16x256xf32>, vector<16x256xf32>, vector<16x256xf32>, vector<16x256xf32>, vector<16x256xf32>, vector<16x256xf32>, vector<16x256xf32>, vector<16x256xf32> -> vector<144x256xf32>
    %cst_67 = arith.constant dense<0.000000e+00> : vector<16x256xf32>
    %130 = tpu.matmul %119, %129, %cst_67 {dimension_numbers = #tpu.dot_dimension_numbers<[1], [0], [0], [1], [0, 0, 1, 1], [], []>} : vector<16x144xf32>, vector<144x256xf32>, vector<16x256xf32> -> vector<16x256xf32>
    %131 = vector.broadcast %120 : vector<16x1xf32> to vector<16x256xf32>
    %132 = arith.addf %130, %131 : vector<16x256xf32>
    %cst_68 = arith.constant 2.000000e-01 : f32
    %133 = vector.broadcast %cst_68 : f32 to vector<16x256xf32>
    %134 = arith.mulf %133, %132 : vector<16x256xf32>
    %135 = arith.maximumf %132, %134 : vector<16x256xf32>
    %136 = vector.broadcast %97 : vector<1x256xf32> to vector<16x256xf32>
    %137 = arith.mulf %135, %136 : vector<16x256xf32>
    %c0_69 = arith.constant 0 : index
    %c0_70 = arith.constant 0 : index
    %138 = vector.load %arg17[%c0_69, %c0_70] : memref<16x112xf32, #tpu.memory_space<vmem>>, vector<16x112xf32>
    %c0_71 = arith.constant 0 : index
    %c0_72 = arith.constant 0 : index
    %139 = vector.load %arg18[%c0_71, %c0_72] : memref<16x1xf32, #tpu.memory_space<vmem>>, vector<16x1xf32>
    %c3_i32_73 = arith.constant 3 : i32
    %140 = tpu.dynamic_rotate %137 by %c3_i32_73 dim 1 : vector<16x256xf32>, i32 -> vector<16x256xf32>
    %c2_i32_74 = arith.constant 2 : i32
    %141 = tpu.dynamic_rotate %137 by %c2_i32_74 dim 1 : vector<16x256xf32>, i32 -> vector<16x256xf32>
    %c1_i32_75 = arith.constant 1 : i32
    %142 = tpu.dynamic_rotate %137 by %c1_i32_75 dim 1 : vector<16x256xf32>, i32 -> vector<16x256xf32>
    %c255_i32_76 = arith.constant 255 : i32
    %143 = tpu.dynamic_rotate %137 by %c255_i32_76 dim 1 : vector<16x256xf32>, i32 -> vector<16x256xf32>
    %c254_i32_77 = arith.constant 254 : i32
    %144 = tpu.dynamic_rotate %137 by %c254_i32_77 dim 1 : vector<16x256xf32>, i32 -> vector<16x256xf32>
    %c253_i32_78 = arith.constant 253 : i32
    %145 = tpu.dynamic_rotate %137 by %c253_i32_78 dim 1 : vector<16x256xf32>, i32 -> vector<16x256xf32>
    %146 = tpu.concatenate %140, %141, %142, %137, %143, %144, %145 in 0 : vector<16x256xf32>, vector<16x256xf32>, vector<16x256xf32>, vector<16x256xf32>, vector<16x256xf32>, vector<16x256xf32>, vector<16x256xf32> -> vector<112x256xf32>
    %cst_79 = arith.constant dense<0.000000e+00> : vector<16x256xf32>
    %147 = tpu.matmul %138, %146, %cst_79 {dimension_numbers = #tpu.dot_dimension_numbers<[1], [0], [0], [1], [0, 0, 1, 1], [], []>} : vector<16x112xf32>, vector<112x256xf32>, vector<16x256xf32> -> vector<16x256xf32>
    %148 = vector.broadcast %139 : vector<16x1xf32> to vector<16x256xf32>
    %149 = arith.addf %147, %148 : vector<16x256xf32>
    %cst_80 = arith.constant 2.000000e-01 : f32
    %150 = vector.broadcast %cst_80 : f32 to vector<16x256xf32>
    %151 = arith.mulf %150, %149 : vector<16x256xf32>
    %152 = arith.maximumf %149, %151 : vector<16x256xf32>
    %153 = vector.broadcast %97 : vector<1x256xf32> to vector<16x256xf32>
    %154 = arith.mulf %152, %153 : vector<16x256xf32>
    %c0_81 = arith.constant 0 : index
    %c0_82 = arith.constant 0 : index
    %155 = vector.load %arg19[%c0_81, %c0_82] : memref<1x80xf32, #tpu.memory_space<vmem>>, vector<1x80xf32>
    %c0_83 = arith.constant 0 : index
    %c0_84 = arith.constant 0 : index
    %156 = vector.load %arg20[%c0_83, %c0_84] : memref<1x1xf32, #tpu.memory_space<vmem>>, vector<1x1xf32>
    %c2_i32_85 = arith.constant 2 : i32
    %157 = tpu.dynamic_rotate %154 by %c2_i32_85 dim 1 : vector<16x256xf32>, i32 -> vector<16x256xf32>
    %c1_i32_86 = arith.constant 1 : i32
    %158 = tpu.dynamic_rotate %154 by %c1_i32_86 dim 1 : vector<16x256xf32>, i32 -> vector<16x256xf32>
    %c255_i32_87 = arith.constant 255 : i32
    %159 = tpu.dynamic_rotate %154 by %c255_i32_87 dim 1 : vector<16x256xf32>, i32 -> vector<16x256xf32>
    %c254_i32_88 = arith.constant 254 : i32
    %160 = tpu.dynamic_rotate %154 by %c254_i32_88 dim 1 : vector<16x256xf32>, i32 -> vector<16x256xf32>
    %161 = tpu.concatenate %157, %158, %154, %159, %160 in 0 : vector<16x256xf32>, vector<16x256xf32>, vector<16x256xf32>, vector<16x256xf32>, vector<16x256xf32> -> vector<80x256xf32>
    %cst_89 = arith.constant dense<0.000000e+00> : vector<1x256xf32>
    %162 = tpu.matmul %155, %161, %cst_89 {dimension_numbers = #tpu.dot_dimension_numbers<[1], [0], [0], [1], [0, 0, 1, 1], [], []>} : vector<1x80xf32>, vector<80x256xf32>, vector<1x256xf32> -> vector<1x256xf32>
    %163 = vector.broadcast %156 : vector<1x1xf32> to vector<1x256xf32>
    %164 = arith.addf %162, %163 : vector<1x256xf32>
    %165 = vector.extract_strided_slice %164 {offsets = [0, 0], sizes = [1, 128], strides = [1, 1]} : vector<1x256xf32> to vector<1x128xf32>
    %166 = vector.extract_strided_slice %164 {offsets = [0, 128], sizes = [1, 128], strides = [1, 1]} : vector<1x256xf32> to vector<1x128xf32>
    %167 = tpu.concatenate %165, %166 in 0 : vector<1x128xf32>, vector<1x128xf32> -> vector<2x128xf32>
    %c0_90 = arith.constant 0 : index
    %c0_91 = arith.constant 0 : index
    %c0_92 = arith.constant 0 : index
    %168 = vector.load %arg21[%c0_90, %c0_91, %c0_92] : memref<1x2x128xf32, #tpu.memory_space<vmem>>, vector<1x2x128xf32>
    %169 = vector.shape_cast %168 : vector<1x2x128xf32> to vector<2x128xf32>
    %170 = vector.shape_cast %167 : vector<2x128xf32> to vector<1x2x128xf32>
    tpu.vector_store %arg21[%c0_90, %c0_91, %c0_92], %170 {strides = array<i32>} : memref<1x2x128xf32, #tpu.memory_space<vmem>>, vector<1x2x128xf32>,
    return
  }
  func.func @transform_0(%arg0: i32) -> (i32, i32, i32) {
    %c0_i32 = arith.constant 0 : i32
    %c0_i32_0 = arith.constant 0 : i32
    %c0_i32_1 = arith.constant 0 : i32
    return %arg0, %c0_i32, %c0_i32_0 : i32, i32, i32
  }
  func.func @transform_1(%arg0: i32) -> (i32, i32) {
    %c0_i32 = arith.constant 0 : i32
    %c0_i32_0 = arith.constant 0 : i32
    %c0_i32_1 = arith.constant 0 : i32
    return %c0_i32, %c0_i32_0 : i32, i32
  }
  func.func @transform_2(%arg0: i32) -> (i32, i32) {
    %c0_i32 = arith.constant 0 : i32
    %c0_i32_0 = arith.constant 0 : i32
    %c0_i32_1 = arith.constant 0 : i32
    return %c0_i32, %c0_i32_0 : i32, i32
  }
  func.func @transform_3(%arg0: i32) -> (i32, i32) {
    %c0_i32 = arith.constant 0 : i32
    %c0_i32_0 = arith.constant 0 : i32
    %c0_i32_1 = arith.constant 0 : i32
    return %c0_i32, %c0_i32_0 : i32, i32
  }
  func.func @transform_4(%arg0: i32) -> (i32, i32) {
    %c0_i32 = arith.constant 0 : i32
    %c0_i32_0 = arith.constant 0 : i32
    %c0_i32_1 = arith.constant 0 : i32
    return %c0_i32, %c0_i32_0 : i32, i32
  }
  func.func @transform_5(%arg0: i32) -> (i32, i32) {
    %c0_i32 = arith.constant 0 : i32
    %c0_i32_0 = arith.constant 0 : i32
    %c0_i32_1 = arith.constant 0 : i32
    return %c0_i32, %c0_i32_0 : i32, i32
  }
  func.func @transform_6(%arg0: i32) -> (i32, i32) {
    %c0_i32 = arith.constant 0 : i32
    %c0_i32_0 = arith.constant 0 : i32
    %c0_i32_1 = arith.constant 0 : i32
    return %c0_i32, %c0_i32_0 : i32, i32
  }
  func.func @transform_7(%arg0: i32) -> (i32, i32) {
    %c0_i32 = arith.constant 0 : i32
    %c0_i32_0 = arith.constant 0 : i32
    %c0_i32_1 = arith.constant 0 : i32
    return %c0_i32, %c0_i32_0 : i32, i32
  }
  func.func @transform_8(%arg0: i32) -> (i32, i32) {
    %c0_i32 = arith.constant 0 : i32
    %c0_i32_0 = arith.constant 0 : i32
    %c0_i32_1 = arith.constant 0 : i32
    return %c0_i32, %c0_i32_0 : i32, i32
  }
  func.func @transform_9(%arg0: i32) -> (i32, i32) {
    %c0_i32 = arith.constant 0 : i32
    %c0_i32_0 = arith.constant 0 : i32
    %c0_i32_1 = arith.constant 0 : i32
    return %c0_i32, %c0_i32_0 : i32, i32
  }
  func.func @transform_10(%arg0: i32) -> (i32, i32) {
    %c0_i32 = arith.constant 0 : i32
    %c0_i32_0 = arith.constant 0 : i32
    %c0_i32_1 = arith.constant 0 : i32
    return %c0_i32, %c0_i32_0 : i32, i32
  }
  func.func @transform_11(%arg0: i32) -> (i32, i32) {
    %c0_i32 = arith.constant 0 : i32
    %c0_i32_0 = arith.constant 0 : i32
    %c0_i32_1 = arith.constant 0 : i32
    return %c0_i32, %c0_i32_0 : i32, i32
  }
  func.func @transform_12(%arg0: i32) -> (i32, i32) {
    %c0_i32 = arith.constant 0 : i32
    %c0_i32_0 = arith.constant 0 : i32
    %c0_i32_1 = arith.constant 0 : i32
    return %c0_i32, %c0_i32_0 : i32, i32
  }
  func.func @transform_13(%arg0: i32) -> (i32, i32) {
    %c0_i32 = arith.constant 0 : i32
    %c0_i32_0 = arith.constant 0 : i32
    %c0_i32_1 = arith.constant 0 : i32
    return %c0_i32, %c0_i32_0 : i32, i32
  }
  func.func @transform_14(%arg0: i32) -> (i32, i32) {
    %c0_i32 = arith.constant 0 : i32
    %c0_i32_0 = arith.constant 0 : i32
    %c0_i32_1 = arith.constant 0 : i32
    return %c0_i32, %c0_i32_0 : i32, i32
  }
  func.func @transform_15(%arg0: i32) -> (i32, i32) {
    %c0_i32 = arith.constant 0 : i32
    %c0_i32_0 = arith.constant 0 : i32
    %c0_i32_1 = arith.constant 0 : i32
    return %c0_i32, %c0_i32_0 : i32, i32
  }
  func.func @transform_16(%arg0: i32) -> (i32, i32) {
    %c0_i32 = arith.constant 0 : i32
    %c0_i32_0 = arith.constant 0 : i32
    %c0_i32_1 = arith.constant 0 : i32
    return %c0_i32, %c0_i32_0 : i32, i32
  }
  func.func @transform_17(%arg0: i32) -> (i32, i32) {
    %c0_i32 = arith.constant 0 : i32
    %c0_i32_0 = arith.constant 0 : i32
    %c0_i32_1 = arith.constant 0 : i32
    return %c0_i32, %c0_i32_0 : i32, i32
  }
  func.func @transform_18(%arg0: i32) -> (i32, i32) {
    %c0_i32 = arith.constant 0 : i32
    %c0_i32_0 = arith.constant 0 : i32
    %c0_i32_1 = arith.constant 0 : i32
    return %c0_i32, %c0_i32_0 : i32, i32
  }
  func.func @transform_19(%arg0: i32) -> (i32, i32) {
    %c0_i32 = arith.constant 0 : i32
    %c0_i32_0 = arith.constant 0 : i32
    %c0_i32_1 = arith.constant 0 : i32
    return %c0_i32, %c0_i32_0 : i32, i32
  }
  func.func @transform_20(%arg0: i32) -> (i32, i32, i32) {
    %c0_i32 = arith.constant 0 : i32
    %c0_i32_0 = arith.constant 0 : i32
    %c0_i32_1 = arith.constant 0 : i32
    return %arg0, %c0_i32, %c0_i32_0 : i32, i32, i32
  }
}

module attributes {stable_mosaic.version = 11 : i64} {
  func.func @_ngcc_fused_kernel(%arg0: i32, %arg1: memref<1x1x512xf32, #tpu.memory_space<vmem>>, %arg2: memref<128x78xf32, #tpu.memory_space<vmem>>, %arg3: memref<78x13xf32, #tpu.memory_space<vmem>>, %arg4: memref<1x256xf32, #tpu.memory_space<vmem>>, %arg5: memref<8x15xf32, #tpu.memory_space<vmem>>, %arg6: memref<8x1xf32, #tpu.memory_space<vmem>>, %arg7: memref<8x56xf32, #tpu.memory_space<vmem>>, %arg8: memref<8x1xf32, #tpu.memory_space<vmem>>, %arg9: memref<8x40xf32, #tpu.memory_space<vmem>>, %arg10: memref<8x1xf32, #tpu.memory_space<vmem>>, %arg11: memref<8x24xf32, #tpu.memory_space<vmem>>, %arg12: memref<8x1xf32, #tpu.memory_space<vmem>>, %arg13: memref<16x88xf32, #tpu.memory_space<vmem>>, %arg14: memref<16x1xf32, #tpu.memory_space<vmem>>, %arg15: memref<16x144xf32, #tpu.memory_space<vmem>>, %arg16: memref<16x1xf32, #tpu.memory_space<vmem>>, %arg17: memref<16x112xf32, #tpu.memory_space<vmem>>, %arg18: memref<16x1xf32, #tpu.memory_space<vmem>>, %arg19: memref<1x80xf32, #tpu.memory_space<vmem>>, %arg20: memref<1x1xf32, #tpu.memory_space<vmem>>, %arg21: memref<1x2x128xf32, #tpu.memory_space<vmem>>) attributes {dimension_semantics = [#tpu.dimension_semantics<parallel>], iteration_bounds = array<i64: 2>, scalar_prefetch = 0 : i64, scratch_operands = 0 : i64, tpu.core_type = #tpu.core_type<tc>, window_params = [{transform_indices = @transform_0, window_bounds = array<i64: 1, 1, 512>}, {pipeline_mode = #tpu.pipeline_mode<synchronous>, transform_indices = @transform_1, window_bounds = array<i64: 128, 78>}, {pipeline_mode = #tpu.pipeline_mode<synchronous>, transform_indices = @transform_2, window_bounds = array<i64: 78, 13>}, {pipeline_mode = #tpu.pipeline_mode<synchronous>, transform_indices = @transform_3, window_bounds = array<i64: 1, 256>}, {pipeline_mode = #tpu.pipeline_mode<synchronous>, transform_indices = @transform_4, window_bounds = array<i64: 8, 15>}, {pipeline_mode = #tpu.pipeline_mode<synchronous>, transform_indices = @transform_5, window_bounds = array<i64: 8, 1>}, {pipeline_mode = #tpu.pipeline_mode<synchronous>, transform_indices = @transform_6, window_bounds = array<i64: 8, 56>}, {pipeline_mode = #tpu.pipeline_mode<synchronous>, transform_indices = @transform_7, window_bounds = array<i64: 8, 1>}, {pipeline_mode = #tpu.pipeline_mode<synchronous>, transform_indices = @transform_8, window_bounds = array<i64: 8, 40>}, {pipeline_mode = #tpu.pipeline_mode<synchronous>, transform_indices = @transform_9, window_bounds = array<i64: 8, 1>}, {pipeline_mode = #tpu.pipeline_mode<synchronous>, transform_indices = @transform_10, window_bounds = array<i64: 8, 24>}, {pipeline_mode = #tpu.pipeline_mode<synchronous>, transform_indices = @transform_11, window_bounds = array<i64: 8, 1>}, {pipeline_mode = #tpu.pipeline_mode<synchronous>, transform_indices = @transform_12, window_bounds = array<i64: 16, 88>}, {pipeline_mode = #tpu.pipeline_mode<synchronous>, transform_indices = @transform_13, window_bounds = array<i64: 16, 1>}, {pipeline_mode = #tpu.pipeline_mode<synchronous>, transform_indices = @transform_14, window_bounds = array<i64: 16, 144>}, {pipeline_mode = #tpu.pipeline_mode<synchronous>, transform_indices = @transform_15, window_bounds = array<i64: 16, 1>}, {pipeline_mode = #tpu.pipeline_mode<synchronous>, transform_indices = @transform_16, window_bounds = array<i64: 16, 112>}, {pipeline_mode = #tpu.pipeline_mode<synchronous>, transform_indices = @transform_17, window_bounds = array<i64: 16, 1>}, {pipeline_mode = #tpu.pipeline_mode<synchronous>, transform_indices = @transform_18, window_bounds = array<i64: 1, 80>}, {pipeline_mode = #tpu.pipeline_mode<synchronous>, transform_indices = @transform_19, window_bounds = array<i64: 1, 1>}, {transform_indices = @transform_20, window_bounds = array<i64: 1, 2, 128>}]} {
    %c0 = arith.constant 0 : index
    %c0_0 = arith.constant 0 : index
    %c0_1 = arith.constant 0 : index
    %0 = vector.load %arg1[%c0, %c0_0, %c0_1] : memref<1x1x512xf32, #tpu.memory_space<vmem>>, vector<1x1x512xf32>
    %1 = vector.shape_cast %0 : vector<1x1x512xf32> to vector<1x512xf32>
    %c0_2 = arith.constant 0 : index
    %c0_3 = arith.constant 0 : index
    %2 = vector.load %arg5[%c0_2, %c0_3] : memref<8x15xf32, #tpu.memory_space<vmem>>, vector<8x15xf32>
    %c0_4 = arith.constant 0 : index
    %c0_5 = arith.constant 0 : index
    %3 = vector.load %arg6[%c0_4, %c0_5] : memref<8x1xf32, #tpu.memory_space<vmem>>, vector<8x1xf32>
    %c511_i32 = arith.constant 511 : i32
    %4 = tpu.dynamic_rotate %1 by %c511_i32 dim 1 : vector<1x512xf32>, i32 -> vector<1x512xf32>
    %c510_i32 = arith.constant 510 : i32
    %5 = tpu.dynamic_rotate %1 by %c510_i32 dim 1 : vector<1x512xf32>, i32 -> vector<1x512xf32>
    %c509_i32 = arith.constant 509 : i32
    %6 = tpu.dynamic_rotate %1 by %c509_i32 dim 1 : vector<1x512xf32>, i32 -> vector<1x512xf32>
    %c508_i32 = arith.constant 508 : i32
    %7 = tpu.dynamic_rotate %1 by %c508_i32 dim 1 : vector<1x512xf32>, i32 -> vector<1x512xf32>
    %c507_i32 = arith.constant 507 : i32
    %8 = tpu.dynamic_rotate %1 by %c507_i32 dim 1 : vector<1x512xf32>, i32 -> vector<1x512xf32>
    %c506_i32 = arith.constant 506 : i32
    %9 = tpu.dynamic_rotate %1 by %c506_i32 dim 1 : vector<1x512xf32>, i32 -> vector<1x512xf32>
    %c505_i32 = arith.constant 505 : i32
    %10 = tpu.dynamic_rotate %1 by %c505_i32 dim 1 : vector<1x512xf32>, i32 -> vector<1x512xf32>
    %c504_i32 = arith.constant 504 : i32
    %11 = tpu.dynamic_rotate %1 by %c504_i32 dim 1 : vector<1x512xf32>, i32 -> vector<1x512xf32>
    %c503_i32 = arith.constant 503 : i32
    %12 = tpu.dynamic_rotate %1 by %c503_i32 dim 1 : vector<1x512xf32>, i32 -> vector<1x512xf32>
    %c502_i32 = arith.constant 502 : i32
    %13 = tpu.dynamic_rotate %1 by %c502_i32 dim 1 : vector<1x512xf32>, i32 -> vector<1x512xf32>
    %c501_i32 = arith.constant 501 : i32
    %14 = tpu.dynamic_rotate %1 by %c501_i32 dim 1 : vector<1x512xf32>, i32 -> vector<1x512xf32>
    %c500_i32 = arith.constant 500 : i32
    %15 = tpu.dynamic_rotate %1 by %c500_i32 dim 1 : vector<1x512xf32>, i32 -> vector<1x512xf32>
    %c499_i32 = arith.constant 499 : i32
    %16 = tpu.dynamic_rotate %1 by %c499_i32 dim 1 : vector<1x512xf32>, i32 -> vector<1x512xf32>
    %c498_i32 = arith.constant 498 : i32
    %17 = tpu.dynamic_rotate %1 by %c498_i32 dim 1 : vector<1x512xf32>, i32 -> vector<1x512xf32>
    %18 = tpu.concatenate %1, %4, %5, %6, %7, %8, %9, %10, %11, %12, %13, %14, %15, %16, %17 in 0 : vector<1x512xf32>, vector<1x512xf32>, vector<1x512xf32>, vector<1x512xf32>, vector<1x512xf32>, vector<1x512xf32>, vector<1x512xf32>, vector<1x512xf32>, vector<1x512xf32>, vector<1x512xf32>, vector<1x512xf32>, vector<1x512xf32>, vector<1x512xf32>, vector<1x512xf32>, vector<1x512xf32> -> vector<15x512xf32>
    %cst = arith.constant dense<0.000000e+00> : vector<8x512xf32>
    %19 = tpu.matmul %2, %18, %cst {dimension_numbers = #tpu.dot_dimension_numbers<[1], [0], [0], [1], [0, 0, 1, 1], [], []>, precision = #tpu.contract_precision<fp32>} : vector<8x15xf32>, vector<15x512xf32>, vector<8x512xf32> -> vector<8x512xf32>
    %20 = vector.broadcast %3 : vector<8x1xf32> to vector<8x512xf32>
    %21 = arith.addf %19, %20 : vector<8x512xf32>
    %cst_6 = arith.constant 2.000000e-01 : f32
    %22 = vector.broadcast %cst_6 : f32 to vector<8x512xf32>
    %23 = arith.mulf %22, %21 : vector<8x512xf32>
    %24 = arith.maximumf %21, %23 : vector<8x512xf32>
    %c0_7 = arith.constant 0 : index
    %c0_8 = arith.constant 0 : index
    %25 = vector.load %arg7[%c0_7, %c0_8] : memref<8x56xf32, #tpu.memory_space<vmem>>, vector<8x56xf32>
    %c0_9 = arith.constant 0 : index
    %c0_10 = arith.constant 0 : index
    %26 = vector.load %arg8[%c0_9, %c0_10] : memref<8x1xf32, #tpu.memory_space<vmem>>, vector<8x1xf32>
    %c511_i32_11 = arith.constant 511 : i32
    %27 = tpu.dynamic_rotate %24 by %c511_i32_11 dim 1 : vector<8x512xf32>, i32 -> vector<8x512xf32>
    %c510_i32_12 = arith.constant 510 : i32
    %28 = tpu.dynamic_rotate %24 by %c510_i32_12 dim 1 : vector<8x512xf32>, i32 -> vector<8x512xf32>
    %c509_i32_13 = arith.constant 509 : i32
    %29 = tpu.dynamic_rotate %24 by %c509_i32_13 dim 1 : vector<8x512xf32>, i32 -> vector<8x512xf32>
    %c508_i32_14 = arith.constant 508 : i32
    %30 = tpu.dynamic_rotate %24 by %c508_i32_14 dim 1 : vector<8x512xf32>, i32 -> vector<8x512xf32>
    %c507_i32_15 = arith.constant 507 : i32
    %31 = tpu.dynamic_rotate %24 by %c507_i32_15 dim 1 : vector<8x512xf32>, i32 -> vector<8x512xf32>
    %c506_i32_16 = arith.constant 506 : i32
    %32 = tpu.dynamic_rotate %24 by %c506_i32_16 dim 1 : vector<8x512xf32>, i32 -> vector<8x512xf32>
    %33 = tpu.concatenate %24, %27, %28, %29, %30, %31, %32 in 0 : vector<8x512xf32>, vector<8x512xf32>, vector<8x512xf32>, vector<8x512xf32>, vector<8x512xf32>, vector<8x512xf32>, vector<8x512xf32> -> vector<56x512xf32>
    %cst_17 = arith.constant dense<0.000000e+00> : vector<8x512xf32>
    %34 = tpu.matmul %25, %33, %cst_17 {dimension_numbers = #tpu.dot_dimension_numbers<[1], [0], [0], [1], [0, 0, 1, 1], [], []>, precision = #tpu.contract_precision<fp32>} : vector<8x56xf32>, vector<56x512xf32>, vector<8x512xf32> -> vector<8x512xf32>
    %35 = vector.broadcast %26 : vector<8x1xf32> to vector<8x512xf32>
    %36 = arith.addf %34, %35 : vector<8x512xf32>
    %cst_18 = arith.constant 2.000000e-01 : f32
    %37 = vector.broadcast %cst_18 : f32 to vector<8x512xf32>
    %38 = arith.mulf %37, %36 : vector<8x512xf32>
    %39 = arith.maximumf %36, %38 : vector<8x512xf32>
    %c0_19 = arith.constant 0 : index
    %c0_20 = arith.constant 0 : index
    %40 = vector.load %arg9[%c0_19, %c0_20] : memref<8x40xf32, #tpu.memory_space<vmem>>, vector<8x40xf32>
    %c0_21 = arith.constant 0 : index
    %c0_22 = arith.constant 0 : index
    %41 = vector.load %arg10[%c0_21, %c0_22] : memref<8x1xf32, #tpu.memory_space<vmem>>, vector<8x1xf32>
    %c511_i32_23 = arith.constant 511 : i32
    %42 = tpu.dynamic_rotate %39 by %c511_i32_23 dim 1 : vector<8x512xf32>, i32 -> vector<8x512xf32>
    %c510_i32_24 = arith.constant 510 : i32
    %43 = tpu.dynamic_rotate %39 by %c510_i32_24 dim 1 : vector<8x512xf32>, i32 -> vector<8x512xf32>
    %c509_i32_25 = arith.constant 509 : i32
    %44 = tpu.dynamic_rotate %39 by %c509_i32_25 dim 1 : vector<8x512xf32>, i32 -> vector<8x512xf32>
    %c508_i32_26 = arith.constant 508 : i32
    %45 = tpu.dynamic_rotate %39 by %c508_i32_26 dim 1 : vector<8x512xf32>, i32 -> vector<8x512xf32>
    %46 = tpu.concatenate %39, %42, %43, %44, %45 in 0 : vector<8x512xf32>, vector<8x512xf32>, vector<8x512xf32>, vector<8x512xf32>, vector<8x512xf32> -> vector<40x512xf32>
    %cst_27 = arith.constant dense<0.000000e+00> : vector<8x512xf32>
    %47 = tpu.matmul %40, %46, %cst_27 {dimension_numbers = #tpu.dot_dimension_numbers<[1], [0], [0], [1], [0, 0, 1, 1], [], []>, precision = #tpu.contract_precision<fp32>} : vector<8x40xf32>, vector<40x512xf32>, vector<8x512xf32> -> vector<8x512xf32>
    %48 = vector.broadcast %41 : vector<8x1xf32> to vector<8x512xf32>
    %49 = arith.addf %47, %48 : vector<8x512xf32>
    %cst_28 = arith.constant 2.000000e-01 : f32
    %50 = vector.broadcast %cst_28 : f32 to vector<8x512xf32>
    %51 = arith.mulf %50, %49 : vector<8x512xf32>
    %52 = arith.maximumf %49, %51 : vector<8x512xf32>
    %c0_29 = arith.constant 0 : index
    %c0_30 = arith.constant 0 : index
    %53 = vector.load %arg11[%c0_29, %c0_30] : memref<8x24xf32, #tpu.memory_space<vmem>>, vector<8x24xf32>
    %c0_31 = arith.constant 0 : index
    %c0_32 = arith.constant 0 : index
    %54 = vector.load %arg12[%c0_31, %c0_32] : memref<8x1xf32, #tpu.memory_space<vmem>>, vector<8x1xf32>
    %c511_i32_33 = arith.constant 511 : i32
    %55 = tpu.dynamic_rotate %52 by %c511_i32_33 dim 1 : vector<8x512xf32>, i32 -> vector<8x512xf32>
    %c510_i32_34 = arith.constant 510 : i32
    %56 = tpu.dynamic_rotate %52 by %c510_i32_34 dim 1 : vector<8x512xf32>, i32 -> vector<8x512xf32>
    %57 = tpu.concatenate %52, %55, %56 in 0 : vector<8x512xf32>, vector<8x512xf32>, vector<8x512xf32> -> vector<24x512xf32>
    %cst_35 = arith.constant dense<0.000000e+00> : vector<8x512xf32>
    %58 = tpu.matmul %53, %57, %cst_35 {dimension_numbers = #tpu.dot_dimension_numbers<[1], [0], [0], [1], [0, 0, 1, 1], [], []>, precision = #tpu.contract_precision<fp32>} : vector<8x24xf32>, vector<24x512xf32>, vector<8x512xf32> -> vector<8x512xf32>
    %59 = vector.broadcast %54 : vector<8x1xf32> to vector<8x512xf32>
    %60 = arith.addf %58, %59 : vector<8x512xf32>
    %61 = vector.extract_strided_slice %60 {offsets = [0, 0], sizes = [8, 128], strides = [1, 1]} : vector<8x512xf32> to vector<8x128xf32>
    %62 = vector.extract_strided_slice %60 {offsets = [0, 128], sizes = [8, 128], strides = [1, 1]} : vector<8x512xf32> to vector<8x128xf32>
    %63 = vector.extract_strided_slice %60 {offsets = [0, 256], sizes = [8, 128], strides = [1, 1]} : vector<8x512xf32> to vector<8x128xf32>
    %64 = vector.extract_strided_slice %60 {offsets = [0, 384], sizes = [8, 128], strides = [1, 1]} : vector<8x512xf32> to vector<8x128xf32>
    %65 = tpu.concatenate %61, %62, %63, %64 in 0 : vector<8x128xf32>, vector<8x128xf32>, vector<8x128xf32>, vector<8x128xf32> -> vector<32x128xf32>
    %c0_36 = arith.constant 0 : index
    %c0_37 = arith.constant 0 : index
    %66 = vector.load %arg2[%c0_36, %c0_37] : memref<128x78xf32, #tpu.memory_space<vmem>>, vector<128x78xf32>
    %cst_38 = arith.constant dense<0.000000e+00> : vector<32x78xf32>
    %67 = tpu.matmul %65, %66, %cst_38 {dimension_numbers = #tpu.dot_dimension_numbers<[1], [0], [0], [1], [0, 0, 1, 1], [], []>, precision = #tpu.contract_precision<fp32>} : vector<32x128xf32>, vector<128x78xf32>, vector<32x78xf32> -> vector<32x78xf32>
    %68 = vector.extract_strided_slice %67 {offsets = [0, 0], sizes = [16, 39], strides = [1, 1]} : vector<32x78xf32> to vector<16x39xf32>
    %69 = vector.extract_strided_slice %67 {offsets = [0, 39], sizes = [16, 39], strides = [1, 1]} : vector<32x78xf32> to vector<16x39xf32>
    %70 = vector.extract_strided_slice %67 {offsets = [16, 0], sizes = [16, 39], strides = [1, 1]} : vector<32x78xf32> to vector<16x39xf32>
    %71 = vector.extract_strided_slice %67 {offsets = [16, 39], sizes = [16, 39], strides = [1, 1]} : vector<32x78xf32> to vector<16x39xf32>
    %72 = arith.mulf %68, %70 : vector<16x39xf32>
    %73 = arith.mulf %69, %71 : vector<16x39xf32>
    %74 = arith.addf %72, %73 : vector<16x39xf32>
    %75 = arith.mulf %68, %71 : vector<16x39xf32>
    %76 = arith.mulf %69, %70 : vector<16x39xf32>
    %77 = arith.subf %75, %76 : vector<16x39xf32>
    %78 = arith.mulf %74, %74 : vector<16x39xf32>
    %79 = arith.mulf %77, %77 : vector<16x39xf32>
    %80 = arith.addf %78, %79 : vector<16x39xf32>
    %81 = math.sqrt %80 : vector<16x39xf32>
    %cst_39 = arith.constant 1.000000e-03 : f32
    %82 = vector.broadcast %cst_39 : f32 to vector<16x39xf32>
    %83 = arith.addf %81, %82 : vector<16x39xf32>
    %84 = tpu.reciprocal %83 {approx = true} : vector<16x39xf32> -> vector<16x39xf32>
    %85 = arith.mulf %74, %84 : vector<16x39xf32>
    %86 = arith.mulf %77, %84 : vector<16x39xf32>
    %87 = tpu.concatenate %85, %86 in 1 : vector<16x39xf32>, vector<16x39xf32> -> vector<16x78xf32>
    %c0_40 = arith.constant 0 : index
    %c0_41 = arith.constant 0 : index
    %88 = vector.load %arg3[%c0_40, %c0_41] : memref<78x13xf32, #tpu.memory_space<vmem>>, vector<78x13xf32>
    %cst_42 = arith.constant dense<0.000000e+00> : vector<16x13xf32>
    %89 = tpu.matmul %87, %88, %cst_42 {dimension_numbers = #tpu.dot_dimension_numbers<[1], [0], [0], [1], [0, 0, 1, 1], [], []>, precision = #tpu.contract_precision<fp32>} : vector<16x78xf32>, vector<78x13xf32>, vector<16x13xf32> -> vector<16x13xf32>
    %cst_43 = arith.constant 0.000000e+00 : f32
    %90 = vector.broadcast %cst_43 : f32 to vector<8x5xf32>
    %91 = vector.extract_strided_slice %89 {offsets = [0, 0], sizes = [8, 13], strides = [1, 1]} : vector<16x13xf32> to vector<8x13xf32>
    %cst_44 = arith.constant 0.000000e+00 : f32
    %92 = vector.broadcast %cst_44 : f32 to vector<8x110xf32>
    %cst_45 = arith.constant 0.000000e+00 : f32
    %93 = vector.broadcast %cst_45 : f32 to vector<8x5xf32>
    %94 = vector.extract_strided_slice %89 {offsets = [8, 0], sizes = [8, 13], strides = [1, 1]} : vector<16x13xf32> to vector<8x13xf32>
    %cst_46 = arith.constant 0.000000e+00 : f32
    %95 = vector.broadcast %cst_46 : f32 to vector<8x110xf32>
    %96 = tpu.concatenate %90, %91, %92, %93, %94, %95 in 1 : vector<8x5xf32>, vector<8x13xf32>, vector<8x110xf32>, vector<8x5xf32>, vector<8x13xf32>, vector<8x110xf32> -> vector<8x256xf32>
    %c0_47 = arith.constant 0 : index
    %c0_48 = arith.constant 0 : index
    %97 = vector.load %arg4[%c0_47, %c0_48] : memref<1x256xf32, #tpu.memory_space<vmem>>, vector<1x256xf32>
    %c0_49 = arith.constant 0 : index
    %c0_50 = arith.constant 0 : index
    %98 = vector.load %arg13[%c0_49, %c0_50] : memref<16x88xf32, #tpu.memory_space<vmem>>, vector<16x88xf32>
    %c0_51 = arith.constant 0 : index
    %c0_52 = arith.constant 0 : index
    %99 = vector.load %arg14[%c0_51, %c0_52] : memref<16x1xf32, #tpu.memory_space<vmem>>, vector<16x1xf32>
    %c5_i32 = arith.constant 5 : i32
    %100 = tpu.dynamic_rotate %96 by %c5_i32 dim 1 : vector<8x256xf32>, i32 -> vector<8x256xf32>
    %c4_i32 = arith.constant 4 : i32
    %101 = tpu.dynamic_rotate %96 by %c4_i32 dim 1 : vector<8x256xf32>, i32 -> vector<8x256xf32>
    %c3_i32 = arith.constant 3 : i32
    %102 = tpu.dynamic_rotate %96 by %c3_i32 dim 1 : vector<8x256xf32>, i32 -> vector<8x256xf32>
    %c2_i32 = arith.constant 2 : i32
    %103 = tpu.dynamic_rotate %96 by %c2_i32 dim 1 : vector<8x256xf32>, i32 -> vector<8x256xf32>
    %c1_i32 = arith.constant 1 : i32
    %104 = tpu.dynamic_rotate %96 by %c1_i32 dim 1 : vector<8x256xf32>, i32 -> vector<8x256xf32>
    %c255_i32 = arith.constant 255 : i32
    %105 = tpu.dynamic_rotate %96 by %c255_i32 dim 1 : vector<8x256xf32>, i32 -> vector<8x256xf32>
    %c254_i32 = arith.constant 254 : i32
    %106 = tpu.dynamic_rotate %96 by %c254_i32 dim 1 : vector<8x256xf32>, i32 -> vector<8x256xf32>
    %c253_i32 = arith.constant 253 : i32
    %107 = tpu.dynamic_rotate %96 by %c253_i32 dim 1 : vector<8x256xf32>, i32 -> vector<8x256xf32>
    %c252_i32 = arith.constant 252 : i32
    %108 = tpu.dynamic_rotate %96 by %c252_i32 dim 1 : vector<8x256xf32>, i32 -> vector<8x256xf32>
    %c251_i32 = arith.constant 251 : i32
    %109 = tpu.dynamic_rotate %96 by %c251_i32 dim 1 : vector<8x256xf32>, i32 -> vector<8x256xf32>
    %110 = tpu.concatenate %100, %101, %102, %103, %104, %96, %105, %106, %107, %108, %109 in 0 : vector<8x256xf32>, vector<8x256xf32>, vector<8x256xf32>, vector<8x256xf32>, vector<8x256xf32>, vector<8x256xf32>, vector<8x256xf32>, vector<8x256xf32>, vector<8x256xf32>, vector<8x256xf32>, vector<8x256xf32> -> vector<88x256xf32>
    %cst_53 = arith.constant dense<0.000000e+00> : vector<16x256xf32>
    %111 = tpu.matmul %98, %110, %cst_53 {dimension_numbers = #tpu.dot_dimension_numbers<[1], [0], [0], [1], [0, 0, 1, 1], [], []>} : vector<16x88xf32>, vector<88x256xf32>, vector<16x256xf32> -> vector<16x256xf32>
    %112 = vector.broadcast %99 : vector<16x1xf32> to vector<16x256xf32>
    %113 = arith.addf %111, %112 : vector<16x256xf32>
    %cst_54 = arith.constant 2.000000e-01 : f32
    %114 = vector.broadcast %cst_54 : f32 to vector<16x256xf32>
    %115 = arith.mulf %114, %113 : vector<16x256xf32>
    %116 = arith.maximumf %113, %115 : vector<16x256xf32>
    %117 = vector.broadcast %97 : vector<1x256xf32> to vector<16x256xf32>
    %118 = arith.mulf %116, %117 : vector<16x256xf32>
    %c0_55 = arith.constant 0 : index
    %c0_56 = arith.constant 0 : index
    %119 = vector.load %arg15[%c0_55, %c0_56] : memref<16x144xf32, #tpu.memory_space<vmem>>, vector<16x144xf32>
    %c0_57 = arith.constant 0 : index
    %c0_58 = arith.constant 0 : index
    %120 = vector.load %arg16[%c0_57, %c0_58] : memref<16x1xf32, #tpu.memory_space<vmem>>, vector<16x1xf32>
    %c4_i32_59 = arith.constant 4 : i32
    %121 = tpu.dynamic_rotate %118 by %c4_i32_59 dim 1 : vector<16x256xf32>, i32 -> vector<16x256xf32>
    %c3_i32_60 = arith.constant 3 : i32
    %122 = tpu.dynamic_rotate %118 by %c3_i32_60 dim 1 : vector<16x256xf32>, i32 -> vector<16x256xf32>
    %c2_i32_61 = arith.constant 2 : i32
    %123 = tpu.dynamic_rotate %118 by %c2_i32_61 dim 1 : vector<16x256xf32>, i32 -> vector<16x256xf32>
    %c1_i32_62 = arith.constant 1 : i32
    %124 = tpu.dynamic_rotate %118 by %c1_i32_62 dim 1 : vector<16x256xf32>, i32 -> vector<16x256xf32>
    %c255_i32_63 = arith.constant 255 : i32
    %125 = tpu.dynamic_rotate %118 by %c255_i32_63 dim 1 : vector<16x256xf32>, i32 -> vector<16x256xf32>
    %c254_i32_64 = arith.constant 254 : i32
    %126 = tpu.dynamic_rotate %118 by %c254_i32_64 dim 1 : vector<16x256xf32>, i32 -> vector<16x256xf32>
    %c253_i32_65 = arith.constant 253 : i32
    %127 = tpu.dynamic_rotate %118 by %c253_i32_65 dim 1 : vector<16x256xf32>, i32 -> vector<16x256xf32>
    %c252_i32_66 = arith.constant 252 : i32
    %128 = tpu.dynamic_rotate %118 by %c252_i32_66 dim 1 : vector<16x256xf32>, i32 -> vector<16x256xf32>
    %129 = tpu.concatenate %121, %122, %123, %124, %118, %125, %126, %127, %128 in 0 : vector<16x256xf32>, vector<16x256xf32>, vector<16x256xf32>, vector<16x256xf32>, vector<16x256xf32>, vector<16x256xf32>, vector<16x256xf32>, vector<16x256xf32>, vector<16x256xf32> -> vector<144x256xf32>
    %cst_67 = arith.constant dense<0.000000e+00> : vector<16x256xf32>
    %130 = tpu.matmul %119, %129, %cst_67 {dimension_numbers = #tpu.dot_dimension_numbers<[1], [0], [0], [1], [0, 0, 1, 1], [], []>} : vector<16x144xf32>, vector<144x256xf32>, vector<16x256xf32> -> vector<16x256xf32>
    %131 = vector.broadcast %120 : vector<16x1xf32> to vector<16x256xf32>
    %132 = arith.addf %130, %131 : vector<16x256xf32>
    %cst_68 = arith.constant 2.000000e-01 : f32
    %133 = vector.broadcast %cst_68 : f32 to vector<16x256xf32>
    %134 = arith.mulf %133, %132 : vector<16x256xf32>
    %135 = arith.maximumf %132, %134 : vector<16x256xf32>
    %136 = vector.broadcast %97 : vector<1x256xf32> to vector<16x256xf32>
    %137 = arith.mulf %135, %136 : vector<16x256xf32>
    %c0_69 = arith.constant 0 : index
    %c0_70 = arith.constant 0 : index
    %138 = vector.load %arg17[%c0_69, %c0_70] : memref<16x112xf32, #tpu.memory_space<vmem>>, vector<16x112xf32>
    %c0_71 = arith.constant 0 : index
    %c0_72 = arith.constant 0 : index
    %139 = vector.load %arg18[%c0_71, %c0_72] : memref<16x1xf32, #tpu.memory_space<vmem>>, vector<16x1xf32>
    %c3_i32_73 = arith.constant 3 : i32
    %140 = tpu.dynamic_rotate %137 by %c3_i32_73 dim 1 : vector<16x256xf32>, i32 -> vector<16x256xf32>
    %c2_i32_74 = arith.constant 2 : i32
    %141 = tpu.dynamic_rotate %137 by %c2_i32_74 dim 1 : vector<16x256xf32>, i32 -> vector<16x256xf32>
    %c1_i32_75 = arith.constant 1 : i32
    %142 = tpu.dynamic_rotate %137 by %c1_i32_75 dim 1 : vector<16x256xf32>, i32 -> vector<16x256xf32>
    %c255_i32_76 = arith.constant 255 : i32
    %143 = tpu.dynamic_rotate %137 by %c255_i32_76 dim 1 : vector<16x256xf32>, i32 -> vector<16x256xf32>
    %c254_i32_77 = arith.constant 254 : i32
    %144 = tpu.dynamic_rotate %137 by %c254_i32_77 dim 1 : vector<16x256xf32>, i32 -> vector<16x256xf32>
    %c253_i32_78 = arith.constant 253 : i32
    %145 = tpu.dynamic_rotate %137 by %c253_i32_78 dim 1 : vector<16x256xf32>, i32 -> vector<16x256xf32>
    %146 = tpu.concatenate %140, %141, %142, %137, %143, %144, %145 in 0 : vector<16x256xf32>, vector<16x256xf32>, vector<16x256xf32>, vector<16x256xf32>, vector<16x256xf32>, vector<16x256xf32>, vector<16x256xf32> -> vector<112x256xf32>
    %cst_79 = arith.constant dense<0.000000e+00> : vector<16x256xf32>
    %147 = tpu.matmul %138, %146, %cst_79 {dimension_numbers = #tpu.dot_dimension_numbers<[1], [0], [0], [1], [0, 0, 1, 1], [], []>} : vector<16x112xf32>, vector<112x256xf32>, vector<16x256xf32> -> vector<16x256xf32>
    %148 = vector.broadcast %139 : vector<16x1xf32> to vector<16x256xf32>
    %149 = arith.addf %147, %148 : vector<16x256xf32>
    %cst_80 = arith.constant 2.000000e-01 : f32
    %150 = vector.broadcast %cst_80 : f32 to vector<16x256xf32>
    %151 = arith.mulf %150, %149 : vector<16x256xf32>
    %152 = arith.maximumf %149, %151 : vector<16x256xf32>
    %153 = vector.broadcast %97 : vector<1x256xf32> to vector<16x256xf32>
    %154 = arith.mulf %152, %153 : vector<16x256xf32>
    %c0_81 = arith.constant 0 : index
    %c0_82 = arith.constant 0 : index
    %155 = vector.load %arg19[%c0_81, %c0_82] : memref<1x80xf32, #tpu.memory_space<vmem>>, vector<1x80xf32>
    %c0_83 = arith.constant 0 : index
    %c0_84 = arith.constant 0 : index
    %156 = vector.load %arg20[%c0_83, %c0_84] : memref<1x1xf32, #tpu.memory_space<vmem>>, vector<1x1xf32>
    %c2_i32_85 = arith.constant 2 : i32
    %157 = tpu.dynamic_rotate %154 by %c2_i32_85 dim 1 : vector<16x256xf32>, i32 -> vector<16x256xf32>
    %c1_i32_86 = arith.constant 1 : i32
    %158 = tpu.dynamic_rotate %154 by %c1_i32_86 dim 1 : vector<16x256xf32>, i32 -> vector<16x256xf32>
    %c255_i32_87 = arith.constant 255 : i32
    %159 = tpu.dynamic_rotate %154 by %c255_i32_87 dim 1 : vector<16x256xf32>, i32 -> vector<16x256xf32>
    %c254_i32_88 = arith.constant 254 : i32
    %160 = tpu.dynamic_rotate %154 by %c254_i32_88 dim 1 : vector<16x256xf32>, i32 -> vector<16x256xf32>
    %161 = tpu.concatenate %157, %158, %154, %159, %160 in 0 : vector<16x256xf32>, vector<16x256xf32>, vector<16x256xf32>, vector<16x256xf32>, vector<16x256xf32> -> vector<80x256xf32>
    %cst_89 = arith.constant dense<0.000000e+00> : vector<1x256xf32>
    %162 = tpu.matmul %155, %161, %cst_89 {dimension_numbers = #tpu.dot_dimension_numbers<[1], [0], [0], [1], [0, 0, 1, 1], [], []>} : vector<1x80xf32>, vector<80x256xf32>, vector<1x256xf32> -> vector<1x256xf32>
    %163 = vector.broadcast %156 : vector<1x1xf32> to vector<1x256xf32>
    %164 = arith.addf %162, %163 : vector<1x256xf32>
    %165 = vector.extract_strided_slice %164 {offsets = [0, 0], sizes = [1, 128], strides = [1, 1]} : vector<1x256xf32> to vector<1x128xf32>
    %166 = vector.extract_strided_slice %164 {offsets = [0, 128], sizes = [1, 128], strides = [1, 1]} : vector<1x256xf32> to vector<1x128xf32>
    %167 = tpu.concatenate %165, %166 in 0 : vector<1x128xf32>, vector<1x128xf32> -> vector<2x128xf32>
    %c0_90 = arith.constant 0 : index
    %c0_91 = arith.constant 0 : index
    %c0_92 = arith.constant 0 : index
    %168 = vector.load %arg21[%c0_90, %c0_91, %c0_92] : memref<1x2x128xf32, #tpu.memory_space<vmem>>, vector<1x2x128xf32>
    %169 = vector.shape_cast %168 : vector<1x2x128xf32> to vector<2x128xf32>
    %170 = vector.shape_cast %167 : vector<2x128xf32> to vector<1x2x128xf32>
    tpu.vector_store %arg21[%c0_90, %c0_91, %c0_92], %170 {strides = array<i32>} : memref<1x2x128xf32, #tpu.memory_space<vmem>>, vector<1x2x128xf32>,
    return
  }
  func.func @transform_0(%arg0: i32) -> (i32, i32, i32) {
    %c0_i32 = arith.constant 0 : i32
    %c0_i32_0 = arith.constant 0 : i32
    %c0_i32_1 = arith.constant 0 : i32
    return %arg0, %c0_i32, %c0_i32_0 : i32, i32, i32
  }
  func.func @transform_1(%arg0: i32) -> (i32, i32) {
    %c0_i32 = arith.constant 0 : i32
    %c0_i32_0 = arith.constant 0 : i32
    %c0_i32_1 = arith.constant 0 : i32
    return %c0_i32, %c0_i32_0 : i32, i32
  }
  func.func @transform_2(%arg0: i32) -> (i32, i32) {
    %c0_i32 = arith.constant 0 : i32
    %c0_i32_0 = arith.constant 0 : i32
    %c0_i32_1 = arith.constant 0 : i32
    return %c0_i32, %c0_i32_0 : i32, i32
  }
  func.func @transform_3(%arg0: i32) -> (i32, i32) {
    %c0_i32 = arith.constant 0 : i32
    %c0_i32_0 = arith.constant 0 : i32
    %c0_i32_1 = arith.constant 0 : i32
    return %c0_i32, %c0_i32_0 : i32, i32
  }
  func.func @transform_4(%arg0: i32) -> (i32, i32) {
    %c0_i32 = arith.constant 0 : i32
    %c0_i32_0 = arith.constant 0 : i32
    %c0_i32_1 = arith.constant 0 : i32
    return %c0_i32, %c0_i32_0 : i32, i32
  }
  func.func @transform_5(%arg0: i32) -> (i32, i32) {
    %c0_i32 = arith.constant 0 : i32
    %c0_i32_0 = arith.constant 0 : i32
    %c0_i32_1 = arith.constant 0 : i32
    return %c0_i32, %c0_i32_0 : i32, i32
  }
  func.func @transform_6(%arg0: i32) -> (i32, i32) {
    %c0_i32 = arith.constant 0 : i32
    %c0_i32_0 = arith.constant 0 : i32
    %c0_i32_1 = arith.constant 0 : i32
    return %c0_i32, %c0_i32_0 : i32, i32
  }
  func.func @transform_7(%arg0: i32) -> (i32, i32) {
    %c0_i32 = arith.constant 0 : i32
    %c0_i32_0 = arith.constant 0 : i32
    %c0_i32_1 = arith.constant 0 : i32
    return %c0_i32, %c0_i32_0 : i32, i32
  }
  func.func @transform_8(%arg0: i32) -> (i32, i32) {
    %c0_i32 = arith.constant 0 : i32
    %c0_i32_0 = arith.constant 0 : i32
    %c0_i32_1 = arith.constant 0 : i32
    return %c0_i32, %c0_i32_0 : i32, i32
  }
  func.func @transform_9(%arg0: i32) -> (i32, i32) {
    %c0_i32 = arith.constant 0 : i32
    %c0_i32_0 = arith.constant 0 : i32
    %c0_i32_1 = arith.constant 0 : i32
    return %c0_i32, %c0_i32_0 : i32, i32
  }
  func.func @transform_10(%arg0: i32) -> (i32, i32) {
    %c0_i32 = arith.constant 0 : i32
    %c0_i32_0 = arith.constant 0 : i32
    %c0_i32_1 = arith.constant 0 : i32
    return %c0_i32, %c0_i32_0 : i32, i32
  }
  func.func @transform_11(%arg0: i32) -> (i32, i32) {
    %c0_i32 = arith.constant 0 : i32
    %c0_i32_0 = arith.constant 0 : i32
    %c0_i32_1 = arith.constant 0 : i32
    return %c0_i32, %c0_i32_0 : i32, i32
  }
  func.func @transform_12(%arg0: i32) -> (i32, i32) {
    %c0_i32 = arith.constant 0 : i32
    %c0_i32_0 = arith.constant 0 : i32
    %c0_i32_1 = arith.constant 0 : i32
    return %c0_i32, %c0_i32_0 : i32, i32
  }
  func.func @transform_13(%arg0: i32) -> (i32, i32) {
    %c0_i32 = arith.constant 0 : i32
    %c0_i32_0 = arith.constant 0 : i32
    %c0_i32_1 = arith.constant 0 : i32
    return %c0_i32, %c0_i32_0 : i32, i32
  }
  func.func @transform_14(%arg0: i32) -> (i32, i32) {
    %c0_i32 = arith.constant 0 : i32
    %c0_i32_0 = arith.constant 0 : i32
    %c0_i32_1 = arith.constant 0 : i32
    return %c0_i32, %c0_i32_0 : i32, i32
  }
  func.func @transform_15(%arg0: i32) -> (i32, i32) {
    %c0_i32 = arith.constant 0 : i32
    %c0_i32_0 = arith.constant 0 : i32
    %c0_i32_1 = arith.constant 0 : i32
    return %c0_i32, %c0_i32_0 : i32, i32
  }
  func.func @transform_16(%arg0: i32) -> (i32, i32) {
    %c0_i32 = arith.constant 0 : i32
    %c0_i32_0 = arith.constant 0 : i32
    %c0_i32_1 = arith.constant 0 : i32
    return %c0_i32, %c0_i32_0 : i32, i32
  }
  func.func @transform_17(%arg0: i32) -> (i32, i32) {
    %c0_i32 = arith.constant 0 : i32
    %c0_i32_0 = arith.constant 0 : i32
    %c0_i32_1 = arith.constant 0 : i32
    return %c0_i32, %c0_i32_0 : i32, i32
  }
  func.func @transform_18(%arg0: i32) -> (i32, i32) {
    %c0_i32 = arith.constant 0 : i32
    %c0_i32_0 = arith.constant 0 : i32
    %c0_i32_1 = arith.constant 0 : i32
    return %c0_i32, %c0_i32_0 : i32, i32
  }
  func.func @transform_19(%arg0: i32) -> (i32, i32) {
    %c0_i32 = arith.constant 0 : i32
    %c0_i32_0 = arith.constant 0 : i32
    %c0_i32_1 = arith.constant 0 : i32
    return %c0_i32, %c0_i32_0 : i32, i32
  }
  func.func @transform_20(%arg0: i32) -> (i32, i32, i32) {
    %c0_i32 = arith.constant 0 : i32
    %c0_i32_0 = arith.constant 0 : i32
    %c0_i32_1 = arith.constant 0 : i32
    return %arg0, %c0_i32, %c0_i32_0 : i32, i32, i32
  }
}

</mosaic_0001>

<bundles_post_ra>
// kernel: tpu_custom_call.1
= control target key start
LH: loop header
LB: loop body
LE: loop exit
PB: predicated region body
PF: predicated region fallthrough
CT: control target
= control target key end

     0   :  { %s12727_s0 = inlined_call_operand.vmem [shape: f32[2,1,512], index: 0, kind: input, shape index: {}]   ;;  %s12728_s1 = inlined_call_operand.vmem [shape: f32[128,78], index: 1, kind: input, shape index: {}]   ;;  %s12729_s2 = inlined_call_operand.vmem [shape: f32[78,13], index: 2, kind: input, shape index: {}]   ;;  %s12730_s3 = inlined_call_operand.vmem [shape: f32[1,256], index: 3, kind: input, shape index: {}]   ;;  %s12731_s4 = inlined_call_operand.vmem [shape: f32[8,15], index: 4, kind: input, shape index: {}]   ;;  %s12732_s5 = inlined_call_operand.vmem [shape: f32[8,1], index: 5, kind: input, shape index: {}]   ;;  %s12733_s6 = inlined_call_operand.vmem [shape: f32[8,56], index: 6, kind: input, shape index: {}]   ;;  %s12734_s7 = inlined_call_operand.vmem [shape: f32[8,1], index: 7, kind: input, shape index: {}]   ;;  %s12735_s8 = inlined_call_operand.vmem [shape: f32[8,40], index: 8, kind: input, shape index: {}]   ;;  %s12736_s9 = inlined_call_operand.vmem [shape: f32[8,1], index: 9, kind: input, shape index: {}]   ;;  %s12737_s10 = inlined_call_operand.vmem [shape: f32[8,24], index: 10, kind: input, shape index: {}]   ;;  %s12738_s11 = inlined_call_operand.vmem [shape: f32[8,1], index: 11, kind: input, shape index: {}]   ;;  %s12739_s12 = inlined_call_operand.vmem [shape: f32[16,88], index: 12, kind: input, shape index: {}]   ;;  %s12740_s13 = inlined_call_operand.vmem [shape: f32[16,1], index: 13, kind: input, shape index: {}]   ;;  %s12741_s14 = inlined_call_operand.vmem [shape: f32[16,144], index: 14, kind: input, shape index: {}]   ;;  %s12742_s15 = inlined_call_operand.vmem [shape: f32[16,1], index: 15, kind: input, shape index: {}]   ;;  %s12743_s16 = inlined_call_operand.vmem [shape: f32[16,112], index: 16, kind: input, shape index: {}]   ;;  %s12744_s17 = inlined_call_operand.vmem [shape: f32[16,1], index: 17, kind: input, shape index: {}]   ;;  %s12745_s18 = inlined_call_operand.vmem [shape: f32[1,80], index: 18, kind: input, shape index: {}]   ;;  %s12746_s19 = inlined_call_operand.<no memory space> [shape: f32[1,1], index: 19, kind: input, shape index: {}]   ;;  %s12747_s20 = inlined_call_operand.hbm [shape: f32[2,2,128], index: 20, kind: output, shape index: {}]  }
   0x1   :  { %12836 = sst [smem:[#allocation21_spill]] %s12727_s0  ;;  %v25_v0 = vstv %s12746_s19 }
   0x2   :  { %12837 = sst [smem:[#allocation22_spill]] %s12728_s1  ;;  %26 = vst [vmem:[#allocation2] sm:$0x1] %v25_v0 }
   0x3   :  { %12838 = sst [smem:[#allocation23_spill]] %s12729_s2 }
   0x4   :  { %12839 = sst [smem:[#allocation24_spill]] %s12730_s3 }
   0x5   :  { %12840 = sst [smem:[#allocation25_spill]] %s12731_s4 }
   0x6   :  { %12841 = sst [smem:[#allocation26_spill]] %s12732_s5 }
   0x7   :  { %12842 = sst [smem:[#allocation27_spill]] %s12733_s6 }
   0x8   :  { %12843 = sst [smem:[#allocation28_spill]] %s12734_s7 }
   0x9   :  { %12844 = sst [smem:[#allocation29_spill]] %s12735_s8 }
   0xa   :  { %12845 = sst [smem:[#allocation30_spill]] %s12736_s9 }
   0xb   :  { %12846 = sst [smem:[#allocation31_spill]] %s12737_s10 }
   0xc   :  { %27 = vsyncpa [#allocation4], 0 }
   0xd   :  { %29 = vsyncpa [#allocation4 + $0x1], 0  ;;  %s9914_s23 = smov 0   ;;  %s9916_s24 = smov 0  }
   0xe   :  { %s9918_s2 = smov 0   ;;  %s9920_s25 = smov 0  }
   0xf LB: > { %s9935_s19 = sadd.s32 4294967295, %s9779_s25   ;;  %s7962_s3 = sadd.s32 4294967294, %s9779_s25   ;;  %s9779_s25 = sphi %s9920_s25, %s12970_s25   ;;  %s9775_s2 = sphi %s9918_s2, %s12969_s2   ;;  %s9771_s24 = sphi %s9916_s24, %s12968_s24   ;;  %s9767_s23 = sphi %s9914_s23, %s12967_s23  }
  0x10   : > { %s9939_s26 = sadd.s32 1, %s9779_s25   ;;  %s467_s27 = sadd.s32 1, %s9775_s2 }
  0x11   : > { %s464_s28 = ssub.s32 %s9779_s25, %s9939_s26  ;;  %p477_p0 = scmp.ne.s32.totalorder %s9775_s2, %s9771_s24 }
  0x12   : > { %p465_p1 = scmp.eq.s32.totalorder %s464_s28, 0  ;;  %p478_p2 = scmp.eq.s32.totalorder %s9935_s19, 1 }
  0x13   : > { %p483_p3 = scmp.ne.s32.totalorder %s9771_s24, %s9767_s23  ;;  %p484_p4 = scmp.eq.s32.totalorder %s7962_s3, 1 }
  0x14   : > { %s9950_s4 = scalar_select %p465_p1, %s9775_s2, %s467_s27  }
  0x15   : > { %p9952_p5 = por %p478_p2, %p477_p0  ;;  %p9956_p6 = por %p484_p4, %p483_p3 }
  0x16   : > { %12847 = sst [smem:[#allocation6_spill]] %s9950_s4  ;;  %p7965_p7 = scmp.ge.s32.totalorder %s9779_s25, 1 }
  0x17   : > { %p566_p8 = scmp.lt.s32.totalorder %s9779_s25, 3 }
  0x19   : > { %p567_p9 = pnand %p7965_p7, %p566_p8 }
  0x1b   : > { %570 = sbr.rel (%p567_p9) target bundleno = 4519 (0x11a7), region = 100 }
  0x22   : > { %p623_p10 = scmp.lt.s32.totalorder %s9935_s19, 1  ;;  %v631_v1 = vlaneseq  ;;  %s12851_s3 = sld [smem:[#allocation21_spill]]  ;;  %v12765_v12 = vmov 0.0   ;;  %v9796_v32 = vmov 0   ;;  %vm1055_vm0 = vcmask 121856  }
  0x23   : > { %s9781_s28 = smov 119   ;;  %s12817_s4 = smov 127   ;;  %1139 = vmatprep.mubr.f32.mxu0 %v12765_v12  ;;  %1630 = vmatprep.mubr.f32.mxu1 %v12765_v12  ;;  %vm12752_vm4 = vcmask 1040384   ;;  %vm996_vm5 = vcmask 1041408   ;;  %vm1001_vm8 = vcmask 1042432   ;;  %vm1006_vm15 = vcmask 1043456  }
  0x24   : > { %s624_s0 = scalar_select %p623_p10, %s9935_s19, 1  ;;  %v9965_v2 = vshrl.u32 %v631_v1, 7  ;;  %9482 = vset.pattern.permute.xlu0 %v9796_v32  ;;  %9483 = vset.pattern.permute.xlu1 %v9796_v32  ;;  %v10130_v48 = vand.u32 127, %v631_v1 }
  0x25   : > { %s12755_s1 = smov 125   ;;  %s9786_s22 = smov 120  }
  0x26   : > { %12850 = vst [vmem:[#allocation7_spill] sm:$0xff] %v9965_v2  ;;  %s7967_s21 = sshll.u32 %s624_s0, 2  ;;  %v12757_v3 = vsub.s32 1, %v9965_v2  ;;  %v641_v4 = vsub.s32 2, %v9965_v2  ;;  %v645_v8 = vsub.s32 3, %v9965_v2  ;;  %v9983_v9 = vsub.s32 0, %v9965_v2 }
  0x27   : > { %s12800_s0 = smov 126   ;;  %s12853_s5 = sld [smem:[#allocation26_spill]]  ;;  %12855 = vst [vmem:[#allocation9_spill] sm:$0xff] %v10130_v48  ;;  %vm661_vm1 = vcmp.lt.s32.totalorder %v10130_v48, 127  ;;  %vm674_vm2 = vcmp.lt.s32.totalorder %v10130_v48, 126  ;;  %vm765_vm3 = vcmp.lt.s32.totalorder %v10130_v48, 119 }
  0x28   : > { %s626_s27 = scalar_lea.vmem %s12851_s3, %s7967_s21  ;;  %12852 = vst [vmem:[#allocation8_spill] sm:$0xff] %v9983_v9  ;;  %s9784_s21 = smov 118   ;;  %vm778_vm6 = vcmp.lt.s32.totalorder %v10130_v48, 118  ;;  %vm687_vm7 = vcmp.lt.s32.totalorder %v10130_v48, 125  ;;  %vm752_vm9 = vcmp.lt.s32.totalorder %v10130_v48, 120  ;;  %vm791_vm10 = vcmp.lt.s32.totalorder %v10130_v48, 117 }
  0x29   : > { %v627_v5 = vld [vmem:[%s626_s27] sm:$0xf]  ;;  %s9787_s3 = smov 117   ;;  %s12753_s27 = smov 124   ;;  %vm700_vm11 = vcmp.lt.s32.totalorder %v10130_v48, 124  ;;  %vm804_vm12 = vcmp.lt.s32.totalorder %v10130_v48, 116 }
  0x2a   : > { %v9974_v6 = vrot.slane %v627_v5, %v12757_v3  ;;  %v9979_v7 = vrot.slane %v627_v5, %v641_v4  ;;  %v9988_v10 = vrot.slane %v627_v5, %v645_v8  ;;  %v9991_v11 = vrot.slane %v627_v5, %v9983_v9  ;;  %s12857_s7 = sld [smem:[#allocation28_spill]]  ;;  %s12858_s6 = sld [smem:[#allocation27_spill]] }
  0x2b   : > { %vm713_vm13 = vcmp.lt.s32.totalorder %v10130_v48, 123  ;;  %vm817_vm14 = vcmp.lt.s32.totalorder %v10130_v48, 115  ;;  %s12920_s9 = sld [smem:[#allocation30_spill]]  ;;  %s12921_s8 = sld [smem:[#allocation29_spill]] }
  0x2c   : > { %759 = vrot.lane.b32.xlu1 %v9974_v6, %s9781_s28  ;;  %653 = vrot.lane.b32.xlu0 %v9974_v6, %s12817_s4  ;;  %s12943_s10 = sld [smem:[#allocation31_spill]] }
  0x2d   : > { %v629_v31 = vld [vmem:[%s12853_s5] sm:$0xff]  ;;  %s12957_s5 = smov 39  }
  0x30   : > { %761 = vrot.lane.b32.xlu1 %v9979_v7, %s9781_s28  ;;  %655 = vrot.lane.b32.xlu0 %v9979_v7, %s12817_s4 }
  0x34   : > { %657 = vrot.lane.b32.xlu1 %v9988_v10, %s12817_s4  ;;  %651 = vrot.lane.b32.xlu0 %v9991_v11, %s12817_s4 }
  0x38   : > { %670 = vrot.lane.b32.xlu1 %v9979_v7, %s12800_s0  ;;  %668 = vrot.lane.b32.xlu0 %v9974_v6, %s12800_s0 }
  0x3c   : > { %763 = vrot.lane.b32.xlu1 %v9988_v10, %s9781_s28  ;;  %757 = vrot.lane.b32.xlu0 %v9991_v11, %s9781_s28  ;;  %s9789_s28 = smov 116  }
  0x40   : > { %774 = vrot.lane.b32.xlu1 %v9979_v7, %s9784_s21  ;;  %772 = vrot.lane.b32.xlu0 %v9974_v6, %s9784_s21 }
  0x44   : > { %672 = vrot.lane.b32.xlu1 %v9988_v10, %s12800_s0  ;;  %666 = vrot.lane.b32.xlu0 %v9991_v11, %s12800_s0 }
  0x48   : > { %683 = vrot.lane.b32.xlu1 %v9979_v7, %s12755_s1  ;;  %681 = vrot.lane.b32.xlu0 %v9974_v6, %s12755_s1 }
  0x4c   : > { %748 = vrot.lane.b32.xlu1 %v9979_v7, %s9786_s22  ;;  %746 = vrot.lane.b32.xlu0 %v9974_v6, %s9786_s22 }
  0x50   : > { %776 = vrot.lane.b32.xlu1 %v9988_v10, %s9784_s21  ;;  %770 = vrot.lane.b32.xlu0 %v9991_v11, %s9784_s21  ;;  %s12750_s21 = smov 123  }
  0x54   : > { %787 = vrot.lane.b32.xlu1 %v9979_v7, %s9787_s3  ;;  %785 = vrot.lane.b32.xlu0 %v9974_v6, %s9787_s3 }
  0x58   : > { %685 = vrot.lane.b32.xlu1 %v9988_v10, %s12755_s1  ;;  %679 = vrot.lane.b32.xlu0 %v9991_v11, %s12755_s1 }
  0x5c   : > { %696 = vrot.lane.b32.xlu1 %v9979_v7, %s12753_s27  ;;  %694 = vrot.lane.b32.xlu0 %v9974_v6, %s12753_s27 }
  0x60   : > { %750 = vrot.lane.b32.xlu1 %v9988_v10, %s9786_s22  ;;  %744 = vrot.lane.b32.xlu0 %v9991_v11, %s9786_s22  ;;  %s9791_s22 = smov 115  }
  0x64   : > { %789 = vrot.lane.b32.xlu1 %v9988_v10, %s9787_s3  ;;  %783 = vrot.lane.b32.xlu0 %v9991_v11, %s9787_s3  ;;  %s9792_s3 = smov 122  }
  0x68   : > { %800 = vrot.lane.b32.xlu1 %v9979_v7, %s9789_s28  ;;  %798 = vrot.lane.b32.xlu0 %v9974_v6, %s9789_s28 }
  0x6c   : > { %698 = vrot.lane.b32.xlu1 %v9988_v10, %s12753_s27  ;;  %692 = vrot.lane.b32.xlu0 %v9991_v11, %s12753_s27 }
  0x70   : > { %709 = vrot.lane.b32.xlu1 %v9979_v7, %s12750_s21  ;;  %707 = vrot.lane.b32.xlu0 %v9974_v6, %s12750_s21 }
  0x74   : > { %802 = vrot.lane.b32.xlu1 %v9988_v10, %s9789_s28  ;;  %796 = vrot.lane.b32.xlu0 %v9991_v11, %s9789_s28  ;;  %s9793_s28 = smov 114  }
  0x78   : > { %813 = vrot.lane.b32.xlu1 %v9979_v7, %s9791_s22  ;;  %811 = vrot.lane.b32.xlu0 %v9974_v6, %s9791_s22 }
  0x7c   : > { %711 = vrot.lane.b32.xlu1 %v9988_v10, %s12750_s21  ;;  %705 = vrot.lane.b32.xlu0 %v9991_v11, %s12750_s21  ;;  %s9794_s21 = smov 121  }
  0x80   : > { %722 = vrot.lane.b32.xlu1 %v9979_v7, %s9792_s3  ;;  %720 = vrot.lane.b32.xlu0 %v9974_v6, %s9792_s3 }
  0x84   : > { %815 = vrot.lane.b32.xlu1 %v9988_v10, %s9791_s22  ;;  %809 = vrot.lane.b32.xlu0 %v9991_v11, %s9791_s22  ;;  %s12854_s22 = sld [smem:[#allocation25_spill]] }
  0x88   : > { %826 = vrot.lane.b32.xlu1 %v9979_v7, %s9793_s28  ;;  %824 = vrot.lane.b32.xlu0 %v9974_v6, %s9793_s28 }
  0x8a   : > { %v628_v41 = vld [vmem:[%s12854_s22] sm:$0xff]  ;;  %s12963_s22 = smov 2  }
  0x8b   : > { %v1057_v44 = vsel %vm1055_vm0, %v628_v41, 0  ;;  %vm830_vm0 = vcmp.lt.s32.totalorder %v10130_v48, 114 }
  0x8c   : > { %724 = vrot.lane.b32.xlu1 %v9988_v10, %s9792_s3  ;;  %718 = vrot.lane.b32.xlu0 %v9991_v11, %s9792_s3  ;;  %v10123_v45 = vand.u32 4294901760, %v1057_v44 }
  0x8e   : > { %v10133_v49 = vsub.f32 %v1057_v44, %v10123_v45 }
  0x90   : > { %735 = vrot.lane.b32.xlu1 %v9979_v7, %s9794_s21  ;;  %733 = vrot.lane.b32.xlu0 %v9974_v6, %s9794_s21  ;;  %v10141_v52 = vand.u32 4294901760, %v10133_v49 }
  0x92   : > { %v1143_v60 = vsub.f32 %v10133_v49, %v10141_v52 }
  0x94   : > { %828 = vrot.lane.b32.xlu1 %v9988_v10, %s9793_s28  ;;  %822 = vrot.lane.b32.xlu0 %v9991_v11, %s9793_s28  ;;  %s12856_s28 = smov 123  }
  0x98   : > { %737 = vrot.lane.b32.xlu1 %v9988_v10, %s9794_s21  ;;  %731 = vrot.lane.b32.xlu0 %v9991_v11, %s9794_s21  ;;  %s12944_s21 = sld [smem:[#allocation22_spill]] }
  0x9c   : > { %1052 = vperm.xlu0 %9482, %v629_v31  }
  0x9e   : > { %v10069_v13 = vpop.permute.xlu1 %759  ;;  %v654_v14 = vpop.permute.xlu0 %653 }
  0xa2   : > { %v10071_v15 = vpop.permute.xlu1 %761  ;;  %v656_v16 = vpop.permute.xlu0 %655 }
  0xa3   : > { %v663_v55 = vsel %vm661_vm1, %v654_v14, %v656_v16  ;;  %v767_v1 = vsel %vm765_vm3, %v10069_v13, %v10071_v15 }
  0xa4   : > { %v840_v61 = vrot.slane %v663_v55, 7 }
  0xa6   : > { %v658_v17 = vpop.permute.xlu1 %657  ;;  %v652_v18 = vpop.permute.xlu0 %651 }
  0xa7   : > { %v662_v56 = vsel %vm661_vm1, %v656_v16, %v658_v17  ;;  %v664_v57 = vsel %vm661_vm1, %v652_v18, %v654_v14  ;;  %v665_v58 = vsel %vm661_vm1, %v658_v17, %v652_v18  ;;  %v10176_v14 = vand.u32 4294901760, %v1143_v60 }
  0xa8   : > { %v841_v62 = vrot.slane %v662_v56, 7  ;;  %v839_v4 = vrot.slane %v664_v57, 7  ;;  %v842_v5 = vrot.slane %v665_v58, 7  ;;  %v924_v16 = vrot.slane %v767_v1, 7 }
  0xa9   : > { %v993_v17 = vsel %vm12752_vm4, %v9974_v6, %v840_v61 }
  0xaa   : > { %v10073_v19 = vpop.permute.xlu1 %670  ;;  %v10075_v20 = vpop.permute.xlu0 %668  ;;  %v994_v18 = vsel %vm12752_vm4, %v9979_v7, %v841_v62  ;;  %v992_v44 = vsel %vm12752_vm4, %v9991_v11, %v839_v4  ;;  %v995_v55 = vsel %vm12752_vm4, %v9988_v10, %v842_v5 }
  0xab   : > { %v676_v59 = vsel %vm674_vm2, %v10075_v20, %v10073_v19 }
  0xac   : > { %v852_v8 = vrot.slane %v676_v59, 6 }
  0xae   : > { %v10077_v21 = vpop.permute.xlu1 %763  ;;  %v10079_v22 = vpop.permute.xlu0 %757 }
  0xaf   : > { %v10186_v31 = vsel %vm765_vm3, %v10071_v15, %v10077_v21  ;;  %v998_v15 = vsel %vm996_vm5, %v993_v17, %v852_v8  ;;  %v10209_v11 = vsel %vm765_vm3, %v10079_v22, %v10069_v13  ;;  %v769_v13 = vsel %vm765_vm3, %v10077_v21, %v10079_v22 }
  0xb0   : > { %v923_v60 = vrot.slane %v10209_v11, 7  ;;  %v926_v4 = vrot.slane %v769_v13, 7  ;;  %vm1011_vm3 = vcmask 1044480  }
  0xb2   : > { %v10081_v23 = vpop.permute.xlu1 %774  ;;  %v10083_v24 = vpop.permute.xlu0 %772 }
  0xb6   : > { %v10085_v25 = vpop.permute.xlu1 %672  ;;  %v10087_v26 = vpop.permute.xlu0 %666 }
  0xb7   : > { %v675_v6 = vsel %vm674_vm2, %v10073_v19, %v10085_v25  ;;  %v677_v7 = vsel %vm674_vm2, %v10087_v26, %v10075_v20  ;;  %v678_v10 = vsel %vm674_vm2, %v10085_v25, %v10087_v26  ;;  %v925_v20 = vrot.slane %v10186_v31, 7 }
  0xb8   : > { %v780_v26 = vsel %vm778_vm6, %v10083_v24, %v10081_v23  ;;  %v853_v57 = vrot.slane %v675_v6, 6  ;;  %v851_v58 = vrot.slane %v677_v7, 6  ;;  %v854_v61 = vrot.slane %v678_v10, 6 }
  0xb9   : > { %v936_v17 = vrot.slane %v780_v26, 6 }
  0xba   : > { %v10089_v27 = vpop.permute.xlu1 %683  ;;  %v10091_v28 = vpop.permute.xlu0 %681  ;;  %v997_v7 = vsel %vm996_vm5, %v992_v44, %v851_v58 }
  0xbb   : > { %v689_v19 = vsel %vm687_vm7, %v10091_v28, %v10089_v27 }
  0xbc   : > { %v864_v62 = vrot.slane %v689_v19, 5 }
  0xbe   : > { %v10093_v29 = vpop.permute.xlu1 %748  ;;  %v10095_v30 = vpop.permute.xlu0 %746  ;;  %v1003_v13 = vsel %vm1001_vm8, %v998_v15, %v864_v62 }
  0xbf   : > { %v754_v56 = vsel %vm752_vm9, %v10095_v30, %v10093_v29 }
  0xc2   : > { %v10100_v33 = vpop.permute.xlu1 %776  ;;  %v10102_v34 = vpop.permute.xlu0 %770 }
  0xc3   : > { %v779_v5 = vsel %vm778_vm6, %v10081_v23, %v10100_v33  ;;  %v781_v31 = vsel %vm778_vm6, %v10102_v34, %v10083_v24  ;;  %v1000_v24 = vsel %vm996_vm5, %v995_v55, %v854_v61 }
  0xc6   : > { %v10104_v35 = vpop.permute.xlu1 %787  ;;  %v10106_v36 = vpop.permute.xlu0 %785 }
  0xc7   : > { %v793_v25 = vsel %vm791_vm10, %v10106_v36, %v10104_v35 }
  0xc8   : > { %v948_v8 = vrot.slane %v793_v25, 5 }
  0xca   : > { %v10108_v37 = vpop.permute.xlu1 %685  ;;  %v10110_v38 = vpop.permute.xlu0 %679 }
  0xcb   : > { %v688_v21 = vsel %vm687_vm7, %v10089_v27, %v10108_v37  ;;  %v690_v1 = vsel %vm687_vm7, %v10110_v38, %v10091_v28  ;;  %v1027_v27 = vsel %vm12752_vm4, %v754_v56, %v924_v16  ;;  %v782_v28 = vsel %vm778_vm6, %v10100_v33, %v10102_v34 }
  0xcc   : > { %v865_v6 = vrot.slane %v688_v21, 5  ;;  %v999_v16 = vsel %vm996_vm5, %v994_v18, %v853_v57  ;;  %v691_v23 = vsel %vm687_vm7, %v10108_v37, %v10110_v38  ;;  %v863_v11 = vrot.slane %v690_v1, 5 }
  0xcd   : > { %v1031_v33 = vsel %vm996_vm5, %v1027_v27, %v936_v17  ;;  %v937_v34 = vrot.slane %v779_v5, 6  ;;  %v935_v18 = vrot.slane %v781_v31, 6  ;;  %v938_v56 = vrot.slane %v782_v28, 6 }
  0xce   : > { %v10112_v39 = vpop.permute.xlu1 %696  ;;  %v10114_v40 = vpop.permute.xlu0 %694  ;;  %v1035_v44 = vsel %vm1001_vm8, %v1031_v33, %v948_v8  ;;  %v1004_v38 = vsel %vm1001_vm8, %v999_v16, %v865_v6  ;;  %v866_v25 = vrot.slane %v691_v23, 5  ;;  %v1002_v26 = vsel %vm1001_vm8, %v997_v7, %v863_v11 }
  0xcf   : > { %v702_v37 = vsel %vm700_vm11, %v10114_v40, %v10112_v39  ;;  %vm726_vm6 = vcmp.lt.s32.totalorder %v10130_v48, 122 }
  0xd0   : > { %v876_v61 = vrot.slane %v702_v37, 4 }
  0xd2   : > { %v10119_v42 = vpop.permute.xlu1 %750  ;;  %v10121_v43 = vpop.permute.xlu0 %744  ;;  %v1008_v17 = vsel %vm1006_vm15, %v1003_v13, %v876_v61 }
  0xd3   : > { %v753_v55 = vsel %vm752_vm9, %v10093_v29, %v10119_v42  ;;  %v755_v15 = vsel %vm752_vm9, %v10121_v43, %v10095_v30  ;;  %v756_v57 = vsel %vm752_vm9, %v10119_v42, %v10121_v43  ;;  %vm1021_vm9 = vcmask 1046528  }
  0xd4   : > { %v1028_v43 = vsel %vm12752_vm4, %v753_v55, %v925_v20  ;;  %v1026_v62 = vsel %vm12752_vm4, %v755_v15, %v923_v60  ;;  %v1029_v1 = vsel %vm12752_vm4, %v756_v57, %v926_v4  ;;  %v1005_v4 = vsel %vm1001_vm8, %v1000_v24, %v866_v25 }
  0xd5   : > { %v1032_v6 = vsel %vm996_vm5, %v1028_v43, %v937_v34  ;;  %v1030_v16 = vsel %vm996_vm5, %v1026_v62, %v935_v18  ;;  %v1033_v7 = vsel %vm996_vm5, %v1029_v1, %v938_v56  ;;  %vm739_vm4 = vcmp.lt.s32.totalorder %v10130_v48, 121 }
  0xd6   : > { %v10125_v46 = vpop.permute.xlu1 %789  ;;  %v10127_v47 = vpop.permute.xlu0 %783  ;;  %vm3449_vm5 = vcmask 326656  }
  0xd7   : > { %v792_v58 = vsel %vm791_vm10, %v10104_v35, %v10125_v46  ;;  %v794_v29 = vsel %vm791_vm10, %v10127_v47, %v10106_v36  ;;  %v795_v42 = vsel %vm791_vm10, %v10125_v46, %v10127_v47  ;;  %vm1016_vm10 = vcmask 1045504  }
  0xd8   : > { %v947_v27 = vrot.slane %v794_v29, 5  ;;  %v950_v60 = vrot.slane %v795_v42, 5 }
  0xda   : > { %v10135_v50 = vpop.permute.xlu1 %800  ;;  %v10137_v51 = vpop.permute.xlu0 %798  ;;  %v1034_v33 = vsel %vm1001_vm8, %v1030_v16, %v947_v27  ;;  %v1037_v37 = vsel %vm1001_vm8, %v1033_v7, %v950_v60 }
  0xdb   : > { %v806_v35 = vsel %vm804_vm12, %v10137_v51, %v10135_v50 }
  0xdc   : > { %v960_v5 = vrot.slane %v806_v35, 4 }
  0xde   : > { %v10144_v53 = vpop.permute.xlu1 %698  ;;  %v10146_v54 = vpop.permute.xlu0 %692  ;;  %v1039_v34 = vsel %vm1006_vm15, %v1035_v44, %v960_v5 }
  0xdf   : > { %v701_v36 = vsel %vm700_vm11, %v10112_v39, %v10144_v53  ;;  %v703_v46 = vsel %vm700_vm11, %v10146_v54, %v10114_v40  ;;  %v704_v47 = vsel %vm700_vm11, %v10144_v53, %v10146_v54  ;;  %v949_v39 = vrot.slane %v792_v58, 5 }
  0xe0   : > { %v877_v8 = vrot.slane %v701_v36, 4  ;;  %v875_v31 = vrot.slane %v703_v46, 4  ;;  %v878_v28 = vrot.slane %v704_v47, 4 }
  0xe1   : > { %v1036_v11 = vsel %vm1001_vm8, %v1032_v6, %v949_v39  ;;  %vm4630_vm8 = vcmask 195584  }
  0xe2   : > { %v10163_v63 = vpop.permute.xlu1 %709  ;;  %v10165_v0 = vpop.permute.xlu0 %707  ;;  %v1009_v18 = vsel %vm1006_vm15, %v1004_v38, %v877_v8  ;;  %v1007_v15 = vsel %vm1006_vm15, %v1002_v26, %v875_v31  ;;  %v1010_v57 = vsel %vm1006_vm15, %v1005_v4, %v878_v28 }
  0xe3   : > { %v715_v20 = vsel %vm713_vm13, %v10165_v0, %v10163_v63 }
  0xe4   : > { %v888_v23 = vrot.slane %v715_v20, 3 }
  0xe6   : > { %v10188_v32 = vpop.permute.xlu1 %802  ;;  %v10190_v41 = vpop.permute.xlu0 %796  ;;  %v1013_v38 = vsel %vm1011_vm3, %v1008_v17, %v888_v23 }
  0xe7   : > { %v805_v24 = vsel %vm804_vm12, %v10135_v50, %v10188_v32  ;;  %v807_v56 = vsel %vm804_vm12, %v10190_v41, %v10137_v51  ;;  %v808_v50 = vsel %vm804_vm12, %v10188_v32, %v10190_v41 }
  0xe8   : > { %v961_v58 = vrot.slane %v805_v24, 4  ;;  %v959_v26 = vrot.slane %v807_v56, 4  ;;  %v962_v42 = vrot.slane %v808_v50, 4 }
  0xea   : > { %v10242_v22 = vpop.permute.xlu1 %813  ;;  %v10244_v59 = vpop.permute.xlu0 %811  ;;  %v1040_v47 = vsel %vm1006_vm15, %v1036_v11, %v961_v58  ;;  %v1041_v17 = vsel %vm1006_vm15, %v1037_v37, %v962_v42 }
  0xeb   : > { %v819_v40 = vsel %vm817_vm14, %v10244_v59, %v10242_v22 }
  0xec   : > { %v972_v13 = vrot.slane %v819_v40, 3 }
  0xee   : > { %v10271_v10 = vpop.permute.xlu1 %711  ;;  %v10273_v19 = vpop.permute.xlu0 %705  ;;  %v1043_v61 = vsel %vm1011_vm3, %v1039_v34, %v972_v13 }
  0xef   : > { %v714_v51 = vsel %vm713_vm13, %v10163_v63, %v10271_v10  ;;  %v716_v32 = vsel %vm713_vm13, %v10273_v19, %v10165_v0  ;;  %v717_v41 = vsel %vm713_vm13, %v10271_v10, %v10273_v19 }
  0xf0   : > { %v889_v0 = vrot.slane %v714_v51, 3  ;;  %v887_v1 = vrot.slane %v716_v32, 3  ;;  %v890_v39 = vrot.slane %v717_v41, 3 }
  0xf2   : > { %v10306_v21 = vpop.permute.xlu1 %722  ;;  %v10308_v30 = vpop.permute.xlu0 %720  ;;  %v1014_v31 = vsel %vm1011_vm3, %v1009_v18, %v889_v0  ;;  %v1012_v6 = vsel %vm1011_vm3, %v1007_v15, %v887_v1  ;;  %v1015_v16 = vsel %vm1011_vm3, %v1010_v57, %v890_v39 }
  0xf3   : > { %v728_v63 = vsel %vm726_vm6, %v10308_v30, %v10306_v21 }
  0xf4   : > { %v900_v20 = vrot.slane %v728_v63, 2 }
  0xf6   : > { %v816_v53 = vpop.permute.xlu1 %815  ;;  %v810_v54 = vpop.permute.xlu0 %809  ;;  %v1018_v23 = vsel %vm1016_vm10, %v1013_v38, %v900_v20 }
  0xf7   : > { %v818_v35 = vsel %vm817_vm14, %v10242_v22, %v816_v53  ;;  %v820_v46 = vsel %vm817_vm14, %v810_v54, %v10244_v59  ;;  %v821_v10 = vsel %vm817_vm14, %v816_v53, %v810_v54  ;;  %v1038_v22 = vsel %vm1006_vm15, %v1034_v33, %v959_v26 }
  0xf8   : > { %v973_v60 = vrot.slane %v818_v35, 3  ;;  %v971_v8 = vrot.slane %v820_v46, 3  ;;  %v974_v59 = vrot.slane %v821_v10, 3 }
  0xfa   : > { %v827_v25 = vpop.permute.xlu1 %826  ;;  %v825_v55 = vpop.permute.xlu0 %824  ;;  %v1044_v11 = vsel %vm1011_vm3, %v1040_v47, %v973_v60  ;;  %v1042_v13 = vsel %vm1011_vm3, %v1038_v22, %v971_v8  ;;  %v1045_v37 = vsel %vm1011_vm3, %v1041_v17, %v974_v59  ;;  %vm6530_vm3 = vcmask 318464  }
  0xfb   : > { %v832_v44 = vsel %vm830_vm0, %v825_v55, %v827_v25 }
  0xfc   : > { %v984_v29 = vrot.slane %v832_v44, 2 }
  0xfe   : > { %v725_v36 = vpop.permute.xlu1 %724  ;;  %v719_v43 = vpop.permute.xlu0 %718  ;;  %v1047_v62 = vsel %vm1016_vm10, %v1043_v61, %v984_v29 }
  0xff   : > { %v1063_v19 = vsel %vm1021_vm9, %v1047_v62, 0  ;;  %v727_v5 = vsel %vm726_vm6, %v10306_v21, %v725_v36  ;;  %v729_v40 = vsel %vm726_vm6, %v719_v43, %v10308_v30  ;;  %v730_v28 = vsel %vm726_vm6, %v725_v36, %v719_v43 }
 0x100   : > { %v1075_v27 = vand.u32 4294901760, %v1063_v19  ;;  %v901_v7 = vrot.slane %v727_v5, 2  ;;  %v899_v33 = vrot.slane %v729_v40, 2  ;;  %v902_v34 = vrot.slane %v730_v28, 2 }
 0x102   : > { %v736_v53 = vpop.permute.xlu1 %735  ;;  %v734_v54 = vpop.permute.xlu0 %733  ;;  %v10405_v4 = vsub.f32 %v1063_v19, %v1075_v27  ;;  %v1019_v58 = vsel %vm1016_vm10, %v1014_v31, %v901_v7  ;;  %v1017_v61 = vsel %vm1016_vm10, %v1012_v6, %v899_v33 }
 0x103   : > { %v741_v21 = vsel %vm739_vm4, %v734_v54, %v736_v53 }
 0x104   : > { %v912_v30 = vrot.slane %v741_v21, 1  ;;  %v1165_v24 = vand.u32 4294901760, %v10405_v4 }
 0x106   : > { %v829_v18 = vpop.permute.xlu1 %828  ;;  %v823_v56 = vpop.permute.xlu0 %822  ;;  %v1023_v15 = vsel %vm1021_vm9, %v1018_v23, %v912_v30 }
 0x107   : > { %v831_v57 = vsel %vm830_vm0, %v827_v25, %v829_v18  ;;  %v833_v50 = vsel %vm830_vm0, %v823_v56, %v825_v55  ;;  %v834_v44 = vsel %vm830_vm0, %v829_v18, %v823_v56  ;;  %v1071_v38 = vand.u32 4294901760, %v1023_v15 }
 0x108   : > { %v985_v51 = vrot.slane %v831_v57, 2  ;;  %v983_v29 = vrot.slane %v833_v50, 2  ;;  %v986_v26 = vrot.slane %v834_v44, 2  ;;  %v1166_v25 = vsub.f32 %v10405_v4, %v1165_v24 }
 0x109   : > { %v10429_v32 = vpack.c.bf16 %v1075_v27, %v1071_v38  ;;  %v10431_v41 = vsub.f32 %v1023_v15, %v1071_v38  ;;  %v1020_v55 = vsel %vm1016_vm10, %v1015_v16, %v902_v34 }
 0x10a   : > { %v738_v42 = vpop.permute.xlu1 %737  ;;  %v732_v63 = vpop.permute.xlu0 %731  ;;  %v1046_v35 = vsel %vm1016_vm10, %v1042_v13, %v983_v29  ;;  %v1049_v36 = vsel %vm1016_vm10, %v1045_v37, %v986_v26  ;;  %v1048_v43 = vsel %vm1016_vm10, %v1044_v11, %v985_v51  ;;  %v1167_v20 = vand.u32 4294901760, %v1166_v25 }
 0x10b   : > { %v740_v62 = vsel %vm739_vm4, %v736_v53, %v738_v42  ;;  %v742_v0 = vsel %vm739_vm4, %v732_v63, %v734_v54  ;;  %v743_v46 = vsel %vm739_vm4, %v738_v42, %v732_v63  ;;  %8540 = vmatprep.subr.bf16.mxu0 %v10429_v32  ;;  %v1060_v10 = vsel %vm1021_vm9, %v1046_v35, 0 }
 0x10c   : > { %v913_v19 = vrot.slane %v740_v62, 1  ;;  %v911_v47 = vrot.slane %v742_v0, 1  ;;  %v914_v1 = vrot.slane %v743_v46, 1  ;;  %v1077_v39 = vand.u32 4294901760, %v1060_v10 }
 0x10d   : > { %v1069_v27 = vsel %vm1021_vm9, %v1049_v36, 0  ;;  %v1153_v22 = vand.u32 4294901760, %v10431_v41  ;;  %v1066_v60 = vsel %vm1021_vm9, %v1048_v43, 0  ;;  %v8547_v0 = vpack.c.bf16 %v10405_v4, %v10431_v41 }
 0x10e   : > { %v1022_v5 = vsel %vm1021_vm9, %v1017_v61, %v911_v47  ;;  %v10452_v8 = vsub.f32 %v1060_v10, %v1077_v39  ;;  %v1025_v59 = vsel %vm1021_vm9, %v1020_v55, %v914_v1  ;;  %v1566_v40 = vand.u32 4294901760, %v1069_v27 }
 0x10f   : > { %v1073_v53 = vand.u32 4294901760, %v1022_v5  ;;  %v1562_v54 = vand.u32 4294901760, %v1025_v59  ;;  %v1154_v17 = vsub.f32 %v10431_v41, %v1153_v22  ;;  %v1024_v31 = vsel %vm1021_vm9, %v1019_v58, %v913_v19 }
 0x110   : > { %v10459_v28 = vsub.f32 %v1069_v27, %v1566_v40  ;;  %v1564_v21 = vand.u32 4294901760, %v1024_v31  ;;  %v1568_v6 = vand.u32 4294901760, %v1066_v60  ;;  %v1171_v16 = vand.u32 4294901760, %v10452_v8 }
 0x111   : > { %v10462_v7 = vpack.c.bf16 %v1077_v39, %v1073_v53  ;;  %v10464_v30 = vsub.f32 %v1022_v5, %v1073_v53  ;;  %v10466_v23 = vpack.c.bf16 %v1566_v40, %v1562_v54  ;;  %v1643_v11 = vsub.f32 %v1025_v59, %v1562_v54 }
 0x112   : > { %v1155_v33 = vand.u32 4294901760, %v1154_v17  ;;  %v10468_v13 = vpack.c.bf16 %v1568_v6, %v1564_v21  ;;  %v1649_v37 = vsub.f32 %v1024_v31, %v1564_v21  ;;  %v1661_v34 = vsub.f32 %v1066_v60, %v1568_v6  ;;  %v2062_v31 = vld [vmem:[%s12857_s7] sm:$0xff]  ;;  %s9800_s7 = smov 4  }
 0x113   : > { %8542 = vmatpush1.bf16.msra.mxu0 %v10462_v7  ;;  %8564 = vmatprep.subr.bf16.mxu1 %v10466_v23  ;;  %v1159_v18 = vand.u32 4294901760, %v10464_v30  ;;  %v1172_v56 = vsub.f32 %v10452_v8, %v1171_v16  ;;  %v1644_v15 = vand.u32 4294901760, %v1643_v11  ;;  %v1656_v57 = vand.u32 4294901760, %v10459_v28 }
 0x114   : > { %v8543_v50 = vpack.c.bf16 %v1167_v20, %v1155_v33  ;;  %8566 = vmatpush1.bf16.msra.mxu1 %v10468_v13  ;;  %v1650_v44 = vand.u32 4294901760, %v1649_v37  ;;  %v1662_v38 = vand.u32 4294901760, %v1661_v34  ;;  %v8549_v10 = vpack.c.bf16 %v10452_v8, %v10464_v30 }
 0x115   : > { %v1160_v58 = vsub.f32 %v10464_v30, %v1159_v18  ;;  %v1645_v51 = vsub.f32 %v1643_v11, %v1644_v15  ;;  %v1657_v29 = vsub.f32 %v10459_v28, %v1656_v57  ;;  %v1173_v55 = vand.u32 4294901760, %v1172_v56 }
 0x116   : > { %8544 = vmatprep.subr.bf16.mxu0 %v8543_v50  ;;  %1145 = vmatmul.mubr.f32.vlgmr.msra.gmra.mrb[0].mxu0 %v10176_v14  ;;  %v1651_v26 = vsub.f32 %v1649_v37, %v1650_v44  ;;  %v1663_v61 = vsub.f32 %v1661_v34, %v1662_v38  ;;  %v8573_v19 = vpack.c.bf16 %v1661_v34, %v1649_v37  ;;  %vm2140_vm4 = vcmask 457728  }
 0x117   : > { %1636 = vmatmul.mubr.f32.vlgmr.msra.gmra.mrb[0].mxu1 %v10176_v14  ;;  %v1161_v25 = vand.u32 4294901760, %v1160_v58  ;;  %v1646_v42 = vand.u32 4294901760, %v1645_v51  ;;  %v1658_v63 = vand.u32 4294901760, %v1657_v29  ;;  %1235 = vmatprep.mubr.f32.mxu0 %v12765_v12  ;;  %v8571_v14 = vpack.c.bf16 %v10459_v28, %v1643_v11 }
 0x118   : > { %v1652_v35 = vand.u32 4294901760, %v1651_v26  ;;  %v1664_v36 = vand.u32 4294901760, %v1663_v61  ;;  %1726 = vmatprep.mubr.f32.mxu1 %v12765_v12  ;;  %v8555_v47 = vpack.c.bf16 %v1165_v24, %v1153_v22  ;;  %v8579_v1 = vpack.c.bf16 %v1656_v57, %v1644_v15 }
 0x119   : > { %v8545_v43 = vpack.c.bf16 %v1173_v55, %v1161_v25  ;;  %v8567_v62 = vpack.c.bf16 %v1658_v63, %v1646_v42  ;;  %v8557_v39 = vpack.c.bf16 %v1171_v16, %v1159_v18  ;;  %v8581_v4 = vpack.c.bf16 %v1662_v38, %v1650_v44 }
 0x11a   : > { %v8569_v46 = vpack.c.bf16 %v1664_v36, %v1652_v35  ;;  %vm7167_vm9 = vcmask 39936  }
 0x11b   : > { %8546 = vmatpush1.bf16.msra.mxu0 %v8545_v43  ;;  %8568 = vmatprep.subr.bf16.mxu1 %v8567_v62 }
 0x11c   : > { %8548 = vmatprep.subr.bf16.mxu0 %v8547_v0  ;;  %8570 = vmatpush1.bf16.msra.mxu1 %v8569_v46 }
 0x11d   : > { %8572 = vmatprep.subr.bf16.mxu1 %v8571_v14 }
 0x11e   : > { %1237 = vmatmul.mubr.f32.vlgmr.msra.gmra.mrb[0].mxu0 %v10123_v45 }
 0x11f   : > { %8550 = vmatpush1.bf16.msra.mxu0 %v8549_v10  ;;  %1728 = vmatmul.mubr.f32.vlgmr.msra.gmra.mrb[0].mxu1 %v10123_v45 }
 0x120   : > { %8552 = vmatprep.subr.bf16.mxu0 %v10429_v32  ;;  %8574 = vmatpush1.bf16.msra.mxu1 %v8573_v19 }
 0x121   : > { %8576 = vmatprep.subr.bf16.mxu1 %v10466_v23  ;;  %1315 = vmatprep.mubr.f32.mxu0 %v12765_v12 }
 0x122   : > { %1806 = vmatprep.mubr.f32.mxu1 %v12765_v12 }
 0x126   : > { %1318 = vmatmul.mubr.f32.vlgmr.msra.gmra.mrb[0].mxu0 %v10133_v49 }
 0x127   : > { %8554 = vmatpush1.bf16.msra.mxu0 %v10462_v7  ;;  %1809 = vmatmul.mubr.f32.vlgmr.msra.gmra.mrb[0].mxu1 %v10133_v49  ;;  %v1053_v49 = vpop.permute.xlu0 %1052 }
 0x128   : > { %8556 = vmatprep.subr.bf16.mxu0 %v8555_v47  ;;  %8578 = vmatpush1.bf16.msra.mxu1 %v10468_v13 }
 0x129   : > { %8580 = vmatprep.subr.bf16.mxu1 %v8579_v1  ;;  %1392 = vmatprep.mubr.f32.mxu0 %v12765_v12 }
 0x12a   : > { %1883 = vmatprep.mubr.f32.mxu1 %v12765_v12 }
 0x12e   : > { %1396 = vmatmul.mubr.f32.vlgmr.msra.gmra.mrb[0].mxu0 %v10141_v52 }
 0x12f   : > { %8558 = vmatpush1.bf16.msra.mxu0 %v8557_v39  ;;  %1887 = vmatmul.mubr.f32.vlgmr.msra.gmra.mrb[0].mxu1 %v10141_v52 }
 0x130   : > { %8560 = vmatprep.subr.bf16.mxu0 %v10429_v32  ;;  %8582 = vmatpush1.bf16.msra.mxu1 %v8581_v4 }
 0x131   : > { %8584 = vmatprep.subr.bf16.mxu1 %v10466_v23  ;;  %1478 = vmatprep.mubr.f32.mxu0 %v12765_v12 }
 0x132   : > { %1969 = vmatprep.mubr.f32.mxu1 %v12765_v12 }
 0x136   : > { %1480 = vmatmul.mubr.f32.vlgmr.msra.gmra.mrb[0].mxu0 %v10123_v45 }
 0x137   : > { %8562 = vmatpush1.bf16.msra.mxu0 %v10462_v7  ;;  %1971 = vmatmul.mubr.f32.vlgmr.msra.gmra.mrb[0].mxu1 %v10123_v45  ;;  %v2061_v7 = vld [vmem:[%s12858_s6] sm:$0xff]  ;;  %s9799_s6 = smov 5  }
 0x138   : > { %8586 = vmatpush1.bf16.msra.mxu1 %v10468_v13  ;;  %1554 = vmatprep.mubr.f32.mxu0 %v12765_v12  ;;  %v2142_v33 = vsel %vm2140_vm4, %v2061_v7, 0 }
 0x139   : > { %2045 = vmatprep.mubr.f32.mxu1 %v12765_v12  ;;  %v10604_v57 = vand.u32 4294901760, %v2142_v33 }
 0x13b   : > { %v10625_v26 = vsub.f32 %v2142_v33, %v10604_v57 }
 0x13d   : > { %v10638_v36 = vand.u32 4294901760, %v10625_v26 }
 0x13e   : > { %1556 = vmatmul.mubr.f32.vlgmr.msra.gmra.mrb[0].mxu0 %v10123_v45 }
 0x13f   : > { %2047 = vmatmul.mubr.f32.vlgmr.msra.gmra.mrb[0].mxu1 %v10123_v45  ;;  %2222 = vmatprep.mubr.f32.mxu0 %v12765_v12  ;;  %12859 = vst [vmem:[#allocation10_spill] sm:$0xff] %v10638_v36 }
 0x140   : > { %2843 = vmatprep.mubr.f32.mxu1 %v12765_v12 }
 0x211   : > { %v1557_v52 = vpop.f32.mrb[0].mxu0 }
 0x212   : > { %v9293_v24 = vadd.f32 %v1557_v52, %v1053_v49  ;;  %v1559_v32 = vpop.f32.mrb[1].mxu0  ;;  %v2048_v41 = vpop.f32.mrb[0].mxu1 }
 0x213   : > { %v9295_v27 = vadd.f32 %v2048_v41, %v1053_v49  ;;  %v2050_v22 = vpop.f32.mrb[1].mxu1  ;;  %v9294_v45 = vadd.f32 %v1559_v32, %v1053_v49 }
 0x214   : > { %v2053_v20 = vmul.f32 0.2, %v9293_v24  ;;  %v9296_v40 = vadd.f32 %v2050_v22, %v1053_v49 }
 0x215   : > { %v2055_v60 = vmul.f32 0.2, %v9295_v27  ;;  %v2054_v59 = vmul.f32 0.2, %v9294_v45 }
 0x216   : > { %v10523_v5 = vmax.f32 %v9293_v24, %v2053_v20  ;;  %v2056_v54 = vmul.f32 0.2, %v9296_v40 }
 0x217   : > { %v10525_v8 = vmax.f32 %v9295_v27, %v2055_v60  ;;  %v10547_v53 = vmax.f32 %v9294_v45, %v2054_v59  ;;  %v2226_v27 = vsub.f32 %v10625_v26, %v10638_v36 }
 0x218   : > { %2063 = vrot.lane.b32.xlu0 %v10523_v5, %s12817_s4  ;;  %v10553_v17 = vmax.f32 %v9296_v40, %v2056_v54  ;;  %v2146_v23 = vand.u32 4294901760, %v10523_v5 }
 0x219   : > { %2067 = vrot.lane.b32.xlu1 %v10525_v8, %s12817_s4  ;;  %v2144_v13 = vand.u32 4294901760, %v10547_v53  ;;  %v2767_v18 = vand.u32 4294901760, %v10525_v8 }
 0x21a   : > { %v10598_v34 = vsub.f32 %v10523_v5, %v2146_v23  ;;  %v2765_v15 = vand.u32 4294901760, %v10553_v17 }
 0x21b   : > { %v10607_v50 = vsub.f32 %v10547_v53, %v2144_v13  ;;  %v10614_v38 = vsub.f32 %v10525_v8, %v2767_v18 }
 0x21c   : > { %2075 = vrot.lane.b32.xlu0 %v10523_v5, %s12800_s0  ;;  %v12761_v58 = vand.u32 4294901760, %v10598_v34  ;;  %v10622_v29 = vsub.f32 %v10553_v17, %v2765_v15 }
 0x21d   : > { %2079 = vrot.lane.b32.xlu1 %v10525_v8, %s12800_s0  ;;  %v12762_v61 = vand.u32 4294901760, %v10607_v50  ;;  %v12759_v42 = vand.u32 4294901760, %v10614_v38 }
 0x21e   : > { %v10631_v55 = vsub.f32 %v10598_v34, %v12761_v58  ;;  %v12760_v43 = vand.u32 4294901760, %v10622_v29 }
 0x21f   : > { %v10651_v19 = vsub.f32 %v10607_v50, %v12762_v61  ;;  %v10659_v49 = vsub.f32 %v10614_v38, %v12759_v42 }
 0x220   : > { %2087 = vrot.lane.b32.xlu0 %v10523_v5, %s12755_s1 }
 0x221   : > { %2091 = vrot.lane.b32.xlu1 %v10525_v8, %s12755_s1 }
 0x224   : > { %2099 = vrot.lane.b32.xlu0 %v10523_v5, %s12753_s27 }
 0x225   : > { %2103 = vrot.lane.b32.xlu1 %v10525_v8, %s12753_s27 }
 0x228   : > { %2111 = vrot.lane.b32.xlu0 %v10523_v5, %s12856_s28 }
 0x229   : > { %2115 = vrot.lane.b32.xlu1 %v10525_v8, %s12856_s28 }
 0x22c   : > { %2077 = vrot.lane.b32.xlu0 %v10547_v53, %s12800_s0 }
 0x22d   : > { %2065 = vrot.lane.b32.xlu1 %v10547_v53, %s12817_s4 }
 0x230   : > { %2089 = vrot.lane.b32.xlu0 %v10547_v53, %s12755_s1 }
 0x231   : > { %2069 = vrot.lane.b32.xlu1 %v10553_v17, %s12817_s4 }
 0x234   : > { %2101 = vrot.lane.b32.xlu0 %v10547_v53, %s12753_s27 }
 0x235   : > { %2081 = vrot.lane.b32.xlu1 %v10553_v17, %s12800_s0 }
 0x238   : > { %2113 = vrot.lane.b32.xlu0 %v10547_v53, %s12856_s28 }
 0x239   : > { %2093 = vrot.lane.b32.xlu1 %v10553_v17, %s12755_s1  ;;  %s12918_s1 = smov 125  }
 0x23c   : > { %2125 = vrot.lane.b32.xlu0 %v10547_v53, %s9792_s3 }
 0x23d   : > { %2105 = vrot.lane.b32.xlu1 %v10553_v17, %s12753_s27  ;;  %s12919_s27 = smov 124  }
 0x240   : > { %2123 = vrot.lane.b32.xlu0 %v10523_v5, %s9792_s3  ;;  %v10678_v5 = vsub.f32 %v10622_v29, %v12760_v43 }
 0x241   : > { %2117 = vrot.lane.b32.xlu1 %v10553_v17, %s12856_s28 }
 0x244   : > { %2137 = vperm.xlu0 %9482, %v2062_v31  }
 0x245   : > { %2127 = vrot.lane.b32.xlu1 %v10525_v8, %s9792_s3 }
 0x249   : > { %2129 = vrot.lane.b32.xlu1 %v10553_v17, %s9792_s3  ;;  %s12834_s3 = smov 1  }
 0x28a   : > { %v2064_v28 = vpop.permute.xlu0 %2063 }
 0x28b   : > { %v2068_v21 = vpop.permute.xlu1 %2067 }
 0x28e   : > { %v10582_v6 = vpop.permute.xlu0 %2075 }
 0x28f   : > { %v10584_v16 = vpop.permute.xlu1 %2079 }
 0x292   : > { %v10589_v30 = vpop.permute.xlu0 %2087 }
 0x293   : > { %v10592_v11 = vpop.permute.xlu1 %2091 }
 0x296   : > { %v10595_v37 = vpop.permute.xlu0 %2099 }
 0x297   : > { %v10601_v56 = vpop.permute.xlu1 %2103 }
 0x29a   : > { %v10609_v44 = vpop.permute.xlu0 %2111 }
 0x29b   : > { %v10617_v51 = vpop.permute.xlu1 %2115 }
 0x29e   : > { %v2078_v25 = vpop.permute.xlu0 %2077 }
 0x29f   : > { %v2085_v63 = vsel %vm674_vm2, %v10582_v6, %v2078_v25  ;;  %v2066_v35 = vpop.permute.xlu1 %2065  ;;  %v2084_v62 = vsel %vm674_vm2, %v2078_v25, %v10584_v16 }
 0x2a0   : > { %v2154_v0 = vand.u32 4294901760, %v2085_v63  ;;  %v2072_v46 = vsel %vm661_vm1, %v2066_v35, %v2068_v21  ;;  %v2073_v14 = vsel %vm661_vm1, %v2064_v28, %v2066_v35  ;;  %v2152_v52 = vand.u32 4294901760, %v2084_v62 }
 0x2a1   : > { %v2150_v10 = vand.u32 4294901760, %v2073_v14  ;;  %v2148_v1 = vand.u32 4294901760, %v2072_v46  ;;  %v10691_v35 = vand.u32 4294901760, %v2226_v27 }
 0x2a2   : > { %v10653_v47 = vsub.f32 %v2085_v63, %v2154_v0  ;;  %v2090_v39 = vpop.permute.xlu0 %2089  ;;  %v10687_v33 = vsub.f32 %v2084_v62, %v2152_v52 }
 0x2a3   : > { %v10661_v24 = vsub.f32 %v2073_v14, %v2150_v10  ;;  %v2096_v32 = vsel %vm687_vm7, %v2090_v39, %v10592_v11  ;;  %v2070_v41 = vpop.permute.xlu1 %2069  ;;  %v10668_v22 = vpack.c.bf16 %v2150_v10, %v2146_v23  ;;  %v2097_v20 = vsel %vm687_vm7, %v10589_v30, %v2090_v39 }
 0x2a4   : > { %v2071_v60 = vsel %vm661_vm1, %v2068_v21, %v2070_v41  ;;  %v12758_v45 = vand.u32 4294901760, %v10653_v47  ;;  %v2158_v59 = vand.u32 4294901760, %v2097_v20  ;;  %v2074_v40 = vsel %vm661_vm1, %v2070_v41, %v2064_v28 }
 0x2a5   : > { %v2771_v53 = vand.u32 4294901760, %v2071_v60  ;;  %v12763_v54 = vand.u32 4294901760, %v10661_v24  ;;  %v2156_v31 = vand.u32 4294901760, %v2096_v32  ;;  %v10684_v7 = vpack.c.bf16 %v2148_v1, %v2144_v13 }
 0x2a6   : > { %v2102_v23 = vpop.permute.xlu0 %2101  ;;  %v10689_v25 = vsub.f32 %v2097_v20, %v2158_v59  ;;  %v10694_v10 = vsub.f32 %v2072_v46, %v2148_v1  ;;  %v2769_v28 = vand.u32 4294901760, %v2074_v40  ;;  %v10706_v39 = vsub.f32 %v10653_v47, %v12758_v45 }
 0x2a7   : > { %v2082_v63 = vpop.permute.xlu1 %2081  ;;  %8588 = vmatprep.subr.bf16.mxu0 %v10684_v7  ;;  %v2108_v13 = vsel %vm700_vm11, %v2102_v23, %v10601_v56  ;;  %v2109_v62 = vsel %vm700_vm11, %v10595_v37, %v2102_v23  ;;  %v10708_v41 = vsub.f32 %v2071_v60, %v2771_v53  ;;  %v10717_v27 = vsub.f32 %v10661_v24, %v12763_v54 }
 0x2a8   : > { %v2162_v46 = vand.u32 4294901760, %v2109_v62  ;;  %8590 = vmatpush1.bf16.msra.mxu0 %v10668_v22  ;;  %v2083_v1 = vsel %vm674_vm2, %v10584_v16, %v2082_v63  ;;  %v10719_v20 = vsub.f32 %v2096_v32, %v2156_v31  ;;  %v10721_v3 = vpack.c.bf16 %v2156_v31, %v2152_v52 }
 0x2a9   : > { %v2775_v23 = vand.u32 4294901760, %v2083_v1  ;;  %v10723_v60 = vpack.c.bf16 %v2158_v59, %v2154_v0  ;;  %v12764_v42 = vand.u32 4294901760, %v10689_v25  ;;  %v10728_v43 = vpack.c.bf16 %v2771_v53, %v2767_v18 }
 0x2aa   : > { %v2114_v45 = vpop.permute.xlu0 %2113  ;;  %v2160_v16 = vand.u32 4294901760, %v2108_v13  ;;  %v10730_v61 = vsub.f32 %v2109_v62, %v2162_v46  ;;  %v2086_v32 = vsel %vm674_vm2, %v2082_v63, %v10582_v6  ;;  %8592 = vmatprep.subr.bf16.mxu0 %v10721_v3  ;;  %v10738_v0 = vpack.c.bf16 %v2769_v28, %v2765_v15 }
 0x2ab   : > { %12860 = vst [vmem:[#allocation11_spill] sm:$0xff] %v10723_v60  ;;  %12861 = vst [vmem:[#allocation12_spill] sm:$0xff] %v10728_v43  ;;  %v2094_v58 = vpop.permute.xlu1 %2093  ;;  %v2120_v8 = vsel %vm713_vm13, %v2114_v45, %v10617_v51  ;;  %v10743_v18 = vsub.f32 %v2074_v40, %v2769_v28  ;;  %v12767_v52 = vand.u32 4294901760, %v10708_v41  ;;  %v10746_v59 = vsub.f32 %v2083_v1, %v2775_v23 }
 0x2ac   : > { %v2121_v6 = vsel %vm713_vm13, %v10609_v44, %v2114_v45  ;;  %8594 = vmatpush1.bf16.msra.mxu0 %v10723_v60  ;;  %8660 = vmatprep.subr.bf16.mxu1 %v10738_v0  ;;  %v2164_v17 = vand.u32 4294901760, %v2120_v8  ;;  %v2095_v53 = vsel %vm687_vm7, %v10592_v11, %v2094_v58  ;;  %v2098_v40 = vsel %vm687_vm7, %v2094_v58, %v10589_v30 }
 0x2ad   : > { %v2166_v15 = vand.u32 4294901760, %v2121_v6  ;;  %v10762_v63 = vsub.f32 %v10689_v25, %v12764_v42  ;;  %v2773_v45 = vand.u32 4294901760, %v2086_v32  ;;  %8662 = vmatpush1.bf16.msra.mxu1 %v10728_v43  ;;  %v2777_v28 = vand.u32 4294901760, %v2098_v40 }
 0x2ae   : > { %v2126_v31 = vpop.permute.xlu0 %2125  ;;  %v2779_v62 = vand.u32 4294901760, %v2095_v53  ;;  %v10765_v54 = vsub.f32 %v2108_v13, %v2160_v16  ;;  %v10784_v13 = vsub.f32 %v10708_v41, %v12767_v52  ;;  %v10788_v11 = vpack.c.bf16 %v2164_v17, %v2160_v16 }
 0x2af   : > { %v2106_v1 = vpop.permute.xlu1 %2105  ;;  %v10768_v14 = vsub.f32 %v2121_v6, %v2166_v15  ;;  %v10774_v42 = vpack.c.bf16 %v2166_v15, %v2162_v46  ;;  %v10790_v58 = vsub.f32 %v2086_v32, %v2773_v45  ;;  %v10792_v46 = vpack.c.bf16 %v2777_v28, %v2773_v45 }
 0x2b0   : > { %v2107_v30 = vsel %vm700_vm11, %v10601_v56, %v2106_v1  ;;  %v10776_v12 = vsub.f32 %v2095_v53, %v2779_v62  ;;  %v2110_v21 = vsel %vm700_vm11, %v2106_v1, %v10595_v37  ;;  %v10786_v6 = vpack.c.bf16 %v2779_v62, %v2775_v23  ;;  %12864 = vst [vmem:[#allocation15_spill] sm:$0xff] %v10788_v11 }
 0x2b1   : > { %12862 = vst [vmem:[#allocation13_spill] sm:$0xff] %v10774_v42  ;;  %v2783_v4 = vand.u32 4294901760, %v2107_v30  ;;  %12865 = vst [vmem:[#allocation16_spill] sm:$0xff] %v10792_v46  ;;  %v12866_v1 = vand.u32 4294901760, %v10730_v61  ;;  %v10802_v23 = vsub.f32 %v2120_v8, %v2164_v17  ;;  %v2781_v62 = vand.u32 4294901760, %v2110_v21  ;;  %8596 = vmatprep.subr.bf16.mxu0 %v10788_v11  ;;  %8664 = vmatprep.subr.bf16.mxu1 %v10792_v46 }
 0x2b2   : > { %12863 = vst [vmem:[#allocation14_spill] sm:$0xff] %v10786_v6  ;;  %v2124_v56 = vpop.permute.xlu0 %2123  ;;  %v12867_v32 = vand.u32 4294901760, %v10746_v59  ;;  %8598 = vmatpush1.bf16.msra.mxu0 %v10774_v42  ;;  %8666 = vmatpush1.bf16.msra.mxu1 %v10786_v6  ;;  %v12869_v9 = vand.u32 4294901760, %v10694_v10  ;;  %v2256_v42 = vand.u32 4294901760, %v10717_v27  ;;  %v12872_v60 = vand.u32 4294901760, %v10776_v12 }
 0x2b3   : > { %v2133_v15 = vsel %vm726_vm6, %v2124_v56, %v2126_v31  ;;  %v2118_v53 = vpop.permute.xlu1 %2117  ;;  %v10800_v52 = vsub.f32 %v10730_v61, %v12866_v1  ;;  %v10820_v1 = vsub.f32 %v2107_v30, %v2783_v4  ;;  %v10838_v6 = vsub.f32 %v2110_v21, %v2781_v62 }
 0x2b4   : > { %v10809_v45 = vsub.f32 %v10746_v59, %v12867_v32  ;;  %v2119_v8 = vsel %vm713_vm13, %v10617_v51, %v2118_v53  ;;  %v2122_v17 = vsel %vm713_vm13, %v2118_v53, %v10609_v44  ;;  %v10823_v32 = vand.u32 4294901760, %v2133_v15 }
 0x2b5   : > { %v2785_v16 = vand.u32 4294901760, %v2122_v17  ;;  %v2787_v2 = vand.u32 4294901760, %v2119_v8  ;;  %v2249_v36 = vsub.f32 %v10694_v10, %v12869_v9  ;;  %v12870_v44 = vand.u32 4294901760, %v10768_v14 }
 0x2b6   : > { %12868 = vst [vmem:[#allocation17_spill] sm:$0xff] %v10823_v32  ;;  %v10836_v53 = vsub.f32 %v2098_v40, %v2777_v28  ;;  %v10845_v9 = vsub.f32 %v10776_v12, %v12872_v60  ;;  %v10860_v28 = vsub.f32 %v2133_v15, %v10823_v32 }
 0x2b7   : > { %v2128_v37 = vpop.permute.xlu1 %2127  ;;  %v10834_v30 = vsub.f32 %v10768_v14, %v12870_v44  ;;  %v10840_v46 = vpack.c.bf16 %v2787_v2, %v2783_v4  ;;  %v10849_v11 = vpack.c.bf16 %v2785_v16, %v2781_v62  ;;  %v2250_v51 = vand.u32 4294901760, %v2249_v36 }
 0x2b8   : > { %v2132_v27 = vsel %vm726_vm6, %v2126_v31, %v2128_v37  ;;  %v10852_v43 = vsub.f32 %v2119_v8, %v2787_v2  ;;  %v12873_v4 = vand.u32 4294901760, %v10687_v33  ;;  %v10862_v60 = vsub.f32 %v2122_v17, %v2785_v16 }
 0x2b9   : > { %12871 = vst [vmem:[#allocation18_spill] sm:$0xff] %v10840_v46  ;;  %v10854_v40 = vand.u32 4294901760, %v2132_v27  ;;  %8668 = vmatprep.subr.bf16.mxu1 %v10849_v11  ;;  %v12874_v36 = vand.u32 4294901760, %v10631_v55  ;;  %v12875_v2 = vand.u32 4294901760, %v10719_v20  ;;  %v12876_v16 = vand.u32 4294901760, %v10651_v19 }
 0x2ba   : > { %v2261_v21 = vsub.f32 %v10687_v33, %v12873_v4  ;;  %8670 = vmatpush1.bf16.msra.mxu1 %v10840_v46  ;;  %v2859_v55 = vand.u32 4294901760, %v10678_v5  ;;  %v12787_v19 = vand.u32 4294901760, %v10743_v18  ;;  %v2280_v5 = vand.u32 4294901760, %v10762_v63 }
 0x2bb   : > { %v2130_v31 = vpop.permute.xlu1 %2129  ;;  %v8601_v62 = vpack.c.bf16 %v2256_v42, %v12874_v36  ;;  %v2273_v8 = vsub.f32 %v10719_v20, %v12875_v2  ;;  %2169 = vmatprep.subr.mxu0 %v10854_v40  ;;  %v8599_v17 = vpack.c.bf16 %v2250_v51, %v12876_v16  ;;  %v10898_v16 = vsub.f32 %v2132_v27, %v10854_v40 }
 0x2bc   : > { %v2131_v4 = vsel %vm726_vm6, %v2128_v37, %v2130_v31  ;;  %v2134_v15 = vsel %vm726_vm6, %v2130_v31, %v2124_v56  ;;  %2171 = vmatpush1.msra.mxu0 %v10823_v32  ;;  %v2262_v2 = vand.u32 4294901760, %v2261_v21  ;;  %v12879_v37 = vand.u32 4294901760, %v10820_v1 }
 0x2bd   : > { %v10879_v42 = vand.u32 4294901760, %v2134_v15  ;;  %v10881_v36 = vand.u32 4294901760, %v2131_v4  ;;  %v2274_v44 = vand.u32 4294901760, %v2273_v8  ;;  %v12788_v56 = vand.u32 4294901760, %v10852_v43  ;;  %8600 = vmatprep.subr.bf16.mxu0 %v8599_v17  ;;  %2228 = vmatmul.mubr.f32.vlgmr.msra.gmra.mrb[2].mxu0 %v10691_v35 }
 0x2be   : > { %v10887_v48 = vsub.f32 %v10820_v1, %v12879_v37  ;;  %8602 = vmatpush1.bf16.msra.mxu0 %v8601_v62  ;;  %v2268_v8 = vand.u32 4294901760, %v10706_v39  ;;  %v2870_v17 = vsub.f32 %v10743_v18, %v12787_v19  ;;  %v2877_v63 = vand.u32 4294901760, %v10784_v13 }
 0x2bf   : > { %12877 = vst [vmem:[#allocation19_spill] sm:$0xff] %v10879_v42  ;;  %12878 = vst [vmem:[#allocation20_spill] sm:$0xff] %v10881_v36  ;;  %v8603_v21 = vpack.c.bf16 %v2274_v44, %v2262_v2  ;;  %2790 = vmatprep.subr.mxu1 %v10879_v42  ;;  %v12789_v37 = vand.u32 4294901760, %v10790_v58  ;;  %v12880_v51 = vmov 0.0   ;;  %v12794_v39 = vand.u32 4294901760, %v10836_v53 }
 0x2c0   : > { %2792 = vmatpush1.msra.mxu1 %v10881_v36  ;;  %2368 = vmatprep.mubr.f32.mxu0 %v12880_v51  ;;  %v8605_v44 = vpack.c.bf16 %v2280_v5, %v2268_v8  ;;  %v12797_v27 = vand.u32 4294901760, %v10765_v54  ;;  %v2296_v62 = vand.u32 4294901760, %v10802_v23  ;;  %v2924_v2 = vsub.f32 %v10852_v43, %v12788_v56 }
 0x2c1   : > { %8604 = vmatprep.subr.bf16.mxu0 %v8603_v21  ;;  %2849 = vmatmul.mubr.f32.vlgmr.msra.gmra.mrb[2].mxu1 %v10691_v35  ;;  %v10915_v13 = vsub.f32 %v2134_v15, %v10879_v42  ;;  %v2871_v19 = vand.u32 4294901760, %v2870_v17  ;;  %v2882_v5 = vsub.f32 %v10790_v58, %v12789_v37  ;;  %v10922_v35 = vsub.f32 %v2131_v4, %v10881_v36 }
 0x2c2   : > { %2989 = vmatprep.mubr.f32.mxu1 %v12880_v51  ;;  %8606 = vmatpush1.bf16.msra.mxu0 %v8605_v44  ;;  %v2894_v21 = vsub.f32 %v10836_v53, %v12794_v39  ;;  %v2285_v15 = vsub.f32 %v10765_v54, %v12797_v27  ;;  %v2297_v8 = vsub.f32 %v10802_v23, %v2296_v62  ;;  %v12881_v56 = vand.u32 4294901760, %v10659_v49 }
 0x2c3   : > { %v8671_v17 = vpack.c.bf16 %v2871_v19, %v2859_v55  ;;  %v2883_v31 = vand.u32 4294901760, %v2882_v5  ;;  %v2304_v4 = vand.u32 4294901760, %v10834_v30  ;;  %v2901_v39 = vand.u32 4294901760, %v10845_v9 }
 0x2c4   : > { %v8673_v37 = vpack.c.bf16 %v2877_v63, %v12881_v56  ;;  %v2895_v44 = vand.u32 4294901760, %v2894_v21  ;;  %v2286_v36 = vand.u32 4294901760, %v2285_v15  ;;  %v2298_v42 = vand.u32 4294901760, %v2297_v8 }
 0x2c5   : > { %8672 = vmatprep.subr.bf16.mxu1 %v8671_v17  ;;  %v2292_v32 = vand.u32 4294901760, %v10800_v52  ;;  %v2308_v27 = vand.u32 4294901760, %v10898_v16  ;;  %v2905_v46 = vand.u32 4294901760, %v10838_v6  ;;  %v12882_v55 = vand.u32 4294901760, %v10862_v60 }
 0x2c6   : > { %v12883_v56 = vand.u32 4294901760, %v10860_v28  ;;  %8674 = vmatpush1.bf16.msra.mxu1 %v8673_v37  ;;  %v8675_v19 = vpack.c.bf16 %v2895_v44, %v2883_v31  ;;  %v8607_v63 = vpack.c.bf16 %v2298_v42, %v2286_v36  ;;  %v2889_v9 = vand.u32 4294901760, %v10809_v45 }
 0x2c7   : > { %v2918_v49 = vsub.f32 %v10862_v60, %v12882_v55  ;;  %v8609_v5 = vpack.c.bf16 %v2304_v4, %v2292_v32  ;;  %v2309_v52 = vsub.f32 %v10898_v16, %v2308_v27  ;;  %v2906_v21 = vsub.f32 %v10838_v6, %v2905_v46 }
 0x2c8   : > { %v2315_v30 = vsub.f32 %v10860_v28, %v12883_v56  ;;  %v2925_v8 = vand.u32 4294901760, %v2924_v2  ;;  %v2935_v17 = vand.u32 4294901760, %v10922_v35  ;;  %8676 = vmatprep.subr.bf16.mxu1 %v8675_v19  ;;  %8608 = vmatprep.subr.bf16.mxu0 %v8607_v63  ;;  %v8677_v37 = vpack.c.bf16 %v2901_v39, %v2889_v9 }
 0x2c9   : > { %v2919_v15 = vand.u32 4294901760, %v2918_v49  ;;  %v2929_v42 = vand.u32 4294901760, %v10915_v13  ;;  %8610 = vmatpush1.bf16.msra.mxu0 %v8609_v5  ;;  %v2310_v45 = vand.u32 4294901760, %v2309_v52  ;;  %v2907_v32 = vand.u32 4294901760, %v2906_v21 }
 0x2ca   : > { %8678 = vmatpush1.bf16.msra.mxu1 %v8677_v37  ;;  %v2913_v36 = vand.u32 4294901760, %v10887_v48  ;;  %v2316_v2 = vand.u32 4294901760, %v2315_v30  ;;  %v2936_v44 = vsub.f32 %v10922_v35, %v2935_v17  ;;  %v8611_v55 = vpack.c.bf16 %v10694_v10, %v10607_v50 }
 0x2cb   : > { %v2930_v31 = vsub.f32 %v10915_v13, %v2929_v42  ;;  %2311 = vmatprep.subr.mxu0 %v2310_v45  ;;  %v8679_v4 = vpack.c.bf16 %v2919_v15, %v2907_v32  ;;  %v8613_v48 = vpack.c.bf16 %v10661_v24, %v10598_v34  ;;  %v8615_v56 = vpack.c.bf16 %v10719_v20, %v10687_v33  ;;  %v12884_v45 = vld [vmem:[#allocation12_spill] sm:$0xff]  ;;  %v12885_v32 = vld [vmem:[#allocation11_spill] sm:$0xff] }
 0x2cc   : > { %v8681_v39 = vpack.c.bf16 %v2925_v8, %v2913_v36  ;;  %v2937_v30 = vand.u32 4294901760, %v2936_v44  ;;  %v8683_v19 = vpack.c.bf16 %v10743_v18, %v10622_v29  ;;  %v8617_v63 = vpack.c.bf16 %v10689_v25, %v10653_v47  ;;  %v12886_v36 = vld [vmem:[#allocation16_spill] sm:$0xff]  ;;  %v12890_v44 = vld [vmem:[#allocation18_spill] sm:$0xff] }
 0x2cd   : > { %8680 = vmatprep.subr.bf16.mxu1 %v8679_v4  ;;  %2317 = vmatpush1.msra.mxu0 %v2316_v2  ;;  %v2931_v49 = vand.u32 4294901760, %v2930_v31  ;;  %v8685_v9 = vpack.c.bf16 %v10708_v41, %v10614_v38  ;;  %v8619_v5 = vpack.c.bf16 %v10802_v23, %v10765_v54  ;;  %v8687_v52 = vpack.c.bf16 %v10836_v53, %v10790_v58  ;;  %v12887_v31 = vld [vmem:[#allocation15_spill] sm:$0xff]  ;;  %v12888_v4 = vld [vmem:[#allocation14_spill] sm:$0xff]  ;;  %v12889_v2 = vld [vmem:[#allocation13_spill] sm:$0xff] }
 0x2ce   : > { %8682 = vmatpush1.bf16.msra.mxu1 %v8681_v39  ;;  %8612 = vmatprep.subr.bf16.mxu0 %v8611_v55  ;;  %v8621_v21 = vpack.c.bf16 %v10768_v14, %v10730_v61  ;;  %v8689_v15 = vpack.c.bf16 %v10776_v12, %v10746_v59  ;;  %v8691_v8 = vpack.c.bf16 %v10862_v60, %v10838_v6  ;;  %v12892_v39 = vand.u32 4294901760, %v10694_v10 }
 0x2cf   : > { %2932 = vmatprep.subr.mxu1 %v2931_v49  ;;  %2370 = vmatmul.mubr.f32.vlgmr.msra.gmra.mrb[2].mxu0 %v10604_v57  ;;  %v8693_v37 = vpack.c.bf16 %v10852_v43, %v10820_v1  ;;  %v12893_v49 = vld [vmem:[#allocation17_spill] sm:$0xff]  ;;  %v12900_v10 = vand.u32 4294901760, %v10622_v29  ;;  %v12907_v29 = vand.u32 4294901760, %v10790_v58  ;;  %v12912_v58 = vand.u32 4294901760, %v10730_v61 }
 0x2d0   : > { %8614 = vmatpush1.bf16.msra.mxu0 %v8613_v48  ;;  %2468 = vmatprep.mubr.f32.mxu0 %v12880_v51  ;;  %v12894_v48 = vld [vmem:[#allocation19_spill] sm:$0xff]  ;;  %v12917_v61 = vand.u32 4294901760, %v10860_v28  ;;  %vm6543_vm6 = vcmask 637952  }
 0x2d1   : > { %8616 = vmatprep.subr.bf16.mxu0 %v8615_v56  ;;  %v12895_v56 = vand.u32 4294901760, %v10598_v34  ;;  %v12902_v34 = vld [vmem:[#allocation20_spill] sm:$0xff] }
 0x2d2   : > { %2938 = vmatpush1.msra.mxu1 %v2937_v30  ;;  %v12896_v30 = vand.u32 4294901760, %v10661_v24  ;;  %v12903_v24 = vand.u32 4294901760, %v10614_v38 }
 0x2d3   : > { %8684 = vmatprep.subr.bf16.mxu1 %v8683_v19  ;;  %2991 = vmatmul.mubr.f32.vlgmr.msra.gmra.mrb[2].mxu1 %v10604_v57 }
 0x2d4   : > { %8618 = vmatpush1.bf16.msra.mxu0 %v8617_v63  ;;  %8686 = vmatpush1.bf16.msra.mxu1 %v8685_v9  ;;  %v8637_v19 = vpack.c.bf16 %v12896_v30, %v12895_v56  ;;  %v12897_v63 = vld [vmem:[#allocation10_spill] sm:$0xff]  ;;  %v12898_v9 = vand.u32 4294901760, %v10687_v33  ;;  %v12905_v33 = vand.u32 4294901760, %v10653_v47  ;;  %v12910_v47 = vand.u32 4294901760, %v10746_v59 }
 0x2d5   : > { %8620 = vmatprep.subr.bf16.mxu0 %v8619_v5  ;;  %8688 = vmatprep.subr.bf16.mxu1 %v8687_v52  ;;  %v12899_v5 = vand.u32 4294901760, %v10719_v20  ;;  %v12901_v52 = vand.u32 4294901760, %v10743_v18  ;;  %v12906_v20 = vand.u32 4294901760, %v10689_v25  ;;  %v12908_v18 = vand.u32 4294901760, %v10836_v53 }
 0x2d6   : > { %3089 = vmatprep.mubr.f32.mxu1 %v12880_v51  ;;  %v12911_v25 = vand.u32 4294901760, %v10776_v12  ;;  %v12913_v53 = vand.u32 4294901760, %v10768_v14  ;;  %v12915_v59 = vand.u32 4294901760, %v10820_v1  ;;  %v12916_v12 = vand.u32 4294901760, %v10852_v43 }
 0x2d8   : > { %8622 = vmatpush1.bf16.msra.mxu0 %v8621_v21  ;;  %8690 = vmatpush1.bf16.msra.mxu1 %v8689_v15  ;;  %v8707_v21 = vpack.c.bf16 %v12901_v52, %v12900_v10  ;;  %v12904_v15 = vand.u32 4294901760, %v10708_v41  ;;  %v8713_v41 = vpack.c.bf16 %v12911_v25, %v12910_v47 }
 0x2d9   : > { %2414 = vmatprep.subr.mxu0 %v10898_v16  ;;  %8692 = vmatprep.subr.bf16.mxu1 %v8691_v8 }
 0x2da   : > { %v8709_v8 = vpack.c.bf16 %v12904_v15, %v12903_v24 }
 0x2dc   : > { %2417 = vmatpush1.msra.mxu0 %v10860_v28  ;;  %8694 = vmatpush1.bf16.msra.mxu1 %v8693_v37  ;;  %v8641_v37 = vpack.c.bf16 %v12906_v20, %v12905_v33 }
 0x2dd   : > { %8624 = vmatprep.subr.bf16.mxu0 %v10684_v7  ;;  %3035 = vmatprep.subr.mxu1 %v10915_v13 }
 0x2de   : > { %2471 = vmatmul.mubr.f32.vlgmr.msra.gmra.mrb[2].mxu0 %v10625_v26 }
 0x2df   : > { %8626 = vmatpush1.bf16.msra.mxu0 %v10668_v22  ;;  %2555 = vmatprep.mubr.f32.mxu0 %v12880_v51 }
 0x2e0   : > { %8628 = vmatprep.subr.bf16.mxu0 %v10721_v3  ;;  %3038 = vmatpush1.msra.mxu1 %v10922_v35  ;;  %v3395_v35 = vld [vmem:[%s12920_s9] sm:$0xff]  ;;  %s9798_s9 = smov 89  }
 0x2e1   : > { %8696 = vmatprep.subr.bf16.mxu1 %v10738_v0  ;;  %3092 = vmatmul.mubr.f32.vlgmr.msra.gmra.mrb[2].mxu1 %v10625_v26  ;;  %v12891_v26 = vand.u32 4294901760, %v10607_v50  ;;  %v8639_v50 = vpack.c.bf16 %v12899_v5, %v12898_v9 }
 0x2e2   : > { %8698 = vmatpush1.bf16.msra.mxu1 %v12884_v45  ;;  %3176 = vmatprep.mubr.f32.mxu1 %v12880_v51 }
 0x2e3   : > { %8630 = vmatpush1.bf16.msra.mxu0 %v12885_v32  ;;  %8700 = vmatprep.subr.bf16.mxu1 %v12886_v36  ;;  %v8635_v55 = vpack.c.bf16 %v12892_v39, %v12891_v26  ;;  %v8711_v26 = vpack.c.bf16 %v12908_v18, %v12907_v29  ;;  %v12909_v39 = vand.u32 4294901760, %v10765_v54  ;;  %v12914_v54 = vand.u32 4294901760, %v10862_v60 }
 0x2e4   : > { %8632 = vmatprep.subr.bf16.mxu0 %v12887_v31 }
 0x2e5   : > { %v8643_v38 = vpack.c.bf16 %v2296_v62, %v12909_v39  ;;  %v8715_v23 = vpack.c.bf16 %v12914_v54, %v2905_v46  ;;  %v8717_v62 = vpack.c.bf16 %v12916_v12, %v12915_v59 }
 0x2e6   : > { %8702 = vmatpush1.bf16.msra.mxu1 %v12888_v4 }
 0x2e7   : > { %8634 = vmatpush1.bf16.msra.mxu0 %v12889_v2  ;;  %8704 = vmatprep.subr.bf16.mxu1 %v10849_v11 }
 0x2e8   : > { %2502 = vmatprep.subr.mxu0 %v10854_v40 }
 0x2ea   : > { %8706 = vmatpush1.bf16.msra.mxu1 %v12890_v44 }
 0x2eb   : > { %2504 = vmatpush1.msra.mxu0 %v12893_v49  ;;  %3123 = vmatprep.subr.mxu1 %v12894_v48 }
 0x2ec   : > { %8636 = vmatprep.subr.bf16.mxu0 %v8635_v55  ;;  %2559 = vmatmul.mubr.f32.vlgmr.msra.gmra.mrb[2].mxu0 %v12897_v63  ;;  %v8645_v55 = vpack.c.bf16 %v12913_v53, %v12912_v58 }
 0x2ed   : > { %8638 = vmatpush1.bf16.msra.mxu0 %v8637_v19  ;;  %2671 = vmatprep.mubr.f32.mxu0 %v12880_v51 }
 0x2ee   : > { %8640 = vmatprep.subr.bf16.mxu0 %v8639_v50  ;;  %3125 = vmatpush1.msra.mxu1 %v12902_v34 }
 0x2ef   : > { %8708 = vmatprep.subr.bf16.mxu1 %v8707_v21  ;;  %3180 = vmatmul.mubr.f32.vlgmr.msra.gmra.mrb[2].mxu1 %v12897_v63 }
 0x2f0   : > { %8710 = vmatpush1.bf16.msra.mxu1 %v8709_v8  ;;  %3292 = vmatprep.mubr.f32.mxu1 %v12880_v51 }
 0x2f1   : > { %8642 = vmatpush1.bf16.msra.mxu0 %v8641_v37  ;;  %8712 = vmatprep.subr.bf16.mxu1 %v8711_v26 }
 0x2f2   : > { %8644 = vmatprep.subr.bf16.mxu0 %v8643_v38 }
 0x2f4   : > { %8714 = vmatpush1.bf16.msra.mxu1 %v8713_v41 }
 0x2f5   : > { %8646 = vmatpush1.bf16.msra.mxu0 %v8645_v55  ;;  %8716 = vmatprep.subr.bf16.mxu1 %v8715_v23 }
 0x2f6   : > { %2616 = vmatprep.subr.mxu0 %v2308_v27 }
 0x2f8   : > { %8718 = vmatpush1.bf16.msra.mxu1 %v8717_v62 }
 0x2f9   : > { %2620 = vmatpush1.msra.mxu0 %v12917_v61  ;;  %3237 = vmatprep.subr.mxu1 %v2929_v42  ;;  %v3394_v42 = vld [vmem:[%s12921_s8] sm:$0xff]  ;;  %s12830_s8 = smov 39  }
 0x2fa   : > { %8648 = vmatprep.subr.bf16.mxu0 %v10684_v7  ;;  %2673 = vmatmul.mubr.f32.vlgmr.msra.gmra.mrb[2].mxu0 %v10604_v57 }
 0x2fb   : > { %8650 = vmatpush1.bf16.msra.mxu0 %v10668_v22  ;;  %2757 = vmatprep.mubr.f32.mxu0 %v12880_v51 }
 0x2fc   : > { %8652 = vmatprep.subr.bf16.mxu0 %v10721_v3  ;;  %3241 = vmatpush1.msra.mxu1 %v2935_v17  ;;  %v2138_v3 = vpop.permute.xlu0 %2137 }
 0x2fd   : > { %8720 = vmatprep.subr.bf16.mxu1 %v10738_v0  ;;  %3294 = vmatmul.mubr.f32.vlgmr.msra.gmra.mrb[2].mxu1 %v10604_v57 }
 0x2fe   : > { %8722 = vmatpush1.bf16.msra.mxu1 %v12884_v45  ;;  %3378 = vmatprep.mubr.f32.mxu1 %v12880_v51 }
 0x2ff   : > { %8654 = vmatpush1.bf16.msra.mxu0 %v12885_v32  ;;  %8724 = vmatprep.subr.bf16.mxu1 %v12886_v36  ;;  %v3451_v36 = vsel %vm3449_vm5, %v3394_v42, 0 }
 0x300   : > { %8656 = vmatprep.subr.bf16.mxu0 %v12887_v31 }
 0x302   : > { %8726 = vmatpush1.bf16.msra.mxu1 %v12888_v4 }
 0x303   : > { %8658 = vmatpush1.bf16.msra.mxu0 %v12889_v2  ;;  %8728 = vmatprep.subr.bf16.mxu1 %v10849_v11 }
 0x304   : > { %2704 = vmatprep.subr.mxu0 %v10854_v40 }
 0x306   : > { %8730 = vmatpush1.bf16.msra.mxu1 %v12890_v44 }
 0x307   : > { %2706 = vmatpush1.msra.mxu0 %v12893_v49  ;;  %3325 = vmatprep.subr.mxu1 %v12894_v48  ;;  %v11148_v49 = vand.u32 4294901760, %v3451_v36 }
 0x308   : > { %2759 = vmatmul.mubr.f32.vlgmr.msra.gmra.mrb[2].mxu0 %v10604_v57 }
 0x309   : > { %3527 = vmatprep.mubr.f32.mxu0 %v12880_v51  ;;  %v11165_v5 = vsub.f32 %v3451_v36, %v11148_v49 }
 0x30a   : > { %3327 = vmatpush1.msra.mxu1 %v12902_v34  ;;  %v12922_v34 = vld [vmem:[#allocation9_spill] sm:$0xff] }
 0x30b   : > { %3380 = vmatmul.mubr.f32.vlgmr.msra.gmra.mrb[2].mxu1 %v10604_v57  ;;  %v11175_v20 = vand.u32 4294901760, %v11165_v5  ;;  %vm7189_vm4 = vcmp.lt.s32.totalorder %v12922_v34, 4  ;;  %vm7182_vm5 = vcmp.lt.s32.totalorder %v12922_v34, 5 }
 0x30c   : > { %4096 = vmatprep.mubr.f32.mxu1 %v12880_v51 }
 0x30d   : > { %v3531_v59 = vsub.f32 %v11165_v5, %v11175_v20 }
 0x3db   : > { %v2760_v43 = vpop.f32.mrb[2].mxu0 }
 0x3dc   : > { %v9297_v22 = vadd.f32 %v2760_v43, %v2138_v3  ;;  %v2762_v7 = vpop.f32.mrb[3].mxu0 }
 0x3dd   : > { %v9298_v28 = vadd.f32 %v2762_v7, %v2138_v3 }
 0x3de   : > { %v3386_v14 = vmul.f32 0.2, %v9297_v22  ;;  %v3381_v0 = vpop.f32.mrb[2].mxu1 }
 0x3df   : > { %v9299_v11 = vadd.f32 %v3381_v0, %v2138_v3  ;;  %v3383_v6 = vpop.f32.mrb[3].mxu1  ;;  %v3387_v60 = vmul.f32 0.2, %v9298_v28 }
 0x3e0   : > { %v11098_v46 = vmax.f32 %v9297_v22, %v3386_v14  ;;  %v9300_v57 = vadd.f32 %v3383_v6, %v2138_v3 }
 0x3e1   : > { %v3388_v1 = vmul.f32 0.2, %v9299_v11  ;;  %v11112_v27 = vmax.f32 %v9298_v28, %v3387_v60  ;;  %v11229_v60 = vand.u32 4294901760, %v3531_v59 }
 0x3e2   : > { %3396 = vrot.lane.b32.xlu1 %v11098_v46, %s12817_s4  ;;  %v3389_v16 = vmul.f32 0.2, %v9300_v57  ;;  %v3455_v32 = vand.u32 4294901760, %v11098_v46 }
 0x3e3   : > { %v11102_v40 = vmax.f32 %v9299_v11, %v3388_v1  ;;  %v3453_v4 = vand.u32 4294901760, %v11112_v27 }
 0x3e4   : > { %v11118_v13 = vmax.f32 %v9300_v57, %v3389_v16  ;;  %v11151_v56 = vsub.f32 %v11098_v46, %v3455_v32 }
 0x3e5   : > { %3400 = vrot.lane.b32.xlu0 %v11102_v40, %s12817_s4  ;;  %v4024_v2 = vand.u32 4294901760, %v11102_v40  ;;  %v11156_v19 = vsub.f32 %v11112_v27, %v3453_v4 }
 0x3e6   : > { %3408 = vrot.lane.b32.xlu1 %v11098_v46, %s12800_s0  ;;  %v4022_v44 = vand.u32 4294901760, %v11118_v13  ;;  %v12808_v10 = vand.u32 4294901760, %v11151_v56 }
 0x3e7   : > { %v11159_v63 = vsub.f32 %v11102_v40, %v4024_v2  ;;  %v12811_v21 = vand.u32 4294901760, %v11156_v19 }
 0x3e8   : > { %v11162_v9 = vsub.f32 %v11118_v13, %v4022_v44  ;;  %v11181_v18 = vsub.f32 %v11151_v56, %v12808_v10 }
 0x3e9   : > { %3412 = vrot.lane.b32.xlu0 %v11102_v40, %s12800_s0  ;;  %v12804_v8 = vand.u32 4294901760, %v11159_v63  ;;  %v11190_v25 = vsub.f32 %v11156_v19, %v12811_v21 }
 0x3ea   : > { %3420 = vrot.lane.b32.xlu1 %v11098_v46, %s12918_s1  ;;  %v12805_v37 = vand.u32 4294901760, %v11162_v9  ;;  %v3549_v11 = vand.u32 4294901760, %v11181_v18 }
 0x3eb   : > { %v11199_v55 = vsub.f32 %v11159_v63, %v12804_v8  ;;  %v3543_v1 = vand.u32 4294901760, %v11190_v25 }
 0x3ec   : > { %v11210_v12 = vsub.f32 %v11162_v9, %v12805_v37 }
 0x3ed   : > { %3424 = vrot.lane.b32.xlu0 %v11102_v40, %s12918_s1 }
 0x3ee   : > { %3398 = vrot.lane.b32.xlu1 %v11112_v27, %s12817_s4 }
 0x3f1   : > { %3402 = vrot.lane.b32.xlu0 %v11118_v13, %s12817_s4 }
 0x3f2   : > { %3410 = vrot.lane.b32.xlu1 %v11112_v27, %s12800_s0 }
 0x3f5   : > { %3414 = vrot.lane.b32.xlu0 %v11118_v13, %s12800_s0  ;;  %s12942_s0 = smov 126  }
 0x3f6   : > { %3422 = vrot.lane.b32.xlu1 %v11112_v27, %s12918_s1 }
 0x3f9   : > { %3426 = vrot.lane.b32.xlu0 %v11118_v13, %s12918_s1 }
 0x3fa   : > { %3434 = vrot.lane.b32.xlu1 %v11112_v27, %s12919_s27 }
 0x3fd   : > { %3436 = vrot.lane.b32.xlu0 %v11102_v40, %s12919_s27 }
 0x3fe   : > { %3432 = vrot.lane.b32.xlu1 %v11098_v46, %s12919_s27 }
 0x401   : > { %3438 = vrot.lane.b32.xlu0 %v11118_v13, %s12919_s27 }
 0x402   : > { %3446 = vperm.xlu1 %9483, %v3395_v35  }
 0x454   : > { %v3397_v17 = vpop.permute.xlu1 %3396 }
 0x457   : > { %v3401_v45 = vpop.permute.xlu0 %3400 }
 0x458   : > { %v3409_v31 = vpop.permute.xlu1 %3408 }
 0x45b   : > { %v3413_v48 = vpop.permute.xlu0 %3412 }
 0x45c   : > { %v11153_v30 = vpop.permute.xlu1 %3420 }
 0x45f   : > { %v3425_v50 = vpop.permute.xlu0 %3424 }
 0x460   : > { %v3399_v52 = vpop.permute.xlu1 %3398 }
 0x461   : > { %v3405_v24 = vsel %vm661_vm1, %v3399_v52, %v3401_v45  ;;  %v3406_v15 = vsel %vm661_vm1, %v3397_v17, %v3399_v52 }
 0x462   : > { %v3459_v33 = vand.u32 4294901760, %v3406_v15  ;;  %v3457_v26 = vand.u32 4294901760, %v3405_v24 }
 0x463   : > { %v3403_v29 = vpop.permute.xlu0 %3402 }
 0x464   : > { %v11183_v39 = vsub.f32 %v3406_v15, %v3459_v33  ;;  %v3404_v38 = vsel %vm661_vm1, %v3401_v45, %v3403_v29  ;;  %v3411_v47 = vpop.permute.xlu1 %3410  ;;  %v3407_v41 = vsel %vm661_vm1, %v3403_v29, %v3397_v17  ;;  %v11201_v54 = vpack.c.bf16 %v3459_v33, %v3455_v32 }
 0x465   : > { %v4028_v58 = vand.u32 4294901760, %v3404_v38  ;;  %v3418_v53 = vsel %vm674_vm2, %v3409_v31, %v3411_v47  ;;  %v3417_v23 = vsel %vm674_vm2, %v3411_v47, %v3413_v48  ;;  %v4026_v61 = vand.u32 4294901760, %v3407_v41 }
 0x466   : > { %v12806_v62 = vand.u32 4294901760, %v11183_v39  ;;  %v3463_v43 = vand.u32 4294901760, %v3418_v53  ;;  %v11215_v7 = vsub.f32 %v3405_v24, %v3457_v26  ;;  %v11217_v14 = vpack.c.bf16 %v3457_v26, %v3453_v4 }
 0x467   : > { %v11213_v3 = vsub.f32 %v3404_v38, %v4028_v58  ;;  %v3415_v22 = vpop.permute.xlu0 %3414  ;;  %v3461_v6 = vand.u32 4294901760, %v3417_v23  ;;  %v11224_v28 = vpack.c.bf16 %v4028_v58, %v4024_v2  ;;  %v11237_v13 = vsub.f32 %v3407_v41, %v4026_v61 }
 0x468   : > { %v3423_v0 = vpop.permute.xlu1 %3422  ;;  %v11220_v46 = vsub.f32 %v3418_v53, %v3463_v43  ;;  %8732 = vmatprep.subr.bf16.mxu0 %v11217_v14  ;;  %v3416_v57 = vsel %vm674_vm2, %v3413_v48, %v3415_v22  ;;  %v11235_v27 = vsub.f32 %v11183_v39, %v12806_v62  ;;  %v3419_v17 = vsel %vm674_vm2, %v3415_v22, %v3409_v31 }
 0x469   : > { %v12802_v35 = vand.u32 4294901760, %v11213_v3  ;;  %8734 = vmatpush1.bf16.msra.mxu0 %v11201_v54  ;;  %v12810_v45 = vand.u32 4294901760, %v11215_v7  ;;  %v3429_v32 = vsel %vm687_vm7, %v3423_v0, %v3425_v50  ;;  %v3430_v36 = vsel %vm687_vm7, %v11153_v30, %v3423_v0 }
 0x46a   : > { %v11249_v4 = vpack.c.bf16 %v4026_v61, %v4022_v44  ;;  %v11251_v48 = vsub.f32 %v3417_v23, %v3461_v6  ;;  %v12803_v52 = vand.u32 4294901760, %v11220_v46  ;;  %v4032_v24 = vand.u32 4294901760, %v3416_v57 }
 0x46b   : > { %v3427_v42 = vpop.permute.xlu0 %3426  ;;  %v3465_v15 = vand.u32 4294901760, %v3429_v32  ;;  %v4030_v31 = vand.u32 4294901760, %v3419_v17  ;;  %v3467_v33 = vand.u32 4294901760, %v3430_v36  ;;  %v3561_v44 = vand.u32 4294901760, %v11235_v27 }
 0x46c   : > { %v3435_v2 = vpop.permute.xlu1 %3434  ;;  %8780 = vmatprep.subr.bf16.mxu1 %v11249_v4  ;;  %v3428_v29 = vsel %vm687_vm7, %v3425_v50, %v3427_v42  ;;  %v3431_v26 = vsel %vm687_vm7, %v3427_v42, %v11153_v30  ;;  %v12815_v38 = vand.u32 4294901760, %v11237_v13  ;;  %v11265_v47 = vsub.f32 %v11213_v3, %v12802_v35 }
 0x46d   : > { %v11267_v41 = vsub.f32 %v3429_v32, %v3465_v15  ;;  %8782 = vmatpush1.bf16.msra.mxu1 %v11224_v28  ;;  %v11270_v53 = vpack.c.bf16 %v3467_v33, %v3463_v43  ;;  %v11272_v50 = vsub.f32 %v3430_v36, %v3467_v33  ;;  %v4034_v23 = vand.u32 4294901760, %v3431_v26 }
 0x46e   : > { %v4036_v30 = vand.u32 4294901760, %v3428_v29  ;;  %v12809_v61 = vand.u32 4294901760, %v11251_v48  ;;  %v11275_v22 = vsub.f32 %v3416_v57, %v4032_v24  ;;  %v11277_v0 = vpack.c.bf16 %v3465_v15, %v3461_v6 }
 0x46f   : > { %v3437_v58 = vpop.permute.xlu0 %3436  ;;  %v11284_v42 = vsub.f32 %v11220_v46, %v12803_v52  ;;  %v11286_v43 = vsub.f32 %v3419_v17, %v4030_v31  ;;  %v12813_v32 = vand.u32 4294901760, %v11267_v41  ;;  %v12807_v36 = vand.u32 4294901760, %v11272_v50 }
 0x470   : > { %v3433_v59 = vpop.permute.xlu1 %3432  ;;  %v3441_v27 = vsel %vm700_vm11, %v3435_v2, %v3437_v58  ;;  %v11290_v33 = vpack.c.bf16 %v4036_v30, %v4032_v24  ;;  %v11292_v57 = vsub.f32 %v3428_v29, %v4036_v30  ;;  %8736 = vmatprep.subr.bf16.mxu0 %v11277_v0  ;;  %v11299_v52 = vsub.f32 %v3431_v26, %v4034_v23 }
 0x471   : > { %v11295_v6 = vand.u32 4294901760, %v3441_v27  ;;  %v3442_v15 = vsel %vm700_vm11, %v3433_v59, %v3435_v2  ;;  %8738 = vmatpush1.bf16.msra.mxu0 %v11270_v53  ;;  %v11304_v8 = vpack.c.bf16 %v4034_v23, %v4030_v31  ;;  %v4130_v29 = vand.u32 4294901760, %v11265_v47 }
 0x472   : > { %v11302_v17 = vand.u32 4294901760, %v3442_v15  ;;  %v12814_v30 = vand.u32 4294901760, %v11275_v22  ;;  %v12812_v37 = vand.u32 4294901760, %v11292_v57  ;;  %v3573_v26 = vand.u32 4294901760, %v11284_v42 }
 0x473   : > { %v3439_v35 = vpop.permute.xlu0 %3438  ;;  %3470 = vmatprep.subr.mxu0 %v11295_v6  ;;  %v3584_v31 = vsub.f32 %v11272_v50, %v12807_v36  ;;  %8784 = vmatprep.subr.bf16.mxu1 %v11304_v8  ;;  %v12816_v23 = vand.u32 4294901760, %v11286_v43  ;;  %v11325_v62 = vsub.f32 %v3441_v27, %v11295_v6  ;;  %v3578_v27 = vsub.f32 %v11267_v41, %v12813_v32 }
 0x474   : > { %v3440_v24 = vsel %vm700_vm11, %v3437_v58, %v3439_v35  ;;  %v3443_v2 = vsel %vm700_vm11, %v3439_v35, %v3433_v59  ;;  %8786 = vmatpush1.bf16.msra.mxu1 %v11290_v33  ;;  %v3554_v35 = vsub.f32 %v11215_v7, %v12810_v45  ;;  %v3566_v59 = vsub.f32 %v11251_v48, %v12809_v61 }
 0x475   : > { %v11319_v58 = vand.u32 4294901760, %v3443_v2  ;;  %v11321_v47 = vand.u32 4294901760, %v3440_v24  ;;  %v4153_v36 = vsub.f32 %v11292_v57, %v12812_v37  ;;  %v11339_v10 = vsub.f32 %v3442_v15, %v11302_v17  ;;  %3472 = vmatpush1.msra.mxu0 %v11302_v17 }
 0x476   : > { %v4141_v61 = vsub.f32 %v11275_v22, %v12814_v30  ;;  %v3555_v21 = vand.u32 4294901760, %v3554_v35  ;;  %3533 = vmatmul.mubr.f32.vlgmr.msra.gmra.mrb[4].mxu0 %v11229_v60  ;;  %v4123_v15 = vsub.f32 %v11237_v13, %v12815_v38  ;;  %v3585_v37 = vand.u32 4294901760, %v3584_v31 }
 0x477   : > { %4039 = vmatprep.subr.mxu1 %v11319_v58  ;;  %v11350_v45 = vsub.f32 %v3440_v24, %v11321_v47  ;;  %v11357_v40 = vsub.f32 %v3443_v2, %v11319_v58  ;;  %v8741_v32 = vpack.c.bf16 %v3561_v44, %v3549_v11  ;;  %v3579_v16 = vand.u32 4294901760, %v3578_v27  ;;  %3653 = vmatprep.mubr.f32.mxu0 %v12880_v51 }
 0x478   : > { %v8739_v24 = vpack.c.bf16 %v3555_v21, %v3543_v1  ;;  %v3567_v35 = vand.u32 4294901760, %v3566_v59  ;;  %4041 = vmatpush1.msra.mxu1 %v11321_v47  ;;  %v4124_v30 = vand.u32 4294901760, %v4123_v15  ;;  %v3589_v42 = vand.u32 4294901760, %v11325_v62 }
 0x479   : > { %v4154_v38 = vand.u32 4294901760, %v4153_v36  ;;  %v3595_v31 = vand.u32 4294901760, %v11339_v10  ;;  %4102 = vmatmul.mubr.f32.vlgmr.msra.gmra.mrb[4].mxu1 %v11229_v60  ;;  %v4135_v18 = vsub.f32 %v11286_v43, %v12816_v23  ;;  %v12923_v11 = vand.u32 4294901760, %v11299_v52 }
 0x47a   : > { %v4164_v21 = vand.u32 4294901760, %v11350_v45  ;;  %8740 = vmatprep.subr.bf16.mxu0 %v8739_v24  ;;  %v8743_v1 = vpack.c.bf16 %v3579_v16, %v3567_v35  ;;  %v12924_v44 = vand.u32 4294901760, %v11210_v12  ;;  %v3590_v36 = vsub.f32 %v11325_v62, %v3589_v42  ;;  %4222 = vmatprep.mubr.f32.mxu1 %v12880_v51 }
 0x47b   : > { %v4147_v25 = vsub.f32 %v11299_v52, %v12923_v11  ;;  %8742 = vmatpush1.bf16.msra.mxu0 %v8741_v32  ;;  %v12925_v60 = vand.u32 4294901760, %v11199_v55  ;;  %v4136_v27 = vand.u32 4294901760, %v4135_v18  ;;  %v4158_v11 = vand.u32 4294901760, %v11357_v40 }
 0x47c   : > { %v8787_v2 = vpack.c.bf16 %v4124_v30, %v12924_v44  ;;  %v4142_v23 = vand.u32 4294901760, %v4141_v61  ;;  %8744 = vmatprep.subr.bf16.mxu0 %v8743_v1  ;;  %v3591_v16 = vand.u32 4294901760, %v3590_v36  ;;  %v3596_v12 = vsub.f32 %v11339_v10, %v3595_v31 }
 0x47d   : > { %v8789_v59 = vpack.c.bf16 %v4130_v29, %v12925_v60  ;;  %v4148_v15 = vand.u32 4294901760, %v4147_v25  ;;  %v8745_v30 = vpack.c.bf16 %v3585_v37, %v3573_v26  ;;  %v4159_v55 = vsub.f32 %v11357_v40, %v4158_v11 }
 0x47e   : > { %8788 = vmatprep.subr.bf16.mxu1 %v8787_v2  ;;  %v4165_v32 = vsub.f32 %v11350_v45, %v4164_v21  ;;  %v8793_v61 = vpack.c.bf16 %v4154_v38, %v4142_v23  ;;  %v3597_v35 = vand.u32 4294901760, %v3596_v12  ;;  %v8747_v37 = vpack.c.bf16 %v11215_v7, %v11156_v19 }
 0x47f   : > { %8790 = vmatpush1.bf16.msra.mxu1 %v8789_v59  ;;  %v8791_v24 = vpack.c.bf16 %v4148_v15, %v4136_v27  ;;  %8746 = vmatpush1.bf16.msra.mxu0 %v8745_v30  ;;  %v4160_v29 = vand.u32 4294901760, %v4159_v55  ;;  %v8749_v26 = vpack.c.bf16 %v11183_v39, %v11151_v56  ;;  %v8751_v25 = vpack.c.bf16 %v11267_v41, %v11251_v48 }
 0x480   : > { %3592 = vmatprep.subr.mxu0 %v3591_v16  ;;  %v4166_v18 = vand.u32 4294901760, %v4165_v32  ;;  %v8795_v38 = vpack.c.bf16 %v11237_v13, %v11162_v9  ;;  %v8797_v23 = vpack.c.bf16 %v11213_v3, %v11159_v63  ;;  %v8753_v1 = vpack.c.bf16 %v11272_v50, %v11220_v46 }
 0x481   : > { %8792 = vmatprep.subr.bf16.mxu1 %v8791_v24  ;;  %v8799_v44 = vpack.c.bf16 %v11299_v52, %v11286_v43  ;;  %v8801_v2 = vpack.c.bf16 %v11292_v57, %v11275_v22  ;;  %v12926_v36 = vand.u32 4294901760, %v11156_v19  ;;  %v12927_v60 = vand.u32 4294901760, %v11215_v7 }
 0x482   : > { %v12929_v27 = vand.u32 4294901760, %v11183_v39  ;;  %v12930_v16 = vand.u32 4294901760, %v11251_v48  ;;  %v12931_v12 = vand.u32 4294901760, %v11267_v41  ;;  %v12932_v7 = vand.u32 4294901760, %v11162_v9 }
 0x483   : > { %8794 = vmatpush1.bf16.msra.mxu1 %v8793_v61  ;;  %3598 = vmatpush1.msra.mxu0 %v3597_v35  ;;  %v8763_v59 = vpack.c.bf16 %v12927_v60, %v12926_v36  ;;  %v12933_v30 = vand.u32 4294901760, %v11237_v13  ;;  %v12935_v39 = vand.u32 4294901760, %v11213_v3  ;;  %v12936_v48 = vand.u32 4294901760, %v11220_v46 }
 0x484   : > { %4161 = vmatprep.subr.mxu1 %v4160_v29  ;;  %8748 = vmatprep.subr.bf16.mxu0 %v8747_v37  ;;  %v8767_v19 = vpack.c.bf16 %v12931_v12, %v12930_v16  ;;  %v12937_v41 = vand.u32 4294901760, %v11272_v50  ;;  %v12938_v9 = vand.u32 4294901760, %v11286_v43  ;;  %v12939_v13 = vand.u32 4294901760, %v11299_v52 }
 0x485   : > { %3655 = vmatmul.mubr.f32.vlgmr.msra.gmra.mrb[4].mxu0 %v11148_v49  ;;  %v8811_v24 = vpack.c.bf16 %v12933_v30, %v12932_v7  ;;  %v12941_v3 = vand.u32 4294901760, %v11292_v57  ;;  %v4599_v57 = vld [vmem:[%s12943_s10] sm:$0xff]  ;;  %s9802_s10 = smov 3  }
 0x486   : > { %8750 = vmatpush1.bf16.msra.mxu0 %v8749_v26  ;;  %3745 = vmatprep.mubr.f32.mxu0 %v12880_v51  ;;  %v8769_v32 = vpack.c.bf16 %v12937_v41, %v12936_v48  ;;  %v8815_v61 = vpack.c.bf16 %v12939_v13, %v12938_v9 }
 0x487   : > { %4167 = vmatpush1.msra.mxu1 %v4166_v18  ;;  %8752 = vmatprep.subr.bf16.mxu0 %v8751_v25 }
 0x488   : > { %8796 = vmatprep.subr.bf16.mxu1 %v8795_v38  ;;  %4224 = vmatmul.mubr.f32.vlgmr.msra.gmra.mrb[4].mxu1 %v11148_v49 }
 0x489   : > { %8798 = vmatpush1.bf16.msra.mxu1 %v8797_v23  ;;  %4314 = vmatprep.mubr.f32.mxu1 %v12880_v51 }
 0x48a   : > { %8754 = vmatpush1.bf16.msra.mxu0 %v8753_v1  ;;  %8800 = vmatprep.subr.bf16.mxu1 %v8799_v44 }
 0x48b   : > { %3687 = vmatprep.subr.mxu0 %v11325_v62 }
 0x48d   : > { %8802 = vmatpush1.bf16.msra.mxu1 %v8801_v2 }
 0x48e   : > { %3690 = vmatpush1.msra.mxu0 %v11339_v10  ;;  %4256 = vmatprep.subr.mxu1 %v11357_v40  ;;  %v3447_v10 = vpop.permute.xlu1 %3446 }
 0x48f   : > { %8756 = vmatprep.subr.bf16.mxu0 %v11217_v14  ;;  %3748 = vmatmul.mubr.f32.vlgmr.msra.gmra.mrb[4].mxu0 %v11165_v5 }
 0x490   : > { %8758 = vmatpush1.bf16.msra.mxu0 %v11201_v54  ;;  %3828 = vmatprep.mubr.f32.mxu0 %v12880_v51 }
 0x491   : > { %8760 = vmatprep.subr.bf16.mxu0 %v11277_v0  ;;  %4259 = vmatpush1.msra.mxu1 %v11350_v45 }
 0x492   : > { %8804 = vmatprep.subr.bf16.mxu1 %v11249_v4  ;;  %4317 = vmatmul.mubr.f32.vlgmr.msra.gmra.mrb[4].mxu1 %v11165_v5  ;;  %v12928_v5 = vand.u32 4294901760, %v11151_v56  ;;  %v12934_v56 = vand.u32 4294901760, %v11159_v63  ;;  %v12940_v63 = vand.u32 4294901760, %v11275_v22 }
 0x493   : > { %8806 = vmatpush1.bf16.msra.mxu1 %v11224_v28  ;;  %4397 = vmatprep.mubr.f32.mxu1 %v12880_v51 }
 0x494   : > { %8762 = vmatpush1.bf16.msra.mxu0 %v11270_v53  ;;  %8808 = vmatprep.subr.bf16.mxu1 %v11304_v8  ;;  %v8765_v15 = vpack.c.bf16 %v12929_v27, %v12928_v5  ;;  %v8813_v55 = vpack.c.bf16 %v12935_v39, %v12934_v56  ;;  %v8817_v46 = vpack.c.bf16 %v12941_v3, %v12940_v63 }
 0x495   : > { %3771 = vmatprep.subr.mxu0 %v11295_v6 }
 0x497   : > { %8810 = vmatpush1.bf16.msra.mxu1 %v11290_v33 }
 0x498   : > { %3773 = vmatpush1.msra.mxu0 %v11302_v17  ;;  %4340 = vmatprep.subr.mxu1 %v11319_v58 }
 0x499   : > { %8764 = vmatprep.subr.bf16.mxu0 %v8763_v59  ;;  %3832 = vmatmul.mubr.f32.vlgmr.msra.gmra.mrb[4].mxu0 %v11175_v20 }
 0x49a   : > { %8766 = vmatpush1.bf16.msra.mxu0 %v8765_v15  ;;  %3932 = vmatprep.mubr.f32.mxu0 %v12880_v51 }
 0x49b   : > { %8768 = vmatprep.subr.bf16.mxu0 %v8767_v19  ;;  %4342 = vmatpush1.msra.mxu1 %v11321_v47 }
 0x49c   : > { %8812 = vmatprep.subr.bf16.mxu1 %v8811_v24  ;;  %4401 = vmatmul.mubr.f32.vlgmr.msra.gmra.mrb[4].mxu1 %v11175_v20 }
 0x49d   : > { %8814 = vmatpush1.bf16.msra.mxu1 %v8813_v55  ;;  %4501 = vmatprep.mubr.f32.mxu1 %v12880_v51 }
 0x49e   : > { %8770 = vmatpush1.bf16.msra.mxu0 %v8769_v32  ;;  %8816 = vmatprep.subr.bf16.mxu1 %v8815_v61 }
 0x49f   : > { %3873 = vmatprep.subr.mxu0 %v3589_v42 }
 0x4a1   : > { %8818 = vmatpush1.bf16.msra.mxu1 %v8817_v46 }
 0x4a2   : > { %3877 = vmatpush1.msra.mxu0 %v3595_v31  ;;  %4442 = vmatprep.subr.mxu1 %v4158_v11 }
 0x4a3   : > { %8772 = vmatprep.subr.bf16.mxu0 %v11217_v14  ;;  %3934 = vmatmul.mubr.f32.vlgmr.msra.gmra.mrb[4].mxu0 %v11148_v49 }
 0x4a4   : > { %8774 = vmatpush1.bf16.msra.mxu0 %v11201_v54  ;;  %4014 = vmatprep.mubr.f32.mxu0 %v12880_v51 }
 0x4a5   : > { %8776 = vmatprep.subr.bf16.mxu0 %v11277_v0  ;;  %4446 = vmatpush1.msra.mxu1 %v4164_v21 }
 0x4a6   : > { %8820 = vmatprep.subr.bf16.mxu1 %v11249_v4  ;;  %4503 = vmatmul.mubr.f32.vlgmr.msra.gmra.mrb[4].mxu1 %v11148_v49 }
 0x4a7   : > { %8822 = vmatpush1.bf16.msra.mxu1 %v11224_v28  ;;  %4583 = vmatprep.mubr.f32.mxu1 %v12880_v51 }
 0x4a8   : > { %8778 = vmatpush1.bf16.msra.mxu0 %v11270_v53  ;;  %8824 = vmatprep.subr.bf16.mxu1 %v11304_v8 }
 0x4a9   : > { %3957 = vmatprep.subr.mxu0 %v11295_v6  ;;  %v4632_v6 = vsel %vm4630_vm8, %v4599_v57, 0  ;;  %vm7203_vm8 = vcmp.lt.s32.totalorder %v12922_v34, 2 }
 0x4ab   : > { %8826 = vmatpush1.bf16.msra.mxu1 %v11290_v33  ;;  %v4600_v33 = vld [vmem:[%s12738_s11] sm:$0xff] }
 0x4ac   : > { %3959 = vmatpush1.msra.mxu0 %v11302_v17  ;;  %4526 = vmatprep.subr.mxu1 %v11319_v58  ;;  %v11519_v58 = vand.u32 4294901760, %v4632_v6 }
 0x4ad   : > { %4016 = vmatmul.mubr.f32.vlgmr.msra.gmra.mrb[4].mxu0 %v11148_v49 }
 0x4ae   : > { %4704 = vmatprep.mubr.f32.mxu0 %v12880_v51  ;;  %v11524_v31 = vsub.f32 %v4632_v6, %v11519_v58 }
 0x4af   : > { %4528 = vmatpush1.msra.mxu1 %v11321_v47 }
 0x4b0   : > { %4585 = vmatmul.mubr.f32.vlgmr.msra.gmra.mrb[4].mxu1 %v11148_v49  ;;  %v11532_v26 = vand.u32 4294901760, %v11524_v31 }
 0x4b1   : > { %5221 = vmatprep.mubr.f32.mxu1 %v12880_v51 }
 0x4b2   : > { %v4708_v27 = vsub.f32 %v11524_v31, %v11532_v26 }
 0x4b4   : > { %v11575_v13 = vand.u32 4294901760, %v4708_v27 }
 0x580   : > { %v4017_v8 = vpop.f32.mrb[4].mxu0 }
 0x581   : > { %v4019_v20 = vpop.f32.mrb[5].mxu0  ;;  %v9301_v54 = vadd.f32 %v4017_v8, %v3447_v10 }
 0x582   : > { %v9302_v62 = vadd.f32 %v4019_v20, %v3447_v10 }
 0x583   : > { %v4586_v14 = vpop.f32.mrb[4].mxu1  ;;  %v4591_v4 = vmul.f32 0.2, %v9301_v54 }
 0x584   : > { %v4592_v40 = vmul.f32 0.2, %v9302_v62  ;;  %v9303_v28 = vadd.f32 %v4586_v14, %v3447_v10  ;;  %v4588_v45 = vpop.f32.mrb[5].mxu1 }
 0x585   : > { %v4595_v22 = vmax.f32 %v9301_v54, %v4591_v4  ;;  %v9304_v49 = vadd.f32 %v4588_v45, %v3447_v10 }
 0x586   : > { %v4596_v52 = vmax.f32 %v9302_v62, %v4592_v40  ;;  %v4593_v53 = vmul.f32 0.2, %v9303_v28 }
 0x587   : > { %v4594_v0 = vmul.f32 0.2, %v9304_v49  ;;  %v4636_v17 = vand.u32 4294901760, %v4595_v22 }
 0x588   : > { %v11497_v50 = vmax.f32 %v9303_v28, %v4593_v53  ;;  %4603 = vrot.lane.b32.xlu0 %v4596_v52, %s12817_s4  ;;  %v4634_v47 = vand.u32 4294901760, %v4596_v52 }
 0x589   : > { %v11506_v43 = vmax.f32 %v9304_v49, %v4594_v0  ;;  %v11521_v42 = vsub.f32 %v4595_v22, %v4636_v17 }
 0x58a   : > { %4605 = vrot.lane.b32.xlu1 %v11497_v50, %s12817_s4  ;;  %v11526_v11 = vsub.f32 %v4596_v52, %v4634_v47  ;;  %v5153_v29 = vand.u32 4294901760, %v11497_v50 }
 0x58b   : > { %v4724_v18 = vand.u32 4294901760, %v11521_v42  ;;  %v5151_v25 = vand.u32 4294901760, %v11506_v43 }
 0x58c   : > { %4601 = vrot.lane.b32.xlu0 %v4595_v22, %s12817_s4  ;;  %v11539_v44 = vsub.f32 %v11497_v50, %v5153_v29  ;;  %v4718_v2 = vand.u32 4294901760, %v11526_v11 }
 0x58d   : > { %v4725_v15 = vsub.f32 %v11521_v42, %v4724_v18  ;;  %v11552_v16 = vsub.f32 %v11506_v43, %v5151_v25 }
 0x58e   : > { %4615 = vrot.lane.b32.xlu1 %v4596_v52, %s12942_s0  ;;  %v4719_v56 = vsub.f32 %v11526_v11, %v4718_v2  ;;  %v5241_v39 = vand.u32 4294901760, %v11539_v44 }
 0x58f   : > { %v4726_v61 = vand.u32 4294901760, %v4725_v15  ;;  %v5235_v63 = vand.u32 4294901760, %v11552_v16 }
 0x590   : > { %4617 = vrot.lane.b32.xlu0 %v11497_v50, %s12942_s0  ;;  %v4720_v14 = vand.u32 4294901760, %v4719_v56  ;;  %v5242_v40 = vsub.f32 %v11539_v44, %v5241_v39 }
 0x592   : > { %4613 = vrot.lane.b32.xlu1 %v4595_v22, %s12942_s0 }
 0x594   : > { %4607 = vrot.lane.b32.xlu0 %v11506_v43, %s12817_s4  ;;  %s12956_s4 = sld [smem:[#allocation23_spill]] }
 0x596   : > { %4619 = vrot.lane.b32.xlu1 %v11506_v43, %s12942_s0 }
 0x598   : > { %4627 = vperm.xlu0 %9482, %v4600_v33  }
 0x5fa   : > { %v4604_v21 = vpop.permute.xlu0 %4603 }
 0x5fc   : > { %v4606_v35 = vpop.permute.xlu1 %4605 }
 0x5fd   : > { %v4610_v37 = vsel %vm661_vm1, %v4604_v21, %v4606_v35 }
 0x5fe   : > { %v4638_v38 = vand.u32 4294901760, %v4610_v37  ;;  %v4602_v23 = vpop.permute.xlu0 %4601 }
 0x5ff   : > { %v4611_v1 = vsel %vm661_vm1, %v4602_v23, %v4604_v21 }
 0x600   : > { %v11542_v36 = vsub.f32 %v4610_v37, %v4638_v38  ;;  %v4640_v60 = vand.u32 4294901760, %v4611_v1  ;;  %v4616_v59 = vpop.permute.xlu1 %4615  ;;  %v11544_v5 = vpack.c.bf16 %v4638_v38, %v4634_v47 }
 0x602   : > { %v4730_v12 = vand.u32 4294901760, %v11542_v36  ;;  %v11555_v19 = vpack.c.bf16 %v4640_v60, %v4636_v17  ;;  %v11557_v7 = vsub.f32 %v4611_v1, %v4640_v60  ;;  %v4618_v30 = vpop.permute.xlu0 %4617  ;;  %8828 = vmatprep.subr.bf16.mxu0 %v11544_v5 }
 0x603   : > { %v4622_v24 = vsel %vm674_vm2, %v4616_v59, %v4618_v30 }
 0x604   : > { %v4736_v55 = vand.u32 4294901760, %v11557_v7  ;;  %v11567_v48 = vand.u32 4294901760, %v4622_v24  ;;  %8830 = vmatpush1.bf16.msra.mxu0 %v11555_v19  ;;  %v4614_v41 = vpop.permute.xlu1 %4613  ;;  %v4731_v32 = vsub.f32 %v11542_v36, %v4730_v12 }
 0x605   : > { %v4623_v9 = vsel %vm674_vm2, %v4614_v41, %v4616_v59 }
 0x606   : > { %v4737_v3 = vsub.f32 %v11557_v7, %v4736_v55  ;;  %v11582_v46 = vsub.f32 %v4622_v24, %v11567_v48  ;;  %v11584_v10 = vand.u32 4294901760, %v4623_v9  ;;  %v4608_v8 = vpop.permute.xlu0 %4607  ;;  %4643 = vmatprep.subr.mxu0 %v11567_v48  ;;  %v4732_v20 = vand.u32 4294901760, %v4731_v32 }
 0x607   : > { %v4609_v54 = vsel %vm661_vm1, %v4606_v35, %v4608_v8  ;;  %v4612_v62 = vsel %vm661_vm1, %v4608_v8, %v4602_v23  ;;  %v5236_v23 = vsub.f32 %v11552_v16, %v5235_v63  ;;  %v5243_v24 = vand.u32 4294901760, %v5242_v40 }
 0x608   : > { %v4738_v28 = vand.u32 4294901760, %v4737_v3  ;;  %v11595_v45 = vsub.f32 %v4623_v9, %v11584_v10  ;;  %v5155_v4 = vand.u32 4294901760, %v4612_v62  ;;  %v5157_v52 = vand.u32 4294901760, %v4609_v54  ;;  %v4620_v53 = vpop.permute.xlu1 %4619  ;;  %4645 = vmatpush1.msra.mxu0 %v11584_v10 }
 0x609   : > { %v4621_v50 = vsel %vm674_vm2, %v4618_v30, %v4620_v53  ;;  %v4624_v22 = vsel %vm674_vm2, %v4620_v53, %v4614_v41  ;;  %4710 = vmatmul.mubr.f32.vlgmr.msra.gmra.mrb[6].mxu0 %v11575_v13  ;;  %v8831_v49 = vpack.c.bf16 %v4732_v20, %v4720_v14  ;;  %v4742_v0 = vand.u32 4294901760, %v11582_v46 }
 0x60a   : > { %v4748_v43 = vand.u32 4294901760, %v11595_v45  ;;  %v11605_v33 = vpack.c.bf16 %v5157_v52, %v5153_v29  ;;  %v11607_v57 = vsub.f32 %v4612_v62, %v5155_v4  ;;  %v11609_v6 = vsub.f32 %v4609_v54, %v5157_v52  ;;  %4810 = vmatprep.mubr.f32.mxu0 %v12880_v51 }
 0x60b   : > { %v11612_v17 = vand.u32 4294901760, %v4624_v22  ;;  %v11614_v47 = vand.u32 4294901760, %v4621_v50  ;;  %8832 = vmatprep.subr.bf16.mxu0 %v8831_v49  ;;  %v8833_v21 = vpack.c.bf16 %v4738_v28, %v4726_v61  ;;  %v11616_v35 = vpack.c.bf16 %v5155_v4, %v5151_v25  ;;  %v11800_v49 = vld [vmem:[%s12944_s21 + $0x48] sm:$0xff] }
 0x60c   : > { %v4749_v37 = vsub.f32 %v11595_v45, %v4748_v43  ;;  %v5247_v29 = vand.u32 4294901760, %v11607_v57  ;;  %v5253_v38 = vand.u32 4294901760, %v11609_v6  ;;  %v4743_v25 = vsub.f32 %v11582_v46, %v4742_v0 }
 0x60d   : > { %v11627_v1 = vsub.f32 %v4624_v22, %v11612_v17  ;;  %v11630_v60 = vsub.f32 %v4621_v50, %v11614_v47  ;;  %8834 = vmatpush1.bf16.msra.mxu0 %v8833_v21  ;;  %8852 = vmatprep.subr.bf16.mxu1 %v11616_v35  ;;  %v5237_v9 = vand.u32 4294901760, %v5236_v23  ;;  %v8835_v3 = vpack.c.bf16 %v11542_v36, %v11526_v11  ;;  %v11701_v11 = vld [vmem:[%s12944_s21 + $0x8] sm:$0xff]  ;;  %v11795_v22 = vld [vmem:[%s12944_s21 + $0x40] sm:$0xff] }
 0x60e   : > { %v5254_v59 = vsub.f32 %v11609_v6, %v5253_v38  ;;  %8854 = vmatpush1.bf16.msra.mxu1 %v11605_v33  ;;  %v4750_v27 = vand.u32 4294901760, %v4749_v37  ;;  %v5248_v15 = vsub.f32 %v11607_v57, %v5247_v29  ;;  %v4744_v30 = vand.u32 4294901760, %v4743_v25 }
 0x60f   : > { %5160 = vmatprep.subr.mxu1 %v11612_v17  ;;  %v5259_v56 = vand.u32 4294901760, %v11627_v1  ;;  %v5265_v32 = vand.u32 4294901760, %v11630_v60  ;;  %v8837_v20 = vpack.c.bf16 %v11557_v7, %v11521_v42  ;;  %v8859_v4 = vpack.c.bf16 %v11607_v57, %v11552_v16  ;;  %v11696_v42 = vld [vmem:[%s12944_s21] sm:$0xff]  ;;  %v11722_v16 = vld [vmem:[%s12944_s21 + $0x10] sm:$0xff]  ;;  %v11751_v7 = vld [vmem:[%s12944_s21 + $0x28] sm:$0xff] }
 0x610   : > { %v5255_v41 = vand.u32 4294901760, %v5254_v59  ;;  %v5249_v61 = vand.u32 4294901760, %v5248_v15  ;;  %4745 = vmatprep.subr.mxu0 %v4744_v30  ;;  %v8843_v52 = vpack.c.bf16 %v4730_v12, %v4718_v2  ;;  %v8845_v53 = vpack.c.bf16 %v4736_v55, %v4724_v18 }
 0x611   : > { %v5260_v8 = vsub.f32 %v11627_v1, %v5259_v56  ;;  %4751 = vmatpush1.msra.mxu0 %v4750_v27  ;;  %v5266_v40 = vsub.f32 %v11630_v60, %v5265_v32  ;;  %v5685_v18 = vand.u32 4294901760, %v11696_v42  ;;  %v5688_v2 = vand.u32 4294901760, %v11701_v11 }
 0x612   : > { %5162 = vmatpush1.msra.mxu1 %v11614_v47  ;;  %v8855_v54 = vpack.c.bf16 %v5249_v61, %v5237_v9  ;;  %v8857_v62 = vpack.c.bf16 %v5255_v41, %v5243_v24  ;;  %4812 = vmatmul.mubr.f32.vlgmr.msra.gmra.mrb[6].mxu0 %v11519_v58  ;;  %v8869_v36 = vpack.c.bf16 %v5253_v38, %v5241_v39  ;;  %v5691_v12 = vand.u32 4294901760, %v11722_v16 }
 0x613   : > { %8836 = vmatprep.subr.bf16.mxu0 %v8835_v3  ;;  %v5261_v14 = vand.u32 4294901760, %v5260_v8  ;;  %5227 = vmatmul.mubr.f32.vlgmr.msra.gmra.mrb[6].mxu1 %v11575_v13  ;;  %v5267_v28 = vand.u32 4294901760, %v5266_v40  ;;  %v8861_v13 = vpack.c.bf16 %v11609_v6, %v11539_v44  ;;  %v11736_v44 = vpack.c.bf16 %v5688_v2, %v5685_v18  ;;  %v5679_v6 = vld [vmem:[%s12944_s21 + $0x58] sm:$0xff] }
 0x614   : > { %8838 = vmatpush1.bf16.msra.mxu0 %v8837_v20  ;;  %8856 = vmatprep.subr.bf16.mxu1 %v8855_v54  ;;  %v5700_v55 = vand.u32 4294901760, %v11751_v7  ;;  %v5718_v21 = vand.u32 4294901760, %v5679_v6  ;;  %v11851_v25 = vsub.f32 %v11696_v42, %v5685_v18  ;;  %v11856_v59 = vsub.f32 %v11701_v11, %v5688_v2 }
 0x615   : > { %4832 = vmatprep.subr.mxu0 %v11582_v46  ;;  %8858 = vmatpush1.bf16.msra.mxu1 %v8857_v62  ;;  %v11775_v46 = vld [vmem:[%s12944_s21 + $0x38] sm:$0xff] }
 0x616   : > { %4894 = vmatprep.mubr.f32.mxu0 %v12880_v51  ;;  %5262 = vmatprep.subr.mxu1 %v5261_v14  ;;  %v5706_v50 = vand.u32 4294901760, %v11775_v46  ;;  %v5808_v30 = vand.u32 4294901760, %v11851_v25  ;;  %v5815_v24 = vand.u32 4294901760, %v11856_v59  ;;  %v11878_v20 = vsub.f32 %v5679_v6, %v5718_v21 }
 0x617   : > { %5327 = vmatprep.mubr.f32.mxu1 %v12880_v51 }
 0x618   : > { %4835 = vmatpush1.msra.mxu0 %v11595_v45  ;;  %v5809_v41 = vsub.f32 %v11851_v25, %v5808_v30  ;;  %v12823_v62 = vand.u32 4294901760, %v11878_v20 }
 0x619   : > { %8840 = vmatprep.subr.bf16.mxu0 %v11544_v5  ;;  %5268 = vmatpush1.msra.mxu1 %v5267_v28 }
 0x61a   : > { %4897 = vmatmul.mubr.f32.vlgmr.msra.gmra.mrb[6].mxu0 %v11524_v31  ;;  %8860 = vmatprep.subr.bf16.mxu1 %v8859_v4  ;;  %v5810_v9 = vand.u32 4294901760, %v5809_v41  ;;  %v5886_v40 = vsub.f32 %v11878_v20, %v12823_v62 }
 0x61b   : > { %8842 = vmatpush1.bf16.msra.mxu0 %v11555_v19  ;;  %5329 = vmatmul.mubr.f32.vlgmr.msra.gmra.mrb[6].mxu1 %v11519_v58 }
 0x61c   : > { %4912 = vmatprep.subr.mxu0 %v11567_v48  ;;  %8862 = vmatpush1.bf16.msra.mxu1 %v8861_v13 }
 0x61d   : > { %5349 = vmatprep.subr.mxu1 %v11627_v1  ;;  %4973 = vmatprep.mubr.f32.mxu0 %v12880_v51  ;;  %v5682_v1 = vld [vmem:[%s12944_s21 + $0x70] sm:$0xff] }
 0x61e   : > { %5411 = vmatprep.mubr.f32.mxu1 %v12880_v51  ;;  %v5727_v27 = vand.u32 4294901760, %v5682_v1 }
 0x61f   : > { %4914 = vmatpush1.msra.mxu0 %v11584_v10 }
 0x620   : > { %8844 = vmatprep.subr.bf16.mxu0 %v8843_v52  ;;  %5352 = vmatpush1.msra.mxu1 %v11630_v60  ;;  %v5683_v60 = vld [vmem:[%s12944_s21 + $0x78] sm:$0xff]  ;;  %v5887_v52 = vand.u32 4294901760, %v5886_v40  ;;  %v11902_v2 = vsub.f32 %v5682_v1, %v5727_v27 }
 0x621   : > { %8864 = vmatprep.subr.bf16.mxu1 %v11616_v35  ;;  %v5730_v15 = vand.u32 4294901760, %v5683_v60 }
 0x622   : > { %4977 = vmatmul.mubr.f32.vlgmr.msra.gmra.mrb[6].mxu0 %v11532_v26 }
 0x623   : > { %8846 = vmatpush1.bf16.msra.mxu0 %v8845_v53  ;;  %5414 = vmatmul.mubr.f32.vlgmr.msra.gmra.mrb[6].mxu1 %v11524_v31  ;;  %v8867_v31 = vpack.c.bf16 %v5247_v29, %v5235_v63  ;;  %v11770_v63 = vld [vmem:[%s12944_s21 + $0x30] sm:$0xff] }
 0x624   : > { %8866 = vmatpush1.bf16.msra.mxu1 %v11605_v33  ;;  %5002 = vmatprep.subr.mxu0 %v4742_v0  ;;  %v5703_v45 = vand.u32 4294901760, %v11770_v63 }
 0x625   : > { %5429 = vmatprep.subr.mxu1 %v11612_v17  ;;  %5065 = vmatprep.mubr.f32.mxu0 %v12880_v51 }
 0x626   : > { %5490 = vmatprep.mubr.f32.mxu1 %v12880_v51  ;;  %v11809_v0 = vpack.c.bf16 %v5706_v50, %v5703_v45 }
 0x627   : > { %5006 = vmatpush1.msra.mxu0 %v4748_v43  ;;  %v5709_v43 = vand.u32 4294901760, %v11795_v22 }
 0x628   : > { %5431 = vmatpush1.msra.mxu1 %v11614_v47  ;;  %8848 = vmatprep.subr.bf16.mxu0 %v11544_v5  ;;  %v11727_v5 = vld [vmem:[%s12944_s21 + $0x18] sm:$0xff] }
 0x629   : > { %8868 = vmatprep.subr.bf16.mxu1 %v8867_v31 }
 0x62a   : > { %5067 = vmatmul.mubr.f32.vlgmr.msra.gmra.mrb[6].mxu0 %v11519_v58 }
 0x62b   : > { %8850 = vmatpush1.bf16.msra.mxu0 %v11555_v19  ;;  %5494 = vmatmul.mubr.f32.vlgmr.msra.gmra.mrb[6].mxu1 %v11532_v26  ;;  %v5694_v19 = vand.u32 4294901760, %v11727_v5  ;;  %v11746_v26 = vld [vmem:[%s12944_s21 + $0x20] sm:$0xff] }
 0x62c   : > { %8870 = vmatpush1.bf16.msra.mxu1 %v8869_v36  ;;  %5082 = vmatprep.subr.mxu0 %v11567_v48  ;;  %v5697_v39 = vand.u32 4294901760, %v11746_v26  ;;  %v11904_v36 = vsub.f32 %v5683_v60, %v5730_v15  ;;  %v11918_v60 = vpack.c.bf16 %v11856_v59, %v11851_v25 }
 0x62d   : > { %5519 = vmatprep.subr.mxu1 %v5259_v56  ;;  %5143 = vmatprep.mubr.f32.mxu0 %v12880_v51  ;;  %v11765_v48 = vpack.c.bf16 %v5694_v19, %v5691_v12  ;;  %v11862_v56 = vpack.c.bf16 %v5730_v15, %v5727_v27 }
 0x62e   : > { %5582 = vmatprep.mubr.f32.mxu1 %v12880_v51 }
 0x62f   : > { %5084 = vmatpush1.msra.mxu0 %v11584_v10  ;;  %v11786_v10 = vpack.c.bf16 %v5700_v55, %v5697_v39 }
 0x630   : > { %5523 = vmatpush1.msra.mxu1 %v5265_v32  ;;  %8876 = vmatprep.subr.bf16.mxu0 %v11736_v44  ;;  %v5816_v32 = vsub.f32 %v11856_v59, %v5815_v24 }
 0x631   : > { %8872 = vmatprep.subr.bf16.mxu1 %v11616_v35  ;;  %v5681_v35 = vld [vmem:[%s12944_s21 + $0x68] sm:$0xff] }
 0x632   : > { %5145 = vmatmul.mubr.f32.vlgmr.msra.gmra.mrb[6].mxu0 %v11519_v58  ;;  %v5724_v29 = vand.u32 4294901760, %v5681_v35  ;;  %v5817_v61 = vand.u32 4294901760, %v5816_v32  ;;  %v11932_v32 = vpack.c.bf16 %v11904_v36, %v11902_v2 }
 0x633   : > { %5584 = vmatmul.mubr.f32.vlgmr.msra.gmra.mrb[6].mxu1 %v11519_v58  ;;  %8878 = vmatpush3.bf16.msra.mxu0 %v11736_v44 }
 0x634   : > { %8874 = vmatpush1.bf16.msra.mxu1 %v11605_v33  ;;  %5660 = vmatprep.mubr.f32.mxu1 %v12880_v51  ;;  %v5712_v33 = vand.u32 4294901760, %v11800_v49  ;;  %v11872_v3 = vpack.c.bf16 %v5817_v61, %v5810_v9  ;;  %v11890_v4 = vsub.f32 %v5681_v35, %v5724_v29  ;;  %v11937_v9 = vsub.f32 %v11722_v16, %v5691_v12 }
 0x635   : > { %5599 = vmatprep.subr.mxu1 %v11612_v17  ;;  %8880 = vmatprep.subr.bf16.mxu0 %v11765_v48  ;;  %v5680_v17 = vld [vmem:[%s12944_s21 + $0x60] sm:$0xff]  ;;  %v11942_v61 = vsub.f32 %v11727_v5, %v5694_v19  ;;  %v11954_v16 = vsub.f32 %v11751_v7, %v5700_v55  ;;  %v11971_v55 = vsub.f32 %v11770_v63, %v5703_v45 }
 0x636   : > { %v11820_v57 = vpack.c.bf16 %v5712_v33, %v5709_v43  ;;  %v5721_v37 = vand.u32 4294901760, %v5680_v17  ;;  %v12821_v42 = vand.u32 4294901760, %v11890_v4 }
 0x637   : > { %8882 = vmatpush3.bf16.msra.mxu0 %v11765_v48  ;;  %v12827_v40 = vand.u32 4294901760, %v11942_v61  ;;  %v12825_v7 = vand.u32 4294901760, %v11954_v16  ;;  %v12948_v59 = vand.u32 4294901760, %v11954_v16 }
 0x638   : > { %5601 = vmatpush1.msra.mxu1 %v11614_v47  ;;  %8884 = vmatprep.subr.bf16.mxu0 %v11786_v10  ;;  %v11839_v23 = vpack.c.bf16 %v5724_v29, %v5721_v37  ;;  %v11888_v28 = vsub.f32 %v5680_v17, %v5721_v37  ;;  %v5900_v18 = vsub.f32 %v11890_v4, %v12821_v42  ;;  %v12820_v17 = vand.u32 4294901760, %v11902_v2 }
 0x63a   : > { %v12822_v53 = vand.u32 4294901760, %v11888_v28  ;;  %v5901_v6 = vand.u32 4294901760, %v5900_v18  ;;  %v5907_v35 = vsub.f32 %v11902_v2, %v12820_v17  ;;  %v11928_v41 = vpack.c.bf16 %v11890_v4, %v11888_v28 }
 0x63b   : > { %5662 = vmatmul.mubr.f32.vlgmr.msra.gmra.mrb[6].mxu1 %v11519_v58  ;;  %8886 = vmatpush3.bf16.msra.mxu0 %v11786_v10  ;;  %v5678_v58 = vld [vmem:[%s12944_s21 + $0x50] sm:$0xff] }
 0x63c   : > { %8888 = vmatprep.subr.bf16.mxu0 %v11809_v0  ;;  %v5715_v47 = vand.u32 4294901760, %v5678_v58  ;;  %v5893_v31 = vsub.f32 %v11888_v28, %v12822_v53  ;;  %v5908_v29 = vand.u32 4294901760, %v5907_v35 }
 0x63e   : > { %v11837_v38 = vpack.c.bf16 %v5718_v21, %v5715_v47  ;;  %v11876_v8 = vsub.f32 %v5678_v58, %v5715_v47  ;;  %v5894_v58 = vand.u32 4294901760, %v5893_v31  ;;  %v12819_v47 = vand.u32 4294901760, %v11904_v36 }
 0x63f   : > { %8890 = vmatpush3.bf16.msra.mxu0 %v11809_v0 }
 0x640   : > { %8892 = vmatprep.subr.bf16.mxu0 %v11820_v57  ;;  %v12824_v54 = vand.u32 4294901760, %v11876_v8  ;;  %v11908_v21 = vpack.c.bf16 %v5901_v6, %v5894_v58  ;;  %v5914_v37 = vsub.f32 %v11904_v36, %v12819_v47  ;;  %v11924_v15 = vpack.c.bf16 %v11878_v20, %v11876_v8 }
 0x641   : > { %v12005_v47 = vsub.f32 %v11800_v49, %v5712_v33 }
 0x642   : > { %v5879_v14 = vsub.f32 %v11876_v8, %v12824_v54  ;;  %v5915_v1 = vand.u32 4294901760, %v5914_v37  ;;  %v11979_v37 = vsub.f32 %v11775_v46, %v5706_v50  ;;  %v5850_v46 = vand.u32 4294901760, %v11971_v55 }
 0x643   : > { %8894 = vmatpush3.bf16.msra.mxu0 %v11820_v57 }
 0x644   : > { %8896 = vmatprep.subr.bf16.mxu0 %v11837_v38  ;;  %v5880_v13 = vand.u32 4294901760, %v5879_v14  ;;  %v11920_v27 = vpack.c.bf16 %v5915_v1, %v5908_v29  ;;  %v12828_v14 = vand.u32 4294901760, %v11937_v9 }
 0x646   : > { %v11894_v11 = vpack.c.bf16 %v5887_v52, %v5880_v13  ;;  %v11949_v13 = vsub.f32 %v11746_v26, %v5697_v39  ;;  %v4628_v52 = vpop.permute.xlu0 %4627  ;;  %v5823_v58 = vsub.f32 %v11937_v9, %v12828_v14  ;;  %v5830_v26 = vsub.f32 %v11942_v61, %v12827_v40 }
 0x647   : > { %8898 = vmatpush3.bf16.msra.mxu0 %v11837_v38 }
 0x648   : > { %8900 = vmatprep.subr.bf16.mxu0 %v11839_v23  ;;  %v12826_v39 = vand.u32 4294901760, %v11949_v13  ;;  %v12947_v25 = vand.u32 4294901760, %v11949_v13 }
 0x64a   : > { %v5837_v63 = vsub.f32 %v11949_v13, %v12826_v39 }
 0x64b   : > { %8902 = vmatpush3.bf16.msra.mxu0 %v11839_v23 }
 0x64c   : > { %8904 = vmatprep.subr.bf16.mxu0 %v11862_v56  ;;  %v5838_v39 = vand.u32 4294901760, %v5837_v63 }
 0x64f   : > { %8906 = vmatpush3.bf16.msra.mxu0 %v11862_v56 }
 0x650   : > { %8908 = vmatprep.subr.bf16.mxu0 %v11872_v3 }
 0x705   : > { %v5146_v31 = vpop.f32.mrb[6].mxu0 }
 0x706   : > { %v9305_v12 = vadd.f32 %v5146_v31, %v4628_v52  ;;  %v5148_v18 = vpop.f32.mrb[7].mxu0  ;;  %v5824_v31 = vand.u32 4294901760, %v5823_v58  ;;  %v5857_v58 = vand.u32 4294901760, %v11979_v37 }
 0x707   : > { %v9306_v5 = vadd.f32 %v5148_v18, %v4628_v52  ;;  %v5831_v18 = vand.u32 4294901760, %v5830_v26  ;;  %v12000_v26 = vsub.f32 %v11795_v22, %v5709_v43  ;;  %v5851_v43 = vsub.f32 %v11971_v55, %v5850_v46 }
 0x708   : > { %v11956_v19 = vand.u32 4294901760, %v9305_v12  ;;  %v5858_v33 = vsub.f32 %v11979_v37, %v5857_v58 }
 0x709   : > { %v11965_v6 = vand.u32 4294901760, %v9306_v5  ;;  %v5852_v63 = vand.u32 4294901760, %v5851_v43 }
 0x70a   : > { %v11974_v35 = vsub.f32 %v9305_v12, %v11956_v19  ;;  %v5844_v12 = vsub.f32 %v11954_v16, %v12825_v7  ;;  %v8911_v7 = vpack.c.bf16 %v5831_v18, %v5824_v31 }
 0x70b   : > { %v11982_v29 = vsub.f32 %v9306_v5, %v11965_v6 }
 0x70c   : > { %v5767_v1 = vand.u32 4294901760, %v11974_v35  ;;  %v5845_v22 = vand.u32 4294901760, %v5844_v12 }
 0x70d   : > { %v5777_v45 = vand.u32 4294901760, %v11982_v29 }
 0x70e   : > { %v5663_v50 = vpop.f32.mrb[6].mxu1  ;;  %v5768_v5 = vsub.f32 %v11974_v35, %v5767_v1  ;;  %v8915_v18 = vpack.c.bf16 %v5845_v22, %v5838_v39 }
 0x70f   : > { %v5778_v17 = vsub.f32 %v11982_v29, %v5777_v45  ;;  %v9307_v42 = vadd.f32 %v5663_v50, %v4628_v52  ;;  %v5665_v53 = vpop.f32.mrb[7].mxu1  ;;  %v5859_v50 = vand.u32 4294901760, %v5858_v33 }
 0x710   : > { %v9308_v62 = vadd.f32 %v5665_v53, %v4628_v52  ;;  %v5769_v54 = vand.u32 4294901760, %v5768_v5  ;;  %v5864_v53 = vand.u32 4294901760, %v12000_v26  ;;  %v12829_v52 = vand.u32 4294901760, %v12005_v47 }
 0x711   : > { %v12010_v40 = vand.u32 4294901760, %v9307_v42  ;;  %v5779_v14 = vand.u32 4294901760, %v5778_v17  ;;  %v8919_v22 = vpack.c.bf16 %v5859_v50, %v5852_v63 }
 0x712   : > { %v12015_v49 = vand.u32 4294901760, %v9308_v62  ;;  %8205 = vmatprep.mubr.f32.mxu0 %v5769_v54  ;;  %v5865_v5 = vsub.f32 %v12000_v26, %v5864_v53 }
 0x713   : > { %v12023_v31 = vsub.f32 %v9307_v42, %v12010_v40  ;;  %8206 = vmatmul.mubr.f32.vlgmr.msra.gmra.mrb[8].mxu0 %v5779_v14  ;;  %v5872_v42 = vsub.f32 %v12005_v47, %v12829_v52 }
 0x714   : > { %v12026_v17 = vsub.f32 %v9308_v62, %v12015_v49  ;;  %8910 = vmatpush3.bf16.msra.mxu0 %v11872_v3  ;;  %v5866_v43 = vand.u32 4294901760, %v5865_v5 }
 0x715   : > { %8912 = vmatprep.subr.bf16.mxu0 %v8911_v7  ;;  %v5787_v54 = vand.u32 4294901760, %v12023_v31  ;;  %v5873_v33 = vand.u32 4294901760, %v5872_v42 }
 0x716   : > { %v5797_v12 = vand.u32 4294901760, %v12026_v17 }
 0x717   : > { %v5788_v3 = vsub.f32 %v12023_v31, %v5787_v54  ;;  %v8923_v52 = vpack.c.bf16 %v5873_v33, %v5866_v43 }
 0x718   : > { %8914 = vmatpush3.bf16.msra.mxu0 %v8911_v7  ;;  %v5798_v62 = vsub.f32 %v12026_v17, %v5797_v12  ;;  %v8943_v7 = vpack.c.bf16 %v11942_v61, %v11937_v9 }
 0x719   : > { %v5789_v14 = vand.u32 4294901760, %v5788_v3  ;;  %8916 = vmatprep.subr.bf16.mxu0 %v8915_v18 }
 0x71a   : > { %v5799_v39 = vand.u32 4294901760, %v5798_v62 }
 0x71b   : > { %8208 = vmatprep.mubr.f32.mxu0 %v5789_v14 }
 0x71c   : > { %8209 = vmatmul.mubr.f32.gmra.mrb[10].mxu0 %v5799_v39 }
 0x71d   : > { %8918 = vmatpush3.bf16.msra.mxu0 %v8915_v18  ;;  %8243 = vmatprep.mubr.f32.mxu0 %v11956_v19 }
 0x71e   : > { %8920 = vmatprep.subr.bf16.mxu0 %v8919_v22 }
 0x721   : > { %8922 = vmatpush3.bf16.msra.mxu0 %v8919_v22 }
 0x722   : > { %8924 = vmatprep.subr.bf16.mxu0 %v8923_v52 }
 0x725   : > { %8926 = vmatpush3.bf16.msra.mxu0 %v8923_v52 }
 0x726   : > { %8928 = vmatprep.subr.bf16.mxu0 %v11894_v11 }
 0x729   : > { %8930 = vmatpush3.bf16.msra.mxu0 %v11894_v11  ;;  %v8947_v11 = vpack.c.bf16 %v11954_v16, %v11949_v13  ;;  %v12950_v13 = vand.u32 4294901760, %v11876_v8  ;;  %v12951_v16 = vand.u32 4294901760, %v11878_v20 }
 0x72a   : > { %8932 = vmatprep.subr.bf16.mxu0 %v11908_v21 }
 0x72d   : > { %8934 = vmatpush3.bf16.msra.mxu0 %v11908_v21  ;;  %v8951_v21 = vpack.c.bf16 %v11979_v37, %v11971_v55  ;;  %v12952_v55 = vand.u32 4294901760, %v11888_v28  ;;  %v12953_v37 = vand.u32 4294901760, %v11890_v4  ;;  %v12159_v28 = vld [vmem:[%s12956_s4] sm:$0xff]  ;;  %v12164_v4 = vld [vmem:[%s12956_s4 + $0x8] sm:$0xff] }
 0x72e   : > { %8936 = vmatprep.subr.bf16.mxu0 %v11920_v27 }
 0x731   : > { %8938 = vmatpush3.bf16.msra.mxu0 %v11920_v27  ;;  %v8955_v27 = vpack.c.bf16 %v12005_v47, %v12000_v26 }
 0x732   : > { %8940 = vmatprep.subr.bf16.mxu0 %v11918_v60 }
 0x734   : > { %8244 = vmatmul.mubr.f32.vlgmr.msra.gmra.mrb[8].mxu0 %v11965_v6 }
 0x735   : > { %8246 = vmatprep.mubr.f32.mxu0 %v12010_v40  ;;  %8942 = vmatpush3.bf16.msra.mxu0 %v11918_v60  ;;  %v9003_v60 = vpack.c.bf16 %v5815_v24, %v5808_v30  ;;  %v9011_v30 = vpack.c.bf16 %v12948_v59, %v12947_v25  ;;  %v9015_v24 = vpack.c.bf16 %v5857_v58, %v5850_v46 }
 0x736   : > { %8944 = vmatprep.subr.bf16.mxu0 %v8943_v7 }
 0x738   : > { %8247 = vmatmul.mubr.f32.gmra.mrb[10].mxu0 %v12015_v49 }
 0x739   : > { %8946 = vmatpush3.bf16.msra.mxu0 %v8943_v7  ;;  %8281 = vmatprep.mubr.f32.mxu0 %v11974_v35  ;;  %v9023_v35 = vpack.c.bf16 %v12951_v16, %v12950_v13 }
 0x73a   : > { %8948 = vmatprep.subr.bf16.mxu0 %v8947_v11 }
 0x73d   : > { %8950 = vmatpush3.bf16.msra.mxu0 %v8947_v11 }
 0x73e   : > { %8952 = vmatprep.subr.bf16.mxu0 %v8951_v21 }
 0x741   : > { %8954 = vmatpush3.bf16.msra.mxu0 %v8951_v21 }
 0x742   : > { %8956 = vmatprep.subr.bf16.mxu0 %v8955_v27 }
 0x745   : > { %8958 = vmatpush3.bf16.msra.mxu0 %v8955_v27 }
 0x746   : > { %8960 = vmatprep.subr.bf16.mxu0 %v11924_v15 }
 0x749   : > { %8962 = vmatpush3.bf16.msra.mxu0 %v11924_v15  ;;  %v12945_v15 = vand.u32 4294901760, %v11937_v9  ;;  %v12949_v9 = vand.u32 4294901760, %v12005_v47  ;;  %v12955_v47 = vand.u32 4294901760, %v11904_v36  ;;  %v6554_v36 = vand.u32 4294901760, %v12159_v28 }
 0x74a   : > { %8964 = vmatprep.subr.bf16.mxu0 %v11928_v41 }
 0x74d   : > { %8966 = vmatpush3.bf16.msra.mxu0 %v11928_v41  ;;  %v12946_v41 = vand.u32 4294901760, %v11942_v61  ;;  %v9019_v61 = vpack.c.bf16 %v12949_v9, %v5864_v53  ;;  %v6538_v9 = vld [vmem:[%s12956_s4 + $0x28] sm:$0xff] }
 0x74e   : > { %8968 = vmatprep.subr.bf16.mxu0 %v11932_v32  ;;  %v6569_v13 = vand.u32 4294901760, %v6538_v9 }
 0x751   : > { %8970 = vmatpush3.bf16.msra.mxu0 %v11932_v32  ;;  %v9007_v32 = vpack.c.bf16 %v12946_v41, %v12945_v15 }
 0x752   : > { %8972 = vmatprep.subr.bf16.mxu0 %v11736_v44 }
 0x754   : > { %8282 = vmatmul.mubr.f32.vlgmr.msra.gmra.mrb[8].mxu0 %v11982_v29  ;;  %v9027_v29 = vpack.c.bf16 %v12953_v37, %v12952_v55  ;;  %v6539_v37 = vld [vmem:[%s12956_s4 + $0x30] sm:$0xff] }
 0x755   : > { %8284 = vmatprep.mubr.f32.mxu0 %v12023_v31  ;;  %8974 = vmatpush3.bf16.msra.mxu0 %v11736_v44 }
 0x756   : > { %8976 = vmatprep.subr.bf16.mxu0 %v11765_v48 }
 0x758   : > { %8285 = vmatmul.mubr.f32.gmra.mrb[10].mxu0 %v12026_v17 }
 0x759   : > { %8978 = vmatpush3.bf16.msra.mxu0 %v11765_v48  ;;  %8319 = vmatprep.mubr.f32.mxu0 %v5767_v1  ;;  %v12954_v1 = vand.u32 4294901760, %v11902_v2  ;;  %v12169_v2 = vld [vmem:[%s12956_s4 + $0x10] sm:$0xff] }
 0x75a   : > { %8980 = vmatprep.subr.bf16.mxu0 %v11786_v10 }
 0x75d   : > { %8982 = vmatpush3.bf16.msra.mxu0 %v11786_v10 }
 0x75e   : > { %8984 = vmatprep.subr.bf16.mxu0 %v11809_v0 }
 0x761   : > { %8986 = vmatpush3.bf16.msra.mxu0 %v11809_v0 }
 0x762   : > { %8988 = vmatprep.subr.bf16.mxu0 %v11820_v57 }
 0x765   : > { %8990 = vmatpush3.bf16.msra.mxu0 %v11820_v57 }
 0x766   : > { %8992 = vmatprep.subr.bf16.mxu0 %v11837_v38 }
 0x769   : > { %8994 = vmatpush3.bf16.msra.mxu0 %v11837_v38 }
 0x76a   : > { %8996 = vmatprep.subr.bf16.mxu0 %v11839_v23 }
 0x76d   : > { %8998 = vmatpush3.bf16.msra.mxu0 %v11839_v23 }
 0x76e   : > { %9000 = vmatprep.subr.bf16.mxu0 %v11862_v56 }
 0x771   : > { %9002 = vmatpush3.bf16.msra.mxu0 %v11862_v56 }
 0x772   : > { %9004 = vmatprep.subr.bf16.mxu0 %v9003_v60 }
 0x774   : > { %8320 = vmatmul.mubr.f32.vlgmr.msra.gmra.mrb[8].mxu0 %v5777_v45  ;;  %v9031_v45 = vpack.c.bf16 %v12955_v47, %v12954_v1  ;;  %v6541_v1 = vld [vmem:[%s12956_s4 + $0x40] sm:$0xff]  ;;  %v6572_v47 = vand.u32 4294901760, %v6539_v37 }
 0x775   : > { %8322 = vmatprep.mubr.f32.mxu0 %v5787_v54  ;;  %9006 = vmatpush3.bf16.msra.mxu0 %v9003_v60 }
 0x776   : > { %9008 = vmatprep.subr.bf16.mxu0 %v9007_v32 }
 0x778   : > { %8323 = vmatmul.mubr.f32.gmra.mrb[10].mxu0 %v5797_v12 }
 0x779   : > { %9010 = vmatpush3.bf16.msra.mxu0 %v9007_v32  ;;  %8357 = vmatprep.mubr.f32.mxu0 %v11956_v19 }
 0x77a   : > { %9012 = vmatprep.subr.bf16.mxu0 %v9011_v30 }
 0x77d   : > { %9014 = vmatpush3.bf16.msra.mxu0 %v9011_v30 }
 0x77e   : > { %9016 = vmatprep.subr.bf16.mxu0 %v9015_v24 }
 0x781   : > { %9018 = vmatpush3.bf16.msra.mxu0 %v9015_v24  ;;  %v6537_v24 = vld [vmem:[%s12956_s4 + $0x20] sm:$0xff] }
 0x782   : > { %9020 = vmatprep.subr.bf16.mxu0 %v9019_v61 }
 0x785   : > { %9022 = vmatpush3.bf16.msra.mxu0 %v9019_v61  ;;  %v6566_v61 = vand.u32 4294901760, %v6537_v24 }
 0x786   : > { %9024 = vmatprep.subr.bf16.mxu0 %v9023_v35 }
 0x787   : > { %v12210_v16 = vpack.c.bf16 %v6569_v13, %v6566_v61 }
 0x789   : > { %9026 = vmatpush3.bf16.msra.mxu0 %v9023_v35 }
 0x78a   : > { %9028 = vmatprep.subr.bf16.mxu0 %v9027_v29 }
 0x78d   : > { %9030 = vmatpush3.bf16.msra.mxu0 %v9027_v29  ;;  %v6540_v29 = vld [vmem:[%s12956_s4 + $0x38] sm:$0xff] }
 0x78e   : > { %9032 = vmatprep.subr.bf16.mxu0 %v9031_v45 }
 0x791   : > { %9034 = vmatpush3.bf16.msra.mxu0 %v9031_v45  ;;  %v6575_v45 = vand.u32 4294901760, %v6540_v29 }
 0x792   : > { %9036 = vmatprep.subr.bf16.mxu0 %v11736_v44 }
 0x794   : > { %8358 = vmatmul.mubr.f32.vlgmr.msra.gmra.mrb[8].mxu0 %v11965_v6 }
 0x795   : > { %8360 = vmatprep.mubr.f32.mxu0 %v12010_v40  ;;  %9038 = vmatpush3.bf16.msra.mxu0 %v11736_v44 }
 0x796   : > { %9040 = vmatprep.subr.bf16.mxu0 %v11765_v48 }
 0x798   : > { %8361 = vmatmul.mubr.f32.gmra.mrb[10].mxu0 %v12015_v49 }
 0x799   : > { %9042 = vmatpush3.bf16.msra.mxu0 %v11765_v48  ;;  %8395 = vmatprep.mubr.f32.mxu0 %v11956_v19  ;;  %v12176_v19 = vld [vmem:[%s12956_s4 + $0x18] sm:$0xff] }
 0x79a   : > { %9044 = vmatprep.subr.bf16.mxu0 %v11786_v10  ;;  %v6563_v46 = vand.u32 4294901760, %v12176_v19 }
 0x79d   : > { %9046 = vmatpush3.bf16.msra.mxu0 %v11786_v10 }
 0x79e   : > { %9048 = vmatprep.subr.bf16.mxu0 %v11809_v0 }
 0x7a1   : > { %9050 = vmatpush3.bf16.msra.mxu0 %v11809_v0 }
 0x7a2   : > { %9052 = vmatprep.subr.bf16.mxu0 %v11820_v57 }
 0x7a5   : > { %9054 = vmatpush3.bf16.msra.mxu0 %v11820_v57 }
 0x7a6   : > { %9056 = vmatprep.subr.bf16.mxu0 %v11837_v38 }
 0x7a9   : > { %9058 = vmatpush3.bf16.msra.mxu0 %v11837_v38 }
 0x7aa   : > { %9060 = vmatprep.subr.bf16.mxu0 %v11839_v23 }
 0x7ad   : > { %9062 = vmatpush3.bf16.msra.mxu0 %v11839_v23 }
 0x7ae   : > { %9064 = vmatprep.subr.bf16.mxu0 %v11862_v56 }
 0x7b1   : > { %9066 = vmatpush3.bf16.msra.mxu0 %v11862_v56 }
 0x7b4   : > { %8396 = vmatmul.mubr.f32.vlgmr.msra.gmra.mrb[8].mxu0 %v11965_v6  ;;  %v6560_v6 = vand.u32 4294901760, %v12169_v2 }
 0x7b5   : > { %8398 = vmatprep.mubr.f32.mxu0 %v12010_v40  ;;  %v6557_v40 = vand.u32 4294901760, %v12164_v4 }
 0x7b6   : > { %v12190_v26 = vpack.c.bf16 %v6563_v46, %v6560_v6 }
 0x7b7   : > { %v12184_v58 = vpack.c.bf16 %v6557_v40, %v6554_v36 }
 0x7b8   : > { %8399 = vmatmul.mubr.f32.gmra.mrb[10].mxu0 %v12015_v49 }
 0x7b9   : > { %7877 = vmatprep.mubr.f32.mxu0 %v12880_v51  ;;  %9068 = vmatprep.subr.bf16.mxu1 %v12184_v58 }
 0x7ba   : > { %9070 = vmatpush3.bf16.msra.mxu1 %v12184_v58 }
 0x7bb   : > { %9072 = vmatprep.subr.bf16.mxu1 %v12190_v26 }
 0x7be   : > { %9074 = vmatpush3.bf16.msra.mxu1 %v12190_v26 }
 0x7bf   : > { %9076 = vmatprep.subr.bf16.mxu1 %v12210_v16 }
 0x7c2   : > { %9078 = vmatpush3.bf16.msra.mxu1 %v12210_v16 }
 0x887   : > { %v8397_v44 = vpop.f32.mrb[8].mxu0 }
 0x888   : > { %v6432_v48 = vpop.f32.mrb[9].mxu0 }
 0x88b   : > { %v8400_v10 = vpop.f32.mrb[10].mxu0 }
 0x88c   : > { %v6455_v0 = vmul.f32 %v8400_v10, %v8397_v44  ;;  %6478 = vrot.lane.b32.xlu0 %v8400_v10, %s12830_s8  ;;  %v6444_v57 = vpop.f32.mrb[11].mxu0 }
 0x88d   : > { %v6454_v38 = vmul.f32 %v6444_v57, %v6432_v48  ;;  %6476 = vrot.lane.b32.xlu1 %v6444_v57, %s12830_s8  ;;  %s12958_s8 = smov 127  }
 0x890   : > { %6470 = vrot.lane.b32.xlu0 %v8400_v10, %s9798_s9  ;;  %v6650_v10 = vsub.f32 %v12159_v28, %v6554_v36 }
 0x891   : > { %6468 = vrot.lane.b32.xlu1 %v6444_v57, %s9798_s9  ;;  %v6657_v57 = vsub.f32 %v12164_v4, %v6557_v40 }
 0x895   : > { %6458 = vrot.lane.b32.xlu1 %v6454_v38, %s9798_s9 }
 0x899   : > { %6460 = vrot.lane.b32.xlu1 %v6455_v0, %s9798_s9 }
 0x8fe   : > { %v6479_v8 = vpop.permute.xlu0 %6478 }
 0x8ff   : > { %v6477_v23 = vpop.permute.xlu1 %6476  ;;  %v6483_v20 = vmul.f32 %v8397_v44, %v6479_v8 }
 0x900   : > { %v6482_v56 = vmul.f32 %v6477_v23, %v6432_v48 }
 0x902   : > { %6486 = vrot.lane.b32.xlu0 %v6482_v56, %s9798_s9  ;;  %v6471_v52 = vpop.permute.xlu0 %6470  ;;  %v6651_v56 = vand.u32 4294901760, %v6650_v10 }
 0x903   : > { %v6469_v49 = vpop.permute.xlu1 %6468  ;;  %v6475_v12 = vmul.f32 %v8397_v44, %v6471_v52  ;;  %v6542_v44 = vld [vmem:[%s12956_s4 + $0x48] sm:$0x3f] }
 0x904   : > { %v6474_v31 = vmul.f32 %v6469_v49, %v6432_v48  ;;  %v6578_v48 = vand.u32 4294901760, %v6541_v1  ;;  %v6652_v28 = vsub.f32 %v6650_v10, %v6651_v56 }
 0x906   : > { %6488 = vrot.lane.b32.xlu0 %v6483_v20, %s9798_s9  ;;  %v6658_v20 = vand.u32 4294901760, %v6657_v57  ;;  %v6653_v4 = vand.u32 4294901760, %v6652_v28  ;;  %s12832_s9 = smov 2  }
 0x907   : > { %v6459_v53 = vpop.permute.xlu1 %6458 }
 0x908   : > { %v12196_v17 = vadd.f32 %v6459_v53, %v6454_v38  ;;  %v12237_v38 = vpack.c.bf16 %v6575_v45, %v6572_v47  ;;  %v6659_v36 = vsub.f32 %v6657_v57, %v6658_v20 }
 0x90a   : > { %v6494_v50 = vmul.f32 %v12196_v17, %v12196_v17  ;;  %9080 = vmatprep.subr.bf16.mxu1 %v12237_v38  ;;  %v6660_v40 = vand.u32 4294901760, %v6659_v36 }
 0x90b   : > { %v6461_v18 = vpop.permute.xlu1 %6460  ;;  %9082 = vmatpush3.bf16.msra.mxu1 %v12237_v38 }
 0x90c   : > { %v12200_v42 = vadd.f32 %v6461_v18, %v6455_v0  ;;  %v6551_v0 = vsel %vm1016_vm10, %v6542_v44, 0  ;;  %v12246_v52 = vpack.c.bf16 %v6660_v40, %v6653_v4  ;;  %v12255_v44 = vpack.c.bf16 %v6658_v20, %v6651_v56 }
 0x90d   : > { %v6581_v23 = vand.u32 4294901760, %v6551_v0  ;;  %vm7169_vm10 = vcmask 146432  }
 0x90e   : > { %v6495_v39 = vmul.f32 %v12200_v42, %v12200_v42 }
 0x90f   : > { %v12240_v53 = vpack.c.bf16 %v6581_v23, %v6578_v48 }
 0x911   : > { %9084 = vmatprep.subr.bf16.mxu1 %v12240_v53 }
 0x912   : > { %9086 = vmatpush3.bf16.msra.mxu1 %v12240_v53 }
 0x913   : > { %9088 = vmatprep.subr.bf16.mxu1 %v12246_v52 }
 0x974   : > { %v6487_v54 = vpop.permute.xlu0 %6486 }
 0x975   : > { %v6492_v63 = vsub.f32 %v6474_v31, %v6487_v54  ;;  %v6678_v31 = vsub.f32 %v6537_v24, %v6566_v61  ;;  %v6685_v54 = vsub.f32 %v6538_v9, %v6569_v13  ;;  %v9107_v9 = vpack.c.bf16 %v6657_v57, %v6650_v10 }
 0x977   : > { %v6496_v5 = vmul.f32 %v6492_v63, %v6492_v63  ;;  %v6679_v18 = vand.u32 4294901760, %v6678_v31  ;;  %v9115_v13 = vpack.c.bf16 %v6685_v54, %v6678_v31 }
 0x978   : > { %v6489_v3 = vpop.permute.xlu0 %6488 }
 0x979   : > { %v6498_v62 = vadd.f32 %v6496_v5, %v6494_v50  ;;  %v6493_v14 = vsub.f32 %v6475_v12, %v6489_v3  ;;  %v6680_v12 = vsub.f32 %v6678_v31, %v6679_v18  ;;  %v6692_v5 = vsub.f32 %v6539_v37, %v6572_v47 }
 0x97a   : > { %v6699_v3 = vsub.f32 %v6540_v29, %v6575_v45  ;;  %v6664_v29 = vsub.f32 %v12169_v2, %v6560_v6 }
 0x97b   : > { %9709 = vrsqrt.f32 %v6498_v62  ;;  %v6497_v22 = vmul.f32 %v6493_v14, %v6493_v14  ;;  %vm6502_vm12 = vcmp.eq.f32.partialorder %v6498_v62, inf  ;;  %v6505_v11 = vand.u32 2147483648, %v6498_v62 }
 0x97c   : > { %vm6504_vm14 = vcmp.eq.f32.partialorder %v6498_v62, 0.0  ;;  %v6665_v47 = vand.u32 4294901760, %v6664_v29 }
 0x97d   : > { %v6499_v43 = vadd.f32 %v6497_v22, %v6495_v39  ;;  %v6693_v39 = vand.u32 4294901760, %v6692_v5  ;;  %v6700_v22 = vand.u32 4294901760, %v6699_v3 }
 0x97e   : > { %v6666_v31 = vsub.f32 %v6664_v29, %v6665_v47 }
 0x97f   : > { %9711 = vrsqrt.f32 %v6499_v43  ;;  %vm6509_vm15 = vcmp.eq.f32.partialorder %v6499_v43, inf  ;;  %v6512_v32 = vand.u32 2147483648, %v6499_v43  ;;  %vm6511_vm0 = vcmp.eq.f32.partialorder %v6499_v43, 0.0 }
 0x980   : > { %v12261_v10 = vpack.c.bf16 %v6700_v22, %v6693_v39 }
 0x985   : > { %v9710_v33 = vpop.eup %9709 }
 0x986   : > { %v6501_v7 = vmul.f32 %v9710_v33, %v6498_v62  ;;  %v6694_v33 = vsub.f32 %v6692_v5, %v6693_v39 }
 0x988   : > { %v6503_v21 = vsel %vm6502_vm12, %v6498_v62, %v6501_v7  ;;  %v6681_v62 = vand.u32 4294901760, %v6680_v12  ;;  %v6706_v7 = vsub.f32 %v6541_v1, %v6578_v48  ;;  %v6671_v1 = vsub.f32 %v12176_v19, %v6563_v46 }
 0x989   : > { %v6506_v27 = vsel %vm6504_vm14, %v6505_v11, %v6503_v21  ;;  %v9712_v60 = vpop.eup %9711  ;;  %v6713_v11 = vsub.f32 %v6551_v0, %v6581_v23  ;;  %v6701_v21 = vsub.f32 %v6699_v3, %v6700_v22  ;;  %v6667_v12 = vand.u32 4294901760, %v6666_v31  ;;  %v7176_v22 = vld [vmem:[%s12740_s13] sm:$0xff] }
 0x98a   : > { %v6514_v15 = vadd.f32 0.001, %v6506_v27  ;;  %v6508_v41 = vmul.f32 %v9712_v60, %v6499_v43  ;;  %v6695_v27 = vand.u32 4294901760, %v6694_v33  ;;  %v6707_v60 = vand.u32 4294901760, %v6706_v7 }
 0x98b   : > { %v9123_v37 = vpack.c.bf16 %v6713_v11, %v6706_v7  ;;  %v6672_v45 = vand.u32 4294901760, %v6671_v1  ;;  %vm7196_vm12 = vcmp.lt.s32.totalorder %v12922_v34, 3  ;;  %vm7210_vm14 = vcmp.lt.s32.totalorder %v12922_v34, 1 }
 0x98c   : > { %9713 = vrcp.f32 %v6514_v15  ;;  %v6510_v25 = vsel %vm6509_vm15, %v6499_v43, %v6508_v41  ;;  %v6714_v15 = vand.u32 4294901760, %v6713_v11  ;;  %v6702_v41 = vand.u32 4294901760, %v6701_v21 }
 0x98d   : > { %v6513_v59 = vsel %vm6511_vm0, %v6512_v32, %v6510_v25  ;;  %v6708_v32 = vsub.f32 %v6706_v7, %v6707_v60  ;;  %v12257_v48 = vpack.c.bf16 %v6672_v45, %v6665_v47  ;;  %vm9804_vm15 = vmmov 1  }
 0x98e   : > { %v6515_v30 = vadd.f32 0.001, %v6513_v59  ;;  %v6715_v25 = vsub.f32 %v6713_v11, %v6714_v15  ;;  %v9099_v59 = vpack.c.bf16 %v6702_v41, %v6695_v27  ;;  %v12263_v57 = vpack.c.bf16 %v6714_v15, %v6707_v60  ;;  %vm9196_vm0 = vmpackc.low %vm7169_vm10, %vm9804_vm15 }
 0x990   : > { %9715 = vrcp.f32 %v6515_v30  ;;  %v6709_v30 = vand.u32 4294901760, %v6708_v32  ;;  %v6716_v24 = vand.u32 4294901760, %v6715_v25 }
 0x992   : > { %v9103_v61 = vpack.c.bf16 %v6716_v24, %v6709_v30 }
 0x996   : > { %v12213_v35 = vpop.eup %9713 }
 0x997   : > { %v6520_v55 = vmul.f32 %v12213_v35, %v6492_v63  ;;  %v6686_v63 = vand.u32 4294901760, %v6685_v54  ;;  %v6518_v2 = vmul.f32 %v12213_v35, %v12196_v17 }
 0x999   : > { %6524 = vrot.lane.b32.xlu1 %v6520_v55, %s12957_s5  ;;  %v6687_v50 = vsub.f32 %v6685_v54, %v6686_v63  ;;  %v9119_v55 = vpack.c.bf16 %v6699_v3, %v6692_v5  ;;  %v12259_v0 = vpack.c.bf16 %v6686_v63, %v6679_v18  ;;  %v6673_v54 = vsub.f32 %v6671_v1, %v6672_v45 }
 0x99a   : > { %v9716_v8 = vpop.eup %9715  ;;  %v9111_v3 = vpack.c.bf16 %v6671_v1, %v6664_v29 }
 0x99b   : > { %v6521_v49 = vmul.f32 %v9716_v8, %v6493_v14  ;;  %v6688_v14 = vand.u32 4294901760, %v6687_v50  ;;  %v6519_v56 = vmul.f32 %v9716_v8, %v12200_v42  ;;  %v6674_v50 = vand.u32 4294901760, %v6673_v54 }
 0x99d   : > { %6526 = vrot.lane.b32.xlu0 %v6521_v49, %s12957_s5  ;;  %v9095_v43 = vpack.c.bf16 %v6688_v14, %v6681_v62  ;;  %v9091_v8 = vpack.c.bf16 %v6674_v50, %v6667_v12 }
 0xa0b   : > { %v6525_v6 = vpop.permute.xlu1 %6524 }
 0xa0c   : > { %v6531_v23 = vsel %vm6530_vm3, %v6518_v2, %v6525_v6 }
 0xa0d   : > { %v6545_v19 = vsel %vm6543_vm6, %v6531_v23, 0 }
 0xa0e   : > { %v12267_v46 = vand.u32 4294901760, %v6545_v19 }
 0xa0f   : > { %v6527_v49 = vpop.permute.xlu0 %6526 }
 0xa10   : > { %v6629_v20 = vsub.f32 %v6545_v19, %v12267_v46  ;;  %v6532_v28 = vsel %vm6530_vm3, %v6519_v56, %v6527_v49  ;;  %vm7253_vm3 = vcmask 719872  }
 0xa11   : > { %v6548_v36 = vsel %vm6543_vm6, %v6532_v28, 0 }
 0xa12   : > { %v6630_v4 = vand.u32 4294901760, %v6629_v20  ;;  %v12271_v40 = vand.u32 4294901760, %v6548_v36 }
 0xa14   : > { %v6631_v18 = vsub.f32 %v6629_v20, %v6630_v4  ;;  %v6639_v17 = vsub.f32 %v6548_v36, %v12271_v40 }
 0xa16   : > { %v6632_v35 = vand.u32 4294901760, %v6631_v18  ;;  %v6640_v63 = vand.u32 4294901760, %v6639_v17 }
 0xa18   : > { %8421 = vmatprep.mubr.f32.mxu1 %v6632_v35  ;;  %v6641_v5 = vsub.f32 %v6639_v17, %v6640_v63 }
 0xa1a   : > { %v6642_v42 = vand.u32 4294901760, %v6641_v5 }
 0xa1c   : > { %8422 = vmatmul.mubr.f32.vlgmr.msra.gmra.mrb[8].mxu1 %v6642_v42 }
 0xa1d   : > { %9090 = vmatpush3.bf16.msra.mxu1 %v12246_v52  ;;  %8444 = vmatprep.mubr.f32.mxu1 %v12267_v46 }
 0xa1e   : > { %9092 = vmatprep.subr.bf16.mxu1 %v9091_v8 }
 0xa21   : > { %9094 = vmatpush3.bf16.msra.mxu1 %v9091_v8 }
 0xa22   : > { %9096 = vmatprep.subr.bf16.mxu1 %v9095_v43 }
 0xa25   : > { %9098 = vmatpush3.bf16.msra.mxu1 %v9095_v43  ;;  %v7177_v43 = vld [vmem:[%s12740_s13 + $0x8] sm:$0xff] }
 0xa26   : > { %9100 = vmatprep.subr.bf16.mxu1 %v9099_v59 }
 0xa29   : > { %9102 = vmatpush3.bf16.msra.mxu1 %v9099_v59 }
 0xa2a   : > { %9104 = vmatprep.subr.bf16.mxu1 %v9103_v61 }
 0xa2d   : > { %9106 = vmatpush3.bf16.msra.mxu1 %v9103_v61 }
 0xa2e   : > { %9108 = vmatprep.subr.bf16.mxu1 %v9107_v9 }
 0xa30   : > { %8445 = vmatmul.mubr.f32.vlgmr.msra.gmra.mrb[8].mxu1 %v12271_v40 }
 0xa31   : > { %9110 = vmatpush3.bf16.msra.mxu1 %v9107_v9  ;;  %8467 = vmatprep.mubr.f32.mxu1 %v6629_v20 }
 0xa32   : > { %9112 = vmatprep.subr.bf16.mxu1 %v9111_v3 }
 0xa35   : > { %9114 = vmatpush3.bf16.msra.mxu1 %v9111_v3 }
 0xa36   : > { %9116 = vmatprep.subr.bf16.mxu1 %v9115_v13 }
 0xa39   : > { %9118 = vmatpush3.bf16.msra.mxu1 %v9115_v13 }
 0xa3a   : > { %9120 = vmatprep.subr.bf16.mxu1 %v9119_v55 }
 0xa3d   : > { %9122 = vmatpush3.bf16.msra.mxu1 %v9119_v55 }
 0xa3e   : > { %9124 = vmatprep.subr.bf16.mxu1 %v9123_v37 }
 0xa41   : > { %9126 = vmatpush3.bf16.msra.mxu1 %v9123_v37 }
 0xa42   : > { %9128 = vmatprep.subr.bf16.mxu1 %v12184_v58 }
 0xa44   : > { %8468 = vmatmul.mubr.f32.vlgmr.msra.gmra.mrb[8].mxu1 %v6639_v17 }
 0xa45   : > { %9130 = vmatpush3.bf16.msra.mxu1 %v12184_v58  ;;  %8490 = vmatprep.mubr.f32.mxu1 %v6630_v4 }
 0xa46   : > { %9132 = vmatprep.subr.bf16.mxu1 %v12190_v26 }
 0xa49   : > { %9134 = vmatpush3.bf16.msra.mxu1 %v12190_v26 }
 0xa4a   : > { %9136 = vmatprep.subr.bf16.mxu1 %v12210_v16 }
 0xa4d   : > { %9138 = vmatpush3.bf16.msra.mxu1 %v12210_v16 }
 0xa4e   : > { %9140 = vmatprep.subr.bf16.mxu1 %v12237_v38 }
 0xa51   : > { %9142 = vmatpush3.bf16.msra.mxu1 %v12237_v38 }
 0xa52   : > { %9144 = vmatprep.subr.bf16.mxu1 %v12240_v53 }
 0xa55   : > { %9146 = vmatpush3.bf16.msra.mxu1 %v12240_v53 }
 0xa56   : > { %9148 = vmatprep.subr.bf16.mxu1 %v12255_v44 }
 0xa58   : > { %8491 = vmatmul.mubr.f32.vlgmr.msra.gmra.mrb[8].mxu1 %v6640_v63 }
 0xa59   : > { %9150 = vmatpush3.bf16.msra.mxu1 %v12255_v44  ;;  %8513 = vmatprep.mubr.f32.mxu1 %v12267_v46 }
 0xa5a   : > { %9152 = vmatprep.subr.bf16.mxu1 %v12257_v48 }
 0xa5d   : > { %9154 = vmatpush3.bf16.msra.mxu1 %v12257_v48 }
 0xa5e   : > { %9156 = vmatprep.subr.bf16.mxu1 %v12259_v0 }
 0xa61   : > { %9158 = vmatpush3.bf16.msra.mxu1 %v12259_v0 }
 0xa62   : > { %9160 = vmatprep.subr.bf16.mxu1 %v12261_v10 }
 0xa65   : > { %9162 = vmatpush3.bf16.msra.mxu1 %v12261_v10 }
 0xa66   : > { %9164 = vmatprep.subr.bf16.mxu1 %v12263_v57 }
 0xa69   : > { %9166 = vmatpush3.bf16.msra.mxu1 %v12263_v57 }
 0xa6a   : > { %9168 = vmatprep.subr.bf16.mxu1 %v12184_v58 }
 0xa6c   : > { %8514 = vmatmul.mubr.f32.vlgmr.msra.gmra.mrb[8].mxu1 %v12271_v40 }
 0xa6d   : > { %9170 = vmatpush3.bf16.msra.mxu1 %v12184_v58  ;;  %8536 = vmatprep.mubr.f32.mxu1 %v12267_v46 }
 0xa6e   : > { %9172 = vmatprep.subr.bf16.mxu1 %v12190_v26 }
 0xa71   : > { %9174 = vmatpush3.bf16.msra.mxu1 %v12190_v26 }
 0xa72   : > { %9176 = vmatprep.subr.bf16.mxu1 %v12210_v16 }
 0xa75   : > { %9178 = vmatpush3.bf16.msra.mxu1 %v12210_v16 }
 0xa76   : > { %9180 = vmatprep.subr.bf16.mxu1 %v12237_v38 }
 0xa79   : > { %9182 = vmatpush3.bf16.msra.mxu1 %v12237_v38 }
 0xa7a   : > { %9184 = vmatprep.subr.bf16.mxu1 %v12240_v53 }
 0xa7d   : > { %9186 = vmatpush3.bf16.msra.mxu1 %v12240_v53 }
 0xa80   : > { %8537 = vmatmul.mubr.f32.vlgmr.msra.gmra.mrb[8].mxu1 %v12271_v40 }
 0xa81   : > { %7324 = vmatprep.mubr.f32.mxu1 %v12880_v51 }
 0xb53   : > { %v8538_v58 = vpop.f32.mrb[8].mxu1 }
 0xb54   : > { %7164 = vrot.lane.b32.xlu0 %v8538_v58, %s9799_s6  ;;  %v7149_v26 = vpop.f32.mrb[9].mxu1 }
 0xb55   : > { %7160 = vrot.lane.b32.xlu1 %v7149_v26, %s9799_s6 }
 0xbc6   : > { %v7165_v16 = vpop.permute.xlu0 %7164 }
 0xbc7   : > { %v12312_v52 = vsel %vm7167_vm9, 0.0, %v7165_v16  ;;  %v7161_v62 = vpop.permute.xlu1 %7160 }
 0xbc8   : > { %v7172_v38 = vsel %vm7169_vm10, %v12312_v52, 0.0  ;;  %v12316_v14 = vsel %vm7167_vm9, 0.0, %v7161_v62 }
 0xbc9   : > { %v7170_v53 = vsel %vm7169_vm10, %v12316_v14, 0.0 }
 0xbca   : > { %v9489_v39 = vpack.i.bf16 %v7172_v38, %v7170_v53 }
 0xbcc   : > { %9490 = vrot.lane.b32.xlu0 %v9489_v39, %s9800_s7  ;;  %9485 = vrot.lane.b32.xlu1 %v9489_v39, %s9799_s6 }
 0xbd0   : > { %9500 = vrot.lane.b32.xlu0 %v9489_v39, %s12832_s9  ;;  %9495 = vrot.lane.b32.xlu1 %v9489_v39, %s9802_s10  ;;  %s12959_s9 = sld [smem:[#allocation24_spill]] }
 0xbd4   : > { %9510 = vrot.lane.b32.xlu0 %v9489_v39, %s12958_s8  ;;  %9505 = vrot.lane.b32.xlu1 %v9489_v39, %s12834_s3 }
 0xbd8   : > { %9520 = vrot.lane.b32.xlu0 %v9489_v39, %s12918_s1  ;;  %9515 = vrot.lane.b32.xlu1 %v9489_v39, %s12942_s0 }
 0xbdc   : > { %7237 = vrot.lane.b32.xlu0 %v7170_v53, %s12856_s28  ;;  %9525 = vrot.lane.b32.xlu1 %v9489_v39, %s12919_s27  ;;  %v7174_v53 = vld [vmem:[%s12739_s12] sm:$0xff] }
 0xbe0   : > { %7245 = vperm.xlu0 %9482, %v7176_v22   ;;  %7239 = vrot.lane.b32.xlu1 %v7172_v38, %s12856_s28  ;;  %v7175_v22 = vld [vmem:[%s12739_s12 + $0x8] sm:$0xff] }
 0xbe4   : > { %7250 = vperm.xlu1 %9483, %v7177_v43  }
 0xc3e   : > { %v9491_v33 = vpop.permute.xlu0 %9490  ;;  %v9486_v7 = vpop.permute.xlu1 %9485 }
 0xc3f   : > { %v9493_v11 = vunpack.i.h.bf16 %v9491_v33  ;;  %v9492_v21 = vunpack.i.l.bf16 %v9491_v33  ;;  %v9488_v27 = vunpack.i.h.bf16 %v9486_v7  ;;  %v9487_v60 = vunpack.i.l.bf16 %v9486_v7 }
 0xc41   : > { %v7191_v15 = vsel %vm7189_vm4, %v9493_v11, %v9492_v21  ;;  %v7184_v41 = vsel %vm7182_vm5, %v9488_v27, %v9487_v60  ;;  %v7183_v32 = vsel %vm7182_vm5, %v9487_v60, %v9488_v27  ;;  %v7190_v25 = vsel %vm7189_vm4, %v9492_v21, %v9493_v11 }
 0xc42   : > { %v9189_v59 = vpack.c.bf16 %v7191_v15, %v7184_v41  ;;  %v9501_v30 = vpop.permute.xlu0 %9500  ;;  %v9496_v24 = vpop.permute.xlu1 %9495  ;;  %v9187_v9 = vpack.c.bf16 %v7190_v25, %v7183_v32  ;;  %v7173_v15 = vld [vmem:[%s12959_s9] sm:$0x3]  ;;  %s12964_s9 = smov 1  }
 0xc43   : > { %v9503_v61 = vunpack.i.h.bf16 %v9501_v30  ;;  %v9502_v13 = vunpack.i.l.bf16 %v9501_v30  ;;  %v9498_v55 = vunpack.i.h.bf16 %v9496_v24  ;;  %v9497_v37 = vunpack.i.l.bf16 %v9496_v24 }
 0xc44   : > { %9188 = vmatprep.subr.bf16.mxu1 %v9187_v9  ;;  %v12960_v9 = vld [vmem:[#allocation8_spill] sm:$0xff] }
 0xc45   : > { %v7205_v29 = vsel %vm7203_vm8, %v9503_v61, %v9502_v13  ;;  %v7198_v1 = vsel %vm7196_vm12, %v9498_v55, %v9497_v37  ;;  %9190 = vmatpush1.bf16.msra.mxu1 %v9189_v59  ;;  %v7197_v47 = vsel %vm7196_vm12, %v9497_v37, %v9498_v55  ;;  %v7204_v45 = vsel %vm7203_vm8, %v9502_v13, %v9503_v61  ;;  %v12961_v37 = vld [vmem:[#allocation7_spill] sm:$0xff] }
 0xc46   : > { %v9193_v44 = vpack.c.bf16 %v7205_v29, %v7198_v1  ;;  %v9511_v48 = vpop.permute.xlu0 %9510  ;;  %v9506_v0 = vpop.permute.xlu1 %9505  ;;  %v9191_v10 = vpack.c.bf16 %v7204_v45, %v7197_v47  ;;  %v12391_v61 = vrot.slane %v7173_v15, %v12960_v9  ;;  %v12962_v29 = vsub.s32 1, %v12961_v37 }
 0xc47   : > { %v9508_v57 = vunpack.i.h.bf16 %v9506_v0  ;;  %v9507_v2 = vunpack.i.l.bf16 %v9506_v0  ;;  %v9513_v6 = vunpack.i.h.bf16 %v9511_v48  ;;  %v9512_v23 = vunpack.i.l.bf16 %v9511_v48 }
 0xc48   : > { %9192 = vmatprep.subr.bf16.mxu1 %v9191_v10  ;;  %v12395_v1 = vrot.slane %v7173_v15, %v12962_v29 }
 0xc49   : > { %v7211_v19 = vsel %vm7210_vm14, %v9507_v2, %v9508_v57  ;;  %v7212_v46 = vsel %vm7210_vm14, %v9508_v57, %v9507_v2  ;;  %9194 = vmatpush1.bf16.msra.mxu1 %v9193_v44  ;;  %v7217_v40 = vsel %vm661_vm1, %v9512_v23, %v9513_v6  ;;  %v7218_v31 = vsel %vm661_vm1, %v9513_v6, %v9512_v23 }
 0xc4a   : > { %v9195_v56 = vpack.c.bf16 %v12312_v52, %v7211_v19  ;;  %v9198_v20 = vpack.c.bf16 %v12316_v14, %v7212_v46  ;;  %v9521_v49 = vpop.permute.xlu0 %9520  ;;  %v9516_v28 = vpop.permute.xlu1 %9515  ;;  %v7361_v46 = vld [vmem:[%s12741_s14 + $0x8] sm:$0xff] }
 0xc4b   : > { %v9518_v36 = vunpack.i.h.bf16 %v9516_v28  ;;  %v9517_v4 = vunpack.i.l.bf16 %v9516_v28  ;;  %v9523_v54 = vunpack.i.h.bf16 %v9521_v49  ;;  %v9522_v18 = vunpack.i.l.bf16 %v9521_v49 }
 0xc4c   : > { %9197 = vmatprep.subr.msk.bf16.mxu1 %vm9196_vm0, %v9195_v56  ;;  %v7364_v56 = vld [vmem:[%s12742_s15] sm:$0xff] }
 0xc4d   : > { %v7223_v17 = vsel %vm674_vm2, %v9517_v4, %v9518_v36  ;;  %9200 = vmatpush1.bf16.msk.msra.mxu1 %vm9196_vm0, %v9198_v20  ;;  %v7224_v35 = vsel %vm674_vm2, %v9518_v36, %v9517_v4  ;;  %v7229_v8 = vsel %vm687_vm7, %v9522_v18, %v9523_v54  ;;  %v7230_v58 = vsel %vm687_vm7, %v9523_v54, %v9522_v18  ;;  %v7365_v20 = vld [vmem:[%s12742_s15 + $0x8] sm:$0xff] }
 0xc4e   : > { %v9203_v63 = vpack.c.bf16 %v7223_v17, %v7217_v40  ;;  %v9526_v12 = vpop.permute.xlu1 %9525  ;;  %v9201_v50 = vpack.c.bf16 %v7224_v35, %v7218_v31  ;;  %v7238_v38 = vpop.permute.xlu0 %7237 }
 0xc4f   : > { %v9528_v5 = vunpack.i.h.bf16 %v9526_v12  ;;  %v9527_v42 = vunpack.i.l.bf16 %v9526_v12 }
 0xc50   : > { %9202 = vmatprep.subr.bf16.mxu1 %v9201_v50 }
 0xc51   : > { %v7235_v3 = vsel %vm700_vm11, %v9527_v42, %v9528_v5  ;;  %9204 = vmatpush1.bf16.msra.mxu1 %v9203_v63  ;;  %v7236_v26 = vsel %vm700_vm11, %v9528_v5, %v9527_v42 }
 0xc52   : > { %v9207_v16 = vpack.c.bf16 %v7235_v3, %v7229_v8  ;;  %v7240_v52 = vpop.permute.xlu1 %7239  ;;  %v9205_v62 = vpack.c.bf16 %v7236_v26, %v7230_v58 }
 0xc53   : > { %v7242_v14 = vsel %vm713_vm13, %v7240_v52, %v7238_v38  ;;  %v7241_v39 = vsel %vm713_vm13, %v7238_v38, %v7240_v52  ;;  %vm7472_vm13 = vcmask 130048  }
 0xc54   : > { %9206 = vmatprep.subr.bf16.mxu1 %v9205_v62 }
 0xc55   : > { %9208 = vmatpush1.bf16.msra.mxu1 %v9207_v16 }
 0xc56   : > { %7280 = vmatprep.subr.mxu1 %v7242_v14 }
 0xc59   : > { %7281 = vmatpush1.msra.mxu1 %v7241_v39 }
 0xc5a   : > { %7970 = vmatmul.mubr.msk.f32.vlgmr.msra.gmra.mrb[10].mxu1 %vm7253_vm3, %v7174_v53 }
 0xc5b   : > { %7330 = vmatprep.mubr.f32.mxu1 %v12880_v51 }
 0xc5e   : > { %7971 = vmatmul.mubr.msk.f32.gmra.mrb[12].mxu1 %vm7253_vm3, %v7175_v22 }
 0xc5f   : > { %v7246_v43 = vpop.permute.xlu0 %7245  ;;  %7972 = vmatprep.mubr.msk.f32.mxu1 %vm7472_vm13, %v7361_v46 }
 0xc63   : > { %v7251_v60 = vpop.permute.xlu1 %7250 }
 0xd2d   : > { %v7326_v33 = vpop.f32.mrb[10].mxu1 }
 0xd2e   : > { %v7327_v7 = vadd.f32 %v7326_v33, %v7246_v43  ;;  %v7328_v11 = vpop.f32.mrb[11].mxu1 }
 0xd2f   : > { %v7329_v21 = vadd.f32 %v7328_v11, %v7246_v43 }
 0xd30   : > { %v7337_v27 = vmul.f32 0.2, %v7327_v7 }
 0xd31   : > { %v7338_v41 = vmul.f32 0.2, %v7329_v21  ;;  %v7332_v32 = vpop.f32.mrb[12].mxu1 }
 0xd32   : > { %v7333_v25 = vadd.f32 %v7332_v32, %v7251_v60  ;;  %v7334_v59 = vpop.f32.mrb[13].mxu1  ;;  %v7341_v24 = vmax.f32 %v7327_v7, %v7337_v27 }
 0xd33   : > { %v7335_v30 = vadd.f32 %v7334_v59, %v7251_v60  ;;  %v7342_v55 = vmax.f32 %v7329_v21, %v7338_v41 }
 0xd34   : > { %v7339_v13 = vmul.f32 0.2, %v7333_v25  ;;  %v12398_v48 = vmul.f32 %v12391_v61, %v7341_v24 }
 0xd35   : > { %v7340_v47 = vmul.f32 0.2, %v7335_v30  ;;  %v12404_v10 = vmul.f32 %v12395_v1, %v7342_v55 }
 0xd36   : > { %v7343_v45 = vmax.f32 %v7333_v25, %v7339_v13 }
 0xd37   : > { %v7344_v44 = vmax.f32 %v7335_v30, %v7340_v47 }
 0xd38   : > { %v12401_v0 = vmul.f32 %v12391_v61, %v7343_v45 }
 0xd39   : > { %v12407_v57 = vmul.f32 %v12395_v1, %v7344_v44 }
 0xd3a   : > { %v9529_v2 = vpack.i.bf16 %v12401_v0, %v12398_v48  ;;  %v9227_v19 = vpack.c.bf16 %v12401_v0, %v12398_v48 }
 0xd3b   : > { %v9549_v6 = vpack.i.bf16 %v12407_v57, %v12404_v10  ;;  %v9225_v23 = vpack.c.bf16 %v12407_v57, %v12404_v10 }
 0xd3c   : > { %9530 = vrot.lane.b32.xlu0 %v9529_v2, %s9800_s7 }
 0xd3d   : > { %9550 = vrot.lane.b32.xlu1 %v9549_v6, %s9800_s7 }
 0xd40   : > { %9535 = vrot.lane.b32.xlu0 %v9529_v2, %s9802_s10 }
 0xd41   : > { %9555 = vrot.lane.b32.xlu1 %v9549_v6, %s9802_s10 }
 0xd44   : > { %9540 = vrot.lane.b32.xlu0 %v9529_v2, %s12963_s22 }
 0xd45   : > { %9560 = vrot.lane.b32.xlu1 %v9549_v6, %s12963_s22 }
 0xd48   : > { %9545 = vrot.lane.b32.xlu0 %v9529_v2, %s12834_s3 }
 0xd49   : > { %9565 = vrot.lane.b32.xlu1 %v9549_v6, %s12834_s3 }
 0xd4c   : > { %9570 = vrot.lane.b32.xlu0 %v9529_v2, %s12958_s8 }
 0xd4d   : > { %9590 = vrot.lane.b32.xlu1 %v9549_v6, %s12958_s8 }
 0xd50   : > { %9575 = vrot.lane.b32.xlu0 %v9529_v2, %s12942_s0 }
 0xd51   : > { %9595 = vrot.lane.b32.xlu1 %v9549_v6, %s12942_s0 }
 0xd54   : > { %9580 = vrot.lane.b32.xlu0 %v9529_v2, %s12918_s1 }
 0xd55   : > { %9600 = vrot.lane.b32.xlu1 %v9549_v6, %s12918_s1 }
 0xd58   : > { %9585 = vrot.lane.b32.xlu0 %v9529_v2, %s12919_s27 }
 0xd59   : > { %9605 = vrot.lane.b32.xlu1 %v9549_v6, %s12919_s27 }
 0xd5c   : > { %7464 = vperm.xlu0 %9482, %v7364_v56  }
 0xd5d   : > { %7469 = vperm.xlu1 %9483, %v7365_v20  }
 0xdae   : > { %v9531_v49 = vpop.permute.xlu0 %9530 }
 0xdaf   : > { %v9533_v28 = vunpack.i.h.bf16 %v9531_v49  ;;  %v9532_v36 = vunpack.i.l.bf16 %v9531_v49  ;;  %v9551_v4 = vpop.permute.xlu1 %9550 }
 0xdb0   : > { %v9553_v40 = vunpack.i.h.bf16 %v9551_v4  ;;  %v9552_v31 = vunpack.i.l.bf16 %v9551_v4 }
 0xdb2   : > { %v7376_v54 = vsel %vm7189_vm4, %v9552_v31, %v9532_v36  ;;  %v7377_v18 = vsel %vm7189_vm4, %v9553_v40, %v9533_v28  ;;  %v9536_v17 = vpop.permute.xlu0 %9535  ;;  %v7374_v35 = vsel %vm7189_vm4, %v9532_v36, %v9552_v31  ;;  %v7375_v63 = vsel %vm7189_vm4, %v9533_v28, %v9553_v40 }
 0xdb3   : > { %v9211_v12 = vpack.c.bf16 %v7377_v18, %v7376_v54  ;;  %v9538_v50 = vunpack.i.h.bf16 %v9536_v17  ;;  %v9537_v5 = vunpack.i.l.bf16 %v9536_v17  ;;  %v9556_v42 = vpop.permute.xlu1 %9555  ;;  %v9209_v8 = vpack.c.bf16 %v7375_v63, %v7374_v35 }
 0xdb4   : > { %v9558_v3 = vunpack.i.h.bf16 %v9556_v42  ;;  %v9557_v58 = vunpack.i.l.bf16 %v9556_v42 }
 0xdb5   : > { %9210 = vmatprep.subr.bf16.mxu1 %v9209_v8 }
 0xdb6   : > { %v7388_v26 = vsel %vm7196_vm12, %v9557_v58, %v9537_v5  ;;  %v7389_v16 = vsel %vm7196_vm12, %v9558_v3, %v9538_v50  ;;  %v9541_v52 = vpop.permute.xlu0 %9540  ;;  %9212 = vmatpush1.bf16.msra.mxu1 %v9211_v12  ;;  %v7386_v62 = vsel %vm7196_vm12, %v9537_v5, %v9557_v58  ;;  %v7387_v38 = vsel %vm7196_vm12, %v9538_v50, %v9558_v3 }
 0xdb7   : > { %v9215_v14 = vpack.c.bf16 %v7389_v16, %v7388_v26  ;;  %v9543_v53 = vunpack.i.h.bf16 %v9541_v52  ;;  %v9542_v39 = vunpack.i.l.bf16 %v9541_v52  ;;  %v9561_v22 = vpop.permute.xlu1 %9560  ;;  %v9213_v43 = vpack.c.bf16 %v7387_v38, %v7386_v62 }
 0xdb8   : > { %v9563_v33 = vunpack.i.h.bf16 %v9561_v22  ;;  %v9562_v7 = vunpack.i.l.bf16 %v9561_v22 }
 0xdb9   : > { %9214 = vmatprep.subr.bf16.mxu1 %v9213_v43 }
 0xdba   : > { %v7400_v11 = vsel %vm7203_vm8, %v9562_v7, %v9542_v39  ;;  %v7401_v21 = vsel %vm7203_vm8, %v9563_v33, %v9543_v53  ;;  %v9546_v27 = vpop.permute.xlu0 %9545  ;;  %9216 = vmatpush1.bf16.msra.mxu1 %v9215_v14  ;;  %v7398_v60 = vsel %vm7203_vm8, %v9542_v39, %v9562_v7  ;;  %v7399_v15 = vsel %vm7203_vm8, %v9543_v53, %v9563_v33 }
 0xdbb   : > { %v9219_v41 = vpack.c.bf16 %v7401_v21, %v7400_v11  ;;  %v9548_v32 = vunpack.i.h.bf16 %v9546_v27  ;;  %v9547_v25 = vunpack.i.l.bf16 %v9546_v27  ;;  %v9566_v59 = vpop.permute.xlu1 %9565  ;;  %v9217_v30 = vpack.c.bf16 %v7399_v15, %v7398_v60 }
 0xdbc   : > { %v9568_v24 = vunpack.i.h.bf16 %v9566_v59  ;;  %v9567_v13 = vunpack.i.l.bf16 %v9566_v59  ;;  %v7363_v59 = vld [vmem:[%s12741_s14 + $0x18] sm:$0xff] }
 0xdbd   : > { %9218 = vmatprep.subr.bf16.mxu1 %v9217_v30  ;;  %v7362_v30 = vld [vmem:[%s12741_s14 + $0x10] sm:$0xff] }
 0xdbe   : > { %v7412_v55 = vsel %vm7210_vm14, %v9567_v13, %v9547_v25  ;;  %v7413_v37 = vsel %vm7210_vm14, %v9568_v24, %v9548_v32  ;;  %v9571_v29 = vpop.permute.xlu0 %9570  ;;  %9220 = vmatpush1.bf16.msra.mxu1 %v9219_v41  ;;  %v7410_v47 = vsel %vm7210_vm14, %v9547_v25, %v9567_v13  ;;  %v7411_v45 = vsel %vm7210_vm14, %v9548_v32, %v9568_v24  ;;  %v7360_v25 = vld [vmem:[%s12741_s14] sm:$0xff] }
 0xdbf   : > { %v9223_v44 = vpack.c.bf16 %v7413_v37, %v7412_v55  ;;  %v9573_v2 = vunpack.i.h.bf16 %v9571_v29  ;;  %v9572_v6 = vunpack.i.l.bf16 %v9571_v29  ;;  %v9591_v46 = vpop.permute.xlu1 %9590  ;;  %v9221_v56 = vpack.c.bf16 %v7411_v45, %v7410_v47 }
 0xdc0   : > { %v9593_v20 = vunpack.i.h.bf16 %v9591_v46  ;;  %v9592_v49 = vunpack.i.l.bf16 %v9591_v46 }
 0xdc1   : > { %9222 = vmatprep.subr.bf16.mxu1 %v9221_v56 }
 0xdc2   : > { %v9576_v28 = vpop.permute.xlu0 %9575  ;;  %9224 = vmatpush1.bf16.msra.mxu1 %v9223_v44  ;;  %v7424_v36 = vsel %vm661_vm1, %v9592_v49, %v9572_v6  ;;  %v7425_v4 = vsel %vm661_vm1, %v9593_v20, %v9573_v2  ;;  %v7422_v35 = vsel %vm661_vm1, %v9572_v6, %v9592_v49  ;;  %v7423_v63 = vsel %vm661_vm1, %v9573_v2, %v9593_v20 }
 0xdc3   : > { %v9578_v40 = vunpack.i.h.bf16 %v9576_v28  ;;  %v9577_v31 = vunpack.i.l.bf16 %v9576_v28  ;;  %v9596_v54 = vpop.permute.xlu1 %9595  ;;  %9226 = vmatprep.subr.bf16.mxu1 %v9225_v23  ;;  %v9229_v12 = vpack.c.bf16 %v7425_v4, %v7424_v36  ;;  %v9231_v8 = vpack.c.bf16 %v7423_v63, %v7422_v35 }
 0xdc4   : > { %v9598_v18 = vunpack.i.h.bf16 %v9596_v54  ;;  %v9597_v17 = vunpack.i.l.bf16 %v9596_v54 }
 0xdc6   : > { %v9581_v50 = vpop.permute.xlu0 %9580  ;;  %9228 = vmatpush1.bf16.msra.mxu1 %v9227_v19  ;;  %v7436_v5 = vsel %vm674_vm2, %v9597_v17, %v9577_v31  ;;  %v7437_v10 = vsel %vm674_vm2, %v9598_v18, %v9578_v40  ;;  %v7434_v26 = vsel %vm674_vm2, %v9577_v31, %v9597_v17  ;;  %v7435_v48 = vsel %vm674_vm2, %v9578_v40, %v9598_v18 }
 0xdc7   : > { %v9583_v57 = vunpack.i.h.bf16 %v9581_v50  ;;  %v9582_v23 = vunpack.i.l.bf16 %v9581_v50  ;;  %v9601_v42 = vpop.permute.xlu1 %9600  ;;  %9230 = vmatprep.subr.bf16.mxu1 %v9229_v12  ;;  %v9233_v0 = vpack.c.bf16 %v7437_v10, %v7436_v5  ;;  %v9235_v53 = vpack.c.bf16 %v7435_v48, %v7434_v26  ;;  %v7570_v5 = vld [vmem:[%s12744_s17] sm:$0xff]  ;;  %v7571_v10 = vld [vmem:[%s12744_s17 + $0x8] sm:$0xff] }
 0xdc8   : > { %v9603_v3 = vunpack.i.h.bf16 %v9601_v42  ;;  %v9602_v58 = vunpack.i.l.bf16 %v9601_v42 }
 0xdca   : > { %v9586_v19 = vpop.permute.xlu0 %9585  ;;  %9232 = vmatpush1.bf16.msra.mxu1 %v9231_v8  ;;  %v7448_v16 = vsel %vm687_vm7, %v9602_v58, %v9582_v23  ;;  %v7449_v52 = vsel %vm687_vm7, %v9603_v3, %v9583_v57  ;;  %v7446_v43 = vsel %vm687_vm7, %v9582_v23, %v9602_v58  ;;  %v7447_v33 = vsel %vm687_vm7, %v9583_v57, %v9603_v3 }
 0xdcb   : > { %v9588_v62 = vunpack.i.h.bf16 %v9586_v19  ;;  %v9587_v38 = vunpack.i.l.bf16 %v9586_v19  ;;  %v9606_v14 = vpop.permute.xlu1 %9605  ;;  %9234 = vmatprep.subr.bf16.mxu1 %v9233_v0  ;;  %v9237_v7 = vpack.c.bf16 %v7449_v52, %v7448_v16  ;;  %v9239_v27 = vpack.c.bf16 %v7447_v33, %v7446_v43 }
 0xdcc   : > { %v9608_v39 = vunpack.i.h.bf16 %v9606_v14  ;;  %v9607_v22 = vunpack.i.l.bf16 %v9606_v14 }
 0xdce   : > { %9236 = vmatpush1.bf16.msra.mxu1 %v9235_v53  ;;  %v7460_v11 = vsel %vm700_vm11, %v9607_v22, %v9587_v38  ;;  %v7461_v21 = vsel %vm700_vm11, %v9608_v39, %v9588_v62  ;;  %v7458_v60 = vsel %vm700_vm11, %v9587_v38, %v9607_v22  ;;  %v7459_v15 = vsel %vm700_vm11, %v9588_v62, %v9608_v39 }
 0xdcf   : > { %9238 = vmatprep.subr.bf16.mxu1 %v9237_v7  ;;  %v9241_v41 = vpack.c.bf16 %v7461_v21, %v7460_v11  ;;  %v9243_v32 = vpack.c.bf16 %v7459_v15, %v7458_v60  ;;  %vm7654_vm11 = vcmask 916480  }
 0xdd2   : > { %9240 = vmatpush1.bf16.msra.mxu1 %v9239_v27 }
 0xdd3   : > { %9242 = vmatprep.subr.bf16.mxu1 %v9241_v41 }
 0xdd6   : > { %9244 = vmatpush1.bf16.msra.mxu1 %v9243_v32 }
 0xdd9   : > { %7544 = vmatmul.mubr.f32.vlgmr.msra.gmra.mrb[14].mxu1 %v7360_v25 }
 0xdda   : > { %7973 = vmatprep.mubr.msk.f32.mxu1 %vm7472_vm13, %v7363_v59 }
 0xddb   : > { %v7465_v24 = vpop.permute.xlu0 %7464 }
 0xddc   : > { %v7470_v45 = vpop.permute.xlu1 %7469 }
 0xddd   : > { %7550 = vmatmul.mubr.f32.gmra.mrb[16].mxu1 %v7362_v30 }
 0xdde   : > { %7725 = vmatprep.mubr.f32.mxu1 %v12880_v51 }
 0xeac   : > { %v7545_v13 = vpop.f32.mrb[14].mxu1 }
 0xead   : > { %v7546_v55 = vadd.f32 %v7545_v13, %v7465_v24  ;;  %v7547_v37 = vpop.f32.mrb[15].mxu1 }
 0xeae   : > { %v7548_v29 = vadd.f32 %v7547_v37, %v7465_v24 }
 0xeaf   : > { %v7556_v47 = vmul.f32 0.2, %v7546_v55 }
 0xeb0   : > { %v7557_v44 = vmul.f32 0.2, %v7548_v29  ;;  %v7551_v2 = vpop.f32.mrb[16].mxu1 }
 0xeb1   : > { %v7552_v6 = vadd.f32 %v7551_v2, %v7470_v45  ;;  %v7553_v46 = vpop.f32.mrb[17].mxu1  ;;  %v7560_v20 = vmax.f32 %v7546_v55, %v7556_v47 }
 0xeb2   : > { %v7554_v56 = vadd.f32 %v7553_v46, %v7470_v45  ;;  %v7561_v28 = vmax.f32 %v7548_v29, %v7557_v44 }
 0xeb3   : > { %v7558_v49 = vmul.f32 0.2, %v7552_v6  ;;  %v12525_v31 = vmul.f32 %v7560_v20, %v12391_v61 }
 0xeb4   : > { %v7559_v36 = vmul.f32 0.2, %v7554_v56  ;;  %v12531_v18 = vmul.f32 %v7561_v28, %v12395_v1 }
 0xeb5   : > { %v7562_v4 = vmax.f32 %v7552_v6, %v7558_v49 }
 0xeb6   : > { %v7563_v40 = vmax.f32 %v7554_v56, %v7559_v36 }
 0xeb7   : > { %v12528_v54 = vmul.f32 %v7562_v4, %v12391_v61 }
 0xeb8   : > { %v12534_v17 = vmul.f32 %v7563_v40, %v12395_v1 }
 0xeb9   : > { %v9609_v35 = vpack.i.bf16 %v12528_v54, %v12525_v31  ;;  %v9259_v50 = vpack.c.bf16 %v12528_v54, %v12525_v31 }
 0xeba   : > { %v9624_v63 = vpack.i.bf16 %v12534_v17, %v12531_v18  ;;  %v9257_v12 = vpack.c.bf16 %v12534_v17, %v12531_v18 }
 0xebb   : > { %9610 = vrot.lane.b32.xlu0 %v9609_v35, %s9802_s10 }
 0xebc   : > { %9625 = vrot.lane.b32.xlu1 %v9624_v63, %s9802_s10  ;;  %s7978_s10 = sshll.u32 %s9935_s19, 5  ;;  %s9805_s19 = smov [#allocation3]  }
 0xebd   : > { %s12684_s5 = scalar_lea.hbm %s12747_s20, %s7978_s10 }
 0xebf   : > { %9615 = vrot.lane.b32.xlu0 %v9609_v35, %s12963_s22 }
 0xec0   : > { %9630 = vrot.lane.b32.xlu1 %v9624_v63, %s12963_s22 }
 0xec3   : > { %9620 = vrot.lane.b32.xlu0 %v9609_v35, %s12964_s9 }
 0xec4   : > { %9635 = vrot.lane.b32.xlu1 %v9624_v63, %s12964_s9 }
 0xec7   : > { %9640 = vrot.lane.b32.xlu0 %v9609_v35, %s12958_s8 }
 0xec8   : > { %9655 = vrot.lane.b32.xlu1 %v9624_v63, %s12958_s8 }
 0xecb   : > { %9645 = vrot.lane.b32.xlu0 %v9609_v35, %s12942_s0 }
 0xecc   : > { %9660 = vrot.lane.b32.xlu1 %v9624_v63, %s12942_s0 }
 0xecf   : > { %9650 = vrot.lane.b32.xlu0 %v9609_v35, %s12918_s1 }
 0xed0   : > { %9665 = vrot.lane.b32.xlu1 %v9624_v63, %s12918_s1 }
 0xed3   : > { %7646 = vperm.xlu0 %9482, %v7570_v5  }
 0xed4   : > { %7651 = vperm.xlu1 %9483, %v7571_v10  }
 0xf2d   : > { %v9611_v57 = vpop.permute.xlu0 %9610 }
 0xf2e   : > { %v9613_v23 = vunpack.i.h.bf16 %v9611_v57  ;;  %v9612_v42 = vunpack.i.l.bf16 %v9611_v57  ;;  %v9626_v8 = vpop.permute.xlu1 %9625 }
 0xf2f   : > { %v9628_v3 = vunpack.i.h.bf16 %v9626_v8  ;;  %v9627_v58 = vunpack.i.l.bf16 %v9626_v8 }
 0xf31   : > { %v7582_v26 = vsel %vm7196_vm12, %v9627_v58, %v9612_v42  ;;  %v7583_v48 = vsel %vm7196_vm12, %v9628_v3, %v9613_v23  ;;  %v9616_v0 = vpop.permute.xlu0 %9615  ;;  %v7580_v19 = vsel %vm7196_vm12, %v9612_v42, %v9627_v58  ;;  %v7581_v16 = vsel %vm7196_vm12, %v9613_v23, %v9628_v3 }
 0xf32   : > { %v9247_v52 = vpack.c.bf16 %v7583_v48, %v7582_v26  ;;  %v9618_v62 = vunpack.i.h.bf16 %v9616_v0  ;;  %v9617_v38 = vunpack.i.l.bf16 %v9616_v0  ;;  %v9631_v14 = vpop.permute.xlu1 %9630  ;;  %v9245_v53 = vpack.c.bf16 %v7581_v16, %v7580_v19 }
 0xf33   : > { %v9633_v39 = vunpack.i.h.bf16 %v9631_v14  ;;  %v9632_v22 = vunpack.i.l.bf16 %v9631_v14  ;;  %v7569_v14 = vld [vmem:[%s12743_s16 + $0x8] sm:$0xff] }
 0xf34   : > { %9246 = vmatprep.subr.bf16.mxu1 %v9245_v53 }
 0xf35   : > { %v7594_v43 = vsel %vm7203_vm8, %v9632_v22, %v9617_v38  ;;  %v7595_v33 = vsel %vm7203_vm8, %v9633_v39, %v9618_v62  ;;  %v9621_v7 = vpop.permute.xlu0 %9620  ;;  %9248 = vmatpush1.bf16.msra.mxu1 %v9247_v52  ;;  %v7592_v11 = vsel %vm7203_vm8, %v9617_v38, %v9632_v22  ;;  %v7593_v21 = vsel %vm7203_vm8, %v9618_v62, %v9633_v39  ;;  %v7568_v38 = vld [vmem:[%s12743_s16] sm:$0xff] }
 0xf36   : > { %v9251_v27 = vpack.c.bf16 %v7595_v33, %v7594_v43  ;;  %v9623_v60 = vunpack.i.h.bf16 %v9621_v7  ;;  %v9622_v15 = vunpack.i.l.bf16 %v9621_v7  ;;  %v9636_v41 = vpop.permute.xlu1 %9635  ;;  %v9249_v32 = vpack.c.bf16 %v7593_v21, %v7592_v11 }
 0xf37   : > { %v9638_v25 = vunpack.i.h.bf16 %v9636_v41  ;;  %v9637_v59 = vunpack.i.l.bf16 %v9636_v41 }
 0xf38   : > { %9250 = vmatprep.subr.bf16.mxu1 %v9249_v32 }
 0xf39   : > { %v7606_v30 = vsel %vm7210_vm14, %v9637_v59, %v9622_v15  ;;  %v7607_v24 = vsel %vm7210_vm14, %v9638_v25, %v9623_v60  ;;  %v9641_v13 = vpop.permute.xlu0 %9640  ;;  %9252 = vmatpush1.bf16.msra.mxu1 %v9251_v27  ;;  %v7604_v55 = vsel %vm7210_vm14, %v9622_v15, %v9637_v59  ;;  %v7605_v37 = vsel %vm7210_vm14, %v9623_v60, %v9638_v25 }
 0xf3a   : > { %v9255_v29 = vpack.c.bf16 %v7607_v24, %v7606_v30  ;;  %v9643_v47 = vunpack.i.h.bf16 %v9641_v13  ;;  %v9642_v45 = vunpack.i.l.bf16 %v9641_v13  ;;  %v9656_v44 = vpop.permute.xlu1 %9655  ;;  %v9253_v2 = vpack.c.bf16 %v7605_v37, %v7604_v55 }
 0xf3b   : > { %v9658_v6 = vunpack.i.h.bf16 %v9656_v44  ;;  %v9657_v46 = vunpack.i.l.bf16 %v9656_v44 }
 0xf3c   : > { %9254 = vmatprep.subr.bf16.mxu1 %v9253_v2 }
 0xf3d   : > { %v9646_v56 = vpop.permute.xlu0 %9645  ;;  %9256 = vmatpush1.bf16.msra.mxu1 %v9255_v29  ;;  %v7618_v20 = vsel %vm661_vm1, %v9657_v46, %v9642_v45  ;;  %v7619_v49 = vsel %vm661_vm1, %v9658_v6, %v9643_v47  ;;  %v7616_v63 = vsel %vm661_vm1, %v9642_v45, %v9657_v46  ;;  %v7617_v5 = vsel %vm661_vm1, %v9643_v47, %v9658_v6 }
 0xf3e   : > { %v9648_v28 = vunpack.i.h.bf16 %v9646_v56  ;;  %v9647_v36 = vunpack.i.l.bf16 %v9646_v56  ;;  %v9661_v4 = vpop.permute.xlu1 %9660  ;;  %9258 = vmatprep.subr.bf16.mxu1 %v9257_v12  ;;  %v9261_v10 = vpack.c.bf16 %v7619_v49, %v7618_v20  ;;  %v9263_v8 = vpack.c.bf16 %v7617_v5, %v7616_v63 }
 0xf3f   : > { %v9663_v40 = vunpack.i.h.bf16 %v9661_v4  ;;  %v9662_v35 = vunpack.i.l.bf16 %v9661_v4 }
 0xf41   : > { %v9651_v57 = vpop.permute.xlu0 %9650  ;;  %9260 = vmatpush1.bf16.msra.mxu1 %v9259_v50  ;;  %v7630_v23 = vsel %vm674_vm2, %v9662_v35, %v9647_v36  ;;  %v7631_v18 = vsel %vm674_vm2, %v9663_v40, %v9648_v28  ;;  %v7628_v26 = vsel %vm674_vm2, %v9647_v36, %v9662_v35  ;;  %v7629_v31 = vsel %vm674_vm2, %v9648_v28, %v9663_v40 }
 0xf42   : > { %v9653_v17 = vunpack.i.h.bf16 %v9651_v57  ;;  %v9652_v12 = vunpack.i.l.bf16 %v9651_v57  ;;  %v9666_v42 = vpop.permute.xlu1 %9665  ;;  %9262 = vmatprep.subr.bf16.mxu1 %v9261_v10  ;;  %v9265_v54 = vpack.c.bf16 %v7631_v18, %v7630_v23  ;;  %v9267_v0 = vpack.c.bf16 %v7629_v31, %v7628_v26 }
 0xf43   : > { %v9668_v3 = vunpack.i.h.bf16 %v9666_v42  ;;  %v9667_v58 = vunpack.i.l.bf16 %v9666_v42 }
 0xf45   : > { %9264 = vmatpush1.bf16.msra.mxu1 %v9263_v8  ;;  %v7642_v50 = vsel %vm687_vm7, %v9667_v58, %v9652_v12  ;;  %v7643_v48 = vsel %vm687_vm7, %v9668_v3, %v9653_v17  ;;  %v7640_v19 = vsel %vm687_vm7, %v9652_v12, %v9667_v58  ;;  %v7641_v16 = vsel %vm687_vm7, %v9653_v17, %v9668_v3 }
 0xf46   : > { %9266 = vmatprep.subr.bf16.mxu1 %v9265_v54  ;;  %v9269_v52 = vpack.c.bf16 %v7643_v48, %v7642_v50  ;;  %v9271_v62 = vpack.c.bf16 %v7641_v16, %v7640_v19 }
 0xf49   : > { %9268 = vmatpush1.bf16.msra.mxu1 %v9267_v0 }
 0xf4a   : > { %9270 = vmatprep.subr.bf16.mxu1 %v9269_v52 }
 0xf4d   : > { %9272 = vmatpush1.bf16.msra.mxu1 %v9271_v62 }
 0xf50   : > { %7974 = vmatmul.mubr.msk.f32.vlgmr.msra.gmra.mrb[18].mxu1 %vm7654_vm11, %v7568_v38 }
 0xf51   : > { %7731 = vmatprep.mubr.f32.mxu1 %v12880_v51 }
 0xf52   : > { %v7647_v53 = vpop.permute.xlu0 %7646 }
 0xf53   : > { %v7652_v11 = vpop.permute.xlu1 %7651 }
 0xf54   : > { %7975 = vmatmul.mubr.msk.f32.gmra.mrb[20].mxu1 %vm7654_vm11, %v7569_v14 }
0x1023   : > { %v7727_v39 = vpop.f32.mrb[18].mxu1 }
0x1024   : > { %v7728_v22 = vadd.f32 %v7727_v39, %v7647_v53  ;;  %v7729_v43 = vpop.f32.mrb[19].mxu1 }
0x1025   : > { %v7730_v33 = vadd.f32 %v7729_v43, %v7647_v53 }
0x1026   : > { %v7738_v7 = vmul.f32 0.2, %v7728_v22 }
0x1027   : > { %v7739_v21 = vmul.f32 0.2, %v7730_v33  ;;  %v7733_v27 = vpop.f32.mrb[20].mxu1 }
0x1028   : > { %v7734_v60 = vadd.f32 %v7733_v27, %v7652_v11  ;;  %v7735_v15 = vpop.f32.mrb[21].mxu1  ;;  %v7742_v32 = vmax.f32 %v7728_v22, %v7738_v7 }
0x1029   : > { %v7736_v41 = vadd.f32 %v7735_v15, %v7652_v11  ;;  %v7743_v51 = vmax.f32 %v7730_v33, %v7739_v21 }
0x102a   : > { %v7740_v25 = vmul.f32 0.2, %v7734_v60  ;;  %v12624_v13 = vmul.f32 %v7742_v32, %v12391_v61 }
0x102b   : > { %v7741_v59 = vmul.f32 0.2, %v7736_v41  ;;  %v7747_v37 = vmul.f32 %v7743_v51, %v12395_v1 }
0x102c   : > { %v7744_v30 = vmax.f32 %v7734_v60, %v7740_v25  ;;  %v7750_v25 = vld [vmem:[%s12745_s18] sm:$0x1] }
0x102d   : > { %v7745_v24 = vmax.f32 %v7736_v41, %v7741_v59 }
0x102e   : > { %v12627_v55 = vmul.f32 %v7744_v30, %v12391_v61  ;;  %v7751_v61 = vld [vmem:[#allocation2] sm:$0x1] }
0x102f   : > { %v7749_v29 = vmul.f32 %v7745_v24, %v12395_v1 }
0x1030   : > { %v9669_v47 = vpack.i.bf16 %v12627_v55, %v12624_v13  ;;  %v9283_v2 = vpack.c.bf16 %v12627_v55, %v12624_v13 }
0x1031   : > { %v9679_v45 = vpack.i.bf16 %v7749_v29, %v7747_v37  ;;  %v9281_v44 = vpack.c.bf16 %v7749_v29, %v7747_v37 }
0x1032   : > { %9670 = vrot.lane.b32.xlu0 %v9669_v47, %s12963_s22 }
0x1033   : > { %9680 = vrot.lane.b32.xlu1 %v9679_v45, %s12963_s22  ;;  %s620_s22 = sand.u32 1, %s9771_s24  }
0x1034   : > { %s7890_s6 = scalar_lea.sflag [#allocation4], %s620_s22 }
0x1036   : > { %9675 = vrot.lane.b32.xlu0 %v9669_v47, %s12964_s9 }
0x1037   : > { %9685 = vrot.lane.b32.xlu1 %v9679_v45, %s12964_s9  ;;  %s7966_s9 = sshll.u32 %s620_s22, 1 }
0x1038   : > { %s622_s27 = scalar_lea.vmem [#allocation3], %s7966_s9 }
0x1039   : > { %s7903_s3 = sshll.u32 %s622_s27, 4  ;;  %s12686_s3 = int_to_ptr.vmem [resolvable:$true] %s7903_s3 }
0x103a   : > { %9690 = vrot.lane.b32.xlu0 %v9669_v47, %s12958_s8  ;;  %s9717_s28 = scalar_lea.vmem %s12686_s3, 32 }
0x103b   : > { %9700 = vrot.lane.b32.xlu1 %v9679_v45, %s12958_s8  ;;  %p9718_p11 = scmp.ne.s32.totalorder %s12686_s3, %s9717_s28 }
0x103d   : > { %p9719_p12 = pnand %p9718_p11, %p9952_p5 }
0x103e   : > { %9695 = vrot.lane.b32.xlu0 %v9669_v47, %s12942_s0 }
0x103f   : > { %9705 = vrot.lane.b32.xlu1 %v9679_v45, %s12942_s0  ;;  %p9720_p13 = pneg %p9719_p12  ;;  %s9721_s0 = sshll.u32 %s9805_s19, 4  ;;  %s9722_s0 = int_to_ptr.vmem [resolvable:$false] %s9721_s0 }
0x1040   : > { %s9723_s8 = scalar_lea.vmem %s9722_s0, 64  ;;  %p9724_p0 = scmp.lt.s32.totalorder %s12686_s3, %s9722_s0 }
0x1041   : > { %p9725_p1 = scmp.lt.s32.totalorder %s9723_s8, %s9717_s28 }
0x1042   : > { %7802 = vperm.xlu0 %9482, %v7751_v61  }
0x1043   : > { %p9726_p2 = por %p9725_p1, %p9724_p0 }
0x1045   : > { %p9727_p3 = pnand %p9726_p2, %p9720_p13 }
0x10a4   : > { %v9671_v1 = vpop.permute.xlu0 %9670 }
0x10a5   : > { %v9673_v6 = vunpack.i.h.bf16 %v9671_v1  ;;  %v9672_v46 = vunpack.i.l.bf16 %v9671_v1  ;;  %v9681_v56 = vpop.permute.xlu1 %9680 }
0x10a6   : > { %v9683_v20 = vunpack.i.h.bf16 %v9681_v56  ;;  %v9682_v49 = vunpack.i.l.bf16 %v9681_v56 }
0x10a8   : > { %v7762_v28 = vsel %vm7203_vm8, %v9682_v49, %v9672_v46  ;;  %v7763_v36 = vsel %vm7203_vm8, %v9683_v20, %v9673_v6  ;;  %v9676_v4 = vpop.permute.xlu0 %9675  ;;  %v7760_v40 = vsel %vm7203_vm8, %v9672_v46, %v9682_v49  ;;  %v7761_v35 = vsel %vm7203_vm8, %v9673_v6, %v9683_v20 }
0x10a9   : > { %v9275_v63 = vpack.c.bf16 %v7763_v36, %v7762_v28  ;;  %v9678_v5 = vunpack.i.h.bf16 %v9676_v4  ;;  %v9677_v10 = vunpack.i.l.bf16 %v9676_v4  ;;  %v9686_v57 = vpop.permute.xlu1 %9685  ;;  %v9273_v23 = vpack.c.bf16 %v7761_v35, %v7760_v40 }
0x10aa   : > { %v9688_v18 = vunpack.i.h.bf16 %v9686_v57  ;;  %v9687_v17 = vunpack.i.l.bf16 %v9686_v57 }
0x10ab   : > { %9274 = vmatprep.subr.bf16.mxu0 %v9273_v23 }
0x10ac   : > { %v7774_v12 = vsel %vm7210_vm14, %v9687_v17, %v9677_v10  ;;  %v7775_v42 = vsel %vm7210_vm14, %v9688_v18, %v9678_v5  ;;  %v9691_v8 = vpop.permute.xlu0 %9690  ;;  %9276 = vmatpush1.bf16.msra.mxu0 %v9275_v63  ;;  %v7772_v3 = vsel %vm7210_vm14, %v9677_v10, %v9687_v17  ;;  %v7773_v58 = vsel %vm7210_vm14, %v9678_v5, %v9688_v18 }
0x10ad   : > { %v9279_v26 = vpack.c.bf16 %v7775_v42, %v7774_v12  ;;  %v9693_v31 = vunpack.i.h.bf16 %v9691_v8  ;;  %v9692_v54 = vunpack.i.l.bf16 %v9691_v8  ;;  %v9701_v50 = vpop.permute.xlu1 %9700  ;;  %v9277_v48 = vpack.c.bf16 %v7773_v58, %v7772_v3 }
0x10ae   : > { %v9703_v0 = vunpack.i.h.bf16 %v9701_v50  ;;  %v9702_v19 = vunpack.i.l.bf16 %v9701_v50 }
0x10af   : > { %9278 = vmatprep.subr.bf16.mxu0 %v9277_v48 }
0x10b0   : > { %v9696_v16 = vpop.permute.xlu0 %9695  ;;  %9280 = vmatpush1.bf16.msra.mxu0 %v9279_v26  ;;  %v7786_v52 = vsel %vm661_vm1, %v9702_v19, %v9692_v54  ;;  %v7787_v62 = vsel %vm661_vm1, %v9703_v0, %v9693_v31  ;;  %v7784_v43 = vsel %vm661_vm1, %v9692_v54, %v9702_v19  ;;  %v7785_v33 = vsel %vm661_vm1, %v9693_v31, %v9703_v0 }
0x10b1   : > { %v9698_v38 = vunpack.i.h.bf16 %v9696_v16  ;;  %v9697_v14 = vunpack.i.l.bf16 %v9696_v16  ;;  %v9706_v53 = vpop.permute.xlu1 %9705  ;;  %9282 = vmatprep.subr.bf16.mxu0 %v9281_v44  ;;  %v9285_v7 = vpack.c.bf16 %v7787_v62, %v7786_v52  ;;  %v9287_v27 = vpack.c.bf16 %v7785_v33, %v7784_v43 }
0x10b2   : > { %v9708_v39 = vunpack.i.h.bf16 %v9706_v53  ;;  %v9707_v22 = vunpack.i.l.bf16 %v9706_v53  ;;  %vm7809_vm1 = vcmask 654336  }
0x10b4   : > { %9284 = vmatpush1.bf16.msra.mxu0 %v9283_v2  ;;  %v7798_v11 = vsel %vm674_vm2, %v9707_v22, %v9697_v14  ;;  %v7799_v21 = vsel %vm674_vm2, %v9708_v39, %v9698_v38  ;;  %v7796_v60 = vsel %vm674_vm2, %v9697_v14, %v9707_v22  ;;  %v7797_v15 = vsel %vm674_vm2, %v9698_v38, %v9708_v39 }
0x10b5   : > { %9286 = vmatprep.subr.bf16.mxu0 %v9285_v7  ;;  %v9289_v41 = vpack.c.bf16 %v7799_v21, %v7798_v11  ;;  %v9291_v32 = vpack.c.bf16 %v7797_v15, %v7796_v60  ;;  %vm12965_vm2 = vcmask 1040384  }
0x10b8   : > { %9288 = vmatpush1.bf16.msra.mxu0 %v9287_v27 }
0x10b9   : > { %9290 = vmatprep.subr.bf16.mxu0 %v9289_v41 }
0x10bc   : > { %9292 = vmatpush1.bf16.msra.mxu0 %v9291_v32 }
0x10bf   : > { %7976 = vmatmul.mubr.msk.f32.vlgmr.msra.gmra.mrb[12].mxu0 %vm7809_vm1, %v7750_v25 }
0x10c1   : > { %v7803_v51 = vpop.permute.xlu0 %7802 }
0x10c2   : > { %v7808_v59 = vrot.slane %v7803_v51, %v12960_v9 }
0x1192   : > { %v7879_v34 = vpop.f32.mrb[12].mxu0 }
0x1193   : > { %v7881_v30 = vpop.f32.mrb[13].mxu0  ;;  %v7880_v13 = vadd.f32 %v7879_v34, %v7808_v59 }
0x1194   : > { %v7882_v24 = vadd.f32 %v7881_v30, %v7808_v59 }
0x1196   : > { %v7885_v55 = vrot.slane %v7882_v24, 7 }
0x1198   : > { %v7887_v9 = vsel %vm12965_vm2, %v7880_v13, %v7885_v55 }
0x1199   : > { %7888 = vst [vmem:[%s622_s27] sm:$0x3] %v7887_v9 }
0x119a   : > { %9730 = shalt.err (!%p9727_p3)
}
0x119b   : > { %s9731_s22 = scalar_lea.hbm %s12684_s5, 32  ;;  %s9735_s27 = scalar_lea.hbm %s12747_s20, 64 }
0x119c   : > { %p9732_p4 = scmp.ne.s32.totalorder %s12684_s5, %s9731_s22  ;;  %p9736_p9 = scmp.lt.u32.totalorder %s12684_s5, %s12747_s20 }
0x119d   : > { %p9737_p10 = scmp.lt.u32.totalorder %s9735_s27, %s9731_s22  ;;  %p9739_p12 = scmp.lt.u32.totalorder %s9731_s22, %s12684_s5 }
0x119e   : > { %p9733_p7 = pnand %p9732_p4, %p9952_p5 }
0x119f   : > { %p9738_p11 = por %p9737_p10, %p9736_p9 }
0x11a0   : > { %p9734_p8 = pneg %p9733_p7 }
0x11a1   : > { %p9740_p13 = por %p9739_p12, %p9738_p11 }
0x11a3   : > { %p9741_p0 = pnand %p9740_p13, %p9734_p8 }
0x11a5   : > { %9744 = shalt.err (!%p9741_p0)
}
0x11a6   : > { %9419 = dma.vmem_to_hbm [thread:$0]  (%p9952_p5), %s12686_s3, 32, %s12684_s5, %s7890_s6  }
0x11a7 PF: > { %p9425_p1 = scmp.ge.s32.totalorder %s9779_s25, 2  ;;  %s7915_s28 = sand.u32 1, %s9767_s23  }
0x11a8   : > { %s7916_s19 = scalar_lea.sflag [#allocation4], %s7915_s28 }
0x11a9   : > { %p9422_p2 = pnand %p9425_p1, %p9956_p6 }
0x11ab   : > { %9762 = dma.done.wait (!%p9422_p2), %s7916_s19, 32  }
0x11ac   : > { %9764 = vsyncadd (!%p9422_p2), %s7916_s19, 4294967264  ;;  %s12966_s0 = sld [smem:[#allocation6_spill]]  ;;  %p32_p3 = scmp.ge.s32.totalorder %s9939_s26, 4  }
0x11ad   : > { %s12967_s23 = smov %s9771_s24  ;;  %s12968_s24 = smov %s9775_s2 }
0x11ae   : > { %s12970_s25 = smov %s9939_s26  ;;  %34 = sbr.rel (!%p32_p3) target bundleno = 15 (0xf), region = 135 }
0x11b2   : > { %s12969_s2 = smov %s12966_s0 }
0x11b5   :  { %7921 = vsyncpa [#allocation4], 1 }
0x11b6   :  { %7923 = vsyncpa [#allocation4 + $0x1], 1 }

// kernel: tpu_custom_call.1
= control target key start
LH: loop header
LB: loop body
LE: loop exit
PB: predicated region body
PF: predicated region fallthrough
CT: control target
= control target key end

     0   :  { %s12727_s0 = inlined_call_operand.vmem [shape: f32[2,1,512], index: 0, kind: input, shape index: {}]   ;;  %s12728_s1 = inlined_call_operand.vmem [shape: f32[128,78], index: 1, kind: input, shape index: {}]   ;;  %s12729_s2 = inlined_call_operand.vmem [shape: f32[78,13], index: 2, kind: input, shape index: {}]   ;;  %s12730_s3 = inlined_call_operand.vmem [shape: f32[1,256], index: 3, kind: input, shape index: {}]   ;;  %s12731_s4 = inlined_call_operand.vmem [shape: f32[8,15], index: 4, kind: input, shape index: {}]   ;;  %s12732_s5 = inlined_call_operand.vmem [shape: f32[8,1], index: 5, kind: input, shape index: {}]   ;;  %s12733_s6 = inlined_call_operand.vmem [shape: f32[8,56], index: 6, kind: input, shape index: {}]   ;;  %s12734_s7 = inlined_call_operand.vmem [shape: f32[8,1], index: 7, kind: input, shape index: {}]   ;;  %s12735_s8 = inlined_call_operand.vmem [shape: f32[8,40], index: 8, kind: input, shape index: {}]   ;;  %s12736_s9 = inlined_call_operand.vmem [shape: f32[8,1], index: 9, kind: input, shape index: {}]   ;;  %s12737_s10 = inlined_call_operand.vmem [shape: f32[8,24], index: 10, kind: input, shape index: {}]   ;;  %s12738_s11 = inlined_call_operand.vmem [shape: f32[8,1], index: 11, kind: input, shape index: {}]   ;;  %s12739_s12 = inlined_call_operand.vmem [shape: f32[16,88], index: 12, kind: input, shape index: {}]   ;;  %s12740_s13 = inlined_call_operand.vmem [shape: f32[16,1], index: 13, kind: input, shape index: {}]   ;;  %s12741_s14 = inlined_call_operand.vmem [shape: f32[16,144], index: 14, kind: input, shape index: {}]   ;;  %s12742_s15 = inlined_call_operand.vmem [shape: f32[16,1], index: 15, kind: input, shape index: {}]   ;;  %s12743_s16 = inlined_call_operand.vmem [shape: f32[16,112], index: 16, kind: input, shape index: {}]   ;;  %s12744_s17 = inlined_call_operand.vmem [shape: f32[16,1], index: 17, kind: input, shape index: {}]   ;;  %s12745_s18 = inlined_call_operand.vmem [shape: f32[1,80], index: 18, kind: input, shape index: {}]   ;;  %s12746_s19 = inlined_call_operand.<no memory space> [shape: f32[1,1], index: 19, kind: input, shape index: {}]   ;;  %s12747_s20 = inlined_call_operand.hbm [shape: f32[2,2,128], index: 20, kind: output, shape index: {}]  }
   0x1   :  { %12836 = sst [smem:[#allocation21_spill]] %s12727_s0  ;;  %v25_v0 = vstv %s12746_s19 }
   0x2   :  { %12837 = sst [smem:[#allocation22_spill]] %s12728_s1  ;;  %26 = vst [vmem:[#allocation2] sm:$0x1] %v25_v0 }
   0x3   :  { %12838 = sst [smem:[#allocation23_spill]] %s12729_s2 }
   0x4   :  { %12839 = sst [smem:[#allocation24_spill]] %s12730_s3 }
   0x5   :  { %12840 = sst [smem:[#allocation25_spill]] %s12731_s4 }
   0x6   :  { %12841 = sst [smem:[#allocation26_spill]] %s12732_s5 }
   0x7   :  { %12842 = sst [smem:[#allocation27_spill]] %s12733_s6 }
   0x8   :  { %12843 = sst [smem:[#allocation28_spill]] %s12734_s7 }
   0x9   :  { %12844 = sst [smem:[#allocation29_spill]] %s12735_s8 }
   0xa   :  { %12845 = sst [smem:[#allocation30_spill]] %s12736_s9 }
   0xb   :  { %12846 = sst [smem:[#allocation31_spill]] %s12737_s10 }
   0xc   :  { %27 = vsyncpa [#allocation4], 0 }
   0xd   :  { %29 = vsyncpa [#allocation4 + $0x1], 0  ;;  %s9914_s23 = smov 0   ;;  %s9916_s24 = smov 0  }
   0xe   :  { %s9918_s2 = smov 0   ;;  %s9920_s25 = smov 0  }
   0xf LB: > { %s9935_s19 = sadd.s32 4294967295, %s9779_s25   ;;  %s7962_s3 = sadd.s32 4294967294, %s9779_s25   ;;  %s9779_s25 = sphi %s9920_s25, %s12970_s25   ;;  %s9775_s2 = sphi %s9918_s2, %s12969_s2   ;;  %s9771_s24 = sphi %s9916_s24, %s12968_s24   ;;  %s9767_s23 = sphi %s9914_s23, %s12967_s23  }
  0x10   : > { %s9939_s26 = sadd.s32 1, %s9779_s25   ;;  %s467_s27 = sadd.s32 1, %s9775_s2 }
  0x11   : > { %s464_s28 = ssub.s32 %s9779_s25, %s9939_s26  ;;  %p477_p0 = scmp.ne.s32.totalorder %s9775_s2, %s9771_s24 }
  0x12   : > { %p465_p1 = scmp.eq.s32.totalorder %s464_s28, 0  ;;  %p478_p2 = scmp.eq.s32.totalorder %s9935_s19, 1 }
  0x13   : > { %p483_p3 = scmp.ne.s32.totalorder %s9771_s24, %s9767_s23  ;;  %p484_p4 = scmp.eq.s32.totalorder %s7962_s3, 1 }
  0x14   : > { %s9950_s4 = scalar_select %p465_p1, %s9775_s2, %s467_s27  }
  0x15   : > { %p9952_p5 = por %p478_p2, %p477_p0  ;;  %p9956_p6 = por %p484_p4, %p483_p3 }
  0x16   : > { %12847 = sst [smem:[#allocation6_spill]] %s9950_s4  ;;  %p7965_p7 = scmp.ge.s32.totalorder %s9779_s25, 1 }
  0x17   : > { %p566_p8 = scmp.lt.s32.totalorder %s9779_s25, 3 }
  0x19   : > { %p567_p9 = pnand %p7965_p7, %p566_p8 }
  0x1b   : > { %570 = sbr.rel (%p567_p9) target bundleno = 4519 (0x11a7), region = 100 }
  0x22   : > { %p623_p10 = scmp.lt.s32.totalorder %s9935_s19, 1  ;;  %v631_v1 = vlaneseq  ;;  %s12851_s3 = sld [smem:[#allocation21_spill]]  ;;  %v12765_v12 = vmov 0.0   ;;  %v9796_v32 = vmov 0   ;;  %vm1055_vm0 = vcmask 121856  }
  0x23   : > { %s9781_s28 = smov 119   ;;  %s12817_s4 = smov 127   ;;  %1139 = vmatprep.mubr.f32.mxu0 %v12765_v12  ;;  %1630 = vmatprep.mubr.f32.mxu1 %v12765_v12  ;;  %vm12752_vm4 = vcmask 1040384   ;;  %vm996_vm5 = vcmask 1041408   ;;  %vm1001_vm8 = vcmask 1042432   ;;  %vm1006_vm15 = vcmask 1043456  }
  0x24   : > { %s624_s0 = scalar_select %p623_p10, %s9935_s19, 1  ;;  %v9965_v2 = vshrl.u32 %v631_v1, 7  ;;  %9482 = vset.pattern.permute.xlu0 %v9796_v32  ;;  %9483 = vset.pattern.permute.xlu1 %v9796_v32  ;;  %v10130_v48 = vand.u32 127, %v631_v1 }
  0x25   : > { %s12755_s1 = smov 125   ;;  %s9786_s22 = smov 120  }
  0x26   : > { %12850 = vst [vmem:[#allocation7_spill] sm:$0xff] %v9965_v2  ;;  %s7967_s21 = sshll.u32 %s624_s0, 2  ;;  %v12757_v3 = vsub.s32 1, %v9965_v2  ;;  %v641_v4 = vsub.s32 2, %v9965_v2  ;;  %v645_v8 = vsub.s32 3, %v9965_v2  ;;  %v9983_v9 = vsub.s32 0, %v9965_v2 }
  0x27   : > { %s12800_s0 = smov 126   ;;  %s12853_s5 = sld [smem:[#allocation26_spill]]  ;;  %12855 = vst [vmem:[#allocation9_spill] sm:$0xff] %v10130_v48  ;;  %vm661_vm1 = vcmp.lt.s32.totalorder %v10130_v48, 127  ;;  %vm674_vm2 = vcmp.lt.s32.totalorder %v10130_v48, 126  ;;  %vm765_vm3 = vcmp.lt.s32.totalorder %v10130_v48, 119 }
  0x28   : > { %s626_s27 = scalar_lea.vmem %s12851_s3, %s7967_s21  ;;  %12852 = vst [vmem:[#allocation8_spill] sm:$0xff] %v9983_v9  ;;  %s9784_s21 = smov 118   ;;  %vm778_vm6 = vcmp.lt.s32.totalorder %v10130_v48, 118  ;;  %vm687_vm7 = vcmp.lt.s32.totalorder %v10130_v48, 125  ;;  %vm752_vm9 = vcmp.lt.s32.totalorder %v10130_v48, 120  ;;  %vm791_vm10 = vcmp.lt.s32.totalorder %v10130_v48, 117 }
  0x29   : > { %v627_v5 = vld [vmem:[%s626_s27] sm:$0xf]  ;;  %s9787_s3 = smov 117   ;;  %s12753_s27 = smov 124   ;;  %vm700_vm11 = vcmp.lt.s32.totalorder %v10130_v48, 124  ;;  %vm804_vm12 = vcmp.lt.s32.totalorder %v10130_v48, 116 }
  0x2a   : > { %v9974_v6 = vrot.slane %v627_v5, %v12757_v3  ;;  %v9979_v7 = vrot.slane %v627_v5, %v641_v4  ;;  %v9988_v10 = vrot.slane %v627_v5, %v645_v8  ;;  %v9991_v11 = vrot.slane %v627_v5, %v9983_v9  ;;  %s12857_s7 = sld [smem:[#allocation28_spill]]  ;;  %s12858_s6 = sld [smem:[#allocation27_spill]] }
  0x2b   : > { %vm713_vm13 = vcmp.lt.s32.totalorder %v10130_v48, 123  ;;  %vm817_vm14 = vcmp.lt.s32.totalorder %v10130_v48, 115  ;;  %s12920_s9 = sld [smem:[#allocation30_spill]]  ;;  %s12921_s8 = sld [smem:[#allocation29_spill]] }
  0x2c   : > { %759 = vrot.lane.b32.xlu1 %v9974_v6, %s9781_s28  ;;  %653 = vrot.lane.b32.xlu0 %v9974_v6, %s12817_s4  ;;  %s12943_s10 = sld [smem:[#allocation31_spill]] }
  0x2d   : > { %v629_v31 = vld [vmem:[%s12853_s5] sm:$0xff]  ;;  %s12957_s5 = smov 39  }
  0x30   : > { %761 = vrot.lane.b32.xlu1 %v9979_v7, %s9781_s28  ;;  %655 = vrot.lane.b32.xlu0 %v9979_v7, %s12817_s4 }
  0x34   : > { %657 = vrot.lane.b32.xlu1 %v9988_v10, %s12817_s4  ;;  %651 = vrot.lane.b32.xlu0 %v9991_v11, %s12817_s4 }
  0x38   : > { %670 = vrot.lane.b32.xlu1 %v9979_v7, %s12800_s0  ;;  %668 = vrot.lane.b32.xlu0 %v9974_v6, %s12800_s0 }
  0x3c   : > { %763 = vrot.lane.b32.xlu1 %v9988_v10, %s9781_s28  ;;  %757 = vrot.lane.b32.xlu0 %v9991_v11, %s9781_s28  ;;  %s9789_s28 = smov 116  }
  0x40   : > { %774 = vrot.lane.b32.xlu1 %v9979_v7, %s9784_s21  ;;  %772 = vrot.lane.b32.xlu0 %v9974_v6, %s9784_s21 }
  0x44   : > { %672 = vrot.lane.b32.xlu1 %v9988_v10, %s12800_s0  ;;  %666 = vrot.lane.b32.xlu0 %v9991_v11, %s12800_s0 }
  0x48   : > { %683 = vrot.lane.b32.xlu1 %v9979_v7, %s12755_s1  ;;  %681 = vrot.lane.b32.xlu0 %v9974_v6, %s12755_s1 }
  0x4c   : > { %748 = vrot.lane.b32.xlu1 %v9979_v7, %s9786_s22  ;;  %746 = vrot.lane.b32.xlu0 %v9974_v6, %s9786_s22 }
  0x50   : > { %776 = vrot.lane.b32.xlu1 %v9988_v10, %s9784_s21  ;;  %770 = vrot.lane.b32.xlu0 %v9991_v11, %s9784_s21  ;;  %s12750_s21 = smov 123  }
  0x54   : > { %787 = vrot.lane.b32.xlu1 %v9979_v7, %s9787_s3  ;;  %785 = vrot.lane.b32.xlu0 %v9974_v6, %s9787_s3 }
  0x58   : > { %685 = vrot.lane.b32.xlu1 %v9988_v10, %s12755_s1  ;;  %679 = vrot.lane.b32.xlu0 %v9991_v11, %s12755_s1 }
  0x5c   : > { %696 = vrot.lane.b32.xlu1 %v9979_v7, %s12753_s27  ;;  %694 = vrot.lane.b32.xlu0 %v9974_v6, %s12753_s27 }
  0x60   : > { %750 = vrot.lane.b32.xlu1 %v9988_v10, %s9786_s22  ;;  %744 = vrot.lane.b32.xlu0 %v9991_v11, %s9786_s22  ;;  %s9791_s22 = smov 115  }
  0x64   : > { %789 = vrot.lane.b32.xlu1 %v9988_v10, %s9787_s3  ;;  %783 = vrot.lane.b32.xlu0 %v9991_v11, %s9787_s3  ;;  %s9792_s3 = smov 122  }
  0x68   : > { %800 = vrot.lane.b32.xlu1 %v9979_v7, %s9789_s28  ;;  %798 = vrot.lane.b32.xlu0 %v9974_v6, %s9789_s28 }
  0x6c   : > { %698 = vrot.lane.b32.xlu1 %v9988_v10, %s12753_s27  ;;  %692 = vrot.lane.b32.xlu0 %v9991_v11, %s12753_s27 }
  0x70   : > { %709 = vrot.lane.b32.xlu1 %v9979_v7, %s12750_s21  ;;  %707 = vrot.lane.b32.xlu0 %v9974_v6, %s12750_s21 }
  0x74   : > { %802 = vrot.lane.b32.xlu1 %v9988_v10, %s9789_s28  ;;  %796 = vrot.lane.b32.xlu0 %v9991_v11, %s9789_s28  ;;  %s9793_s28 = smov 114  }
  0x78   : > { %813 = vrot.lane.b32.xlu1 %v9979_v7, %s9791_s22  ;;  %811 = vrot.lane.b32.xlu0 %v9974_v6, %s9791_s22 }
  0x7c   : > { %711 = vrot.lane.b32.xlu1 %v9988_v10, %s12750_s21  ;;  %705 = vrot.lane.b32.xlu0 %v9991_v11, %s12750_s21  ;;  %s9794_s21 = smov 121  }
  0x80   : > { %722 = vrot.lane.b32.xlu1 %v9979_v7, %s9792_s3  ;;  %720 = vrot.lane.b32.xlu0 %v9974_v6, %s9792_s3 }
  0x84   : > { %815 = vrot.lane.b32.xlu1 %v9988_v10, %s9791_s22  ;;  %809 = vrot.lane.b32.xlu0 %v9991_v11, %s9791_s22  ;;  %s12854_s22 = sld [smem:[#allocation25_spill]] }
  0x88   : > { %826 = vrot.lane.b32.xlu1 %v9979_v7, %s9793_s28  ;;  %824 = vrot.lane.b32.xlu0 %v9974_v6, %s9793_s28 }
  0x8a   : > { %v628_v41 = vld [vmem:[%s12854_s22] sm:$0xff]  ;;  %s12963_s22 = smov 2  }
  0x8b   : > { %v1057_v44 = vsel %vm1055_vm0, %v628_v41, 0  ;;  %vm830_vm0 = vcmp.lt.s32.totalorder %v10130_v48, 114 }
  0x8c   : > { %724 = vrot.lane.b32.xlu1 %v9988_v10, %s9792_s3  ;;  %718 = vrot.lane.b32.xlu0 %v9991_v11, %s9792_s3  ;;  %v10123_v45 = vand.u32 4294901760, %v1057_v44 }
  0x8e   : > { %v10133_v49 = vsub.f32 %v1057_v44, %v10123_v45 }
  0x90   : > { %735 = vrot.lane.b32.xlu1 %v9979_v7, %s9794_s21  ;;  %733 = vrot.lane.b32.xlu0 %v9974_v6, %s9794_s21  ;;  %v10141_v52 = vand.u32 4294901760, %v10133_v49 }
  0x92   : > { %v1143_v60 = vsub.f32 %v10133_v49, %v10141_v52 }
  0x94   : > { %828 = vrot.lane.b32.xlu1 %v9988_v10, %s9793_s28  ;;  %822 = vrot.lane.b32.xlu0 %v9991_v11, %s9793_s28  ;;  %s12856_s28 = smov 123  }
  0x98   : > { %737 = vrot.lane.b32.xlu1 %v9988_v10, %s9794_s21  ;;  %731 = vrot.lane.b32.xlu0 %v9991_v11, %s9794_s21  ;;  %s12944_s21 = sld [smem:[#allocation22_spill]] }
  0x9c   : > { %1052 = vperm.xlu0 %9482, %v629_v31  }
  0x9e   : > { %v10069_v13 = vpop.permute.xlu1 %759  ;;  %v654_v14 = vpop.permute.xlu0 %653 }
  0xa2   : > { %v10071_v15 = vpop.permute.xlu1 %761  ;;  %v656_v16 = vpop.permute.xlu0 %655 }
  0xa3   : > { %v663_v55 = vsel %vm661_vm1, %v654_v14, %v656_v16  ;;  %v767_v1 = vsel %vm765_vm3, %v10069_v13, %v10071_v15 }
  0xa4   : > { %v840_v61 = vrot.slane %v663_v55, 7 }
  0xa6   : > { %v658_v17 = vpop.permute.xlu1 %657  ;;  %v652_v18 = vpop.permute.xlu0 %651 }
  0xa7   : > { %v662_v56 = vsel %vm661_vm1, %v656_v16, %v658_v17  ;;  %v664_v57 = vsel %vm661_vm1, %v652_v18, %v654_v14  ;;  %v665_v58 = vsel %vm661_vm1, %v658_v17, %v652_v18  ;;  %v10176_v14 = vand.u32 4294901760, %v1143_v60 }
  0xa8   : > { %v841_v62 = vrot.slane %v662_v56, 7  ;;  %v839_v4 = vrot.slane %v664_v57, 7  ;;  %v842_v5 = vrot.slane %v665_v58, 7  ;;  %v924_v16 = vrot.slane %v767_v1, 7 }
  0xa9   : > { %v993_v17 = vsel %vm12752_vm4, %v9974_v6, %v840_v61 }
  0xaa   : > { %v10073_v19 = vpop.permute.xlu1 %670  ;;  %v10075_v20 = vpop.permute.xlu0 %668  ;;  %v994_v18 = vsel %vm12752_vm4, %v9979_v7, %v841_v62  ;;  %v992_v44 = vsel %vm12752_vm4, %v9991_v11, %v839_v4  ;;  %v995_v55 = vsel %vm12752_vm4, %v9988_v10, %v842_v5 }
  0xab   : > { %v676_v59 = vsel %vm674_vm2, %v10075_v20, %v10073_v19 }
  0xac   : > { %v852_v8 = vrot.slane %v676_v59, 6 }
  0xae   : > { %v10077_v21 = vpop.permute.xlu1 %763  ;;  %v10079_v22 = vpop.permute.xlu0 %757 }
  0xaf   : > { %v10186_v31 = vsel %vm765_vm3, %v10071_v15, %v10077_v21  ;;  %v998_v15 = vsel %vm996_vm5, %v993_v17, %v852_v8  ;;  %v10209_v11 = vsel %vm765_vm3, %v10079_v22, %v10069_v13  ;;  %v769_v13 = vsel %vm765_vm3, %v10077_v21, %v10079_v22 }
  0xb0   : > { %v923_v60 = vrot.slane %v10209_v11, 7  ;;  %v926_v4 = vrot.slane %v769_v13, 7  ;;  %vm1011_vm3 = vcmask 1044480  }
  0xb2   : > { %v10081_v23 = vpop.permute.xlu1 %774  ;;  %v10083_v24 = vpop.permute.xlu0 %772 }
  0xb6   : > { %v10085_v25 = vpop.permute.xlu1 %672  ;;  %v10087_v26 = vpop.permute.xlu0 %666 }
  0xb7   : > { %v675_v6 = vsel %vm674_vm2, %v10073_v19, %v10085_v25  ;;  %v677_v7 = vsel %vm674_vm2, %v10087_v26, %v10075_v20  ;;  %v678_v10 = vsel %vm674_vm2, %v10085_v25, %v10087_v26  ;;  %v925_v20 = vrot.slane %v10186_v31, 7 }
  0xb8   : > { %v780_v26 = vsel %vm778_vm6, %v10083_v24, %v10081_v23  ;;  %v853_v57 = vrot.slane %v675_v6, 6  ;;  %v851_v58 = vrot.slane %v677_v7, 6  ;;  %v854_v61 = vrot.slane %v678_v10, 6 }
  0xb9   : > { %v936_v17 = vrot.slane %v780_v26, 6 }
  0xba   : > { %v10089_v27 = vpop.permute.xlu1 %683  ;;  %v10091_v28 = vpop.permute.xlu0 %681  ;;  %v997_v7 = vsel %vm996_vm5, %v992_v44, %v851_v58 }
  0xbb   : > { %v689_v19 = vsel %vm687_vm7, %v10091_v28, %v10089_v27 }
  0xbc   : > { %v864_v62 = vrot.slane %v689_v19, 5 }
  0xbe   : > { %v10093_v29 = vpop.permute.xlu1 %748  ;;  %v10095_v30 = vpop.permute.xlu0 %746  ;;  %v1003_v13 = vsel %vm1001_vm8, %v998_v15, %v864_v62 }
  0xbf   : > { %v754_v56 = vsel %vm752_vm9, %v10095_v30, %v10093_v29 }
  0xc2   : > { %v10100_v33 = vpop.permute.xlu1 %776  ;;  %v10102_v34 = vpop.permute.xlu0 %770 }
  0xc3   : > { %v779_v5 = vsel %vm778_vm6, %v10081_v23, %v10100_v33  ;;  %v781_v31 = vsel %vm778_vm6, %v10102_v34, %v10083_v24  ;;  %v1000_v24 = vsel %vm996_vm5, %v995_v55, %v854_v61 }
  0xc6   : > { %v10104_v35 = vpop.permute.xlu1 %787  ;;  %v10106_v36 = vpop.permute.xlu0 %785 }
  0xc7   : > { %v793_v25 = vsel %vm791_vm10, %v10106_v36, %v10104_v35 }
  0xc8   : > { %v948_v8 = vrot.slane %v793_v25, 5 }
  0xca   : > { %v10108_v37 = vpop.permute.xlu1 %685  ;;  %v10110_v38 = vpop.permute.xlu0 %679 }
  0xcb   : > { %v688_v21 = vsel %vm687_vm7, %v10089_v27, %v10108_v37  ;;  %v690_v1 = vsel %vm687_vm7, %v10110_v38, %v10091_v28  ;;  %v1027_v27 = vsel %vm12752_vm4, %v754_v56, %v924_v16  ;;  %v782_v28 = vsel %vm778_vm6, %v10100_v33, %v10102_v34 }
  0xcc   : > { %v865_v6 = vrot.slane %v688_v21, 5  ;;  %v999_v16 = vsel %vm996_vm5, %v994_v18, %v853_v57  ;;  %v691_v23 = vsel %vm687_vm7, %v10108_v37, %v10110_v38  ;;  %v863_v11 = vrot.slane %v690_v1, 5 }
  0xcd   : > { %v1031_v33 = vsel %vm996_vm5, %v1027_v27, %v936_v17  ;;  %v937_v34 = vrot.slane %v779_v5, 6  ;;  %v935_v18 = vrot.slane %v781_v31, 6  ;;  %v938_v56 = vrot.slane %v782_v28, 6 }
  0xce   : > { %v10112_v39 = vpop.permute.xlu1 %696  ;;  %v10114_v40 = vpop.permute.xlu0 %694  ;;  %v1035_v44 = vsel %vm1001_vm8, %v1031_v33, %v948_v8  ;;  %v1004_v38 = vsel %vm1001_vm8, %v999_v16, %v865_v6  ;;  %v866_v25 = vrot.slane %v691_v23, 5  ;;  %v1002_v26 = vsel %vm1001_vm8, %v997_v7, %v863_v11 }
  0xcf   : > { %v702_v37 = vsel %vm700_vm11, %v10114_v40, %v10112_v39  ;;  %vm726_vm6 = vcmp.lt.s32.totalorder %v10130_v48, 122 }
  0xd0   : > { %v876_v61 = vrot.slane %v702_v37, 4 }
  0xd2   : > { %v10119_v42 = vpop.permute.xlu1 %750  ;;  %v10121_v43 = vpop.permute.xlu0 %744  ;;  %v1008_v17 = vsel %vm1006_vm15, %v1003_v13, %v876_v61 }
  0xd3   : > { %v753_v55 = vsel %vm752_vm9, %v10093_v29, %v10119_v42  ;;  %v755_v15 = vsel %vm752_vm9, %v10121_v43, %v10095_v30  ;;  %v756_v57 = vsel %vm752_vm9, %v10119_v42, %v10121_v43  ;;  %vm1021_vm9 = vcmask 1046528  }
  0xd4   : > { %v1028_v43 = vsel %vm12752_vm4, %v753_v55, %v925_v20  ;;  %v1026_v62 = vsel %vm12752_vm4, %v755_v15, %v923_v60  ;;  %v1029_v1 = vsel %vm12752_vm4, %v756_v57, %v926_v4  ;;  %v1005_v4 = vsel %vm1001_vm8, %v1000_v24, %v866_v25 }
  0xd5   : > { %v1032_v6 = vsel %vm996_vm5, %v1028_v43, %v937_v34  ;;  %v1030_v16 = vsel %vm996_vm5, %v1026_v62, %v935_v18  ;;  %v1033_v7 = vsel %vm996_vm5, %v1029_v1, %v938_v56  ;;  %vm739_vm4 = vcmp.lt.s32.totalorder %v10130_v48, 121 }
  0xd6   : > { %v10125_v46 = vpop.permute.xlu1 %789  ;;  %v10127_v47 = vpop.permute.xlu0 %783  ;;  %vm3449_vm5 = vcmask 326656  }
  0xd7   : > { %v792_v58 = vsel %vm791_vm10, %v10104_v35, %v10125_v46  ;;  %v794_v29 = vsel %vm791_vm10, %v10127_v47, %v10106_v36  ;;  %v795_v42 = vsel %vm791_vm10, %v10125_v46, %v10127_v47  ;;  %vm1016_vm10 = vcmask 1045504  }
  0xd8   : > { %v947_v27 = vrot.slane %v794_v29, 5  ;;  %v950_v60 = vrot.slane %v795_v42, 5 }
  0xda   : > { %v10135_v50 = vpop.permute.xlu1 %800  ;;  %v10137_v51 = vpop.permute.xlu0 %798  ;;  %v1034_v33 = vsel %vm1001_vm8, %v1030_v16, %v947_v27  ;;  %v1037_v37 = vsel %vm1001_vm8, %v1033_v7, %v950_v60 }
  0xdb   : > { %v806_v35 = vsel %vm804_vm12, %v10137_v51, %v10135_v50 }
  0xdc   : > { %v960_v5 = vrot.slane %v806_v35, 4 }
  0xde   : > { %v10144_v53 = vpop.permute.xlu1 %698  ;;  %v10146_v54 = vpop.permute.xlu0 %692  ;;  %v1039_v34 = vsel %vm1006_vm15, %v1035_v44, %v960_v5 }
  0xdf   : > { %v701_v36 = vsel %vm700_vm11, %v10112_v39, %v10144_v53  ;;  %v703_v46 = vsel %vm700_vm11, %v10146_v54, %v10114_v40  ;;  %v704_v47 = vsel %vm700_vm11, %v10144_v53, %v10146_v54  ;;  %v949_v39 = vrot.slane %v792_v58, 5 }
  0xe0   : > { %v877_v8 = vrot.slane %v701_v36, 4  ;;  %v875_v31 = vrot.slane %v703_v46, 4  ;;  %v878_v28 = vrot.slane %v704_v47, 4 }
  0xe1   : > { %v1036_v11 = vsel %vm1001_vm8, %v1032_v6, %v949_v39  ;;  %vm4630_vm8 = vcmask 195584  }
  0xe2   : > { %v10163_v63 = vpop.permute.xlu1 %709  ;;  %v10165_v0 = vpop.permute.xlu0 %707  ;;  %v1009_v18 = vsel %vm1006_vm15, %v1004_v38, %v877_v8  ;;  %v1007_v15 = vsel %vm1006_vm15, %v1002_v26, %v875_v31  ;;  %v1010_v57 = vsel %vm1006_vm15, %v1005_v4, %v878_v28 }
  0xe3   : > { %v715_v20 = vsel %vm713_vm13, %v10165_v0, %v10163_v63 }
  0xe4   : > { %v888_v23 = vrot.slane %v715_v20, 3 }
  0xe6   : > { %v10188_v32 = vpop.permute.xlu1 %802  ;;  %v10190_v41 = vpop.permute.xlu0 %796  ;;  %v1013_v38 = vsel %vm1011_vm3, %v1008_v17, %v888_v23 }
  0xe7   : > { %v805_v24 = vsel %vm804_vm12, %v10135_v50, %v10188_v32  ;;  %v807_v56 = vsel %vm804_vm12, %v10190_v41, %v10137_v51  ;;  %v808_v50 = vsel %vm804_vm12, %v10188_v32, %v10190_v41 }
  0xe8   : > { %v961_v58 = vrot.slane %v805_v24, 4  ;;  %v959_v26 = vrot.slane %v807_v56, 4  ;;  %v962_v42 = vrot.slane %v808_v50, 4 }
  0xea   : > { %v10242_v22 = vpop.permute.xlu1 %813  ;;  %v10244_v59 = vpop.permute.xlu0 %811  ;;  %v1040_v47 = vsel %vm1006_vm15, %v1036_v11, %v961_v58  ;;  %v1041_v17 = vsel %vm1006_vm15, %v1037_v37, %v962_v42 }
  0xeb   : > { %v819_v40 = vsel %vm817_vm14, %v10244_v59, %v10242_v22 }
  0xec   : > { %v972_v13 = vrot.slane %v819_v40, 3 }
  0xee   : > { %v10271_v10 = vpop.permute.xlu1 %711  ;;  %v10273_v19 = vpop.permute.xlu0 %705  ;;  %v1043_v61 = vsel %vm1011_vm3, %v1039_v34, %v972_v13 }
  0xef   : > { %v714_v51 = vsel %vm713_vm13, %v10163_v63, %v10271_v10  ;;  %v716_v32 = vsel %vm713_vm13, %v10273_v19, %v10165_v0  ;;  %v717_v41 = vsel %vm713_vm13, %v10271_v10, %v10273_v19 }
  0xf0   : > { %v889_v0 = vrot.slane %v714_v51, 3  ;;  %v887_v1 = vrot.slane %v716_v32, 3  ;;  %v890_v39 = vrot.slane %v717_v41, 3 }
  0xf2   : > { %v10306_v21 = vpop.permute.xlu1 %722  ;;  %v10308_v30 = vpop.permute.xlu0 %720  ;;  %v1014_v31 = vsel %vm1011_vm3, %v1009_v18, %v889_v0  ;;  %v1012_v6 = vsel %vm1011_vm3, %v1007_v15, %v887_v1  ;;  %v1015_v16 = vsel %vm1011_vm3, %v1010_v57, %v890_v39 }
  0xf3   : > { %v728_v63 = vsel %vm726_vm6, %v10308_v30, %v10306_v21 }
  0xf4   : > { %v900_v20 = vrot.slane %v728_v63, 2 }
  0xf6   : > { %v816_v53 = vpop.permute.xlu1 %815  ;;  %v810_v54 = vpop.permute.xlu0 %809  ;;  %v1018_v23 = vsel %vm1016_vm10, %v1013_v38, %v900_v20 }
  0xf7   : > { %v818_v35 = vsel %vm817_vm14, %v10242_v22, %v816_v53  ;;  %v820_v46 = vsel %vm817_vm14, %v810_v54, %v10244_v59  ;;  %v821_v10 = vsel %vm817_vm14, %v816_v53, %v810_v54  ;;  %v1038_v22 = vsel %vm1006_vm15, %v1034_v33, %v959_v26 }
  0xf8   : > { %v973_v60 = vrot.slane %v818_v35, 3  ;;  %v971_v8 = vrot.slane %v820_v46, 3  ;;  %v974_v59 = vrot.slane %v821_v10, 3 }
  0xfa   : > { %v827_v25 = vpop.permute.xlu1 %826  ;;  %v825_v55 = vpop.permute.xlu0 %824  ;;  %v1044_v11 = vsel %vm1011_vm3, %v1040_v47, %v973_v60  ;;  %v1042_v13 = vsel %vm1011_vm3, %v1038_v22, %v971_v8  ;;  %v1045_v37 = vsel %vm1011_vm3, %v1041_v17, %v974_v59  ;;  %vm6530_vm3 = vcmask 318464  }
  0xfb   : > { %v832_v44 = vsel %vm830_vm0, %v825_v55, %v827_v25 }
  0xfc   : > { %v984_v29 = vrot.slane %v832_v44, 2 }
  0xfe   : > { %v725_v36 = vpop.permute.xlu1 %724  ;;  %v719_v43 = vpop.permute.xlu0 %718  ;;  %v1047_v62 = vsel %vm1016_vm10, %v1043_v61, %v984_v29 }
  0xff   : > { %v1063_v19 = vsel %vm1021_vm9, %v1047_v62, 0  ;;  %v727_v5 = vsel %vm726_vm6, %v10306_v21, %v725_v36  ;;  %v729_v40 = vsel %vm726_vm6, %v719_v43, %v10308_v30  ;;  %v730_v28 = vsel %vm726_vm6, %v725_v36, %v719_v43 }
 0x100   : > { %v1075_v27 = vand.u32 4294901760, %v1063_v19  ;;  %v901_v7 = vrot.slane %v727_v5, 2  ;;  %v899_v33 = vrot.slane %v729_v40, 2  ;;  %v902_v34 = vrot.slane %v730_v28, 2 }
 0x102   : > { %v736_v53 = vpop.permute.xlu1 %735  ;;  %v734_v54 = vpop.permute.xlu0 %733  ;;  %v10405_v4 = vsub.f32 %v1063_v19, %v1075_v27  ;;  %v1019_v58 = vsel %vm1016_vm10, %v1014_v31, %v901_v7  ;;  %v1017_v61 = vsel %vm1016_vm10, %v1012_v6, %v899_v33 }
 0x103   : > { %v741_v21 = vsel %vm739_vm4, %v734_v54, %v736_v53 }
 0x104   : > { %v912_v30 = vrot.slane %v741_v21, 1  ;;  %v1165_v24 = vand.u32 4294901760, %v10405_v4 }
 0x106   : > { %v829_v18 = vpop.permute.xlu1 %828  ;;  %v823_v56 = vpop.permute.xlu0 %822  ;;  %v1023_v15 = vsel %vm1021_vm9, %v1018_v23, %v912_v30 }
 0x107   : > { %v831_v57 = vsel %vm830_vm0, %v827_v25, %v829_v18  ;;  %v833_v50 = vsel %vm830_vm0, %v823_v56, %v825_v55  ;;  %v834_v44 = vsel %vm830_vm0, %v829_v18, %v823_v56  ;;  %v1071_v38 = vand.u32 4294901760, %v1023_v15 }
 0x108   : > { %v985_v51 = vrot.slane %v831_v57, 2  ;;  %v983_v29 = vrot.slane %v833_v50, 2  ;;  %v986_v26 = vrot.slane %v834_v44, 2  ;;  %v1166_v25 = vsub.f32 %v10405_v4, %v1165_v24 }
 0x109   : > { %v10429_v32 = vpack.c.bf16 %v1075_v27, %v1071_v38  ;;  %v10431_v41 = vsub.f32 %v1023_v15, %v1071_v38  ;;  %v1020_v55 = vsel %vm1016_vm10, %v1015_v16, %v902_v34 }
 0x10a   : > { %v738_v42 = vpop.permute.xlu1 %737  ;;  %v732_v63 = vpop.permute.xlu0 %731  ;;  %v1046_v35 = vsel %vm1016_vm10, %v1042_v13, %v983_v29  ;;  %v1049_v36 = vsel %vm1016_vm10, %v1045_v37, %v986_v26  ;;  %v1048_v43 = vsel %vm1016_vm10, %v1044_v11, %v985_v51  ;;  %v1167_v20 = vand.u32 4294901760, %v1166_v25 }
 0x10b   : > { %v740_v62 = vsel %vm739_vm4, %v736_v53, %v738_v42  ;;  %v742_v0 = vsel %vm739_vm4, %v732_v63, %v734_v54  ;;  %v743_v46 = vsel %vm739_vm4, %v738_v42, %v732_v63  ;;  %8540 = vmatprep.subr.bf16.mxu0 %v10429_v32  ;;  %v1060_v10 = vsel %vm1021_vm9, %v1046_v35, 0 }
 0x10c   : > { %v913_v19 = vrot.slane %v740_v62, 1  ;;  %v911_v47 = vrot.slane %v742_v0, 1  ;;  %v914_v1 = vrot.slane %v743_v46, 1  ;;  %v1077_v39 = vand.u32 4294901760, %v1060_v10 }
 0x10d   : > { %v1069_v27 = vsel %vm1021_vm9, %v1049_v36, 0  ;;  %v1153_v22 = vand.u32 4294901760, %v10431_v41  ;;  %v1066_v60 = vsel %vm1021_vm9, %v1048_v43, 0  ;;  %v8547_v0 = vpack.c.bf16 %v10405_v4, %v10431_v41 }
 0x10e   : > { %v1022_v5 = vsel %vm1021_vm9, %v1017_v61, %v911_v47  ;;  %v10452_v8 = vsub.f32 %v1060_v10, %v1077_v39  ;;  %v1025_v59 = vsel %vm1021_vm9, %v1020_v55, %v914_v1  ;;  %v1566_v40 = vand.u32 4294901760, %v1069_v27 }
 0x10f   : > { %v1073_v53 = vand.u32 4294901760, %v1022_v5  ;;  %v1562_v54 = vand.u32 4294901760, %v1025_v59  ;;  %v1154_v17 = vsub.f32 %v10431_v41, %v1153_v22  ;;  %v1024_v31 = vsel %vm1021_vm9, %v1019_v58, %v913_v19 }
 0x110   : > { %v10459_v28 = vsub.f32 %v1069_v27, %v1566_v40  ;;  %v1564_v21 = vand.u32 4294901760, %v1024_v31  ;;  %v1568_v6 = vand.u32 4294901760, %v1066_v60  ;;  %v1171_v16 = vand.u32 4294901760, %v10452_v8 }
 0x111   : > { %v10462_v7 = vpack.c.bf16 %v1077_v39, %v1073_v53  ;;  %v10464_v30 = vsub.f32 %v1022_v5, %v1073_v53  ;;  %v10466_v23 = vpack.c.bf16 %v1566_v40, %v1562_v54  ;;  %v1643_v11 = vsub.f32 %v1025_v59, %v1562_v54 }
 0x112   : > { %v1155_v33 = vand.u32 4294901760, %v1154_v17  ;;  %v10468_v13 = vpack.c.bf16 %v1568_v6, %v1564_v21  ;;  %v1649_v37 = vsub.f32 %v1024_v31, %v1564_v21  ;;  %v1661_v34 = vsub.f32 %v1066_v60, %v1568_v6  ;;  %v2062_v31 = vld [vmem:[%s12857_s7] sm:$0xff]  ;;  %s9800_s7 = smov 4  }
 0x113   : > { %8542 = vmatpush1.bf16.msra.mxu0 %v10462_v7  ;;  %8564 = vmatprep.subr.bf16.mxu1 %v10466_v23  ;;  %v1159_v18 = vand.u32 4294901760, %v10464_v30  ;;  %v1172_v56 = vsub.f32 %v10452_v8, %v1171_v16  ;;  %v1644_v15 = vand.u32 4294901760, %v1643_v11  ;;  %v1656_v57 = vand.u32 4294901760, %v10459_v28 }
 0x114   : > { %v8543_v50 = vpack.c.bf16 %v1167_v20, %v1155_v33  ;;  %8566 = vmatpush1.bf16.msra.mxu1 %v10468_v13  ;;  %v1650_v44 = vand.u32 4294901760, %v1649_v37  ;;  %v1662_v38 = vand.u32 4294901760, %v1661_v34  ;;  %v8549_v10 = vpack.c.bf16 %v10452_v8, %v10464_v30 }
 0x115   : > { %v1160_v58 = vsub.f32 %v10464_v30, %v1159_v18  ;;  %v1645_v51 = vsub.f32 %v1643_v11, %v1644_v15  ;;  %v1657_v29 = vsub.f32 %v10459_v28, %v1656_v57  ;;  %v1173_v55 = vand.u32 4294901760, %v1172_v56 }
 0x116   : > { %8544 = vmatprep.subr.bf16.mxu0 %v8543_v50  ;;  %1145 = vmatmul.mubr.f32.vlgmr.msra.gmra.mrb[0].mxu0 %v10176_v14  ;;  %v1651_v26 = vsub.f32 %v1649_v37, %v1650_v44  ;;  %v1663_v61 = vsub.f32 %v1661_v34, %v1662_v38  ;;  %v8573_v19 = vpack.c.bf16 %v1661_v34, %v1649_v37  ;;  %vm2140_vm4 = vcmask 457728  }
 0x117   : > { %1636 = vmatmul.mubr.f32.vlgmr.msra.gmra.mrb[0].mxu1 %v10176_v14  ;;  %v1161_v25 = vand.u32 4294901760, %v1160_v58  ;;  %v1646_v42 = vand.u32 4294901760, %v1645_v51  ;;  %v1658_v63 = vand.u32 4294901760, %v1657_v29  ;;  %1235 = vmatprep.mubr.f32.mxu0 %v12765_v12  ;;  %v8571_v14 = vpack.c.bf16 %v10459_v28, %v1643_v11 }
 0x118   : > { %v1652_v35 = vand.u32 4294901760, %v1651_v26  ;;  %v1664_v36 = vand.u32 4294901760, %v1663_v61  ;;  %1726 = vmatprep.mubr.f32.mxu1 %v12765_v12  ;;  %v8555_v47 = vpack.c.bf16 %v1165_v24, %v1153_v22  ;;  %v8579_v1 = vpack.c.bf16 %v1656_v57, %v1644_v15 }
 0x119   : > { %v8545_v43 = vpack.c.bf16 %v1173_v55, %v1161_v25  ;;  %v8567_v62 = vpack.c.bf16 %v1658_v63, %v1646_v42  ;;  %v8557_v39 = vpack.c.bf16 %v1171_v16, %v1159_v18  ;;  %v8581_v4 = vpack.c.bf16 %v1662_v38, %v1650_v44 }
 0x11a   : > { %v8569_v46 = vpack.c.bf16 %v1664_v36, %v1652_v35  ;;  %vm7167_vm9 = vcmask 39936  }
 0x11b   : > { %8546 = vmatpush1.bf16.msra.mxu0 %v8545_v43  ;;  %8568 = vmatprep.subr.bf16.mxu1 %v8567_v62 }
 0x11c   : > { %8548 = vmatprep.subr.bf16.mxu0 %v8547_v0  ;;  %8570 = vmatpush1.bf16.msra.mxu1 %v8569_v46 }
 0x11d   : > { %8572 = vmatprep.subr.bf16.mxu1 %v8571_v14 }
 0x11e   : > { %1237 = vmatmul.mubr.f32.vlgmr.msra.gmra.mrb[0].mxu0 %v10123_v45 }
 0x11f   : > { %8550 = vmatpush1.bf16.msra.mxu0 %v8549_v10  ;;  %1728 = vmatmul.mubr.f32.vlgmr.msra.gmra.mrb[0].mxu1 %v10123_v45 }
 0x120   : > { %8552 = vmatprep.subr.bf16.mxu0 %v10429_v32  ;;  %8574 = vmatpush1.bf16.msra.mxu1 %v8573_v19 }
 0x121   : > { %8576 = vmatprep.subr.bf16.mxu1 %v10466_v23  ;;  %1315 = vmatprep.mubr.f32.mxu0 %v12765_v12 }
 0x122   : > { %1806 = vmatprep.mubr.f32.mxu1 %v12765_v12 }
 0x126   : > { %1318 = vmatmul.mubr.f32.vlgmr.msra.gmra.mrb[0].mxu0 %v10133_v49 }
 0x127   : > { %8554 = vmatpush1.bf16.msra.mxu0 %v10462_v7  ;;  %1809 = vmatmul.mubr.f32.vlgmr.msra.gmra.mrb[0].mxu1 %v10133_v49  ;;  %v1053_v49 = vpop.permute.xlu0 %1052 }
 0x128   : > { %8556 = vmatprep.subr.bf16.mxu0 %v8555_v47  ;;  %8578 = vmatpush1.bf16.msra.mxu1 %v10468_v13 }
 0x129   : > { %8580 = vmatprep.subr.bf16.mxu1 %v8579_v1  ;;  %1392 = vmatprep.mubr.f32.mxu0 %v12765_v12 }
 0x12a   : > { %1883 = vmatprep.mubr.f32.mxu1 %v12765_v12 }
 0x12e   : > { %1396 = vmatmul.mubr.f32.vlgmr.msra.gmra.mrb[0].mxu0 %v10141_v52 }
 0x12f   : > { %8558 = vmatpush1.bf16.msra.mxu0 %v8557_v39  ;;  %1887 = vmatmul.mubr.f32.vlgmr.msra.gmra.mrb[0].mxu1 %v10141_v52 }
 0x130   : > { %8560 = vmatprep.subr.bf16.mxu0 %v10429_v32  ;;  %8582 = vmatpush1.bf16.msra.mxu1 %v8581_v4 }
 0x131   : > { %8584 = vmatprep.subr.bf16.mxu1 %v10466_v23  ;;  %1478 = vmatprep.mubr.f32.mxu0 %v12765_v12 }
 0x132   : > { %1969 = vmatprep.mubr.f32.mxu1 %v12765_v12 }
 0x136   : > { %1480 = vmatmul.mubr.f32.vlgmr.msra.gmra.mrb[0].mxu0 %v10123_v45 }
 0x137   : > { %8562 = vmatpush1.bf16.msra.mxu0 %v10462_v7  ;;  %1971 = vmatmul.mubr.f32.vlgmr.msra.gmra.mrb[0].mxu1 %v10123_v45  ;;  %v2061_v7 = vld [vmem:[%s12858_s6] sm:$0xff]  ;;  %s9799_s6 = smov 5  }
 0x138   : > { %8586 = vmatpush1.bf16.msra.mxu1 %v10468_v13  ;;  %1554 = vmatprep.mubr.f32.mxu0 %v12765_v12  ;;  %v2142_v33 = vsel %vm2140_vm4, %v2061_v7, 0 }
 0x139   : > { %2045 = vmatprep.mubr.f32.mxu1 %v12765_v12  ;;  %v10604_v57 = vand.u32 4294901760, %v2142_v33 }
 0x13b   : > { %v10625_v26 = vsub.f32 %v2142_v33, %v10604_v57 }
 0x13d   : > { %v10638_v36 = vand.u32 4294901760, %v10625_v26 }
 0x13e   : > { %1556 = vmatmul.mubr.f32.vlgmr.msra.gmra.mrb[0].mxu0 %v10123_v45 }
 0x13f   : > { %2047 = vmatmul.mubr.f32.vlgmr.msra.gmra.mrb[0].mxu1 %v10123_v45  ;;  %2222 = vmatprep.mubr.f32.mxu0 %v12765_v12  ;;  %12859 = vst [vmem:[#allocation10_spill] sm:$0xff] %v10638_v36 }
 0x140   : > { %2843 = vmatprep.mubr.f32.mxu1 %v12765_v12 }
 0x211   : > { %v1557_v52 = vpop.f32.mrb[0].mxu0 }
 0x212   : > { %v9293_v24 = vadd.f32 %v1557_v52, %v1053_v49  ;;  %v1559_v32 = vpop.f32.mrb[1].mxu0  ;;  %v2048_v41 = vpop.f32.mrb[0].mxu1 }
 0x213   : > { %v9295_v27 = vadd.f32 %v2048_v41, %v1053_v49  ;;  %v2050_v22 = vpop.f32.mrb[1].mxu1  ;;  %v9294_v45 = vadd.f32 %v1559_v32, %v1053_v49 }
 0x214   : > { %v2053_v20 = vmul.f32 0.2, %v9293_v24  ;;  %v9296_v40 = vadd.f32 %v2050_v22, %v1053_v49 }
 0x215   : > { %v2055_v60 = vmul.f32 0.2, %v9295_v27  ;;  %v2054_v59 = vmul.f32 0.2, %v9294_v45 }
 0x216   : > { %v10523_v5 = vmax.f32 %v9293_v24, %v2053_v20  ;;  %v2056_v54 = vmul.f32 0.2, %v9296_v40 }
 0x217   : > { %v10525_v8 = vmax.f32 %v9295_v27, %v2055_v60  ;;  %v10547_v53 = vmax.f32 %v9294_v45, %v2054_v59  ;;  %v2226_v27 = vsub.f32 %v10625_v26, %v10638_v36 }
 0x218   : > { %2063 = vrot.lane.b32.xlu0 %v10523_v5, %s12817_s4  ;;  %v10553_v17 = vmax.f32 %v9296_v40, %v2056_v54  ;;  %v2146_v23 = vand.u32 4294901760, %v10523_v5 }
 0x219   : > { %2067 = vrot.lane.b32.xlu1 %v10525_v8, %s12817_s4  ;;  %v2144_v13 = vand.u32 4294901760, %v10547_v53  ;;  %v2767_v18 = vand.u32 4294901760, %v10525_v8 }
 0x21a   : > { %v10598_v34 = vsub.f32 %v10523_v5, %v2146_v23  ;;  %v2765_v15 = vand.u32 4294901760, %v10553_v17 }
 0x21b   : > { %v10607_v50 = vsub.f32 %v10547_v53, %v2144_v13  ;;  %v10614_v38 = vsub.f32 %v10525_v8, %v2767_v18 }
 0x21c   : > { %2075 = vrot.lane.b32.xlu0 %v10523_v5, %s12800_s0  ;;  %v12761_v58 = vand.u32 4294901760, %v10598_v34  ;;  %v10622_v29 = vsub.f32 %v10553_v17, %v2765_v15 }
 0x21d   : > { %2079 = vrot.lane.b32.xlu1 %v10525_v8, %s12800_s0  ;;  %v12762_v61 = vand.u32 4294901760, %v10607_v50  ;;  %v12759_v42 = vand.u32 4294901760, %v10614_v38 }
 0x21e   : > { %v10631_v55 = vsub.f32 %v10598_v34, %v12761_v58  ;;  %v12760_v43 = vand.u32 4294901760, %v10622_v29 }
 0x21f   : > { %v10651_v19 = vsub.f32 %v10607_v50, %v12762_v61  ;;  %v10659_v49 = vsub.f32 %v10614_v38, %v12759_v42 }
 0x220   : > { %2087 = vrot.lane.b32.xlu0 %v10523_v5, %s12755_s1 }
 0x221   : > { %2091 = vrot.lane.b32.xlu1 %v10525_v8, %s12755_s1 }
 0x224   : > { %2099 = vrot.lane.b32.xlu0 %v10523_v5, %s12753_s27 }
 0x225   : > { %2103 = vrot.lane.b32.xlu1 %v10525_v8, %s12753_s27 }
 0x228   : > { %2111 = vrot.lane.b32.xlu0 %v10523_v5, %s12856_s28 }
 0x229   : > { %2115 = vrot.lane.b32.xlu1 %v10525_v8, %s12856_s28 }
 0x22c   : > { %2077 = vrot.lane.b32.xlu0 %v10547_v53, %s12800_s0 }
 0x22d   : > { %2065 = vrot.lane.b32.xlu1 %v10547_v53, %s12817_s4 }
 0x230   : > { %2089 = vrot.lane.b32.xlu0 %v10547_v53, %s12755_s1 }
 0x231   : > { %2069 = vrot.lane.b32.xlu1 %v10553_v17, %s12817_s4 }
 0x234   : > { %2101 = vrot.lane.b32.xlu0 %v10547_v53, %s12753_s27 }
 0x235   : > { %2081 = vrot.lane.b32.xlu1 %v10553_v17, %s12800_s0 }
 0x238   : > { %2113 = vrot.lane.b32.xlu0 %v10547_v53, %s12856_s28 }
 0x239   : > { %2093 = vrot.lane.b32.xlu1 %v10553_v17, %s12755_s1  ;;  %s12918_s1 = smov 125  }
 0x23c   : > { %2125 = vrot.lane.b32.xlu0 %v10547_v53, %s9792_s3 }
 0x23d   : > { %2105 = vrot.lane.b32.xlu1 %v10553_v17, %s12753_s27  ;;  %s12919_s27 = smov 124  }
 0x240   : > { %2123 = vrot.lane.b32.xlu0 %v10523_v5, %s9792_s3  ;;  %v10678_v5 = vsub.f32 %v10622_v29, %v12760_v43 }
 0x241   : > { %2117 = vrot.lane.b32.xlu1 %v10553_v17, %s12856_s28 }
 0x244   : > { %2137 = vperm.xlu0 %9482, %v2062_v31  }
 0x245   : > { %2127 = vrot.lane.b32.xlu1 %v10525_v8, %s9792_s3 }
 0x249   : > { %2129 = vrot.lane.b32.xlu1 %v10553_v17, %s9792_s3  ;;  %s12834_s3 = smov 1  }
 0x28a   : > { %v2064_v28 = vpop.permute.xlu0 %2063 }
 0x28b   : > { %v2068_v21 = vpop.permute.xlu1 %2067 }
 0x28e   : > { %v10582_v6 = vpop.permute.xlu0 %2075 }
 0x28f   : > { %v10584_v16 = vpop.permute.xlu1 %2079 }
 0x292   : > { %v10589_v30 = vpop.permute.xlu0 %2087 }
 0x293   : > { %v10592_v11 = vpop.permute.xlu1 %2091 }
 0x296   : > { %v10595_v37 = vpop.permute.xlu0 %2099 }
 0x297   : > { %v10601_v56 = vpop.permute.xlu1 %2103 }
 0x29a   : > { %v10609_v44 = vpop.permute.xlu0 %2111 }
 0x29b   : > { %v10617_v51 = vpop.permute.xlu1 %2115 }
 0x29e   : > { %v2078_v25 = vpop.permute.xlu0 %2077 }
 0x29f   : > { %v2085_v63 = vsel %vm674_vm2, %v10582_v6, %v2078_v25  ;;  %v2066_v35 = vpop.permute.xlu1 %2065  ;;  %v2084_v62 = vsel %vm674_vm2, %v2078_v25, %v10584_v16 }
 0x2a0   : > { %v2154_v0 = vand.u32 4294901760, %v2085_v63  ;;  %v2072_v46 = vsel %vm661_vm1, %v2066_v35, %v2068_v21  ;;  %v2073_v14 = vsel %vm661_vm1, %v2064_v28, %v2066_v35  ;;  %v2152_v52 = vand.u32 4294901760, %v2084_v62 }
 0x2a1   : > { %v2150_v10 = vand.u32 4294901760, %v2073_v14  ;;  %v2148_v1 = vand.u32 4294901760, %v2072_v46  ;;  %v10691_v35 = vand.u32 4294901760, %v2226_v27 }
 0x2a2   : > { %v10653_v47 = vsub.f32 %v2085_v63, %v2154_v0  ;;  %v2090_v39 = vpop.permute.xlu0 %2089  ;;  %v10687_v33 = vsub.f32 %v2084_v62, %v2152_v52 }
 0x2a3   : > { %v10661_v24 = vsub.f32 %v2073_v14, %v2150_v10  ;;  %v2096_v32 = vsel %vm687_vm7, %v2090_v39, %v10592_v11  ;;  %v2070_v41 = vpop.permute.xlu1 %2069  ;;  %v10668_v22 = vpack.c.bf16 %v2150_v10, %v2146_v23  ;;  %v2097_v20 = vsel %vm687_vm7, %v10589_v30, %v2090_v39 }
 0x2a4   : > { %v2071_v60 = vsel %vm661_vm1, %v2068_v21, %v2070_v41  ;;  %v12758_v45 = vand.u32 4294901760, %v10653_v47  ;;  %v2158_v59 = vand.u32 4294901760, %v2097_v20  ;;  %v2074_v40 = vsel %vm661_vm1, %v2070_v41, %v2064_v28 }
 0x2a5   : > { %v2771_v53 = vand.u32 4294901760, %v2071_v60  ;;  %v12763_v54 = vand.u32 4294901760, %v10661_v24  ;;  %v2156_v31 = vand.u32 4294901760, %v2096_v32  ;;  %v10684_v7 = vpack.c.bf16 %v2148_v1, %v2144_v13 }
 0x2a6   : > { %v2102_v23 = vpop.permute.xlu0 %2101  ;;  %v10689_v25 = vsub.f32 %v2097_v20, %v2158_v59  ;;  %v10694_v10 = vsub.f32 %v2072_v46, %v2148_v1  ;;  %v2769_v28 = vand.u32 4294901760, %v2074_v40  ;;  %v10706_v39 = vsub.f32 %v10653_v47, %v12758_v45 }
 0x2a7   : > { %v2082_v63 = vpop.permute.xlu1 %2081  ;;  %8588 = vmatprep.subr.bf16.mxu0 %v10684_v7  ;;  %v2108_v13 = vsel %vm700_vm11, %v2102_v23, %v10601_v56  ;;  %v2109_v62 = vsel %vm700_vm11, %v10595_v37, %v2102_v23  ;;  %v10708_v41 = vsub.f32 %v2071_v60, %v2771_v53  ;;  %v10717_v27 = vsub.f32 %v10661_v24, %v12763_v54 }
 0x2a8   : > { %v2162_v46 = vand.u32 4294901760, %v2109_v62  ;;  %8590 = vmatpush1.bf16.msra.mxu0 %v10668_v22  ;;  %v2083_v1 = vsel %vm674_vm2, %v10584_v16, %v2082_v63  ;;  %v10719_v20 = vsub.f32 %v2096_v32, %v2156_v31  ;;  %v10721_v3 = vpack.c.bf16 %v2156_v31, %v2152_v52 }
 0x2a9   : > { %v2775_v23 = vand.u32 4294901760, %v2083_v1  ;;  %v10723_v60 = vpack.c.bf16 %v2158_v59, %v2154_v0  ;;  %v12764_v42 = vand.u32 4294901760, %v10689_v25  ;;  %v10728_v43 = vpack.c.bf16 %v2771_v53, %v2767_v18 }
 0x2aa   : > { %v2114_v45 = vpop.permute.xlu0 %2113  ;;  %v2160_v16 = vand.u32 4294901760, %v2108_v13  ;;  %v10730_v61 = vsub.f32 %v2109_v62, %v2162_v46  ;;  %v2086_v32 = vsel %vm674_vm2, %v2082_v63, %v10582_v6  ;;  %8592 = vmatprep.subr.bf16.mxu0 %v10721_v3  ;;  %v10738_v0 = vpack.c.bf16 %v2769_v28, %v2765_v15 }
 0x2ab   : > { %12860 = vst [vmem:[#allocation11_spill] sm:$0xff] %v10723_v60  ;;  %12861 = vst [vmem:[#allocation12_spill] sm:$0xff] %v10728_v43  ;;  %v2094_v58 = vpop.permute.xlu1 %2093  ;;  %v2120_v8 = vsel %vm713_vm13, %v2114_v45, %v10617_v51  ;;  %v10743_v18 = vsub.f32 %v2074_v40, %v2769_v28  ;;  %v12767_v52 = vand.u32 4294901760, %v10708_v41  ;;  %v10746_v59 = vsub.f32 %v2083_v1, %v2775_v23 }
 0x2ac   : > { %v2121_v6 = vsel %vm713_vm13, %v10609_v44, %v2114_v45  ;;  %8594 = vmatpush1.bf16.msra.mxu0 %v10723_v60  ;;  %8660 = vmatprep.subr.bf16.mxu1 %v10738_v0  ;;  %v2164_v17 = vand.u32 4294901760, %v2120_v8  ;;  %v2095_v53 = vsel %vm687_vm7, %v10592_v11, %v2094_v58  ;;  %v2098_v40 = vsel %vm687_vm7, %v2094_v58, %v10589_v30 }
 0x2ad   : > { %v2166_v15 = vand.u32 4294901760, %v2121_v6  ;;  %v10762_v63 = vsub.f32 %v10689_v25, %v12764_v42  ;;  %v2773_v45 = vand.u32 4294901760, %v2086_v32  ;;  %8662 = vmatpush1.bf16.msra.mxu1 %v10728_v43  ;;  %v2777_v28 = vand.u32 4294901760, %v2098_v40 }
 0x2ae   : > { %v2126_v31 = vpop.permute.xlu0 %2125  ;;  %v2779_v62 = vand.u32 4294901760, %v2095_v53  ;;  %v10765_v54 = vsub.f32 %v2108_v13, %v2160_v16  ;;  %v10784_v13 = vsub.f32 %v10708_v41, %v12767_v52  ;;  %v10788_v11 = vpack.c.bf16 %v2164_v17, %v2160_v16 }
 0x2af   : > { %v2106_v1 = vpop.permute.xlu1 %2105  ;;  %v10768_v14 = vsub.f32 %v2121_v6, %v2166_v15  ;;  %v10774_v42 = vpack.c.bf16 %v2166_v15, %v2162_v46  ;;  %v10790_v58 = vsub.f32 %v2086_v32, %v2773_v45  ;;  %v10792_v46 = vpack.c.bf16 %v2777_v28, %v2773_v45 }
 0x2b0   : > { %v2107_v30 = vsel %vm700_vm11, %v10601_v56, %v2106_v1  ;;  %v10776_v12 = vsub.f32 %v2095_v53, %v2779_v62  ;;  %v2110_v21 = vsel %vm700_vm11, %v2106_v1, %v10595_v37  ;;  %v10786_v6 = vpack.c.bf16 %v2779_v62, %v2775_v23  ;;  %12864 = vst [vmem:[#allocation15_spill] sm:$0xff] %v10788_v11 }
 0x2b1   : > { %12862 = vst [vmem:[#allocation13_spill] sm:$0xff] %v10774_v42  ;;  %v2783_v4 = vand.u32 4294901760, %v2107_v30  ;;  %12865 = vst [vmem:[#allocation16_spill] sm:$0xff] %v10792_v46  ;;  %v12866_v1 = vand.u32 4294901760, %v10730_v61  ;;  %v10802_v23 = vsub.f32 %v2120_v8, %v2164_v17  ;;  %v2781_v62 = vand.u32 4294901760, %v2110_v21  ;;  %8596 = vmatprep.subr.bf16.mxu0 %v10788_v11  ;;  %8664 = vmatprep.subr.bf16.mxu1 %v10792_v46 }
 0x2b2   : > { %12863 = vst [vmem:[#allocation14_spill] sm:$0xff] %v10786_v6  ;;  %v2124_v56 = vpop.permute.xlu0 %2123  ;;  %v12867_v32 = vand.u32 4294901760, %v10746_v59  ;;  %8598 = vmatpush1.bf16.msra.mxu0 %v10774_v42  ;;  %8666 = vmatpush1.bf16.msra.mxu1 %v10786_v6  ;;  %v12869_v9 = vand.u32 4294901760, %v10694_v10  ;;  %v2256_v42 = vand.u32 4294901760, %v10717_v27  ;;  %v12872_v60 = vand.u32 4294901760, %v10776_v12 }
 0x2b3   : > { %v2133_v15 = vsel %vm726_vm6, %v2124_v56, %v2126_v31  ;;  %v2118_v53 = vpop.permute.xlu1 %2117  ;;  %v10800_v52 = vsub.f32 %v10730_v61, %v12866_v1  ;;  %v10820_v1 = vsub.f32 %v2107_v30, %v2783_v4  ;;  %v10838_v6 = vsub.f32 %v2110_v21, %v2781_v62 }
 0x2b4   : > { %v10809_v45 = vsub.f32 %v10746_v59, %v12867_v32  ;;  %v2119_v8 = vsel %vm713_vm13, %v10617_v51, %v2118_v53  ;;  %v2122_v17 = vsel %vm713_vm13, %v2118_v53, %v10609_v44  ;;  %v10823_v32 = vand.u32 4294901760, %v2133_v15 }
 0x2b5   : > { %v2785_v16 = vand.u32 4294901760, %v2122_v17  ;;  %v2787_v2 = vand.u32 4294901760, %v2119_v8  ;;  %v2249_v36 = vsub.f32 %v10694_v10, %v12869_v9  ;;  %v12870_v44 = vand.u32 4294901760, %v10768_v14 }
 0x2b6   : > { %12868 = vst [vmem:[#allocation17_spill] sm:$0xff] %v10823_v32  ;;  %v10836_v53 = vsub.f32 %v2098_v40, %v2777_v28  ;;  %v10845_v9 = vsub.f32 %v10776_v12, %v12872_v60  ;;  %v10860_v28 = vsub.f32 %v2133_v15, %v10823_v32 }
 0x2b7   : > { %v2128_v37 = vpop.permute.xlu1 %2127  ;;  %v10834_v30 = vsub.f32 %v10768_v14, %v12870_v44  ;;  %v10840_v46 = vpack.c.bf16 %v2787_v2, %v2783_v4  ;;  %v10849_v11 = vpack.c.bf16 %v2785_v16, %v2781_v62  ;;  %v2250_v51 = vand.u32 4294901760, %v2249_v36 }
 0x2b8   : > { %v2132_v27 = vsel %vm726_vm6, %v2126_v31, %v2128_v37  ;;  %v10852_v43 = vsub.f32 %v2119_v8, %v2787_v2  ;;  %v12873_v4 = vand.u32 4294901760, %v10687_v33  ;;  %v10862_v60 = vsub.f32 %v2122_v17, %v2785_v16 }
 0x2b9   : > { %12871 = vst [vmem:[#allocation18_spill] sm:$0xff] %v10840_v46  ;;  %v10854_v40 = vand.u32 4294901760, %v2132_v27  ;;  %8668 = vmatprep.subr.bf16.mxu1 %v10849_v11  ;;  %v12874_v36 = vand.u32 4294901760, %v10631_v55  ;;  %v12875_v2 = vand.u32 4294901760, %v10719_v20  ;;  %v12876_v16 = vand.u32 4294901760, %v10651_v19 }
 0x2ba   : > { %v2261_v21 = vsub.f32 %v10687_v33, %v12873_v4  ;;  %8670 = vmatpush1.bf16.msra.mxu1 %v10840_v46  ;;  %v2859_v55 = vand.u32 4294901760, %v10678_v5  ;;  %v12787_v19 = vand.u32 4294901760, %v10743_v18  ;;  %v2280_v5 = vand.u32 4294901760, %v10762_v63 }
 0x2bb   : > { %v2130_v31 = vpop.permute.xlu1 %2129  ;;  %v8601_v62 = vpack.c.bf16 %v2256_v42, %v12874_v36  ;;  %v2273_v8 = vsub.f32 %v10719_v20, %v12875_v2  ;;  %2169 = vmatprep.subr.mxu0 %v10854_v40  ;;  %v8599_v17 = vpack.c.bf16 %v2250_v51, %v12876_v16  ;;  %v10898_v16 = vsub.f32 %v2132_v27, %v10854_v40 }
 0x2bc   : > { %v2131_v4 = vsel %vm726_vm6, %v2128_v37, %v2130_v31  ;;  %v2134_v15 = vsel %vm726_vm6, %v2130_v31, %v2124_v56  ;;  %2171 = vmatpush1.msra.mxu0 %v10823_v32  ;;  %v2262_v2 = vand.u32 4294901760, %v2261_v21  ;;  %v12879_v37 = vand.u32 4294901760, %v10820_v1 }
 0x2bd   : > { %v10879_v42 = vand.u32 4294901760, %v2134_v15  ;;  %v10881_v36 = vand.u32 4294901760, %v2131_v4  ;;  %v2274_v44 = vand.u32 4294901760, %v2273_v8  ;;  %v12788_v56 = vand.u32 4294901760, %v10852_v43  ;;  %8600 = vmatprep.subr.bf16.mxu0 %v8599_v17  ;;  %2228 = vmatmul.mubr.f32.vlgmr.msra.gmra.mrb[2].mxu0 %v10691_v35 }
 0x2be   : > { %v10887_v48 = vsub.f32 %v10820_v1, %v12879_v37  ;;  %8602 = vmatpush1.bf16.msra.mxu0 %v8601_v62  ;;  %v2268_v8 = vand.u32 4294901760, %v10706_v39  ;;  %v2870_v17 = vsub.f32 %v10743_v18, %v12787_v19  ;;  %v2877_v63 = vand.u32 4294901760, %v10784_v13 }
 0x2bf   : > { %12877 = vst [vmem:[#allocation19_spill] sm:$0xff] %v10879_v42  ;;  %12878 = vst [vmem:[#allocation20_spill] sm:$0xff] %v10881_v36  ;;  %v8603_v21 = vpack.c.bf16 %v2274_v44, %v2262_v2  ;;  %2790 = vmatprep.subr.mxu1 %v10879_v42  ;;  %v12789_v37 = vand.u32 4294901760, %v10790_v58  ;;  %v12880_v51 = vmov 0.0   ;;  %v12794_v39 = vand.u32 4294901760, %v10836_v53 }
 0x2c0   : > { %2792 = vmatpush1.msra.mxu1 %v10881_v36  ;;  %2368 = vmatprep.mubr.f32.mxu0 %v12880_v51  ;;  %v8605_v44 = vpack.c.bf16 %v2280_v5, %v2268_v8  ;;  %v12797_v27 = vand.u32 4294901760, %v10765_v54  ;;  %v2296_v62 = vand.u32 4294901760, %v10802_v23  ;;  %v2924_v2 = vsub.f32 %v10852_v43, %v12788_v56 }
 0x2c1   : > { %8604 = vmatprep.subr.bf16.mxu0 %v8603_v21  ;;  %2849 = vmatmul.mubr.f32.vlgmr.msra.gmra.mrb[2].mxu1 %v10691_v35  ;;  %v10915_v13 = vsub.f32 %v2134_v15, %v10879_v42  ;;  %v2871_v19 = vand.u32 4294901760, %v2870_v17  ;;  %v2882_v5 = vsub.f32 %v10790_v58, %v12789_v37  ;;  %v10922_v35 = vsub.f32 %v2131_v4, %v10881_v36 }
 0x2c2   : > { %2989 = vmatprep.mubr.f32.mxu1 %v12880_v51  ;;  %8606 = vmatpush1.bf16.msra.mxu0 %v8605_v44  ;;  %v2894_v21 = vsub.f32 %v10836_v53, %v12794_v39  ;;  %v2285_v15 = vsub.f32 %v10765_v54, %v12797_v27  ;;  %v2297_v8 = vsub.f32 %v10802_v23, %v2296_v62  ;;  %v12881_v56 = vand.u32 4294901760, %v10659_v49 }
 0x2c3   : > { %v8671_v17 = vpack.c.bf16 %v2871_v19, %v2859_v55  ;;  %v2883_v31 = vand.u32 4294901760, %v2882_v5  ;;  %v2304_v4 = vand.u32 4294901760, %v10834_v30  ;;  %v2901_v39 = vand.u32 4294901760, %v10845_v9 }
 0x2c4   : > { %v8673_v37 = vpack.c.bf16 %v2877_v63, %v12881_v56  ;;  %v2895_v44 = vand.u32 4294901760, %v2894_v21  ;;  %v2286_v36 = vand.u32 4294901760, %v2285_v15  ;;  %v2298_v42 = vand.u32 4294901760, %v2297_v8 }
 0x2c5   : > { %8672 = vmatprep.subr.bf16.mxu1 %v8671_v17  ;;  %v2292_v32 = vand.u32 4294901760, %v10800_v52  ;;  %v2308_v27 = vand.u32 4294901760, %v10898_v16  ;;  %v2905_v46 = vand.u32 4294901760, %v10838_v6  ;;  %v12882_v55 = vand.u32 4294901760, %v10862_v60 }
 0x2c6   : > { %v12883_v56 = vand.u32 4294901760, %v10860_v28  ;;  %8674 = vmatpush1.bf16.msra.mxu1 %v8673_v37  ;;  %v8675_v19 = vpack.c.bf16 %v2895_v44, %v2883_v31  ;;  %v8607_v63 = vpack.c.bf16 %v2298_v42, %v2286_v36  ;;  %v2889_v9 = vand.u32 4294901760, %v10809_v45 }
 0x2c7   : > { %v2918_v49 = vsub.f32 %v10862_v60, %v12882_v55  ;;  %v8609_v5 = vpack.c.bf16 %v2304_v4, %v2292_v32  ;;  %v2309_v52 = vsub.f32 %v10898_v16, %v2308_v27  ;;  %v2906_v21 = vsub.f32 %v10838_v6, %v2905_v46 }
 0x2c8   : > { %v2315_v30 = vsub.f32 %v10860_v28, %v12883_v56  ;;  %v2925_v8 = vand.u32 4294901760, %v2924_v2  ;;  %v2935_v17 = vand.u32 4294901760, %v10922_v35  ;;  %8676 = vmatprep.subr.bf16.mxu1 %v8675_v19  ;;  %8608 = vmatprep.subr.bf16.mxu0 %v8607_v63  ;;  %v8677_v37 = vpack.c.bf16 %v2901_v39, %v2889_v9 }
 0x2c9   : > { %v2919_v15 = vand.u32 4294901760, %v2918_v49  ;;  %v2929_v42 = vand.u32 4294901760, %v10915_v13  ;;  %8610 = vmatpush1.bf16.msra.mxu0 %v8609_v5  ;;  %v2310_v45 = vand.u32 4294901760, %v2309_v52  ;;  %v2907_v32 = vand.u32 4294901760, %v2906_v21 }
 0x2ca   : > { %8678 = vmatpush1.bf16.msra.mxu1 %v8677_v37  ;;  %v2913_v36 = vand.u32 4294901760, %v10887_v48  ;;  %v2316_v2 = vand.u32 4294901760, %v2315_v30  ;;  %v2936_v44 = vsub.f32 %v10922_v35, %v2935_v17  ;;  %v8611_v55 = vpack.c.bf16 %v10694_v10, %v10607_v50 }
 0x2cb   : > { %v2930_v31 = vsub.f32 %v10915_v13, %v2929_v42  ;;  %2311 = vmatprep.subr.mxu0 %v2310_v45  ;;  %v8679_v4 = vpack.c.bf16 %v2919_v15, %v2907_v32  ;;  %v8613_v48 = vpack.c.bf16 %v10661_v24, %v10598_v34  ;;  %v8615_v56 = vpack.c.bf16 %v10719_v20, %v10687_v33  ;;  %v12884_v45 = vld [vmem:[#allocation12_spill] sm:$0xff]  ;;  %v12885_v32 = vld [vmem:[#allocation11_spill] sm:$0xff] }
 0x2cc   : > { %v8681_v39 = vpack.c.bf16 %v2925_v8, %v2913_v36  ;;  %v2937_v30 = vand.u32 4294901760, %v2936_v44  ;;  %v8683_v19 = vpack.c.bf16 %v10743_v18, %v10622_v29  ;;  %v8617_v63 = vpack.c.bf16 %v10689_v25, %v10653_v47  ;;  %v12886_v36 = vld [vmem:[#allocation16_spill] sm:$0xff]  ;;  %v12890_v44 = vld [vmem:[#allocation18_spill] sm:$0xff] }
 0x2cd   : > { %8680 = vmatprep.subr.bf16.mxu1 %v8679_v4  ;;  %2317 = vmatpush1.msra.mxu0 %v2316_v2  ;;  %v2931_v49 = vand.u32 4294901760, %v2930_v31  ;;  %v8685_v9 = vpack.c.bf16 %v10708_v41, %v10614_v38  ;;  %v8619_v5 = vpack.c.bf16 %v10802_v23, %v10765_v54  ;;  %v8687_v52 = vpack.c.bf16 %v10836_v53, %v10790_v58  ;;  %v12887_v31 = vld [vmem:[#allocation15_spill] sm:$0xff]  ;;  %v12888_v4 = vld [vmem:[#allocation14_spill] sm:$0xff]  ;;  %v12889_v2 = vld [vmem:[#allocation13_spill] sm:$0xff] }
 0x2ce   : > { %8682 = vmatpush1.bf16.msra.mxu1 %v8681_v39  ;;  %8612 = vmatprep.subr.bf16.mxu0 %v8611_v55  ;;  %v8621_v21 = vpack.c.bf16 %v10768_v14, %v10730_v61  ;;  %v8689_v15 = vpack.c.bf16 %v10776_v12, %v10746_v59  ;;  %v8691_v8 = vpack.c.bf16 %v10862_v60, %v10838_v6  ;;  %v12892_v39 = vand.u32 4294901760, %v10694_v10 }
 0x2cf   : > { %2932 = vmatprep.subr.mxu1 %v2931_v49  ;;  %2370 = vmatmul.mubr.f32.vlgmr.msra.gmra.mrb[2].mxu0 %v10604_v57  ;;  %v8693_v37 = vpack.c.bf16 %v10852_v43, %v10820_v1  ;;  %v12893_v49 = vld [vmem:[#allocation17_spill] sm:$0xff]  ;;  %v12900_v10 = vand.u32 4294901760, %v10622_v29  ;;  %v12907_v29 = vand.u32 4294901760, %v10790_v58  ;;  %v12912_v58 = vand.u32 4294901760, %v10730_v61 }
 0x2d0   : > { %8614 = vmatpush1.bf16.msra.mxu0 %v8613_v48  ;;  %2468 = vmatprep.mubr.f32.mxu0 %v12880_v51  ;;  %v12894_v48 = vld [vmem:[#allocation19_spill] sm:$0xff]  ;;  %v12917_v61 = vand.u32 4294901760, %v10860_v28  ;;  %vm6543_vm6 = vcmask 637952  }
 0x2d1   : > { %8616 = vmatprep.subr.bf16.mxu0 %v8615_v56  ;;  %v12895_v56 = vand.u32 4294901760, %v10598_v34  ;;  %v12902_v34 = vld [vmem:[#allocation20_spill] sm:$0xff] }
 0x2d2   : > { %2938 = vmatpush1.msra.mxu1 %v2937_v30  ;;  %v12896_v30 = vand.u32 4294901760, %v10661_v24  ;;  %v12903_v24 = vand.u32 4294901760, %v10614_v38 }
 0x2d3   : > { %8684 = vmatprep.subr.bf16.mxu1 %v8683_v19  ;;  %2991 = vmatmul.mubr.f32.vlgmr.msra.gmra.mrb[2].mxu1 %v10604_v57 }
 0x2d4   : > { %8618 = vmatpush1.bf16.msra.mxu0 %v8617_v63  ;;  %8686 = vmatpush1.bf16.msra.mxu1 %v8685_v9  ;;  %v8637_v19 = vpack.c.bf16 %v12896_v30, %v12895_v56  ;;  %v12897_v63 = vld [vmem:[#allocation10_spill] sm:$0xff]  ;;  %v12898_v9 = vand.u32 4294901760, %v10687_v33  ;;  %v12905_v33 = vand.u32 4294901760, %v10653_v47  ;;  %v12910_v47 = vand.u32 4294901760, %v10746_v59 }
 0x2d5   : > { %8620 = vmatprep.subr.bf16.mxu0 %v8619_v5  ;;  %8688 = vmatprep.subr.bf16.mxu1 %v8687_v52  ;;  %v12899_v5 = vand.u32 4294901760, %v10719_v20  ;;  %v12901_v52 = vand.u32 4294901760, %v10743_v18  ;;  %v12906_v20 = vand.u32 4294901760, %v10689_v25  ;;  %v12908_v18 = vand.u32 4294901760, %v10836_v53 }
 0x2d6   : > { %3089 = vmatprep.mubr.f32.mxu1 %v12880_v51  ;;  %v12911_v25 = vand.u32 4294901760, %v10776_v12  ;;  %v12913_v53 = vand.u32 4294901760, %v10768_v14  ;;  %v12915_v59 = vand.u32 4294901760, %v10820_v1  ;;  %v12916_v12 = vand.u32 4294901760, %v10852_v43 }
 0x2d8   : > { %8622 = vmatpush1.bf16.msra.mxu0 %v8621_v21  ;;  %8690 = vmatpush1.bf16.msra.mxu1 %v8689_v15  ;;  %v8707_v21 = vpack.c.bf16 %v12901_v52, %v12900_v10  ;;  %v12904_v15 = vand.u32 4294901760, %v10708_v41  ;;  %v8713_v41 = vpack.c.bf16 %v12911_v25, %v12910_v47 }
 0x2d9   : > { %2414 = vmatprep.subr.mxu0 %v10898_v16  ;;  %8692 = vmatprep.subr.bf16.mxu1 %v8691_v8 }
 0x2da   : > { %v8709_v8 = vpack.c.bf16 %v12904_v15, %v12903_v24 }
 0x2dc   : > { %2417 = vmatpush1.msra.mxu0 %v10860_v28  ;;  %8694 = vmatpush1.bf16.msra.mxu1 %v8693_v37  ;;  %v8641_v37 = vpack.c.bf16 %v12906_v20, %v12905_v33 }
 0x2dd   : > { %8624 = vmatprep.subr.bf16.mxu0 %v10684_v7  ;;  %3035 = vmatprep.subr.mxu1 %v10915_v13 }
 0x2de   : > { %2471 = vmatmul.mubr.f32.vlgmr.msra.gmra.mrb[2].mxu0 %v10625_v26 }
 0x2df   : > { %8626 = vmatpush1.bf16.msra.mxu0 %v10668_v22  ;;  %2555 = vmatprep.mubr.f32.mxu0 %v12880_v51 }
 0x2e0   : > { %8628 = vmatprep.subr.bf16.mxu0 %v10721_v3  ;;  %3038 = vmatpush1.msra.mxu1 %v10922_v35  ;;  %v3395_v35 = vld [vmem:[%s12920_s9] sm:$0xff]  ;;  %s9798_s9 = smov 89  }
 0x2e1   : > { %8696 = vmatprep.subr.bf16.mxu1 %v10738_v0  ;;  %3092 = vmatmul.mubr.f32.vlgmr.msra.gmra.mrb[2].mxu1 %v10625_v26  ;;  %v12891_v26 = vand.u32 4294901760, %v10607_v50  ;;  %v8639_v50 = vpack.c.bf16 %v12899_v5, %v12898_v9 }
 0x2e2   : > { %8698 = vmatpush1.bf16.msra.mxu1 %v12884_v45  ;;  %3176 = vmatprep.mubr.f32.mxu1 %v12880_v51 }
 0x2e3   : > { %8630 = vmatpush1.bf16.msra.mxu0 %v12885_v32  ;;  %8700 = vmatprep.subr.bf16.mxu1 %v12886_v36  ;;  %v8635_v55 = vpack.c.bf16 %v12892_v39, %v12891_v26  ;;  %v8711_v26 = vpack.c.bf16 %v12908_v18, %v12907_v29  ;;  %v12909_v39 = vand.u32 4294901760, %v10765_v54  ;;  %v12914_v54 = vand.u32 4294901760, %v10862_v60 }
 0x2e4   : > { %8632 = vmatprep.subr.bf16.mxu0 %v12887_v31 }
 0x2e5   : > { %v8643_v38 = vpack.c.bf16 %v2296_v62, %v12909_v39  ;;  %v8715_v23 = vpack.c.bf16 %v12914_v54, %v2905_v46  ;;  %v8717_v62 = vpack.c.bf16 %v12916_v12, %v12915_v59 }
 0x2e6   : > { %8702 = vmatpush1.bf16.msra.mxu1 %v12888_v4 }
 0x2e7   : > { %8634 = vmatpush1.bf16.msra.mxu0 %v12889_v2  ;;  %8704 = vmatprep.subr.bf16.mxu1 %v10849_v11 }
 0x2e8   : > { %2502 = vmatprep.subr.mxu0 %v10854_v40 }
 0x2ea   : > { %8706 = vmatpush1.bf16.msra.mxu1 %v12890_v44 }
 0x2eb   : > { %2504 = vmatpush1.msra.mxu0 %v12893_v49  ;;  %3123 = vmatprep.subr.mxu1 %v12894_v48 }
 0x2ec   : > { %8636 = vmatprep.subr.bf16.mxu0 %v8635_v55  ;;  %2559 = vmatmul.mubr.f32.vlgmr.msra.gmra.mrb[2].mxu0 %v12897_v63  ;;  %v8645_v55 = vpack.c.bf16 %v12913_v53, %v12912_v58 }
 0x2ed   : > { %8638 = vmatpush1.bf16.msra.mxu0 %v8637_v19  ;;  %2671 = vmatprep.mubr.f32.mxu0 %v12880_v51 }
 0x2ee   : > { %8640 = vmatprep.subr.bf16.mxu0 %v8639_v50  ;;  %3125 = vmatpush1.msra.mxu1 %v12902_v34 }
 0x2ef   : > { %8708 = vmatprep.subr.bf16.mxu1 %v8707_v21  ;;  %3180 = vmatmul.mubr.f32.vlgmr.msra.gmra.mrb[2].mxu1 %v12897_v63 }
 0x2f0   : > { %8710 = vmatpush1.bf16.msra.mxu1 %v8709_v8  ;;  %3292 = vmatprep.mubr.f32.mxu1 %v12880_v51 }
 0x2f1   : > { %8642 = vmatpush1.bf16.msra.mxu0 %v8641_v37  ;;  %8712 = vmatprep.subr.bf16.mxu1 %v8711_v26 }
 0x2f2   : > { %8644 = vmatprep.subr.bf16.mxu0 %v8643_v38 }
 0x2f4   : > { %8714 = vmatpush1.bf16.msra.mxu1 %v8713_v41 }
 0x2f5   : > { %8646 = vmatpush1.bf16.msra.mxu0 %v8645_v55  ;;  %8716 = vmatprep.subr.bf16.mxu1 %v8715_v23 }
 0x2f6   : > { %2616 = vmatprep.subr.mxu0 %v2308_v27 }
 0x2f8   : > { %8718 = vmatpush1.bf16.msra.mxu1 %v8717_v62 }
 0x2f9   : > { %2620 = vmatpush1.msra.mxu0 %v12917_v61  ;;  %3237 = vmatprep.subr.mxu1 %v2929_v42  ;;  %v3394_v42 = vld [vmem:[%s12921_s8] sm:$0xff]  ;;  %s12830_s8 = smov 39  }
 0x2fa   : > { %8648 = vmatprep.subr.bf16.mxu0 %v10684_v7  ;;  %2673 = vmatmul.mubr.f32.vlgmr.msra.gmra.mrb[2].mxu0 %v10604_v57 }
 0x2fb   : > { %8650 = vmatpush1.bf16.msra.mxu0 %v10668_v22  ;;  %2757 = vmatprep.mubr.f32.mxu0 %v12880_v51 }
 0x2fc   : > { %8652 = vmatprep.subr.bf16.mxu0 %v10721_v3  ;;  %3241 = vmatpush1.msra.mxu1 %v2935_v17  ;;  %v2138_v3 = vpop.permute.xlu0 %2137 }
 0x2fd   : > { %8720 = vmatprep.subr.bf16.mxu1 %v10738_v0  ;;  %3294 = vmatmul.mubr.f32.vlgmr.msra.gmra.mrb[2].mxu1 %v10604_v57 }
 0x2fe   : > { %8722 = vmatpush1.bf16.msra.mxu1 %v12884_v45  ;;  %3378 = vmatprep.mubr.f32.mxu1 %v12880_v51 }
 0x2ff   : > { %8654 = vmatpush1.bf16.msra.mxu0 %v12885_v32  ;;  %8724 = vmatprep.subr.bf16.mxu1 %v12886_v36  ;;  %v3451_v36 = vsel %vm3449_vm5, %v3394_v42, 0 }
 0x300   : > { %8656 = vmatprep.subr.bf16.mxu0 %v12887_v31 }
 0x302   : > { %8726 = vmatpush1.bf16.msra.mxu1 %v12888_v4 }
 0x303   : > { %8658 = vmatpush1.bf16.msra.mxu0 %v12889_v2  ;;  %8728 = vmatprep.subr.bf16.mxu1 %v10849_v11 }
 0x304   : > { %2704 = vmatprep.subr.mxu0 %v10854_v40 }
 0x306   : > { %8730 = vmatpush1.bf16.msra.mxu1 %v12890_v44 }
 0x307   : > { %2706 = vmatpush1.msra.mxu0 %v12893_v49  ;;  %3325 = vmatprep.subr.mxu1 %v12894_v48  ;;  %v11148_v49 = vand.u32 4294901760, %v3451_v36 }
 0x308   : > { %2759 = vmatmul.mubr.f32.vlgmr.msra.gmra.mrb[2].mxu0 %v10604_v57 }
 0x309   : > { %3527 = vmatprep.mubr.f32.mxu0 %v12880_v51  ;;  %v11165_v5 = vsub.f32 %v3451_v36, %v11148_v49 }
 0x30a   : > { %3327 = vmatpush1.msra.mxu1 %v12902_v34  ;;  %v12922_v34 = vld [vmem:[#allocation9_spill] sm:$0xff] }
 0x30b   : > { %3380 = vmatmul.mubr.f32.vlgmr.msra.gmra.mrb[2].mxu1 %v10604_v57  ;;  %v11175_v20 = vand.u32 4294901760, %v11165_v5  ;;  %vm7189_vm4 = vcmp.lt.s32.totalorder %v12922_v34, 4  ;;  %vm7182_vm5 = vcmp.lt.s32.totalorder %v12922_v34, 5 }
 0x30c   : > { %4096 = vmatprep.mubr.f32.mxu1 %v12880_v51 }
 0x30d   : > { %v3531_v59 = vsub.f32 %v11165_v5, %v11175_v20 }
 0x3db   : > { %v2760_v43 = vpop.f32.mrb[2].mxu0 }
 0x3dc   : > { %v9297_v22 = vadd.f32 %v2760_v43, %v2138_v3  ;;  %v2762_v7 = vpop.f32.mrb[3].mxu0 }
 0x3dd   : > { %v9298_v28 = vadd.f32 %v2762_v7, %v2138_v3 }
 0x3de   : > { %v3386_v14 = vmul.f32 0.2, %v9297_v22  ;;  %v3381_v0 = vpop.f32.mrb[2].mxu1 }
 0x3df   : > { %v9299_v11 = vadd.f32 %v3381_v0, %v2138_v3  ;;  %v3383_v6 = vpop.f32.mrb[3].mxu1  ;;  %v3387_v60 = vmul.f32 0.2, %v9298_v28 }
 0x3e0   : > { %v11098_v46 = vmax.f32 %v9297_v22, %v3386_v14  ;;  %v9300_v57 = vadd.f32 %v3383_v6, %v2138_v3 }
 0x3e1   : > { %v3388_v1 = vmul.f32 0.2, %v9299_v11  ;;  %v11112_v27 = vmax.f32 %v9298_v28, %v3387_v60  ;;  %v11229_v60 = vand.u32 4294901760, %v3531_v59 }
 0x3e2   : > { %3396 = vrot.lane.b32.xlu1 %v11098_v46, %s12817_s4  ;;  %v3389_v16 = vmul.f32 0.2, %v9300_v57  ;;  %v3455_v32 = vand.u32 4294901760, %v11098_v46 }
 0x3e3   : > { %v11102_v40 = vmax.f32 %v9299_v11, %v3388_v1  ;;  %v3453_v4 = vand.u32 4294901760, %v11112_v27 }
 0x3e4   : > { %v11118_v13 = vmax.f32 %v9300_v57, %v3389_v16  ;;  %v11151_v56 = vsub.f32 %v11098_v46, %v3455_v32 }
 0x3e5   : > { %3400 = vrot.lane.b32.xlu0 %v11102_v40, %s12817_s4  ;;  %v4024_v2 = vand.u32 4294901760, %v11102_v40  ;;  %v11156_v19 = vsub.f32 %v11112_v27, %v3453_v4 }
 0x3e6   : > { %3408 = vrot.lane.b32.xlu1 %v11098_v46, %s12800_s0  ;;  %v4022_v44 = vand.u32 4294901760, %v11118_v13  ;;  %v12808_v10 = vand.u32 4294901760, %v11151_v56 }
 0x3e7   : > { %v11159_v63 = vsub.f32 %v11102_v40, %v4024_v2  ;;  %v12811_v21 = vand.u32 4294901760, %v11156_v19 }
 0x3e8   : > { %v11162_v9 = vsub.f32 %v11118_v13, %v4022_v44  ;;  %v11181_v18 = vsub.f32 %v11151_v56, %v12808_v10 }
 0x3e9   : > { %3412 = vrot.lane.b32.xlu0 %v11102_v40, %s12800_s0  ;;  %v12804_v8 = vand.u32 4294901760, %v11159_v63  ;;  %v11190_v25 = vsub.f32 %v11156_v19, %v12811_v21 }
 0x3ea   : > { %3420 = vrot.lane.b32.xlu1 %v11098_v46, %s12918_s1  ;;  %v12805_v37 = vand.u32 4294901760, %v11162_v9  ;;  %v3549_v11 = vand.u32 4294901760, %v11181_v18 }
 0x3eb   : > { %v11199_v55 = vsub.f32 %v11159_v63, %v12804_v8  ;;  %v3543_v1 = vand.u32 4294901760, %v11190_v25 }
 0x3ec   : > { %v11210_v12 = vsub.f32 %v11162_v9, %v12805_v37 }
 0x3ed   : > { %3424 = vrot.lane.b32.xlu0 %v11102_v40, %s12918_s1 }
 0x3ee   : > { %3398 = vrot.lane.b32.xlu1 %v11112_v27, %s12817_s4 }
 0x3f1   : > { %3402 = vrot.lane.b32.xlu0 %v11118_v13, %s12817_s4 }
 0x3f2   : > { %3410 = vrot.lane.b32.xlu1 %v11112_v27, %s12800_s0 }
 0x3f5   : > { %3414 = vrot.lane.b32.xlu0 %v11118_v13, %s12800_s0  ;;  %s12942_s0 = smov 126  }
 0x3f6   : > { %3422 = vrot.lane.b32.xlu1 %v11112_v27, %s12918_s1 }
 0x3f9   : > { %3426 = vrot.lane.b32.xlu0 %v11118_v13, %s12918_s1 }
 0x3fa   : > { %3434 = vrot.lane.b32.xlu1 %v11112_v27, %s12919_s27 }
 0x3fd   : > { %3436 = vrot.lane.b32.xlu0 %v11102_v40, %s12919_s27 }
 0x3fe   : > { %3432 = vrot.lane.b32.xlu1 %v11098_v46, %s12919_s27 }
 0x401   : > { %3438 = vrot.lane.b32.xlu0 %v11118_v13, %s12919_s27 }
 0x402   : > { %3446 = vperm.xlu1 %9483, %v3395_v35  }
 0x454   : > { %v3397_v17 = vpop.permute.xlu1 %3396 }
 0x457   : > { %v3401_v45 = vpop.permute.xlu0 %3400 }
 0x458   : > { %v3409_v31 = vpop.permute.xlu1 %3408 }
 0x45b   : > { %v3413_v48 = vpop.permute.xlu0 %3412 }
 0x45c   : > { %v11153_v30 = vpop.permute.xlu1 %3420 }
 0x45f   : > { %v3425_v50 = vpop.permute.xlu0 %3424 }
 0x460   : > { %v3399_v52 = vpop.permute.xlu1 %3398 }
 0x461   : > { %v3405_v24 = vsel %vm661_vm1, %v3399_v52, %v3401_v45  ;;  %v3406_v15 = vsel %vm661_vm1, %v3397_v17, %v3399_v52 }
 0x462   : > { %v3459_v33 = vand.u32 4294901760, %v3406_v15  ;;  %v3457_v26 = vand.u32 4294901760, %v3405_v24 }
 0x463   : > { %v3403_v29 = vpop.permute.xlu0 %3402 }
 0x464   : > { %v11183_v39 = vsub.f32 %v3406_v15, %v3459_v33  ;;  %v3404_v38 = vsel %vm661_vm1, %v3401_v45, %v3403_v29  ;;  %v3411_v47 = vpop.permute.xlu1 %3410  ;;  %v3407_v41 = vsel %vm661_vm1, %v3403_v29, %v3397_v17  ;;  %v11201_v54 = vpack.c.bf16 %v3459_v33, %v3455_v32 }
 0x465   : > { %v4028_v58 = vand.u32 4294901760, %v3404_v38  ;;  %v3418_v53 = vsel %vm674_vm2, %v3409_v31, %v3411_v47  ;;  %v3417_v23 = vsel %vm674_vm2, %v3411_v47, %v3413_v48  ;;  %v4026_v61 = vand.u32 4294901760, %v3407_v41 }
 0x466   : > { %v12806_v62 = vand.u32 4294901760, %v11183_v39  ;;  %v3463_v43 = vand.u32 4294901760, %v3418_v53  ;;  %v11215_v7 = vsub.f32 %v3405_v24, %v3457_v26  ;;  %v11217_v14 = vpack.c.bf16 %v3457_v26, %v3453_v4 }
 0x467   : > { %v11213_v3 = vsub.f32 %v3404_v38, %v4028_v58  ;;  %v3415_v22 = vpop.permute.xlu0 %3414  ;;  %v3461_v6 = vand.u32 4294901760, %v3417_v23  ;;  %v11224_v28 = vpack.c.bf16 %v4028_v58, %v4024_v2  ;;  %v11237_v13 = vsub.f32 %v3407_v41, %v4026_v61 }
 0x468   : > { %v3423_v0 = vpop.permute.xlu1 %3422  ;;  %v11220_v46 = vsub.f32 %v3418_v53, %v3463_v43  ;;  %8732 = vmatprep.subr.bf16.mxu0 %v11217_v14  ;;  %v3416_v57 = vsel %vm674_vm2, %v3413_v48, %v3415_v22  ;;  %v11235_v27 = vsub.f32 %v11183_v39, %v12806_v62  ;;  %v3419_v17 = vsel %vm674_vm2, %v3415_v22, %v3409_v31 }
 0x469   : > { %v12802_v35 = vand.u32 4294901760, %v11213_v3  ;;  %8734 = vmatpush1.bf16.msra.mxu0 %v11201_v54  ;;  %v12810_v45 = vand.u32 4294901760, %v11215_v7  ;;  %v3429_v32 = vsel %vm687_vm7, %v3423_v0, %v3425_v50  ;;  %v3430_v36 = vsel %vm687_vm7, %v11153_v30, %v3423_v0 }
 0x46a   : > { %v11249_v4 = vpack.c.bf16 %v4026_v61, %v4022_v44  ;;  %v11251_v48 = vsub.f32 %v3417_v23, %v3461_v6  ;;  %v12803_v52 = vand.u32 4294901760, %v11220_v46  ;;  %v4032_v24 = vand.u32 4294901760, %v3416_v57 }
 0x46b   : > { %v3427_v42 = vpop.permute.xlu0 %3426  ;;  %v3465_v15 = vand.u32 4294901760, %v3429_v32  ;;  %v4030_v31 = vand.u32 4294901760, %v3419_v17  ;;  %v3467_v33 = vand.u32 4294901760, %v3430_v36  ;;  %v3561_v44 = vand.u32 4294901760, %v11235_v27 }
 0x46c   : > { %v3435_v2 = vpop.permute.xlu1 %3434  ;;  %8780 = vmatprep.subr.bf16.mxu1 %v11249_v4  ;;  %v3428_v29 = vsel %vm687_vm7, %v3425_v50, %v3427_v42  ;;  %v3431_v26 = vsel %vm687_vm7, %v3427_v42, %v11153_v30  ;;  %v12815_v38 = vand.u32 4294901760, %v11237_v13  ;;  %v11265_v47 = vsub.f32 %v11213_v3, %v12802_v35 }
 0x46d   : > { %v11267_v41 = vsub.f32 %v3429_v32, %v3465_v15  ;;  %8782 = vmatpush1.bf16.msra.mxu1 %v11224_v28  ;;  %v11270_v53 = vpack.c.bf16 %v3467_v33, %v3463_v43  ;;  %v11272_v50 = vsub.f32 %v3430_v36, %v3467_v33  ;;  %v4034_v23 = vand.u32 4294901760, %v3431_v26 }
 0x46e   : > { %v4036_v30 = vand.u32 4294901760, %v3428_v29  ;;  %v12809_v61 = vand.u32 4294901760, %v11251_v48  ;;  %v11275_v22 = vsub.f32 %v3416_v57, %v4032_v24  ;;  %v11277_v0 = vpack.c.bf16 %v3465_v15, %v3461_v6 }
 0x46f   : > { %v3437_v58 = vpop.permute.xlu0 %3436  ;;  %v11284_v42 = vsub.f32 %v11220_v46, %v12803_v52  ;;  %v11286_v43 = vsub.f32 %v3419_v17, %v4030_v31  ;;  %v12813_v32 = vand.u32 4294901760, %v11267_v41  ;;  %v12807_v36 = vand.u32 4294901760, %v11272_v50 }
 0x470   : > { %v3433_v59 = vpop.permute.xlu1 %3432  ;;  %v3441_v27 = vsel %vm700_vm11, %v3435_v2, %v3437_v58  ;;  %v11290_v33 = vpack.c.bf16 %v4036_v30, %v4032_v24  ;;  %v11292_v57 = vsub.f32 %v3428_v29, %v4036_v30  ;;  %8736 = vmatprep.subr.bf16.mxu0 %v11277_v0  ;;  %v11299_v52 = vsub.f32 %v3431_v26, %v4034_v23 }
 0x471   : > { %v11295_v6 = vand.u32 4294901760, %v3441_v27  ;;  %v3442_v15 = vsel %vm700_vm11, %v3433_v59, %v3435_v2  ;;  %8738 = vmatpush1.bf16.msra.mxu0 %v11270_v53  ;;  %v11304_v8 = vpack.c.bf16 %v4034_v23, %v4030_v31  ;;  %v4130_v29 = vand.u32 4294901760, %v11265_v47 }
 0x472   : > { %v11302_v17 = vand.u32 4294901760, %v3442_v15  ;;  %v12814_v30 = vand.u32 4294901760, %v11275_v22  ;;  %v12812_v37 = vand.u32 4294901760, %v11292_v57  ;;  %v3573_v26 = vand.u32 4294901760, %v11284_v42 }
 0x473   : > { %v3439_v35 = vpop.permute.xlu0 %3438  ;;  %3470 = vmatprep.subr.mxu0 %v11295_v6  ;;  %v3584_v31 = vsub.f32 %v11272_v50, %v12807_v36  ;;  %8784 = vmatprep.subr.bf16.mxu1 %v11304_v8  ;;  %v12816_v23 = vand.u32 4294901760, %v11286_v43  ;;  %v11325_v62 = vsub.f32 %v3441_v27, %v11295_v6  ;;  %v3578_v27 = vsub.f32 %v11267_v41, %v12813_v32 }
 0x474   : > { %v3440_v24 = vsel %vm700_vm11, %v3437_v58, %v3439_v35  ;;  %v3443_v2 = vsel %vm700_vm11, %v3439_v35, %v3433_v59  ;;  %8786 = vmatpush1.bf16.msra.mxu1 %v11290_v33  ;;  %v3554_v35 = vsub.f32 %v11215_v7, %v12810_v45  ;;  %v3566_v59 = vsub.f32 %v11251_v48, %v12809_v61 }
 0x475   : > { %v11319_v58 = vand.u32 4294901760, %v3443_v2  ;;  %v11321_v47 = vand.u32 4294901760, %v3440_v24  ;;  %v4153_v36 = vsub.f32 %v11292_v57, %v12812_v37  ;;  %v11339_v10 = vsub.f32 %v3442_v15, %v11302_v17  ;;  %3472 = vmatpush1.msra.mxu0 %v11302_v17 }
 0x476   : > { %v4141_v61 = vsub.f32 %v11275_v22, %v12814_v30  ;;  %v3555_v21 = vand.u32 4294901760, %v3554_v35  ;;  %3533 = vmatmul.mubr.f32.vlgmr.msra.gmra.mrb[4].mxu0 %v11229_v60  ;;  %v4123_v15 = vsub.f32 %v11237_v13, %v12815_v38  ;;  %v3585_v37 = vand.u32 4294901760, %v3584_v31 }
 0x477   : > { %4039 = vmatprep.subr.mxu1 %v11319_v58  ;;  %v11350_v45 = vsub.f32 %v3440_v24, %v11321_v47  ;;  %v11357_v40 = vsub.f32 %v3443_v2, %v11319_v58  ;;  %v8741_v32 = vpack.c.bf16 %v3561_v44, %v3549_v11  ;;  %v3579_v16 = vand.u32 4294901760, %v3578_v27  ;;  %3653 = vmatprep.mubr.f32.mxu0 %v12880_v51 }
 0x478   : > { %v8739_v24 = vpack.c.bf16 %v3555_v21, %v3543_v1  ;;  %v3567_v35 = vand.u32 4294901760, %v3566_v59  ;;  %4041 = vmatpush1.msra.mxu1 %v11321_v47  ;;  %v4124_v30 = vand.u32 4294901760, %v4123_v15  ;;  %v3589_v42 = vand.u32 4294901760, %v11325_v62 }
 0x479   : > { %v4154_v38 = vand.u32 4294901760, %v4153_v36  ;;  %v3595_v31 = vand.u32 4294901760, %v11339_v10  ;;  %4102 = vmatmul.mubr.f32.vlgmr.msra.gmra.mrb[4].mxu1 %v11229_v60  ;;  %v4135_v18 = vsub.f32 %v11286_v43, %v12816_v23  ;;  %v12923_v11 = vand.u32 4294901760, %v11299_v52 }
 0x47a   : > { %v4164_v21 = vand.u32 4294901760, %v11350_v45  ;;  %8740 = vmatprep.subr.bf16.mxu0 %v8739_v24  ;;  %v8743_v1 = vpack.c.bf16 %v3579_v16, %v3567_v35  ;;  %v12924_v44 = vand.u32 4294901760, %v11210_v12  ;;  %v3590_v36 = vsub.f32 %v11325_v62, %v3589_v42  ;;  %4222 = vmatprep.mubr.f32.mxu1 %v12880_v51 }
 0x47b   : > { %v4147_v25 = vsub.f32 %v11299_v52, %v12923_v11  ;;  %8742 = vmatpush1.bf16.msra.mxu0 %v8741_v32  ;;  %v12925_v60 = vand.u32 4294901760, %v11199_v55  ;;  %v4136_v27 = vand.u32 4294901760, %v4135_v18  ;;  %v4158_v11 = vand.u32 4294901760, %v11357_v40 }
 0x47c   : > { %v8787_v2 = vpack.c.bf16 %v4124_v30, %v12924_v44  ;;  %v4142_v23 = vand.u32 4294901760, %v4141_v61  ;;  %8744 = vmatprep.subr.bf16.mxu0 %v8743_v1  ;;  %v3591_v16 = vand.u32 4294901760, %v3590_v36  ;;  %v3596_v12 = vsub.f32 %v11339_v10, %v3595_v31 }
 0x47d   : > { %v8789_v59 = vpack.c.bf16 %v4130_v29, %v12925_v60  ;;  %v4148_v15 = vand.u32 4294901760, %v4147_v25  ;;  %v8745_v30 = vpack.c.bf16 %v3585_v37, %v3573_v26  ;;  %v4159_v55 = vsub.f32 %v11357_v40, %v4158_v11 }
 0x47e   : > { %8788 = vmatprep.subr.bf16.mxu1 %v8787_v2  ;;  %v4165_v32 = vsub.f32 %v11350_v45, %v4164_v21  ;;  %v8793_v61 = vpack.c.bf16 %v4154_v38, %v4142_v23  ;;  %v3597_v35 = vand.u32 4294901760, %v3596_v12  ;;  %v8747_v37 = vpack.c.bf16 %v11215_v7, %v11156_v19 }
 0x47f   : > { %8790 = vmatpush1.bf16.msra.mxu1 %v8789_v59  ;;  %v8791_v24 = vpack.c.bf16 %v4148_v15, %v4136_v27  ;;  %8746 = vmatpush1.bf16.msra.mxu0 %v8745_v30  ;;  %v4160_v29 = vand.u32 4294901760, %v4159_v55  ;;  %v8749_v26 = vpack.c.bf16 %v11183_v39, %v11151_v56  ;;  %v8751_v25 = vpack.c.bf16 %v11267_v41, %v11251_v48 }
 0x480   : > { %3592 = vmatprep.subr.mxu0 %v3591_v16  ;;  %v4166_v18 = vand.u32 4294901760, %v4165_v32  ;;  %v8795_v38 = vpack.c.bf16 %v11237_v13, %v11162_v9  ;;  %v8797_v23 = vpack.c.bf16 %v11213_v3, %v11159_v63  ;;  %v8753_v1 = vpack.c.bf16 %v11272_v50, %v11220_v46 }
 0x481   : > { %8792 = vmatprep.subr.bf16.mxu1 %v8791_v24  ;;  %v8799_v44 = vpack.c.bf16 %v11299_v52, %v11286_v43  ;;  %v8801_v2 = vpack.c.bf16 %v11292_v57, %v11275_v22  ;;  %v12926_v36 = vand.u32 4294901760, %v11156_v19  ;;  %v12927_v60 = vand.u32 4294901760, %v11215_v7 }
 0x482   : > { %v12929_v27 = vand.u32 4294901760, %v11183_v39  ;;  %v12930_v16 = vand.u32 4294901760, %v11251_v48  ;;  %v12931_v12 = vand.u32 4294901760, %v11267_v41  ;;  %v12932_v7 = vand.u32 4294901760, %v11162_v9 }
 0x483   : > { %8794 = vmatpush1.bf16.msra.mxu1 %v8793_v61  ;;  %3598 = vmatpush1.msra.mxu0 %v3597_v35  ;;  %v8763_v59 = vpack.c.bf16 %v12927_v60, %v12926_v36  ;;  %v12933_v30 = vand.u32 4294901760, %v11237_v13  ;;  %v12935_v39 = vand.u32 4294901760, %v11213_v3  ;;  %v12936_v48 = vand.u32 4294901760, %v11220_v46 }
 0x484   : > { %4161 = vmatprep.subr.mxu1 %v4160_v29  ;;  %8748 = vmatprep.subr.bf16.mxu0 %v8747_v37  ;;  %v8767_v19 = vpack.c.bf16 %v12931_v12, %v12930_v16  ;;  %v12937_v41 = vand.u32 4294901760, %v11272_v50  ;;  %v12938_v9 = vand.u32 4294901760, %v11286_v43  ;;  %v12939_v13 = vand.u32 4294901760, %v11299_v52 }
 0x485   : > { %3655 = vmatmul.mubr.f32.vlgmr.msra.gmra.mrb[4].mxu0 %v11148_v49  ;;  %v8811_v24 = vpack.c.bf16 %v12933_v30, %v12932_v7  ;;  %v12941_v3 = vand.u32 4294901760, %v11292_v57  ;;  %v4599_v57 = vld [vmem:[%s12943_s10] sm:$0xff]  ;;  %s9802_s10 = smov 3  }
 0x486   : > { %8750 = vmatpush1.bf16.msra.mxu0 %v8749_v26  ;;  %3745 = vmatprep.mubr.f32.mxu0 %v12880_v51  ;;  %v8769_v32 = vpack.c.bf16 %v12937_v41, %v12936_v48  ;;  %v8815_v61 = vpack.c.bf16 %v12939_v13, %v12938_v9 }
 0x487   : > { %4167 = vmatpush1.msra.mxu1 %v4166_v18  ;;  %8752 = vmatprep.subr.bf16.mxu0 %v8751_v25 }
 0x488   : > { %8796 = vmatprep.subr.bf16.mxu1 %v8795_v38  ;;  %4224 = vmatmul.mubr.f32.vlgmr.msra.gmra.mrb[4].mxu1 %v11148_v49 }
 0x489   : > { %8798 = vmatpush1.bf16.msra.mxu1 %v8797_v23  ;;  %4314 = vmatprep.mubr.f32.mxu1 %v12880_v51 }
 0x48a   : > { %8754 = vmatpush1.bf16.msra.mxu0 %v8753_v1  ;;  %8800 = vmatprep.subr.bf16.mxu1 %v8799_v44 }
 0x48b   : > { %3687 = vmatprep.subr.mxu0 %v11325_v62 }
 0x48d   : > { %8802 = vmatpush1.bf16.msra.mxu1 %v8801_v2 }
 0x48e   : > { %3690 = vmatpush1.msra.mxu0 %v11339_v10  ;;  %4256 = vmatprep.subr.mxu1 %v11357_v40  ;;  %v3447_v10 = vpop.permute.xlu1 %3446 }
 0x48f   : > { %8756 = vmatprep.subr.bf16.mxu0 %v11217_v14  ;;  %3748 = vmatmul.mubr.f32.vlgmr.msra.gmra.mrb[4].mxu0 %v11165_v5 }
 0x490   : > { %8758 = vmatpush1.bf16.msra.mxu0 %v11201_v54  ;;  %3828 = vmatprep.mubr.f32.mxu0 %v12880_v51 }
 0x491   : > { %8760 = vmatprep.subr.bf16.mxu0 %v11277_v0  ;;  %4259 = vmatpush1.msra.mxu1 %v11350_v45 }
 0x492   : > { %8804 = vmatprep.subr.bf16.mxu1 %v11249_v4  ;;  %4317 = vmatmul.mubr.f32.vlgmr.msra.gmra.mrb[4].mxu1 %v11165_v5  ;;  %v12928_v5 = vand.u32 4294901760, %v11151_v56  ;;  %v12934_v56 = vand.u32 4294901760, %v11159_v63  ;;  %v12940_v63 = vand.u32 4294901760, %v11275_v22 }
 0x493   : > { %8806 = vmatpush1.bf16.msra.mxu1 %v11224_v28  ;;  %4397 = vmatprep.mubr.f32.mxu1 %v12880_v51 }
 0x494   : > { %8762 = vmatpush1.bf16.msra.mxu0 %v11270_v53  ;;  %8808 = vmatprep.subr.bf16.mxu1 %v11304_v8  ;;  %v8765_v15 = vpack.c.bf16 %v12929_v27, %v12928_v5  ;;  %v8813_v55 = vpack.c.bf16 %v12935_v39, %v12934_v56  ;;  %v8817_v46 = vpack.c.bf16 %v12941_v3, %v12940_v63 }
 0x495   : > { %3771 = vmatprep.subr.mxu0 %v11295_v6 }
 0x497   : > { %8810 = vmatpush1.bf16.msra.mxu1 %v11290_v33 }
 0x498   : > { %3773 = vmatpush1.msra.mxu0 %v11302_v17  ;;  %4340 = vmatprep.subr.mxu1 %v11319_v58 }
 0x499   : > { %8764 = vmatprep.subr.bf16.mxu0 %v8763_v59  ;;  %3832 = vmatmul.mubr.f32.vlgmr.msra.gmra.mrb[4].mxu0 %v11175_v20 }
 0x49a   : > { %8766 = vmatpush1.bf16.msra.mxu0 %v8765_v15  ;;  %3932 = vmatprep.mubr.f32.mxu0 %v12880_v51 }
 0x49b   : > { %8768 = vmatprep.subr.bf16.mxu0 %v8767_v19  ;;  %4342 = vmatpush1.msra.mxu1 %v11321_v47 }
 0x49c   : > { %8812 = vmatprep.subr.bf16.mxu1 %v8811_v24  ;;  %4401 = vmatmul.mubr.f32.vlgmr.msra.gmra.mrb[4].mxu1 %v11175_v20 }
 0x49d   : > { %8814 = vmatpush1.bf16.msra.mxu1 %v8813_v55  ;;  %4501 = vmatprep.mubr.f32.mxu1 %v12880_v51 }
 0x49e   : > { %8770 = vmatpush1.bf16.msra.mxu0 %v8769_v32  ;;  %8816 = vmatprep.subr.bf16.mxu1 %v8815_v61 }
 0x49f   : > { %3873 = vmatprep.subr.mxu0 %v3589_v42 }
 0x4a1   : > { %8818 = vmatpush1.bf16.msra.mxu1 %v8817_v46 }
 0x4a2   : > { %3877 = vmatpush1.msra.mxu0 %v3595_v31  ;;  %4442 = vmatprep.subr.mxu1 %v4158_v11 }
 0x4a3   : > { %8772 = vmatprep.subr.bf16.mxu0 %v11217_v14  ;;  %3934 = vmatmul.mubr.f32.vlgmr.msra.gmra.mrb[4].mxu0 %v11148_v49 }
 0x4a4   : > { %8774 = vmatpush1.bf16.msra.mxu0 %v11201_v54  ;;  %4014 = vmatprep.mubr.f32.mxu0 %v12880_v51 }
 0x4a5   : > { %8776 = vmatprep.subr.bf16.mxu0 %v11277_v0  ;;  %4446 = vmatpush1.msra.mxu1 %v4164_v21 }
 0x4a6   : > { %8820 = vmatprep.subr.bf16.mxu1 %v11249_v4  ;;  %4503 = vmatmul.mubr.f32.vlgmr.msra.gmra.mrb[4].mxu1 %v11148_v49 }
 0x4a7   : > { %8822 = vmatpush1.bf16.msra.mxu1 %v11224_v28  ;;  %4583 = vmatprep.mubr.f32.mxu1 %v12880_v51 }
 0x4a8   : > { %8778 = vmatpush1.bf16.msra.mxu0 %v11270_v53  ;;  %8824 = vmatprep.subr.bf16.mxu1 %v11304_v8 }
 0x4a9   : > { %3957 = vmatprep.subr.mxu0 %v11295_v6  ;;  %v4632_v6 = vsel %vm4630_vm8, %v4599_v57, 0  ;;  %vm7203_vm8 = vcmp.lt.s32.totalorder %v12922_v34, 2 }
 0x4ab   : > { %8826 = vmatpush1.bf16.msra.mxu1 %v11290_v33  ;;  %v4600_v33 = vld [vmem:[%s12738_s11] sm:$0xff] }
 0x4ac   : > { %3959 = vmatpush1.msra.mxu0 %v11302_v17  ;;  %4526 = vmatprep.subr.mxu1 %v11319_v58  ;;  %v11519_v58 = vand.u32 4294901760, %v4632_v6 }
 0x4ad   : > { %4016 = vmatmul.mubr.f32.vlgmr.msra.gmra.mrb[4].mxu0 %v11148_v49 }
 0x4ae   : > { %4704 = vmatprep.mubr.f32.mxu0 %v12880_v51  ;;  %v11524_v31 = vsub.f32 %v4632_v6, %v11519_v58 }
 0x4af   : > { %4528 = vmatpush1.msra.mxu1 %v11321_v47 }
 0x4b0   : > { %4585 = vmatmul.mubr.f32.vlgmr.msra.gmra.mrb[4].mxu1 %v11148_v49  ;;  %v11532_v26 = vand.u32 4294901760, %v11524_v31 }
 0x4b1   : > { %5221 = vmatprep.mubr.f32.mxu1 %v12880_v51 }
 0x4b2   : > { %v4708_v27 = vsub.f32 %v11524_v31, %v11532_v26 }
 0x4b4   : > { %v11575_v13 = vand.u32 4294901760, %v4708_v27 }
 0x580   : > { %v4017_v8 = vpop.f32.mrb[4].mxu0 }
 0x581   : > { %v4019_v20 = vpop.f32.mrb[5].mxu0  ;;  %v9301_v54 = vadd.f32 %v4017_v8, %v3447_v10 }
 0x582   : > { %v9302_v62 = vadd.f32 %v4019_v20, %v3447_v10 }
 0x583   : > { %v4586_v14 = vpop.f32.mrb[4].mxu1  ;;  %v4591_v4 = vmul.f32 0.2, %v9301_v54 }
 0x584   : > { %v4592_v40 = vmul.f32 0.2, %v9302_v62  ;;  %v9303_v28 = vadd.f32 %v4586_v14, %v3447_v10  ;;  %v4588_v45 = vpop.f32.mrb[5].mxu1 }
 0x585   : > { %v4595_v22 = vmax.f32 %v9301_v54, %v4591_v4  ;;  %v9304_v49 = vadd.f32 %v4588_v45, %v3447_v10 }
 0x586   : > { %v4596_v52 = vmax.f32 %v9302_v62, %v4592_v40  ;;  %v4593_v53 = vmul.f32 0.2, %v9303_v28 }
 0x587   : > { %v4594_v0 = vmul.f32 0.2, %v9304_v49  ;;  %v4636_v17 = vand.u32 4294901760, %v4595_v22 }
 0x588   : > { %v11497_v50 = vmax.f32 %v9303_v28, %v4593_v53  ;;  %4603 = vrot.lane.b32.xlu0 %v4596_v52, %s12817_s4  ;;  %v4634_v47 = vand.u32 4294901760, %v4596_v52 }
 0x589   : > { %v11506_v43 = vmax.f32 %v9304_v49, %v4594_v0  ;;  %v11521_v42 = vsub.f32 %v4595_v22, %v4636_v17 }
 0x58a   : > { %4605 = vrot.lane.b32.xlu1 %v11497_v50, %s12817_s4  ;;  %v11526_v11 = vsub.f32 %v4596_v52, %v4634_v47  ;;  %v5153_v29 = vand.u32 4294901760, %v11497_v50 }
 0x58b   : > { %v4724_v18 = vand.u32 4294901760, %v11521_v42  ;;  %v5151_v25 = vand.u32 4294901760, %v11506_v43 }
 0x58c   : > { %4601 = vrot.lane.b32.xlu0 %v4595_v22, %s12817_s4  ;;  %v11539_v44 = vsub.f32 %v11497_v50, %v5153_v29  ;;  %v4718_v2 = vand.u32 4294901760, %v11526_v11 }
 0x58d   : > { %v4725_v15 = vsub.f32 %v11521_v42, %v4724_v18  ;;  %v11552_v16 = vsub.f32 %v11506_v43, %v5151_v25 }
 0x58e   : > { %4615 = vrot.lane.b32.xlu1 %v4596_v52, %s12942_s0  ;;  %v4719_v56 = vsub.f32 %v11526_v11, %v4718_v2  ;;  %v5241_v39 = vand.u32 4294901760, %v11539_v44 }
 0x58f   : > { %v4726_v61 = vand.u32 4294901760, %v4725_v15  ;;  %v5235_v63 = vand.u32 4294901760, %v11552_v16 }
 0x590   : > { %4617 = vrot.lane.b32.xlu0 %v11497_v50, %s12942_s0  ;;  %v4720_v14 = vand.u32 4294901760, %v4719_v56  ;;  %v5242_v40 = vsub.f32 %v11539_v44, %v5241_v39 }
 0x592   : > { %4613 = vrot.lane.b32.xlu1 %v4595_v22, %s12942_s0 }
 0x594   : > { %4607 = vrot.lane.b32.xlu0 %v11506_v43, %s12817_s4  ;;  %s12956_s4 = sld [smem:[#allocation23_spill]] }
 0x596   : > { %4619 = vrot.lane.b32.xlu1 %v11506_v43, %s12942_s0 }
 0x598   : > { %4627 = vperm.xlu0 %9482, %v4600_v33  }
 0x5fa   : > { %v4604_v21 = vpop.permute.xlu0 %4603 }
 0x5fc   : > { %v4606_v35 = vpop.permute.xlu1 %4605 }
 0x5fd   : > { %v4610_v37 = vsel %vm661_vm1, %v4604_v21, %v4606_v35 }
 0x5fe   : > { %v4638_v38 = vand.u32 4294901760, %v4610_v37  ;;  %v4602_v23 = vpop.permute.xlu0 %4601 }
 0x5ff   : > { %v4611_v1 = vsel %vm661_vm1, %v4602_v23, %v4604_v21 }
 0x600   : > { %v11542_v36 = vsub.f32 %v4610_v37, %v4638_v38  ;;  %v4640_v60 = vand.u32 4294901760, %v4611_v1  ;;  %v4616_v59 = vpop.permute.xlu1 %4615  ;;  %v11544_v5 = vpack.c.bf16 %v4638_v38, %v4634_v47 }
 0x602   : > { %v4730_v12 = vand.u32 4294901760, %v11542_v36  ;;  %v11555_v19 = vpack.c.bf16 %v4640_v60, %v4636_v17  ;;  %v11557_v7 = vsub.f32 %v4611_v1, %v4640_v60  ;;  %v4618_v30 = vpop.permute.xlu0 %4617  ;;  %8828 = vmatprep.subr.bf16.mxu0 %v11544_v5 }
 0x603   : > { %v4622_v24 = vsel %vm674_vm2, %v4616_v59, %v4618_v30 }
 0x604   : > { %v4736_v55 = vand.u32 4294901760, %v11557_v7  ;;  %v11567_v48 = vand.u32 4294901760, %v4622_v24  ;;  %8830 = vmatpush1.bf16.msra.mxu0 %v11555_v19  ;;  %v4614_v41 = vpop.permute.xlu1 %4613  ;;  %v4731_v32 = vsub.f32 %v11542_v36, %v4730_v12 }
 0x605   : > { %v4623_v9 = vsel %vm674_vm2, %v4614_v41, %v4616_v59 }
 0x606   : > { %v4737_v3 = vsub.f32 %v11557_v7, %v4736_v55  ;;  %v11582_v46 = vsub.f32 %v4622_v24, %v11567_v48  ;;  %v11584_v10 = vand.u32 4294901760, %v4623_v9  ;;  %v4608_v8 = vpop.permute.xlu0 %4607  ;;  %4643 = vmatprep.subr.mxu0 %v11567_v48  ;;  %v4732_v20 = vand.u32 4294901760, %v4731_v32 }
 0x607   : > { %v4609_v54 = vsel %vm661_vm1, %v4606_v35, %v4608_v8  ;;  %v4612_v62 = vsel %vm661_vm1, %v4608_v8, %v4602_v23  ;;  %v5236_v23 = vsub.f32 %v11552_v16, %v5235_v63  ;;  %v5243_v24 = vand.u32 4294901760, %v5242_v40 }
 0x608   : > { %v4738_v28 = vand.u32 4294901760, %v4737_v3  ;;  %v11595_v45 = vsub.f32 %v4623_v9, %v11584_v10  ;;  %v5155_v4 = vand.u32 4294901760, %v4612_v62  ;;  %v5157_v52 = vand.u32 4294901760, %v4609_v54  ;;  %v4620_v53 = vpop.permute.xlu1 %4619  ;;  %4645 = vmatpush1.msra.mxu0 %v11584_v10 }
 0x609   : > { %v4621_v50 = vsel %vm674_vm2, %v4618_v30, %v4620_v53  ;;  %v4624_v22 = vsel %vm674_vm2, %v4620_v53, %v4614_v41  ;;  %4710 = vmatmul.mubr.f32.vlgmr.msra.gmra.mrb[6].mxu0 %v11575_v13  ;;  %v8831_v49 = vpack.c.bf16 %v4732_v20, %v4720_v14  ;;  %v4742_v0 = vand.u32 4294901760, %v11582_v46 }
 0x60a   : > { %v4748_v43 = vand.u32 4294901760, %v11595_v45  ;;  %v11605_v33 = vpack.c.bf16 %v5157_v52, %v5153_v29  ;;  %v11607_v57 = vsub.f32 %v4612_v62, %v5155_v4  ;;  %v11609_v6 = vsub.f32 %v4609_v54, %v5157_v52  ;;  %4810 = vmatprep.mubr.f32.mxu0 %v12880_v51 }
 0x60b   : > { %v11612_v17 = vand.u32 4294901760, %v4624_v22  ;;  %v11614_v47 = vand.u32 4294901760, %v4621_v50  ;;  %8832 = vmatprep.subr.bf16.mxu0 %v8831_v49  ;;  %v8833_v21 = vpack.c.bf16 %v4738_v28, %v4726_v61  ;;  %v11616_v35 = vpack.c.bf16 %v5155_v4, %v5151_v25  ;;  %v11800_v49 = vld [vmem:[%s12944_s21 + $0x48] sm:$0xff] }
 0x60c   : > { %v4749_v37 = vsub.f32 %v11595_v45, %v4748_v43  ;;  %v5247_v29 = vand.u32 4294901760, %v11607_v57  ;;  %v5253_v38 = vand.u32 4294901760, %v11609_v6  ;;  %v4743_v25 = vsub.f32 %v11582_v46, %v4742_v0 }
 0x60d   : > { %v11627_v1 = vsub.f32 %v4624_v22, %v11612_v17  ;;  %v11630_v60 = vsub.f32 %v4621_v50, %v11614_v47  ;;  %8834 = vmatpush1.bf16.msra.mxu0 %v8833_v21  ;;  %8852 = vmatprep.subr.bf16.mxu1 %v11616_v35  ;;  %v5237_v9 = vand.u32 4294901760, %v5236_v23  ;;  %v8835_v3 = vpack.c.bf16 %v11542_v36, %v11526_v11  ;;  %v11701_v11 = vld [vmem:[%s12944_s21 + $0x8] sm:$0xff]  ;;  %v11795_v22 = vld [vmem:[%s12944_s21 + $0x40] sm:$0xff] }
 0x60e   : > { %v5254_v59 = vsub.f32 %v11609_v6, %v5253_v38  ;;  %8854 = vmatpush1.bf16.msra.mxu1 %v11605_v33  ;;  %v4750_v27 = vand.u32 4294901760, %v4749_v37  ;;  %v5248_v15 = vsub.f32 %v11607_v57, %v5247_v29  ;;  %v4744_v30 = vand.u32 4294901760, %v4743_v25 }
 0x60f   : > { %5160 = vmatprep.subr.mxu1 %v11612_v17  ;;  %v5259_v56 = vand.u32 4294901760, %v11627_v1  ;;  %v5265_v32 = vand.u32 4294901760, %v11630_v60  ;;  %v8837_v20 = vpack.c.bf16 %v11557_v7, %v11521_v42  ;;  %v8859_v4 = vpack.c.bf16 %v11607_v57, %v11552_v16  ;;  %v11696_v42 = vld [vmem:[%s12944_s21] sm:$0xff]  ;;  %v11722_v16 = vld [vmem:[%s12944_s21 + $0x10] sm:$0xff]  ;;  %v11751_v7 = vld [vmem:[%s12944_s21 + $0x28] sm:$0xff] }
 0x610   : > { %v5255_v41 = vand.u32 4294901760, %v5254_v59  ;;  %v5249_v61 = vand.u32 4294901760, %v5248_v15  ;;  %4745 = vmatprep.subr.mxu0 %v4744_v30  ;;  %v8843_v52 = vpack.c.bf16 %v4730_v12, %v4718_v2  ;;  %v8845_v53 = vpack.c.bf16 %v4736_v55, %v4724_v18 }
 0x611   : > { %v5260_v8 = vsub.f32 %v11627_v1, %v5259_v56  ;;  %4751 = vmatpush1.msra.mxu0 %v4750_v27  ;;  %v5266_v40 = vsub.f32 %v11630_v60, %v5265_v32  ;;  %v5685_v18 = vand.u32 4294901760, %v11696_v42  ;;  %v5688_v2 = vand.u32 4294901760, %v11701_v11 }
 0x612   : > { %5162 = vmatpush1.msra.mxu1 %v11614_v47  ;;  %v8855_v54 = vpack.c.bf16 %v5249_v61, %v5237_v9  ;;  %v8857_v62 = vpack.c.bf16 %v5255_v41, %v5243_v24  ;;  %4812 = vmatmul.mubr.f32.vlgmr.msra.gmra.mrb[6].mxu0 %v11519_v58  ;;  %v8869_v36 = vpack.c.bf16 %v5253_v38, %v5241_v39  ;;  %v5691_v12 = vand.u32 4294901760, %v11722_v16 }
 0x613   : > { %8836 = vmatprep.subr.bf16.mxu0 %v8835_v3  ;;  %v5261_v14 = vand.u32 4294901760, %v5260_v8  ;;  %5227 = vmatmul.mubr.f32.vlgmr.msra.gmra.mrb[6].mxu1 %v11575_v13  ;;  %v5267_v28 = vand.u32 4294901760, %v5266_v40  ;;  %v8861_v13 = vpack.c.bf16 %v11609_v6, %v11539_v44  ;;  %v11736_v44 = vpack.c.bf16 %v5688_v2, %v5685_v18  ;;  %v5679_v6 = vld [vmem:[%s12944_s21 + $0x58] sm:$0xff] }
 0x614   : > { %8838 = vmatpush1.bf16.msra.mxu0 %v8837_v20  ;;  %8856 = vmatprep.subr.bf16.mxu1 %v8855_v54  ;;  %v5700_v55 = vand.u32 4294901760, %v11751_v7  ;;  %v5718_v21 = vand.u32 4294901760, %v5679_v6  ;;  %v11851_v25 = vsub.f32 %v11696_v42, %v5685_v18  ;;  %v11856_v59 = vsub.f32 %v11701_v11, %v5688_v2 }
 0x615   : > { %4832 = vmatprep.subr.mxu0 %v11582_v46  ;;  %8858 = vmatpush1.bf16.msra.mxu1 %v8857_v62  ;;  %v11775_v46 = vld [vmem:[%s12944_s21 + $0x38] sm:$0xff] }
 0x616   : > { %4894 = vmatprep.mubr.f32.mxu0 %v12880_v51  ;;  %5262 = vmatprep.subr.mxu1 %v5261_v14  ;;  %v5706_v50 = vand.u32 4294901760, %v11775_v46  ;;  %v5808_v30 = vand.u32 4294901760, %v11851_v25  ;;  %v5815_v24 = vand.u32 4294901760, %v11856_v59  ;;  %v11878_v20 = vsub.f32 %v5679_v6, %v5718_v21 }
 0x617   : > { %5327 = vmatprep.mubr.f32.mxu1 %v12880_v51 }
 0x618   : > { %4835 = vmatpush1.msra.mxu0 %v11595_v45  ;;  %v5809_v41 = vsub.f32 %v11851_v25, %v5808_v30  ;;  %v12823_v62 = vand.u32 4294901760, %v11878_v20 }
 0x619   : > { %8840 = vmatprep.subr.bf16.mxu0 %v11544_v5  ;;  %5268 = vmatpush1.msra.mxu1 %v5267_v28 }
 0x61a   : > { %4897 = vmatmul.mubr.f32.vlgmr.msra.gmra.mrb[6].mxu0 %v11524_v31  ;;  %8860 = vmatprep.subr.bf16.mxu1 %v8859_v4  ;;  %v5810_v9 = vand.u32 4294901760, %v5809_v41  ;;  %v5886_v40 = vsub.f32 %v11878_v20, %v12823_v62 }
 0x61b   : > { %8842 = vmatpush1.bf16.msra.mxu0 %v11555_v19  ;;  %5329 = vmatmul.mubr.f32.vlgmr.msra.gmra.mrb[6].mxu1 %v11519_v58 }
 0x61c   : > { %4912 = vmatprep.subr.mxu0 %v11567_v48  ;;  %8862 = vmatpush1.bf16.msra.mxu1 %v8861_v13 }
 0x61d   : > { %5349 = vmatprep.subr.mxu1 %v11627_v1  ;;  %4973 = vmatprep.mubr.f32.mxu0 %v12880_v51  ;;  %v5682_v1 = vld [vmem:[%s12944_s21 + $0x70] sm:$0xff] }
 0x61e   : > { %5411 = vmatprep.mubr.f32.mxu1 %v12880_v51  ;;  %v5727_v27 = vand.u32 4294901760, %v5682_v1 }
 0x61f   : > { %4914 = vmatpush1.msra.mxu0 %v11584_v10 }
 0x620   : > { %8844 = vmatprep.subr.bf16.mxu0 %v8843_v52  ;;  %5352 = vmatpush1.msra.mxu1 %v11630_v60  ;;  %v5683_v60 = vld [vmem:[%s12944_s21 + $0x78] sm:$0xff]  ;;  %v5887_v52 = vand.u32 4294901760, %v5886_v40  ;;  %v11902_v2 = vsub.f32 %v5682_v1, %v5727_v27 }
 0x621   : > { %8864 = vmatprep.subr.bf16.mxu1 %v11616_v35  ;;  %v5730_v15 = vand.u32 4294901760, %v5683_v60 }
 0x622   : > { %4977 = vmatmul.mubr.f32.vlgmr.msra.gmra.mrb[6].mxu0 %v11532_v26 }
 0x623   : > { %8846 = vmatpush1.bf16.msra.mxu0 %v8845_v53  ;;  %5414 = vmatmul.mubr.f32.vlgmr.msra.gmra.mrb[6].mxu1 %v11524_v31  ;;  %v8867_v31 = vpack.c.bf16 %v5247_v29, %v5235_v63  ;;  %v11770_v63 = vld [vmem:[%s12944_s21 + $0x30] sm:$0xff] }
 0x624   : > { %8866 = vmatpush1.bf16.msra.mxu1 %v11605_v33  ;;  %5002 = vmatprep.subr.mxu0 %v4742_v0  ;;  %v5703_v45 = vand.u32 4294901760, %v11770_v63 }
 0x625   : > { %5429 = vmatprep.subr.mxu1 %v11612_v17  ;;  %5065 = vmatprep.mubr.f32.mxu0 %v12880_v51 }
 0x626   : > { %5490 = vmatprep.mubr.f32.mxu1 %v12880_v51  ;;  %v11809_v0 = vpack.c.bf16 %v5706_v50, %v5703_v45 }
 0x627   : > { %5006 = vmatpush1.msra.mxu0 %v4748_v43  ;;  %v5709_v43 = vand.u32 4294901760, %v11795_v22 }
 0x628   : > { %5431 = vmatpush1.msra.mxu1 %v11614_v47  ;;  %8848 = vmatprep.subr.bf16.mxu0 %v11544_v5  ;;  %v11727_v5 = vld [vmem:[%s12944_s21 + $0x18] sm:$0xff] }
 0x629   : > { %8868 = vmatprep.subr.bf16.mxu1 %v8867_v31 }
 0x62a   : > { %5067 = vmatmul.mubr.f32.vlgmr.msra.gmra.mrb[6].mxu0 %v11519_v58 }
 0x62b   : > { %8850 = vmatpush1.bf16.msra.mxu0 %v11555_v19  ;;  %5494 = vmatmul.mubr.f32.vlgmr.msra.gmra.mrb[6].mxu1 %v11532_v26  ;;  %v5694_v19 = vand.u32 4294901760, %v11727_v5  ;;  %v11746_v26 = vld [vmem:[%s12944_s21 + $0x20] sm:$0xff] }
 0x62c   : > { %8870 = vmatpush1.bf16.msra.mxu1 %v8869_v36  ;;  %5082 = vmatprep.subr.mxu0 %v11567_v48  ;;  %v5697_v39 = vand.u32 4294901760, %v11746_v26  ;;  %v11904_v36 = vsub.f32 %v5683_v60, %v5730_v15  ;;  %v11918_v60 = vpack.c.bf16 %v11856_v59, %v11851_v25 }
 0x62d   : > { %5519 = vmatprep.subr.mxu1 %v5259_v56  ;;  %5143 = vmatprep.mubr.f32.mxu0 %v12880_v51  ;;  %v11765_v48 = vpack.c.bf16 %v5694_v19, %v5691_v12  ;;  %v11862_v56 = vpack.c.bf16 %v5730_v15, %v5727_v27 }
 0x62e   : > { %5582 = vmatprep.mubr.f32.mxu1 %v12880_v51 }
 0x62f   : > { %5084 = vmatpush1.msra.mxu0 %v11584_v10  ;;  %v11786_v10 = vpack.c.bf16 %v5700_v55, %v5697_v39 }
 0x630   : > { %5523 = vmatpush1.msra.mxu1 %v5265_v32  ;;  %8876 = vmatprep.subr.bf16.mxu0 %v11736_v44  ;;  %v5816_v32 = vsub.f32 %v11856_v59, %v5815_v24 }
 0x631   : > { %8872 = vmatprep.subr.bf16.mxu1 %v11616_v35  ;;  %v5681_v35 = vld [vmem:[%s12944_s21 + $0x68] sm:$0xff] }
 0x632   : > { %5145 = vmatmul.mubr.f32.vlgmr.msra.gmra.mrb[6].mxu0 %v11519_v58  ;;  %v5724_v29 = vand.u32 4294901760, %v5681_v35  ;;  %v5817_v61 = vand.u32 4294901760, %v5816_v32  ;;  %v11932_v32 = vpack.c.bf16 %v11904_v36, %v11902_v2 }
 0x633   : > { %5584 = vmatmul.mubr.f32.vlgmr.msra.gmra.mrb[6].mxu1 %v11519_v58  ;;  %8878 = vmatpush3.bf16.msra.mxu0 %v11736_v44 }
 0x634   : > { %8874 = vmatpush1.bf16.msra.mxu1 %v11605_v33  ;;  %5660 = vmatprep.mubr.f32.mxu1 %v12880_v51  ;;  %v5712_v33 = vand.u32 4294901760, %v11800_v49  ;;  %v11872_v3 = vpack.c.bf16 %v5817_v61, %v5810_v9  ;;  %v11890_v4 = vsub.f32 %v5681_v35, %v5724_v29  ;;  %v11937_v9 = vsub.f32 %v11722_v16, %v5691_v12 }
 0x635   : > { %5599 = vmatprep.subr.mxu1 %v11612_v17  ;;  %8880 = vmatprep.subr.bf16.mxu0 %v11765_v48  ;;  %v5680_v17 = vld [vmem:[%s12944_s21 + $0x60] sm:$0xff]  ;;  %v11942_v61 = vsub.f32 %v11727_v5, %v5694_v19  ;;  %v11954_v16 = vsub.f32 %v11751_v7, %v5700_v55  ;;  %v11971_v55 = vsub.f32 %v11770_v63, %v5703_v45 }
 0x636   : > { %v11820_v57 = vpack.c.bf16 %v5712_v33, %v5709_v43  ;;  %v5721_v37 = vand.u32 4294901760, %v5680_v17  ;;  %v12821_v42 = vand.u32 4294901760, %v11890_v4 }
 0x637   : > { %8882 = vmatpush3.bf16.msra.mxu0 %v11765_v48  ;;  %v12827_v40 = vand.u32 4294901760, %v11942_v61  ;;  %v12825_v7 = vand.u32 4294901760, %v11954_v16  ;;  %v12948_v59 = vand.u32 4294901760, %v11954_v16 }
 0x638   : > { %5601 = vmatpush1.msra.mxu1 %v11614_v47  ;;  %8884 = vmatprep.subr.bf16.mxu0 %v11786_v10  ;;  %v11839_v23 = vpack.c.bf16 %v5724_v29, %v5721_v37  ;;  %v11888_v28 = vsub.f32 %v5680_v17, %v5721_v37  ;;  %v5900_v18 = vsub.f32 %v11890_v4, %v12821_v42  ;;  %v12820_v17 = vand.u32 4294901760, %v11902_v2 }
 0x63a   : > { %v12822_v53 = vand.u32 4294901760, %v11888_v28  ;;  %v5901_v6 = vand.u32 4294901760, %v5900_v18  ;;  %v5907_v35 = vsub.f32 %v11902_v2, %v12820_v17  ;;  %v11928_v41 = vpack.c.bf16 %v11890_v4, %v11888_v28 }
 0x63b   : > { %5662 = vmatmul.mubr.f32.vlgmr.msra.gmra.mrb[6].mxu1 %v11519_v58  ;;  %8886 = vmatpush3.bf16.msra.mxu0 %v11786_v10  ;;  %v5678_v58 = vld [vmem:[%s12944_s21 + $0x50] sm:$0xff] }
 0x63c   : > { %8888 = vmatprep.subr.bf16.mxu0 %v11809_v0  ;;  %v5715_v47 = vand.u32 4294901760, %v5678_v58  ;;  %v5893_v31 = vsub.f32 %v11888_v28, %v12822_v53  ;;  %v5908_v29 = vand.u32 4294901760, %v5907_v35 }
 0x63e   : > { %v11837_v38 = vpack.c.bf16 %v5718_v21, %v5715_v47  ;;  %v11876_v8 = vsub.f32 %v5678_v58, %v5715_v47  ;;  %v5894_v58 = vand.u32 4294901760, %v5893_v31  ;;  %v12819_v47 = vand.u32 4294901760, %v11904_v36 }
 0x63f   : > { %8890 = vmatpush3.bf16.msra.mxu0 %v11809_v0 }
 0x640   : > { %8892 = vmatprep.subr.bf16.mxu0 %v11820_v57  ;;  %v12824_v54 = vand.u32 4294901760, %v11876_v8  ;;  %v11908_v21 = vpack.c.bf16 %v5901_v6, %v5894_v58  ;;  %v5914_v37 = vsub.f32 %v11904_v36, %v12819_v47  ;;  %v11924_v15 = vpack.c.bf16 %v11878_v20, %v11876_v8 }
 0x641   : > { %v12005_v47 = vsub.f32 %v11800_v49, %v5712_v33 }
 0x642   : > { %v5879_v14 = vsub.f32 %v11876_v8, %v12824_v54  ;;  %v5915_v1 = vand.u32 4294901760, %v5914_v37  ;;  %v11979_v37 = vsub.f32 %v11775_v46, %v5706_v50  ;;  %v5850_v46 = vand.u32 4294901760, %v11971_v55 }
 0x643   : > { %8894 = vmatpush3.bf16.msra.mxu0 %v11820_v57 }
 0x644   : > { %8896 = vmatprep.subr.bf16.mxu0 %v11837_v38  ;;  %v5880_v13 = vand.u32 4294901760, %v5879_v14  ;;  %v11920_v27 = vpack.c.bf16 %v5915_v1, %v5908_v29  ;;  %v12828_v14 = vand.u32 4294901760, %v11937_v9 }
 0x646   : > { %v11894_v11 = vpack.c.bf16 %v5887_v52, %v5880_v13  ;;  %v11949_v13 = vsub.f32 %v11746_v26, %v5697_v39  ;;  %v4628_v52 = vpop.permute.xlu0 %4627  ;;  %v5823_v58 = vsub.f32 %v11937_v9, %v12828_v14  ;;  %v5830_v26 = vsub.f32 %v11942_v61, %v12827_v40 }
 0x647   : > { %8898 = vmatpush3.bf16.msra.mxu0 %v11837_v38 }
 0x648   : > { %8900 = vmatprep.subr.bf16.mxu0 %v11839_v23  ;;  %v12826_v39 = vand.u32 4294901760, %v11949_v13  ;;  %v12947_v25 = vand.u32 4294901760, %v11949_v13 }
 0x64a   : > { %v5837_v63 = vsub.f32 %v11949_v13, %v12826_v39 }
 0x64b   : > { %8902 = vmatpush3.bf16.msra.mxu0 %v11839_v23 }
 0x64c   : > { %8904 = vmatprep.subr.bf16.mxu0 %v11862_v56  ;;  %v5838_v39 = vand.u32 4294901760, %v5837_v63 }
 0x64f   : > { %8906 = vmatpush3.bf16.msra.mxu0 %v11862_v56 }
 0x650   : > { %8908 = vmatprep.subr.bf16.mxu0 %v11872_v3 }
 0x705   : > { %v5146_v31 = vpop.f32.mrb[6].mxu0 }
 0x706   : > { %v9305_v12 = vadd.f32 %v5146_v31, %v4628_v52  ;;  %v5148_v18 = vpop.f32.mrb[7].mxu0  ;;  %v5824_v31 = vand.u32 4294901760, %v5823_v58  ;;  %v5857_v58 = vand.u32 4294901760, %v11979_v37 }
 0x707   : > { %v9306_v5 = vadd.f32 %v5148_v18, %v4628_v52  ;;  %v5831_v18 = vand.u32 4294901760, %v5830_v26  ;;  %v12000_v26 = vsub.f32 %v11795_v22, %v5709_v43  ;;  %v5851_v43 = vsub.f32 %v11971_v55, %v5850_v46 }
 0x708   : > { %v11956_v19 = vand.u32 4294901760, %v9305_v12  ;;  %v5858_v33 = vsub.f32 %v11979_v37, %v5857_v58 }
 0x709   : > { %v11965_v6 = vand.u32 4294901760, %v9306_v5  ;;  %v5852_v63 = vand.u32 4294901760, %v5851_v43 }
 0x70a   : > { %v11974_v35 = vsub.f32 %v9305_v12, %v11956_v19  ;;  %v5844_v12 = vsub.f32 %v11954_v16, %v12825_v7  ;;  %v8911_v7 = vpack.c.bf16 %v5831_v18, %v5824_v31 }
 0x70b   : > { %v11982_v29 = vsub.f32 %v9306_v5, %v11965_v6 }
 0x70c   : > { %v5767_v1 = vand.u32 4294901760, %v11974_v35  ;;  %v5845_v22 = vand.u32 4294901760, %v5844_v12 }
 0x70d   : > { %v5777_v45 = vand.u32 4294901760, %v11982_v29 }
 0x70e   : > { %v5663_v50 = vpop.f32.mrb[6].mxu1  ;;  %v5768_v5 = vsub.f32 %v11974_v35, %v5767_v1  ;;  %v8915_v18 = vpack.c.bf16 %v5845_v22, %v5838_v39 }
 0x70f   : > { %v5778_v17 = vsub.f32 %v11982_v29, %v5777_v45  ;;  %v9307_v42 = vadd.f32 %v5663_v50, %v4628_v52  ;;  %v5665_v53 = vpop.f32.mrb[7].mxu1  ;;  %v5859_v50 = vand.u32 4294901760, %v5858_v33 }
 0x710   : > { %v9308_v62 = vadd.f32 %v5665_v53, %v4628_v52  ;;  %v5769_v54 = vand.u32 4294901760, %v5768_v5  ;;  %v5864_v53 = vand.u32 4294901760, %v12000_v26  ;;  %v12829_v52 = vand.u32 4294901760, %v12005_v47 }
 0x711   : > { %v12010_v40 = vand.u32 4294901760, %v9307_v42  ;;  %v5779_v14 = vand.u32 4294901760, %v5778_v17  ;;  %v8919_v22 = vpack.c.bf16 %v5859_v50, %v5852_v63 }
 0x712   : > { %v12015_v49 = vand.u32 4294901760, %v9308_v62  ;;  %8205 = vmatprep.mubr.f32.mxu0 %v5769_v54  ;;  %v5865_v5 = vsub.f32 %v12000_v26, %v5864_v53 }
 0x713   : > { %v12023_v31 = vsub.f32 %v9307_v42, %v12010_v40  ;;  %8206 = vmatmul.mubr.f32.vlgmr.msra.gmra.mrb[8].mxu0 %v5779_v14  ;;  %v5872_v42 = vsub.f32 %v12005_v47, %v12829_v52 }
 0x714   : > { %v12026_v17 = vsub.f32 %v9308_v62, %v12015_v49  ;;  %8910 = vmatpush3.bf16.msra.mxu0 %v11872_v3  ;;  %v5866_v43 = vand.u32 4294901760, %v5865_v5 }
 0x715   : > { %8912 = vmatprep.subr.bf16.mxu0 %v8911_v7  ;;  %v5787_v54 = vand.u32 4294901760, %v12023_v31  ;;  %v5873_v33 = vand.u32 4294901760, %v5872_v42 }
 0x716   : > { %v5797_v12 = vand.u32 4294901760, %v12026_v17 }
 0x717   : > { %v5788_v3 = vsub.f32 %v12023_v31, %v5787_v54  ;;  %v8923_v52 = vpack.c.bf16 %v5873_v33, %v5866_v43 }
 0x718   : > { %8914 = vmatpush3.bf16.msra.mxu0 %v8911_v7  ;;  %v5798_v62 = vsub.f32 %v12026_v17, %v5797_v12  ;;  %v8943_v7 = vpack.c.bf16 %v11942_v61, %v11937_v9 }
 0x719   : > { %v5789_v14 = vand.u32 4294901760, %v5788_v3  ;;  %8916 = vmatprep.subr.bf16.mxu0 %v8915_v18 }
 0x71a   : > { %v5799_v39 = vand.u32 4294901760, %v5798_v62 }
 0x71b   : > { %8208 = vmatprep.mubr.f32.mxu0 %v5789_v14 }
 0x71c   : > { %8209 = vmatmul.mubr.f32.gmra.mrb[10].mxu0 %v5799_v39 }
 0x71d   : > { %8918 = vmatpush3.bf16.msra.mxu0 %v8915_v18  ;;  %8243 = vmatprep.mubr.f32.mxu0 %v11956_v19 }
 0x71e   : > { %8920 = vmatprep.subr.bf16.mxu0 %v8919_v22 }
 0x721   : > { %8922 = vmatpush3.bf16.msra.mxu0 %v8919_v22 }
 0x722   : > { %8924 = vmatprep.subr.bf16.mxu0 %v8923_v52 }
 0x725   : > { %8926 = vmatpush3.bf16.msra.mxu0 %v8923_v52 }
 0x726   : > { %8928 = vmatprep.subr.bf16.mxu0 %v11894_v11 }
 0x729   : > { %8930 = vmatpush3.bf16.msra.mxu0 %v11894_v11  ;;  %v8947_v11 = vpack.c.bf16 %v11954_v16, %v11949_v13  ;;  %v12950_v13 = vand.u32 4294901760, %v11876_v8  ;;  %v12951_v16 = vand.u32 4294901760, %v11878_v20 }
 0x72a   : > { %8932 = vmatprep.subr.bf16.mxu0 %v11908_v21 }
 0x72d   : > { %8934 = vmatpush3.bf16.msra.mxu0 %v11908_v21  ;;  %v8951_v21 = vpack.c.bf16 %v11979_v37, %v11971_v55  ;;  %v12952_v55 = vand.u32 4294901760, %v11888_v28  ;;  %v12953_v37 = vand.u32 4294901760, %v11890_v4  ;;  %v12159_v28 = vld [vmem:[%s12956_s4] sm:$0xff]  ;;  %v12164_v4 = vld [vmem:[%s12956_s4 + $0x8] sm:$0xff] }
 0x72e   : > { %8936 = vmatprep.subr.bf16.mxu0 %v11920_v27 }
 0x731   : > { %8938 = vmatpush3.bf16.msra.mxu0 %v11920_v27  ;;  %v8955_v27 = vpack.c.bf16 %v12005_v47, %v12000_v26 }
 0x732   : > { %8940 = vmatprep.subr.bf16.mxu0 %v11918_v60 }
 0x734   : > { %8244 = vmatmul.mubr.f32.vlgmr.msra.gmra.mrb[8].mxu0 %v11965_v6 }
 0x735   : > { %8246 = vmatprep.mubr.f32.mxu0 %v12010_v40  ;;  %8942 = vmatpush3.bf16.msra.mxu0 %v11918_v60  ;;  %v9003_v60 = vpack.c.bf16 %v5815_v24, %v5808_v30  ;;  %v9011_v30 = vpack.c.bf16 %v12948_v59, %v12947_v25  ;;  %v9015_v24 = vpack.c.bf16 %v5857_v58, %v5850_v46 }
 0x736   : > { %8944 = vmatprep.subr.bf16.mxu0 %v8943_v7 }
 0x738   : > { %8247 = vmatmul.mubr.f32.gmra.mrb[10].mxu0 %v12015_v49 }
 0x739   : > { %8946 = vmatpush3.bf16.msra.mxu0 %v8943_v7  ;;  %8281 = vmatprep.mubr.f32.mxu0 %v11974_v35  ;;  %v9023_v35 = vpack.c.bf16 %v12951_v16, %v12950_v13 }
 0x73a   : > { %8948 = vmatprep.subr.bf16.mxu0 %v8947_v11 }
 0x73d   : > { %8950 = vmatpush3.bf16.msra.mxu0 %v8947_v11 }
 0x73e   : > { %8952 = vmatprep.subr.bf16.mxu0 %v8951_v21 }
 0x741   : > { %8954 = vmatpush3.bf16.msra.mxu0 %v8951_v21 }
 0x742   : > { %8956 = vmatprep.subr.bf16.mxu0 %v8955_v27 }
 0x745   : > { %8958 = vmatpush3.bf16.msra.mxu0 %v8955_v27 }
 0x746   : > { %8960 = vmatprep.subr.bf16.mxu0 %v11924_v15 }
 0x749   : > { %8962 = vmatpush3.bf16.msra.mxu0 %v11924_v15  ;;  %v12945_v15 = vand.u32 4294901760, %v11937_v9  ;;  %v12949_v9 = vand.u32 4294901760, %v12005_v47  ;;  %v12955_v47 = vand.u32 4294901760, %v11904_v36  ;;  %v6554_v36 = vand.u32 4294901760, %v12159_v28 }
 0x74a   : > { %8964 = vmatprep.subr.bf16.mxu0 %v11928_v41 }
 0x74d   : > { %8966 = vmatpush3.bf16.msra.mxu0 %v11928_v41  ;;  %v12946_v41 = vand.u32 4294901760, %v11942_v61  ;;  %v9019_v61 = vpack.c.bf16 %v12949_v9, %v5864_v53  ;;  %v6538_v9 = vld [vmem:[%s12956_s4 + $0x28] sm:$0xff] }
 0x74e   : > { %8968 = vmatprep.subr.bf16.mxu0 %v11932_v32  ;;  %v6569_v13 = vand.u32 4294901760, %v6538_v9 }
 0x751   : > { %8970 = vmatpush3.bf16.msra.mxu0 %v11932_v32  ;;  %v9007_v32 = vpack.c.bf16 %v12946_v41, %v12945_v15 }
 0x752   : > { %8972 = vmatprep.subr.bf16.mxu0 %v11736_v44 }
 0x754   : > { %8282 = vmatmul.mubr.f32.vlgmr.msra.gmra.mrb[8].mxu0 %v11982_v29  ;;  %v9027_v29 = vpack.c.bf16 %v12953_v37, %v12952_v55  ;;  %v6539_v37 = vld [vmem:[%s12956_s4 + $0x30] sm:$0xff] }
 0x755   : > { %8284 = vmatprep.mubr.f32.mxu0 %v12023_v31  ;;  %8974 = vmatpush3.bf16.msra.mxu0 %v11736_v44 }
 0x756   : > { %8976 = vmatprep.subr.bf16.mxu0 %v11765_v48 }
 0x758   : > { %8285 = vmatmul.mubr.f32.gmra.mrb[10].mxu0 %v12026_v17 }
 0x759   : > { %8978 = vmatpush3.bf16.msra.mxu0 %v11765_v48  ;;  %8319 = vmatprep.mubr.f32.mxu0 %v5767_v1  ;;  %v12954_v1 = vand.u32 4294901760, %v11902_v2  ;;  %v12169_v2 = vld [vmem:[%s12956_s4 + $0x10] sm:$0xff] }
 0x75a   : > { %8980 = vmatprep.subr.bf16.mxu0 %v11786_v10 }
 0x75d   : > { %8982 = vmatpush3.bf16.msra.mxu0 %v11786_v10 }
 0x75e   : > { %8984 = vmatprep.subr.bf16.mxu0 %v11809_v0 }
 0x761   : > { %8986 = vmatpush3.bf16.msra.mxu0 %v11809_v0 }
 0x762   : > { %8988 = vmatprep.subr.bf16.mxu0 %v11820_v57 }
 0x765   : > { %8990 = vmatpush3.bf16.msra.mxu0 %v11820_v57 }
 0x766   : > { %8992 = vmatprep.subr.bf16.mxu0 %v11837_v38 }
 0x769   : > { %8994 = vmatpush3.bf16.msra.mxu0 %v11837_v38 }
 0x76a   : > { %8996 = vmatprep.subr.bf16.mxu0 %v11839_v23 }
 0x76d   : > { %8998 = vmatpush3.bf16.msra.mxu0 %v11839_v23 }
 0x76e   : > { %9000 = vmatprep.subr.bf16.mxu0 %v11862_v56 }
 0x771   : > { %9002 = vmatpush3.bf16.msra.mxu0 %v11862_v56 }
 0x772   : > { %9004 = vmatprep.subr.bf16.mxu0 %v9003_v60 }
 0x774   : > { %8320 = vmatmul.mubr.f32.vlgmr.msra.gmra.mrb[8].mxu0 %v5777_v45  ;;  %v9031_v45 = vpack.c.bf16 %v12955_v47, %v12954_v1  ;;  %v6541_v1 = vld [vmem:[%s12956_s4 + $0x40] sm:$0xff]  ;;  %v6572_v47 = vand.u32 4294901760, %v6539_v37 }
 0x775   : > { %8322 = vmatprep.mubr.f32.mxu0 %v5787_v54  ;;  %9006 = vmatpush3.bf16.msra.mxu0 %v9003_v60 }
 0x776   : > { %9008 = vmatprep.subr.bf16.mxu0 %v9007_v32 }
 0x778   : > { %8323 = vmatmul.mubr.f32.gmra.mrb[10].mxu0 %v5797_v12 }
 0x779   : > { %9010 = vmatpush3.bf16.msra.mxu0 %v9007_v32  ;;  %8357 = vmatprep.mubr.f32.mxu0 %v11956_v19 }
 0x77a   : > { %9012 = vmatprep.subr.bf16.mxu0 %v9011_v30 }
 0x77d   : > { %9014 = vmatpush3.bf16.msra.mxu0 %v9011_v30 }
 0x77e   : > { %9016 = vmatprep.subr.bf16.mxu0 %v9015_v24 }
 0x781   : > { %9018 = vmatpush3.bf16.msra.mxu0 %v9015_v24  ;;  %v6537_v24 = vld [vmem:[%s12956_s4 + $0x20] sm:$0xff] }
 0x782   : > { %9020 = vmatprep.subr.bf16.mxu0 %v9019_v61 }
 0x785   : > { %9022 = vmatpush3.bf16.msra.mxu0 %v9019_v61  ;;  %v6566_v61 = vand.u32 4294901760, %v6537_v24 }
 0x786   : > { %9024 = vmatprep.subr.bf16.mxu0 %v9023_v35 }
 0x787   : > { %v12210_v16 = vpack.c.bf16 %v6569_v13, %v6566_v61 }
 0x789   : > { %9026 = vmatpush3.bf16.msra.mxu0 %v9023_v35 }
 0x78a   : > { %9028 = vmatprep.subr.bf16.mxu0 %v9027_v29 }
 0x78d   : > { %9030 = vmatpush3.bf16.msra.mxu0 %v9027_v29  ;;  %v6540_v29 = vld [vmem:[%s12956_s4 + $0x38] sm:$0xff] }
 0x78e   : > { %9032 = vmatprep.subr.bf16.mxu0 %v9031_v45 }
 0x791   : > { %9034 = vmatpush3.bf16.msra.mxu0 %v9031_v45  ;;  %v6575_v45 = vand.u32 4294901760, %v6540_v29 }
 0x792   : > { %9036 = vmatprep.subr.bf16.mxu0 %v11736_v44 }
 0x794   : > { %8358 = vmatmul.mubr.f32.vlgmr.msra.gmra.mrb[8].mxu0 %v11965_v6 }
 0x795   : > { %8360 = vmatprep.mubr.f32.mxu0 %v12010_v40  ;;  %9038 = vmatpush3.bf16.msra.mxu0 %v11736_v44 }
 0x796   : > { %9040 = vmatprep.subr.bf16.mxu0 %v11765_v48 }
 0x798   : > { %8361 = vmatmul.mubr.f32.gmra.mrb[10].mxu0 %v12015_v49 }
 0x799   : > { %9042 = vmatpush3.bf16.msra.mxu0 %v11765_v48  ;;  %8395 = vmatprep.mubr.f32.mxu0 %v11956_v19  ;;  %v12176_v19 = vld [vmem:[%s12956_s4 + $0x18] sm:$0xff] }
 0x79a   : > { %9044 = vmatprep.subr.bf16.mxu0 %v11786_v10  ;;  %v6563_v46 = vand.u32 4294901760, %v12176_v19 }
 0x79d   : > { %9046 = vmatpush3.bf16.msra.mxu0 %v11786_v10 }
 0x79e   : > { %9048 = vmatprep.subr.bf16.mxu0 %v11809_v0 }
 0x7a1   : > { %9050 = vmatpush3.bf16.msra.mxu0 %v11809_v0 }
 0x7a2   : > { %9052 = vmatprep.subr.bf16.mxu0 %v11820_v57 }
 0x7a5   : > { %9054 = vmatpush3.bf16.msra.mxu0 %v11820_v57 }
 0x7a6   : > { %9056 = vmatprep.subr.bf16.mxu0 %v11837_v38 }
 0x7a9   : > { %9058 = vmatpush3.bf16.msra.mxu0 %v11837_v38 }
 0x7aa   : > { %9060 = vmatprep.subr.bf16.mxu0 %v11839_v23 }
 0x7ad   : > { %9062 = vmatpush3.bf16.msra.mxu0 %v11839_v23 }
 0x7ae   : > { %9064 = vmatprep.subr.bf16.mxu0 %v11862_v56 }
 0x7b1   : > { %9066 = vmatpush3.bf16.msra.mxu0 %v11862_v56 }
 0x7b4   : > { %8396 = vmatmul.mubr.f32.vlgmr.msra.gmra.mrb[8].mxu0 %v11965_v6  ;;  %v6560_v6 = vand.u32 4294901760, %v12169_v2 }
 0x7b5   : > { %8398 = vmatprep.mubr.f32.mxu0 %v12010_v40  ;;  %v6557_v40 = vand.u32 4294901760, %v12164_v4 }
 0x7b6   : > { %v12190_v26 = vpack.c.bf16 %v6563_v46, %v6560_v6 }
 0x7b7   : > { %v12184_v58 = vpack.c.bf16 %v6557_v40, %v6554_v36 }
 0x7b8   : > { %8399 = vmatmul.mubr.f32.gmra.mrb[10].mxu0 %v12015_v49 }
 0x7b9   : > { %7877 = vmatprep.mubr.f32.mxu0 %v12880_v51  ;;  %9068 = vmatprep.subr.bf16.mxu1 %v12184_v58 }
 0x7ba   : > { %9070 = vmatpush3.bf16.msra.mxu1 %v12184_v58 }
 0x7bb   : > { %9072 = vmatprep.subr.bf16.mxu1 %v12190_v26 }
 0x7be   : > { %9074 = vmatpush3.bf16.msra.mxu1 %v12190_v26 }
 0x7bf   : > { %9076 = vmatprep.subr.bf16.mxu1 %v12210_v16 }
 0x7c2   : > { %9078 = vmatpush3.bf16.msra.mxu1 %v12210_v16 }
 0x887   : > { %v8397_v44 = vpop.f32.mrb[8].mxu0 }
 0x888   : > { %v6432_v48 = vpop.f32.mrb[9].mxu0 }
 0x88b   : > { %v8400_v10 = vpop.f32.mrb[10].mxu0 }
 0x88c   : > { %v6455_v0 = vmul.f32 %v8400_v10, %v8397_v44  ;;  %6478 = vrot.lane.b32.xlu0 %v8400_v10, %s12830_s8  ;;  %v6444_v57 = vpop.f32.mrb[11].mxu0 }
 0x88d   : > { %v6454_v38 = vmul.f32 %v6444_v57, %v6432_v48  ;;  %6476 = vrot.lane.b32.xlu1 %v6444_v57, %s12830_s8  ;;  %s12958_s8 = smov 127  }
 0x890   : > { %6470 = vrot.lane.b32.xlu0 %v8400_v10, %s9798_s9  ;;  %v6650_v10 = vsub.f32 %v12159_v28, %v6554_v36 }
 0x891   : > { %6468 = vrot.lane.b32.xlu1 %v6444_v57, %s9798_s9  ;;  %v6657_v57 = vsub.f32 %v12164_v4, %v6557_v40 }
 0x895   : > { %6458 = vrot.lane.b32.xlu1 %v6454_v38, %s9798_s9 }
 0x899   : > { %6460 = vrot.lane.b32.xlu1 %v6455_v0, %s9798_s9 }
 0x8fe   : > { %v6479_v8 = vpop.permute.xlu0 %6478 }
 0x8ff   : > { %v6477_v23 = vpop.permute.xlu1 %6476  ;;  %v6483_v20 = vmul.f32 %v8397_v44, %v6479_v8 }
 0x900   : > { %v6482_v56 = vmul.f32 %v6477_v23, %v6432_v48 }
 0x902   : > { %6486 = vrot.lane.b32.xlu0 %v6482_v56, %s9798_s9  ;;  %v6471_v52 = vpop.permute.xlu0 %6470  ;;  %v6651_v56 = vand.u32 4294901760, %v6650_v10 }
 0x903   : > { %v6469_v49 = vpop.permute.xlu1 %6468  ;;  %v6475_v12 = vmul.f32 %v8397_v44, %v6471_v52  ;;  %v6542_v44 = vld [vmem:[%s12956_s4 + $0x48] sm:$0x3f] }
 0x904   : > { %v6474_v31 = vmul.f32 %v6469_v49, %v6432_v48  ;;  %v6578_v48 = vand.u32 4294901760, %v6541_v1  ;;  %v6652_v28 = vsub.f32 %v6650_v10, %v6651_v56 }
 0x906   : > { %6488 = vrot.lane.b32.xlu0 %v6483_v20, %s9798_s9  ;;  %v6658_v20 = vand.u32 4294901760, %v6657_v57  ;;  %v6653_v4 = vand.u32 4294901760, %v6652_v28  ;;  %s12832_s9 = smov 2  }
 0x907   : > { %v6459_v53 = vpop.permute.xlu1 %6458 }
 0x908   : > { %v12196_v17 = vadd.f32 %v6459_v53, %v6454_v38  ;;  %v12237_v38 = vpack.c.bf16 %v6575_v45, %v6572_v47  ;;  %v6659_v36 = vsub.f32 %v6657_v57, %v6658_v20 }
 0x90a   : > { %v6494_v50 = vmul.f32 %v12196_v17, %v12196_v17  ;;  %9080 = vmatprep.subr.bf16.mxu1 %v12237_v38  ;;  %v6660_v40 = vand.u32 4294901760, %v6659_v36 }
 0x90b   : > { %v6461_v18 = vpop.permute.xlu1 %6460  ;;  %9082 = vmatpush3.bf16.msra.mxu1 %v12237_v38 }
 0x90c   : > { %v12200_v42 = vadd.f32 %v6461_v18, %v6455_v0  ;;  %v6551_v0 = vsel %vm1016_vm10, %v6542_v44, 0  ;;  %v12246_v52 = vpack.c.bf16 %v6660_v40, %v6653_v4  ;;  %v12255_v44 = vpack.c.bf16 %v6658_v20, %v6651_v56 }
 0x90d   : > { %v6581_v23 = vand.u32 4294901760, %v6551_v0  ;;  %vm7169_vm10 = vcmask 146432  }
 0x90e   : > { %v6495_v39 = vmul.f32 %v12200_v42, %v12200_v42 }
 0x90f   : > { %v12240_v53 = vpack.c.bf16 %v6581_v23, %v6578_v48 }
 0x911   : > { %9084 = vmatprep.subr.bf16.mxu1 %v12240_v53 }
 0x912   : > { %9086 = vmatpush3.bf16.msra.mxu1 %v12240_v53 }
 0x913   : > { %9088 = vmatprep.subr.bf16.mxu1 %v12246_v52 }
 0x974   : > { %v6487_v54 = vpop.permute.xlu0 %6486 }
 0x975   : > { %v6492_v63 = vsub.f32 %v6474_v31, %v6487_v54  ;;  %v6678_v31 = vsub.f32 %v6537_v24, %v6566_v61  ;;  %v6685_v54 = vsub.f32 %v6538_v9, %v6569_v13  ;;  %v9107_v9 = vpack.c.bf16 %v6657_v57, %v6650_v10 }
 0x977   : > { %v6496_v5 = vmul.f32 %v6492_v63, %v6492_v63  ;;  %v6679_v18 = vand.u32 4294901760, %v6678_v31  ;;  %v9115_v13 = vpack.c.bf16 %v6685_v54, %v6678_v31 }
 0x978   : > { %v6489_v3 = vpop.permute.xlu0 %6488 }
 0x979   : > { %v6498_v62 = vadd.f32 %v6496_v5, %v6494_v50  ;;  %v6493_v14 = vsub.f32 %v6475_v12, %v6489_v3  ;;  %v6680_v12 = vsub.f32 %v6678_v31, %v6679_v18  ;;  %v6692_v5 = vsub.f32 %v6539_v37, %v6572_v47 }
 0x97a   : > { %v6699_v3 = vsub.f32 %v6540_v29, %v6575_v45  ;;  %v6664_v29 = vsub.f32 %v12169_v2, %v6560_v6 }
 0x97b   : > { %9709 = vrsqrt.f32 %v6498_v62  ;;  %v6497_v22 = vmul.f32 %v6493_v14, %v6493_v14  ;;  %vm6502_vm12 = vcmp.eq.f32.partialorder %v6498_v62, inf  ;;  %v6505_v11 = vand.u32 2147483648, %v6498_v62 }
 0x97c   : > { %vm6504_vm14 = vcmp.eq.f32.partialorder %v6498_v62, 0.0  ;;  %v6665_v47 = vand.u32 4294901760, %v6664_v29 }
 0x97d   : > { %v6499_v43 = vadd.f32 %v6497_v22, %v6495_v39  ;;  %v6693_v39 = vand.u32 4294901760, %v6692_v5  ;;  %v6700_v22 = vand.u32 4294901760, %v6699_v3 }
 0x97e   : > { %v6666_v31 = vsub.f32 %v6664_v29, %v6665_v47 }
 0x97f   : > { %9711 = vrsqrt.f32 %v6499_v43  ;;  %vm6509_vm15 = vcmp.eq.f32.partialorder %v6499_v43, inf  ;;  %v6512_v32 = vand.u32 2147483648, %v6499_v43  ;;  %vm6511_vm0 = vcmp.eq.f32.partialorder %v6499_v43, 0.0 }
 0x980   : > { %v12261_v10 = vpack.c.bf16 %v6700_v22, %v6693_v39 }
 0x985   : > { %v9710_v33 = vpop.eup %9709 }
 0x986   : > { %v6501_v7 = vmul.f32 %v9710_v33, %v6498_v62  ;;  %v6694_v33 = vsub.f32 %v6692_v5, %v6693_v39 }
 0x988   : > { %v6503_v21 = vsel %vm6502_vm12, %v6498_v62, %v6501_v7  ;;  %v6681_v62 = vand.u32 4294901760, %v6680_v12  ;;  %v6706_v7 = vsub.f32 %v6541_v1, %v6578_v48  ;;  %v6671_v1 = vsub.f32 %v12176_v19, %v6563_v46 }
 0x989   : > { %v6506_v27 = vsel %vm6504_vm14, %v6505_v11, %v6503_v21  ;;  %v9712_v60 = vpop.eup %9711  ;;  %v6713_v11 = vsub.f32 %v6551_v0, %v6581_v23  ;;  %v6701_v21 = vsub.f32 %v6699_v3, %v6700_v22  ;;  %v6667_v12 = vand.u32 4294901760, %v6666_v31  ;;  %v7176_v22 = vld [vmem:[%s12740_s13] sm:$0xff] }
 0x98a   : > { %v6514_v15 = vadd.f32 0.001, %v6506_v27  ;;  %v6508_v41 = vmul.f32 %v9712_v60, %v6499_v43  ;;  %v6695_v27 = vand.u32 4294901760, %v6694_v33  ;;  %v6707_v60 = vand.u32 4294901760, %v6706_v7 }
 0x98b   : > { %v9123_v37 = vpack.c.bf16 %v6713_v11, %v6706_v7  ;;  %v6672_v45 = vand.u32 4294901760, %v6671_v1  ;;  %vm7196_vm12 = vcmp.lt.s32.totalorder %v12922_v34, 3  ;;  %vm7210_vm14 = vcmp.lt.s32.totalorder %v12922_v34, 1 }
 0x98c   : > { %9713 = vrcp.f32 %v6514_v15  ;;  %v6510_v25 = vsel %vm6509_vm15, %v6499_v43, %v6508_v41  ;;  %v6714_v15 = vand.u32 4294901760, %v6713_v11  ;;  %v6702_v41 = vand.u32 4294901760, %v6701_v21 }
 0x98d   : > { %v6513_v59 = vsel %vm6511_vm0, %v6512_v32, %v6510_v25  ;;  %v6708_v32 = vsub.f32 %v6706_v7, %v6707_v60  ;;  %v12257_v48 = vpack.c.bf16 %v6672_v45, %v6665_v47  ;;  %vm9804_vm15 = vmmov 1  }
 0x98e   : > { %v6515_v30 = vadd.f32 0.001, %v6513_v59  ;;  %v6715_v25 = vsub.f32 %v6713_v11, %v6714_v15  ;;  %v9099_v59 = vpack.c.bf16 %v6702_v41, %v6695_v27  ;;  %v12263_v57 = vpack.c.bf16 %v6714_v15, %v6707_v60  ;;  %vm9196_vm0 = vmpackc.low %vm7169_vm10, %vm9804_vm15 }
 0x990   : > { %9715 = vrcp.f32 %v6515_v30  ;;  %v6709_v30 = vand.u32 4294901760, %v6708_v32  ;;  %v6716_v24 = vand.u32 4294901760, %v6715_v25 }
 0x992   : > { %v9103_v61 = vpack.c.bf16 %v6716_v24, %v6709_v30 }
 0x996   : > { %v12213_v35 = vpop.eup %9713 }
 0x997   : > { %v6520_v55 = vmul.f32 %v12213_v35, %v6492_v63  ;;  %v6686_v63 = vand.u32 4294901760, %v6685_v54  ;;  %v6518_v2 = vmul.f32 %v12213_v35, %v12196_v17 }
 0x999   : > { %6524 = vrot.lane.b32.xlu1 %v6520_v55, %s12957_s5  ;;  %v6687_v50 = vsub.f32 %v6685_v54, %v6686_v63  ;;  %v9119_v55 = vpack.c.bf16 %v6699_v3, %v6692_v5  ;;  %v12259_v0 = vpack.c.bf16 %v6686_v63, %v6679_v18  ;;  %v6673_v54 = vsub.f32 %v6671_v1, %v6672_v45 }
 0x99a   : > { %v9716_v8 = vpop.eup %9715  ;;  %v9111_v3 = vpack.c.bf16 %v6671_v1, %v6664_v29 }
 0x99b   : > { %v6521_v49 = vmul.f32 %v9716_v8, %v6493_v14  ;;  %v6688_v14 = vand.u32 4294901760, %v6687_v50  ;;  %v6519_v56 = vmul.f32 %v9716_v8, %v12200_v42  ;;  %v6674_v50 = vand.u32 4294901760, %v6673_v54 }
 0x99d   : > { %6526 = vrot.lane.b32.xlu0 %v6521_v49, %s12957_s5  ;;  %v9095_v43 = vpack.c.bf16 %v6688_v14, %v6681_v62  ;;  %v9091_v8 = vpack.c.bf16 %v6674_v50, %v6667_v12 }
 0xa0b   : > { %v6525_v6 = vpop.permute.xlu1 %6524 }
 0xa0c   : > { %v6531_v23 = vsel %vm6530_vm3, %v6518_v2, %v6525_v6 }
 0xa0d   : > { %v6545_v19 = vsel %vm6543_vm6, %v6531_v23, 0 }
 0xa0e   : > { %v12267_v46 = vand.u32 4294901760, %v6545_v19 }
 0xa0f   : > { %v6527_v49 = vpop.permute.xlu0 %6526 }
 0xa10   : > { %v6629_v20 = vsub.f32 %v6545_v19, %v12267_v46  ;;  %v6532_v28 = vsel %vm6530_vm3, %v6519_v56, %v6527_v49  ;;  %vm7253_vm3 = vcmask 719872  }
 0xa11   : > { %v6548_v36 = vsel %vm6543_vm6, %v6532_v28, 0 }
 0xa12   : > { %v6630_v4 = vand.u32 4294901760, %v6629_v20  ;;  %v12271_v40 = vand.u32 4294901760, %v6548_v36 }
 0xa14   : > { %v6631_v18 = vsub.f32 %v6629_v20, %v6630_v4  ;;  %v6639_v17 = vsub.f32 %v6548_v36, %v12271_v40 }
 0xa16   : > { %v6632_v35 = vand.u32 4294901760, %v6631_v18  ;;  %v6640_v63 = vand.u32 4294901760, %v6639_v17 }
 0xa18   : > { %8421 = vmatprep.mubr.f32.mxu1 %v6632_v35  ;;  %v6641_v5 = vsub.f32 %v6639_v17, %v6640_v63 }
 0xa1a   : > { %v6642_v42 = vand.u32 4294901760, %v6641_v5 }
 0xa1c   : > { %8422 = vmatmul.mubr.f32.vlgmr.msra.gmra.mrb[8].mxu1 %v6642_v42 }
 0xa1d   : > { %9090 = vmatpush3.bf16.msra.mxu1 %v12246_v52  ;;  %8444 = vmatprep.mubr.f32.mxu1 %v12267_v46 }
 0xa1e   : > { %9092 = vmatprep.subr.bf16.mxu1 %v9091_v8 }
 0xa21   : > { %9094 = vmatpush3.bf16.msra.mxu1 %v9091_v8 }
 0xa22   : > { %9096 = vmatprep.subr.bf16.mxu1 %v9095_v43 }
 0xa25   : > { %9098 = vmatpush3.bf16.msra.mxu1 %v9095_v43  ;;  %v7177_v43 = vld [vmem:[%s12740_s13 + $0x8] sm:$0xff] }
 0xa26   : > { %9100 = vmatprep.subr.bf16.mxu1 %v9099_v59 }
 0xa29   : > { %9102 = vmatpush3.bf16.msra.mxu1 %v9099_v59 }
 0xa2a   : > { %9104 = vmatprep.subr.bf16.mxu1 %v9103_v61 }
 0xa2d   : > { %9106 = vmatpush3.bf16.msra.mxu1 %v9103_v61 }
 0xa2e   : > { %9108 = vmatprep.subr.bf16.mxu1 %v9107_v9 }
 0xa30   : > { %8445 = vmatmul.mubr.f32.vlgmr.msra.gmra.mrb[8].mxu1 %v12271_v40 }
 0xa31   : > { %9110 = vmatpush3.bf16.msra.mxu1 %v9107_v9  ;;  %8467 = vmatprep.mubr.f32.mxu1 %v6629_v20 }
 0xa32   : > { %9112 = vmatprep.subr.bf16.mxu1 %v9111_v3 }
 0xa35   : > { %9114 = vmatpush3.bf16.msra.mxu1 %v9111_v3 }
 0xa36   : > { %9116 = vmatprep.subr.bf16.mxu1 %v9115_v13 }
 0xa39   : > { %9118 = vmatpush3.bf16.msra.mxu1 %v9115_v13 }
 0xa3a   : > { %9120 = vmatprep.subr.bf16.mxu1 %v9119_v55 }
 0xa3d   : > { %9122 = vmatpush3.bf16.msra.mxu1 %v9119_v55 }
 0xa3e   : > { %9124 = vmatprep.subr.bf16.mxu1 %v9123_v37 }
 0xa41   : > { %9126 = vmatpush3.bf16.msra.mxu1 %v9123_v37 }
 0xa42   : > { %9128 = vmatprep.subr.bf16.mxu1 %v12184_v58 }
 0xa44   : > { %8468 = vmatmul.mubr.f32.vlgmr.msra.gmra.mrb[8].mxu1 %v6639_v17 }
 0xa45   : > { %9130 = vmatpush3.bf16.msra.mxu1 %v12184_v58  ;;  %8490 = vmatprep.mubr.f32.mxu1 %v6630_v4 }
 0xa46   : > { %9132 = vmatprep.subr.bf16.mxu1 %v12190_v26 }
 0xa49   : > { %9134 = vmatpush3.bf16.msra.mxu1 %v12190_v26 }
 0xa4a   : > { %9136 = vmatprep.subr.bf16.mxu1 %v12210_v16 }
 0xa4d   : > { %9138 = vmatpush3.bf16.msra.mxu1 %v12210_v16 }
 0xa4e   : > { %9140 = vmatprep.subr.bf16.mxu1 %v12237_v38 }
 0xa51   : > { %9142 = vmatpush3.bf16.msra.mxu1 %v12237_v38 }
 0xa52   : > { %9144 = vmatprep.subr.bf16.mxu1 %v12240_v53 }
 0xa55   : > { %9146 = vmatpush3.bf16.msra.mxu1 %v12240_v53 }
 0xa56   : > { %9148 = vmatprep.subr.bf16.mxu1 %v12255_v44 }
 0xa58   : > { %8491 = vmatmul.mubr.f32.vlgmr.msra.gmra.mrb[8].mxu1 %v6640_v63 }
 0xa59   : > { %9150 = vmatpush3.bf16.msra.mxu1 %v12255_v44  ;;  %8513 = vmatprep.mubr.f32.mxu1 %v12267_v46 }
 0xa5a   : > { %9152 = vmatprep.subr.bf16.mxu1 %v12257_v48 }
 0xa5d   : > { %9154 = vmatpush3.bf16.msra.mxu1 %v12257_v48 }
 0xa5e   : > { %9156 = vmatprep.subr.bf16.mxu1 %v12259_v0 }
 0xa61   : > { %9158 = vmatpush3.bf16.msra.mxu1 %v12259_v0 }
 0xa62   : > { %9160 = vmatprep.subr.bf16.mxu1 %v12261_v10 }
 0xa65   : > { %9162 = vmatpush3.bf16.msra.mxu1 %v12261_v10 }
 0xa66   : > { %9164 = vmatprep.subr.bf16.mxu1 %v12263_v57 }
 0xa69   : > { %9166 = vmatpush3.bf16.msra.mxu1 %v12263_v57 }
 0xa6a   : > { %9168 = vmatprep.subr.bf16.mxu1 %v12184_v58 }
 0xa6c   : > { %8514 = vmatmul.mubr.f32.vlgmr.msra.gmra.mrb[8].mxu1 %v12271_v40 }
 0xa6d   : > { %9170 = vmatpush3.bf16.msra.mxu1 %v12184_v58  ;;  %8536 = vmatprep.mubr.f32.mxu1 %v12267_v46 }
 0xa6e   : > { %9172 = vmatprep.subr.bf16.mxu1 %v12190_v26 }
 0xa71   : > { %9174 = vmatpush3.bf16.msra.mxu1 %v12190_v26 }
 0xa72   : > { %9176 = vmatprep.subr.bf16.mxu1 %v12210_v16 }
 0xa75   : > { %9178 = vmatpush3.bf16.msra.mxu1 %v12210_v16 }
 0xa76   : > { %9180 = vmatprep.subr.bf16.mxu1 %v12237_v38 }
 0xa79   : > { %9182 = vmatpush3.bf16.msra.mxu1 %v12237_v38 }
 0xa7a   : > { %9184 = vmatprep.subr.bf16.mxu1 %v12240_v53 }
 0xa7d   : > { %9186 = vmatpush3.bf16.msra.mxu1 %v12240_v53 }
 0xa80   : > { %8537 = vmatmul.mubr.f32.vlgmr.msra.gmra.mrb[8].mxu1 %v12271_v40 }
 0xa81   : > { %7324 = vmatprep.mubr.f32.mxu1 %v12880_v51 }
 0xb53   : > { %v8538_v58 = vpop.f32.mrb[8].mxu1 }
 0xb54   : > { %7164 = vrot.lane.b32.xlu0 %v8538_v58, %s9799_s6  ;;  %v7149_v26 = vpop.f32.mrb[9].mxu1 }
 0xb55   : > { %7160 = vrot.lane.b32.xlu1 %v7149_v26, %s9799_s6 }
 0xbc6   : > { %v7165_v16 = vpop.permute.xlu0 %7164 }
 0xbc7   : > { %v12312_v52 = vsel %vm7167_vm9, 0.0, %v7165_v16  ;;  %v7161_v62 = vpop.permute.xlu1 %7160 }
 0xbc8   : > { %v7172_v38 = vsel %vm7169_vm10, %v12312_v52, 0.0  ;;  %v12316_v14 = vsel %vm7167_vm9, 0.0, %v7161_v62 }
 0xbc9   : > { %v7170_v53 = vsel %vm7169_vm10, %v12316_v14, 0.0 }
 0xbca   : > { %v9489_v39 = vpack.i.bf16 %v7172_v38, %v7170_v53 }
 0xbcc   : > { %9490 = vrot.lane.b32.xlu0 %v9489_v39, %s9800_s7  ;;  %9485 = vrot.lane.b32.xlu1 %v9489_v39, %s9799_s6 }
 0xbd0   : > { %9500 = vrot.lane.b32.xlu0 %v9489_v39, %s12832_s9  ;;  %9495 = vrot.lane.b32.xlu1 %v9489_v39, %s9802_s10  ;;  %s12959_s9 = sld [smem:[#allocation24_spill]] }
 0xbd4   : > { %9510 = vrot.lane.b32.xlu0 %v9489_v39, %s12958_s8  ;;  %9505 = vrot.lane.b32.xlu1 %v9489_v39, %s12834_s3 }
 0xbd8   : > { %9520 = vrot.lane.b32.xlu0 %v9489_v39, %s12918_s1  ;;  %9515 = vrot.lane.b32.xlu1 %v9489_v39, %s12942_s0 }
 0xbdc   : > { %7237 = vrot.lane.b32.xlu0 %v7170_v53, %s12856_s28  ;;  %9525 = vrot.lane.b32.xlu1 %v9489_v39, %s12919_s27  ;;  %v7174_v53 = vld [vmem:[%s12739_s12] sm:$0xff] }
 0xbe0   : > { %7245 = vperm.xlu0 %9482, %v7176_v22   ;;  %7239 = vrot.lane.b32.xlu1 %v7172_v38, %s12856_s28  ;;  %v7175_v22 = vld [vmem:[%s12739_s12 + $0x8] sm:$0xff] }
 0xbe4   : > { %7250 = vperm.xlu1 %9483, %v7177_v43  }
 0xc3e   : > { %v9491_v33 = vpop.permute.xlu0 %9490  ;;  %v9486_v7 = vpop.permute.xlu1 %9485 }
 0xc3f   : > { %v9493_v11 = vunpack.i.h.bf16 %v9491_v33  ;;  %v9492_v21 = vunpack.i.l.bf16 %v9491_v33  ;;  %v9488_v27 = vunpack.i.h.bf16 %v9486_v7  ;;  %v9487_v60 = vunpack.i.l.bf16 %v9486_v7 }
 0xc41   : > { %v7191_v15 = vsel %vm7189_vm4, %v9493_v11, %v9492_v21  ;;  %v7184_v41 = vsel %vm7182_vm5, %v9488_v27, %v9487_v60  ;;  %v7183_v32 = vsel %vm7182_vm5, %v9487_v60, %v9488_v27  ;;  %v7190_v25 = vsel %vm7189_vm4, %v9492_v21, %v9493_v11 }
 0xc42   : > { %v9189_v59 = vpack.c.bf16 %v7191_v15, %v7184_v41  ;;  %v9501_v30 = vpop.permute.xlu0 %9500  ;;  %v9496_v24 = vpop.permute.xlu1 %9495  ;;  %v9187_v9 = vpack.c.bf16 %v7190_v25, %v7183_v32  ;;  %v7173_v15 = vld [vmem:[%s12959_s9] sm:$0x3]  ;;  %s12964_s9 = smov 1  }
 0xc43   : > { %v9503_v61 = vunpack.i.h.bf16 %v9501_v30  ;;  %v9502_v13 = vunpack.i.l.bf16 %v9501_v30  ;;  %v9498_v55 = vunpack.i.h.bf16 %v9496_v24  ;;  %v9497_v37 = vunpack.i.l.bf16 %v9496_v24 }
 0xc44   : > { %9188 = vmatprep.subr.bf16.mxu1 %v9187_v9  ;;  %v12960_v9 = vld [vmem:[#allocation8_spill] sm:$0xff] }
 0xc45   : > { %v7205_v29 = vsel %vm7203_vm8, %v9503_v61, %v9502_v13  ;;  %v7198_v1 = vsel %vm7196_vm12, %v9498_v55, %v9497_v37  ;;  %9190 = vmatpush1.bf16.msra.mxu1 %v9189_v59  ;;  %v7197_v47 = vsel %vm7196_vm12, %v9497_v37, %v9498_v55  ;;  %v7204_v45 = vsel %vm7203_vm8, %v9502_v13, %v9503_v61  ;;  %v12961_v37 = vld [vmem:[#allocation7_spill] sm:$0xff] }
 0xc46   : > { %v9193_v44 = vpack.c.bf16 %v7205_v29, %v7198_v1  ;;  %v9511_v48 = vpop.permute.xlu0 %9510  ;;  %v9506_v0 = vpop.permute.xlu1 %9505  ;;  %v9191_v10 = vpack.c.bf16 %v7204_v45, %v7197_v47  ;;  %v12391_v61 = vrot.slane %v7173_v15, %v12960_v9  ;;  %v12962_v29 = vsub.s32 1, %v12961_v37 }
 0xc47   : > { %v9508_v57 = vunpack.i.h.bf16 %v9506_v0  ;;  %v9507_v2 = vunpack.i.l.bf16 %v9506_v0  ;;  %v9513_v6 = vunpack.i.h.bf16 %v9511_v48  ;;  %v9512_v23 = vunpack.i.l.bf16 %v9511_v48 }
 0xc48   : > { %9192 = vmatprep.subr.bf16.mxu1 %v9191_v10  ;;  %v12395_v1 = vrot.slane %v7173_v15, %v12962_v29 }
 0xc49   : > { %v7211_v19 = vsel %vm7210_vm14, %v9507_v2, %v9508_v57  ;;  %v7212_v46 = vsel %vm7210_vm14, %v9508_v57, %v9507_v2  ;;  %9194 = vmatpush1.bf16.msra.mxu1 %v9193_v44  ;;  %v7217_v40 = vsel %vm661_vm1, %v9512_v23, %v9513_v6  ;;  %v7218_v31 = vsel %vm661_vm1, %v9513_v6, %v9512_v23 }
 0xc4a   : > { %v9195_v56 = vpack.c.bf16 %v12312_v52, %v7211_v19  ;;  %v9198_v20 = vpack.c.bf16 %v12316_v14, %v7212_v46  ;;  %v9521_v49 = vpop.permute.xlu0 %9520  ;;  %v9516_v28 = vpop.permute.xlu1 %9515  ;;  %v7361_v46 = vld [vmem:[%s12741_s14 + $0x8] sm:$0xff] }
 0xc4b   : > { %v9518_v36 = vunpack.i.h.bf16 %v9516_v28  ;;  %v9517_v4 = vunpack.i.l.bf16 %v9516_v28  ;;  %v9523_v54 = vunpack.i.h.bf16 %v9521_v49  ;;  %v9522_v18 = vunpack.i.l.bf16 %v9521_v49 }
 0xc4c   : > { %9197 = vmatprep.subr.msk.bf16.mxu1 %vm9196_vm0, %v9195_v56  ;;  %v7364_v56 = vld [vmem:[%s12742_s15] sm:$0xff] }
 0xc4d   : > { %v7223_v17 = vsel %vm674_vm2, %v9517_v4, %v9518_v36  ;;  %9200 = vmatpush1.bf16.msk.msra.mxu1 %vm9196_vm0, %v9198_v20  ;;  %v7224_v35 = vsel %vm674_vm2, %v9518_v36, %v9517_v4  ;;  %v7229_v8 = vsel %vm687_vm7, %v9522_v18, %v9523_v54  ;;  %v7230_v58 = vsel %vm687_vm7, %v9523_v54, %v9522_v18  ;;  %v7365_v20 = vld [vmem:[%s12742_s15 + $0x8] sm:$0xff] }
 0xc4e   : > { %v9203_v63 = vpack.c.bf16 %v7223_v17, %v7217_v40  ;;  %v9526_v12 = vpop.permute.xlu1 %9525  ;;  %v9201_v50 = vpack.c.bf16 %v7224_v35, %v7218_v31  ;;  %v7238_v38 = vpop.permute.xlu0 %7237 }
 0xc4f   : > { %v9528_v5 = vunpack.i.h.bf16 %v9526_v12  ;;  %v9527_v42 = vunpack.i.l.bf16 %v9526_v12 }
 0xc50   : > { %9202 = vmatprep.subr.bf16.mxu1 %v9201_v50 }
 0xc51   : > { %v7235_v3 = vsel %vm700_vm11, %v9527_v42, %v9528_v5  ;;  %9204 = vmatpush1.bf16.msra.mxu1 %v9203_v63  ;;  %v7236_v26 = vsel %vm700_vm11, %v9528_v5, %v9527_v42 }
 0xc52   : > { %v9207_v16 = vpack.c.bf16 %v7235_v3, %v7229_v8  ;;  %v7240_v52 = vpop.permute.xlu1 %7239  ;;  %v9205_v62 = vpack.c.bf16 %v7236_v26, %v7230_v58 }
 0xc53   : > { %v7242_v14 = vsel %vm713_vm13, %v7240_v52, %v7238_v38  ;;  %v7241_v39 = vsel %vm713_vm13, %v7238_v38, %v7240_v52  ;;  %vm7472_vm13 = vcmask 130048  }
 0xc54   : > { %9206 = vmatprep.subr.bf16.mxu1 %v9205_v62 }
 0xc55   : > { %9208 = vmatpush1.bf16.msra.mxu1 %v9207_v16 }
 0xc56   : > { %7280 = vmatprep.subr.mxu1 %v7242_v14 }
 0xc59   : > { %7281 = vmatpush1.msra.mxu1 %v7241_v39 }
 0xc5a   : > { %7970 = vmatmul.mubr.msk.f32.vlgmr.msra.gmra.mrb[10].mxu1 %vm7253_vm3, %v7174_v53 }
 0xc5b   : > { %7330 = vmatprep.mubr.f32.mxu1 %v12880_v51 }
 0xc5e   : > { %7971 = vmatmul.mubr.msk.f32.gmra.mrb[12].mxu1 %vm7253_vm3, %v7175_v22 }
 0xc5f   : > { %v7246_v43 = vpop.permute.xlu0 %7245  ;;  %7972 = vmatprep.mubr.msk.f32.mxu1 %vm7472_vm13, %v7361_v46 }
 0xc63   : > { %v7251_v60 = vpop.permute.xlu1 %7250 }
 0xd2d   : > { %v7326_v33 = vpop.f32.mrb[10].mxu1 }
 0xd2e   : > { %v7327_v7 = vadd.f32 %v7326_v33, %v7246_v43  ;;  %v7328_v11 = vpop.f32.mrb[11].mxu1 }
 0xd2f   : > { %v7329_v21 = vadd.f32 %v7328_v11, %v7246_v43 }
 0xd30   : > { %v7337_v27 = vmul.f32 0.2, %v7327_v7 }
 0xd31   : > { %v7338_v41 = vmul.f32 0.2, %v7329_v21  ;;  %v7332_v32 = vpop.f32.mrb[12].mxu1 }
 0xd32   : > { %v7333_v25 = vadd.f32 %v7332_v32, %v7251_v60  ;;  %v7334_v59 = vpop.f32.mrb[13].mxu1  ;;  %v7341_v24 = vmax.f32 %v7327_v7, %v7337_v27 }
 0xd33   : > { %v7335_v30 = vadd.f32 %v7334_v59, %v7251_v60  ;;  %v7342_v55 = vmax.f32 %v7329_v21, %v7338_v41 }
 0xd34   : > { %v7339_v13 = vmul.f32 0.2, %v7333_v25  ;;  %v12398_v48 = vmul.f32 %v12391_v61, %v7341_v24 }
 0xd35   : > { %v7340_v47 = vmul.f32 0.2, %v7335_v30  ;;  %v12404_v10 = vmul.f32 %v12395_v1, %v7342_v55 }
 0xd36   : > { %v7343_v45 = vmax.f32 %v7333_v25, %v7339_v13 }
 0xd37   : > { %v7344_v44 = vmax.f32 %v7335_v30, %v7340_v47 }
 0xd38   : > { %v12401_v0 = vmul.f32 %v12391_v61, %v7343_v45 }
 0xd39   : > { %v12407_v57 = vmul.f32 %v12395_v1, %v7344_v44 }
 0xd3a   : > { %v9529_v2 = vpack.i.bf16 %v12401_v0, %v12398_v48  ;;  %v9227_v19 = vpack.c.bf16 %v12401_v0, %v12398_v48 }
 0xd3b   : > { %v9549_v6 = vpack.i.bf16 %v12407_v57, %v12404_v10  ;;  %v9225_v23 = vpack.c.bf16 %v12407_v57, %v12404_v10 }
 0xd3c   : > { %9530 = vrot.lane.b32.xlu0 %v9529_v2, %s9800_s7 }
 0xd3d   : > { %9550 = vrot.lane.b32.xlu1 %v9549_v6, %s9800_s7 }
 0xd40   : > { %9535 = vrot.lane.b32.xlu0 %v9529_v2, %s9802_s10 }
 0xd41   : > { %9555 = vrot.lane.b32.xlu1 %v9549_v6, %s9802_s10 }
 0xd44   : > { %9540 = vrot.lane.b32.xlu0 %v9529_v2, %s12963_s22 }
 0xd45   : > { %9560 = vrot.lane.b32.xlu1 %v9549_v6, %s12963_s22 }
 0xd48   : > { %9545 = vrot.lane.b32.xlu0 %v9529_v2, %s12834_s3 }
 0xd49   : > { %9565 = vrot.lane.b32.xlu1 %v9549_v6, %s12834_s3 }
 0xd4c   : > { %9570 = vrot.lane.b32.xlu0 %v9529_v2, %s12958_s8 }
 0xd4d   : > { %9590 = vrot.lane.b32.xlu1 %v9549_v6, %s12958_s8 }
 0xd50   : > { %9575 = vrot.lane.b32.xlu0 %v9529_v2, %s12942_s0 }
 0xd51   : > { %9595 = vrot.lane.b32.xlu1 %v9549_v6, %s12942_s0 }
 0xd54   : > { %9580 = vrot.lane.b32.xlu0 %v9529_v2, %s12918_s1 }
 0xd55   : > { %9600 = vrot.lane.b32.xlu1 %v9549_v6, %s12918_s1 }
 0xd58   : > { %9585 = vrot.lane.b32.xlu0 %v9529_v2, %s12919_s27 }
 0xd59   : > { %9605 = vrot.lane.b32.xlu1 %v9549_v6, %s12919_s27 }
 0xd5c   : > { %7464 = vperm.xlu0 %9482, %v7364_v56  }
 0xd5d   : > { %7469 = vperm.xlu1 %9483, %v7365_v20  }
 0xdae   : > { %v9531_v49 = vpop.permute.xlu0 %9530 }
 0xdaf   : > { %v9533_v28 = vunpack.i.h.bf16 %v9531_v49  ;;  %v9532_v36 = vunpack.i.l.bf16 %v9531_v49  ;;  %v9551_v4 = vpop.permute.xlu1 %9550 }
 0xdb0   : > { %v9553_v40 = vunpack.i.h.bf16 %v9551_v4  ;;  %v9552_v31 = vunpack.i.l.bf16 %v9551_v4 }
 0xdb2   : > { %v7376_v54 = vsel %vm7189_vm4, %v9552_v31, %v9532_v36  ;;  %v7377_v18 = vsel %vm7189_vm4, %v9553_v40, %v9533_v28  ;;  %v9536_v17 = vpop.permute.xlu0 %9535  ;;  %v7374_v35 = vsel %vm7189_vm4, %v9532_v36, %v9552_v31  ;;  %v7375_v63 = vsel %vm7189_vm4, %v9533_v28, %v9553_v40 }
 0xdb3   : > { %v9211_v12 = vpack.c.bf16 %v7377_v18, %v7376_v54  ;;  %v9538_v50 = vunpack.i.h.bf16 %v9536_v17  ;;  %v9537_v5 = vunpack.i.l.bf16 %v9536_v17  ;;  %v9556_v42 = vpop.permute.xlu1 %9555  ;;  %v9209_v8 = vpack.c.bf16 %v7375_v63, %v7374_v35 }
 0xdb4   : > { %v9558_v3 = vunpack.i.h.bf16 %v9556_v42  ;;  %v9557_v58 = vunpack.i.l.bf16 %v9556_v42 }
 0xdb5   : > { %9210 = vmatprep.subr.bf16.mxu1 %v9209_v8 }
 0xdb6   : > { %v7388_v26 = vsel %vm7196_vm12, %v9557_v58, %v9537_v5  ;;  %v7389_v16 = vsel %vm7196_vm12, %v9558_v3, %v9538_v50  ;;  %v9541_v52 = vpop.permute.xlu0 %9540  ;;  %9212 = vmatpush1.bf16.msra.mxu1 %v9211_v12  ;;  %v7386_v62 = vsel %vm7196_vm12, %v9537_v5, %v9557_v58  ;;  %v7387_v38 = vsel %vm7196_vm12, %v9538_v50, %v9558_v3 }
 0xdb7   : > { %v9215_v14 = vpack.c.bf16 %v7389_v16, %v7388_v26  ;;  %v9543_v53 = vunpack.i.h.bf16 %v9541_v52  ;;  %v9542_v39 = vunpack.i.l.bf16 %v9541_v52  ;;  %v9561_v22 = vpop.permute.xlu1 %9560  ;;  %v9213_v43 = vpack.c.bf16 %v7387_v38, %v7386_v62 }
 0xdb8   : > { %v9563_v33 = vunpack.i.h.bf16 %v9561_v22  ;;  %v9562_v7 = vunpack.i.l.bf16 %v9561_v22 }
 0xdb9   : > { %9214 = vmatprep.subr.bf16.mxu1 %v9213_v43 }
 0xdba   : > { %v7400_v11 = vsel %vm7203_vm8, %v9562_v7, %v9542_v39  ;;  %v7401_v21 = vsel %vm7203_vm8, %v9563_v33, %v9543_v53  ;;  %v9546_v27 = vpop.permute.xlu0 %9545  ;;  %9216 = vmatpush1.bf16.msra.mxu1 %v9215_v14  ;;  %v7398_v60 = vsel %vm7203_vm8, %v9542_v39, %v9562_v7  ;;  %v7399_v15 = vsel %vm7203_vm8, %v9543_v53, %v9563_v33 }
 0xdbb   : > { %v9219_v41 = vpack.c.bf16 %v7401_v21, %v7400_v11  ;;  %v9548_v32 = vunpack.i.h.bf16 %v9546_v27  ;;  %v9547_v25 = vunpack.i.l.bf16 %v9546_v27  ;;  %v9566_v59 = vpop.permute.xlu1 %9565  ;;  %v9217_v30 = vpack.c.bf16 %v7399_v15, %v7398_v60 }
 0xdbc   : > { %v9568_v24 = vunpack.i.h.bf16 %v9566_v59  ;;  %v9567_v13 = vunpack.i.l.bf16 %v9566_v59  ;;  %v7363_v59 = vld [vmem:[%s12741_s14 + $0x18] sm:$0xff] }
 0xdbd   : > { %9218 = vmatprep.subr.bf16.mxu1 %v9217_v30  ;;  %v7362_v30 = vld [vmem:[%s12741_s14 + $0x10] sm:$0xff] }
 0xdbe   : > { %v7412_v55 = vsel %vm7210_vm14, %v9567_v13, %v9547_v25  ;;  %v7413_v37 = vsel %vm7210_vm14, %v9568_v24, %v9548_v32  ;;  %v9571_v29 = vpop.permute.xlu0 %9570  ;;  %9220 = vmatpush1.bf16.msra.mxu1 %v9219_v41  ;;  %v7410_v47 = vsel %vm7210_vm14, %v9547_v25, %v9567_v13  ;;  %v7411_v45 = vsel %vm7210_vm14, %v9548_v32, %v9568_v24  ;;  %v7360_v25 = vld [vmem:[%s12741_s14] sm:$0xff] }
 0xdbf   : > { %v9223_v44 = vpack.c.bf16 %v7413_v37, %v7412_v55  ;;  %v9573_v2 = vunpack.i.h.bf16 %v9571_v29  ;;  %v9572_v6 = vunpack.i.l.bf16 %v9571_v29  ;;  %v9591_v46 = vpop.permute.xlu1 %9590  ;;  %v9221_v56 = vpack.c.bf16 %v7411_v45, %v7410_v47 }
 0xdc0   : > { %v9593_v20 = vunpack.i.h.bf16 %v9591_v46  ;;  %v9592_v49 = vunpack.i.l.bf16 %v9591_v46 }
 0xdc1   : > { %9222 = vmatprep.subr.bf16.mxu1 %v9221_v56 }
 0xdc2   : > { %v9576_v28 = vpop.permute.xlu0 %9575  ;;  %9224 = vmatpush1.bf16.msra.mxu1 %v9223_v44  ;;  %v7424_v36 = vsel %vm661_vm1, %v9592_v49, %v9572_v6  ;;  %v7425_v4 = vsel %vm661_vm1, %v9593_v20, %v9573_v2  ;;  %v7422_v35 = vsel %vm661_vm1, %v9572_v6, %v9592_v49  ;;  %v7423_v63 = vsel %vm661_vm1, %v9573_v2, %v9593_v20 }
 0xdc3   : > { %v9578_v40 = vunpack.i.h.bf16 %v9576_v28  ;;  %v9577_v31 = vunpack.i.l.bf16 %v9576_v28  ;;  %v9596_v54 = vpop.permute.xlu1 %9595  ;;  %9226 = vmatprep.subr.bf16.mxu1 %v9225_v23  ;;  %v9229_v12 = vpack.c.bf16 %v7425_v4, %v7424_v36  ;;  %v9231_v8 = vpack.c.bf16 %v7423_v63, %v7422_v35 }
 0xdc4   : > { %v9598_v18 = vunpack.i.h.bf16 %v9596_v54  ;;  %v9597_v17 = vunpack.i.l.bf16 %v9596_v54 }
 0xdc6   : > { %v9581_v50 = vpop.permute.xlu0 %9580  ;;  %9228 = vmatpush1.bf16.msra.mxu1 %v9227_v19  ;;  %v7436_v5 = vsel %vm674_vm2, %v9597_v17, %v9577_v31  ;;  %v7437_v10 = vsel %vm674_vm2, %v9598_v18, %v9578_v40  ;;  %v7434_v26 = vsel %vm674_vm2, %v9577_v31, %v9597_v17  ;;  %v7435_v48 = vsel %vm674_vm2, %v9578_v40, %v9598_v18 }
 0xdc7   : > { %v9583_v57 = vunpack.i.h.bf16 %v9581_v50  ;;  %v9582_v23 = vunpack.i.l.bf16 %v9581_v50  ;;  %v9601_v42 = vpop.permute.xlu1 %9600  ;;  %9230 = vmatprep.subr.bf16.mxu1 %v9229_v12  ;;  %v9233_v0 = vpack.c.bf16 %v7437_v10, %v7436_v5  ;;  %v9235_v53 = vpack.c.bf16 %v7435_v48, %v7434_v26  ;;  %v7570_v5 = vld [vmem:[%s12744_s17] sm:$0xff]  ;;  %v7571_v10 = vld [vmem:[%s12744_s17 + $0x8] sm:$0xff] }
 0xdc8   : > { %v9603_v3 = vunpack.i.h.bf16 %v9601_v42  ;;  %v9602_v58 = vunpack.i.l.bf16 %v9601_v42 }
 0xdca   : > { %v9586_v19 = vpop.permute.xlu0 %9585  ;;  %9232 = vmatpush1.bf16.msra.mxu1 %v9231_v8  ;;  %v7448_v16 = vsel %vm687_vm7, %v9602_v58, %v9582_v23  ;;  %v7449_v52 = vsel %vm687_vm7, %v9603_v3, %v9583_v57  ;;  %v7446_v43 = vsel %vm687_vm7, %v9582_v23, %v9602_v58  ;;  %v7447_v33 = vsel %vm687_vm7, %v9583_v57, %v9603_v3 }
 0xdcb   : > { %v9588_v62 = vunpack.i.h.bf16 %v9586_v19  ;;  %v9587_v38 = vunpack.i.l.bf16 %v9586_v19  ;;  %v9606_v14 = vpop.permute.xlu1 %9605  ;;  %9234 = vmatprep.subr.bf16.mxu1 %v9233_v0  ;;  %v9237_v7 = vpack.c.bf16 %v7449_v52, %v7448_v16  ;;  %v9239_v27 = vpack.c.bf16 %v7447_v33, %v7446_v43 }
 0xdcc   : > { %v9608_v39 = vunpack.i.h.bf16 %v9606_v14  ;;  %v9607_v22 = vunpack.i.l.bf16 %v9606_v14 }
 0xdce   : > { %9236 = vmatpush1.bf16.msra.mxu1 %v9235_v53  ;;  %v7460_v11 = vsel %vm700_vm11, %v9607_v22, %v9587_v38  ;;  %v7461_v21 = vsel %vm700_vm11, %v9608_v39, %v9588_v62  ;;  %v7458_v60 = vsel %vm700_vm11, %v9587_v38, %v9607_v22  ;;  %v7459_v15 = vsel %vm700_vm11, %v9588_v62, %v9608_v39 }
 0xdcf   : > { %9238 = vmatprep.subr.bf16.mxu1 %v9237_v7  ;;  %v9241_v41 = vpack.c.bf16 %v7461_v21, %v7460_v11  ;;  %v9243_v32 = vpack.c.bf16 %v7459_v15, %v7458_v60  ;;  %vm7654_vm11 = vcmask 916480  }
 0xdd2   : > { %9240 = vmatpush1.bf16.msra.mxu1 %v9239_v27 }
 0xdd3   : > { %9242 = vmatprep.subr.bf16.mxu1 %v9241_v41 }
 0xdd6   : > { %9244 = vmatpush1.bf16.msra.mxu1 %v9243_v32 }
 0xdd9   : > { %7544 = vmatmul.mubr.f32.vlgmr.msra.gmra.mrb[14].mxu1 %v7360_v25 }
 0xdda   : > { %7973 = vmatprep.mubr.msk.f32.mxu1 %vm7472_vm13, %v7363_v59 }
 0xddb   : > { %v7465_v24 = vpop.permute.xlu0 %7464 }
 0xddc   : > { %v7470_v45 = vpop.permute.xlu1 %7469 }
 0xddd   : > { %7550 = vmatmul.mubr.f32.gmra.mrb[16].mxu1 %v7362_v30 }
 0xdde   : > { %7725 = vmatprep.mubr.f32.mxu1 %v12880_v51 }
 0xeac   : > { %v7545_v13 = vpop.f32.mrb[14].mxu1 }
 0xead   : > { %v7546_v55 = vadd.f32 %v7545_v13, %v7465_v24  ;;  %v7547_v37 = vpop.f32.mrb[15].mxu1 }
 0xeae   : > { %v7548_v29 = vadd.f32 %v7547_v37, %v7465_v24 }
 0xeaf   : > { %v7556_v47 = vmul.f32 0.2, %v7546_v55 }
 0xeb0   : > { %v7557_v44 = vmul.f32 0.2, %v7548_v29  ;;  %v7551_v2 = vpop.f32.mrb[16].mxu1 }
 0xeb1   : > { %v7552_v6 = vadd.f32 %v7551_v2, %v7470_v45  ;;  %v7553_v46 = vpop.f32.mrb[17].mxu1  ;;  %v7560_v20 = vmax.f32 %v7546_v55, %v7556_v47 }
 0xeb2   : > { %v7554_v56 = vadd.f32 %v7553_v46, %v7470_v45  ;;  %v7561_v28 = vmax.f32 %v7548_v29, %v7557_v44 }
 0xeb3   : > { %v7558_v49 = vmul.f32 0.2, %v7552_v6  ;;  %v12525_v31 = vmul.f32 %v7560_v20, %v12391_v61 }
 0xeb4   : > { %v7559_v36 = vmul.f32 0.2, %v7554_v56  ;;  %v12531_v18 = vmul.f32 %v7561_v28, %v12395_v1 }
 0xeb5   : > { %v7562_v4 = vmax.f32 %v7552_v6, %v7558_v49 }
 0xeb6   : > { %v7563_v40 = vmax.f32 %v7554_v56, %v7559_v36 }
 0xeb7   : > { %v12528_v54 = vmul.f32 %v7562_v4, %v12391_v61 }
 0xeb8   : > { %v12534_v17 = vmul.f32 %v7563_v40, %v12395_v1 }
 0xeb9   : > { %v9609_v35 = vpack.i.bf16 %v12528_v54, %v12525_v31  ;;  %v9259_v50 = vpack.c.bf16 %v12528_v54, %v12525_v31 }
 0xeba   : > { %v9624_v63 = vpack.i.bf16 %v12534_v17, %v12531_v18  ;;  %v9257_v12 = vpack.c.bf16 %v12534_v17, %v12531_v18 }
 0xebb   : > { %9610 = vrot.lane.b32.xlu0 %v9609_v35, %s9802_s10 }
 0xebc   : > { %9625 = vrot.lane.b32.xlu1 %v9624_v63, %s9802_s10  ;;  %s7978_s10 = sshll.u32 %s9935_s19, 5  ;;  %s9805_s19 = smov [#allocation3]  }
 0xebd   : > { %s12684_s5 = scalar_lea.hbm %s12747_s20, %s7978_s10 }
 0xebf   : > { %9615 = vrot.lane.b32.xlu0 %v9609_v35, %s12963_s22 }
 0xec0   : > { %9630 = vrot.lane.b32.xlu1 %v9624_v63, %s12963_s22 }
 0xec3   : > { %9620 = vrot.lane.b32.xlu0 %v9609_v35, %s12964_s9 }
 0xec4   : > { %9635 = vrot.lane.b32.xlu1 %v9624_v63, %s12964_s9 }
 0xec7   : > { %9640 = vrot.lane.b32.xlu0 %v9609_v35, %s12958_s8 }
 0xec8   : > { %9655 = vrot.lane.b32.xlu1 %v9624_v63, %s12958_s8 }
 0xecb   : > { %9645 = vrot.lane.b32.xlu0 %v9609_v35, %s12942_s0 }
 0xecc   : > { %9660 = vrot.lane.b32.xlu1 %v9624_v63, %s12942_s0 }
 0xecf   : > { %9650 = vrot.lane.b32.xlu0 %v9609_v35, %s12918_s1 }
 0xed0   : > { %9665 = vrot.lane.b32.xlu1 %v9624_v63, %s12918_s1 }
 0xed3   : > { %7646 = vperm.xlu0 %9482, %v7570_v5  }
 0xed4   : > { %7651 = vperm.xlu1 %9483, %v7571_v10  }
 0xf2d   : > { %v9611_v57 = vpop.permute.xlu0 %9610 }
 0xf2e   : > { %v9613_v23 = vunpack.i.h.bf16 %v9611_v57  ;;  %v9612_v42 = vunpack.i.l.bf16 %v9611_v57  ;;  %v9626_v8 = vpop.permute.xlu1 %9625 }
 0xf2f   : > { %v9628_v3 = vunpack.i.h.bf16 %v9626_v8  ;;  %v9627_v58 = vunpack.i.l.bf16 %v9626_v8 }
 0xf31   : > { %v7582_v26 = vsel %vm7196_vm12, %v9627_v58, %v9612_v42  ;;  %v7583_v48 = vsel %vm7196_vm12, %v9628_v3, %v9613_v23  ;;  %v9616_v0 = vpop.permute.xlu0 %9615  ;;  %v7580_v19 = vsel %vm7196_vm12, %v9612_v42, %v9627_v58  ;;  %v7581_v16 = vsel %vm7196_vm12, %v9613_v23, %v9628_v3 }
 0xf32   : > { %v9247_v52 = vpack.c.bf16 %v7583_v48, %v7582_v26  ;;  %v9618_v62 = vunpack.i.h.bf16 %v9616_v0  ;;  %v9617_v38 = vunpack.i.l.bf16 %v9616_v0  ;;  %v9631_v14 = vpop.permute.xlu1 %9630  ;;  %v9245_v53 = vpack.c.bf16 %v7581_v16, %v7580_v19 }
 0xf33   : > { %v9633_v39 = vunpack.i.h.bf16 %v9631_v14  ;;  %v9632_v22 = vunpack.i.l.bf16 %v9631_v14  ;;  %v7569_v14 = vld [vmem:[%s12743_s16 + $0x8] sm:$0xff] }
 0xf34   : > { %9246 = vmatprep.subr.bf16.mxu1 %v9245_v53 }
 0xf35   : > { %v7594_v43 = vsel %vm7203_vm8, %v9632_v22, %v9617_v38  ;;  %v7595_v33 = vsel %vm7203_vm8, %v9633_v39, %v9618_v62  ;;  %v9621_v7 = vpop.permute.xlu0 %9620  ;;  %9248 = vmatpush1.bf16.msra.mxu1 %v9247_v52  ;;  %v7592_v11 = vsel %vm7203_vm8, %v9617_v38, %v9632_v22  ;;  %v7593_v21 = vsel %vm7203_vm8, %v9618_v62, %v9633_v39  ;;  %v7568_v38 = vld [vmem:[%s12743_s16] sm:$0xff] }
 0xf36   : > { %v9251_v27 = vpack.c.bf16 %v7595_v33, %v7594_v43  ;;  %v9623_v60 = vunpack.i.h.bf16 %v9621_v7  ;;  %v9622_v15 = vunpack.i.l.bf16 %v9621_v7  ;;  %v9636_v41 = vpop.permute.xlu1 %9635  ;;  %v9249_v32 = vpack.c.bf16 %v7593_v21, %v7592_v11 }
 0xf37   : > { %v9638_v25 = vunpack.i.h.bf16 %v9636_v41  ;;  %v9637_v59 = vunpack.i.l.bf16 %v9636_v41 }
 0xf38   : > { %9250 = vmatprep.subr.bf16.mxu1 %v9249_v32 }
 0xf39   : > { %v7606_v30 = vsel %vm7210_vm14, %v9637_v59, %v9622_v15  ;;  %v7607_v24 = vsel %vm7210_vm14, %v9638_v25, %v9623_v60  ;;  %v9641_v13 = vpop.permute.xlu0 %9640  ;;  %9252 = vmatpush1.bf16.msra.mxu1 %v9251_v27  ;;  %v7604_v55 = vsel %vm7210_vm14, %v9622_v15, %v9637_v59  ;;  %v7605_v37 = vsel %vm7210_vm14, %v9623_v60, %v9638_v25 }
 0xf3a   : > { %v9255_v29 = vpack.c.bf16 %v7607_v24, %v7606_v30  ;;  %v9643_v47 = vunpack.i.h.bf16 %v9641_v13  ;;  %v9642_v45 = vunpack.i.l.bf16 %v9641_v13  ;;  %v9656_v44 = vpop.permute.xlu1 %9655  ;;  %v9253_v2 = vpack.c.bf16 %v7605_v37, %v7604_v55 }
 0xf3b   : > { %v9658_v6 = vunpack.i.h.bf16 %v9656_v44  ;;  %v9657_v46 = vunpack.i.l.bf16 %v9656_v44 }
 0xf3c   : > { %9254 = vmatprep.subr.bf16.mxu1 %v9253_v2 }
 0xf3d   : > { %v9646_v56 = vpop.permute.xlu0 %9645  ;;  %9256 = vmatpush1.bf16.msra.mxu1 %v9255_v29  ;;  %v7618_v20 = vsel %vm661_vm1, %v9657_v46, %v9642_v45  ;;  %v7619_v49 = vsel %vm661_vm1, %v9658_v6, %v9643_v47  ;;  %v7616_v63 = vsel %vm661_vm1, %v9642_v45, %v9657_v46  ;;  %v7617_v5 = vsel %vm661_vm1, %v9643_v47, %v9658_v6 }
 0xf3e   : > { %v9648_v28 = vunpack.i.h.bf16 %v9646_v56  ;;  %v9647_v36 = vunpack.i.l.bf16 %v9646_v56  ;;  %v9661_v4 = vpop.permute.xlu1 %9660  ;;  %9258 = vmatprep.subr.bf16.mxu1 %v9257_v12  ;;  %v9261_v10 = vpack.c.bf16 %v7619_v49, %v7618_v20  ;;  %v9263_v8 = vpack.c.bf16 %v7617_v5, %v7616_v63 }
 0xf3f   : > { %v9663_v40 = vunpack.i.h.bf16 %v9661_v4  ;;  %v9662_v35 = vunpack.i.l.bf16 %v9661_v4 }
 0xf41   : > { %v9651_v57 = vpop.permute.xlu0 %9650  ;;  %9260 = vmatpush1.bf16.msra.mxu1 %v9259_v50  ;;  %v7630_v23 = vsel %vm674_vm2, %v9662_v35, %v9647_v36  ;;  %v7631_v18 = vsel %vm674_vm2, %v9663_v40, %v9648_v28  ;;  %v7628_v26 = vsel %vm674_vm2, %v9647_v36, %v9662_v35  ;;  %v7629_v31 = vsel %vm674_vm2, %v9648_v28, %v9663_v40 }
 0xf42   : > { %v9653_v17 = vunpack.i.h.bf16 %v9651_v57  ;;  %v9652_v12 = vunpack.i.l.bf16 %v9651_v57  ;;  %v9666_v42 = vpop.permute.xlu1 %9665  ;;  %9262 = vmatprep.subr.bf16.mxu1 %v9261_v10  ;;  %v9265_v54 = vpack.c.bf16 %v7631_v18, %v7630_v23  ;;  %v9267_v0 = vpack.c.bf16 %v7629_v31, %v7628_v26 }
 0xf43   : > { %v9668_v3 = vunpack.i.h.bf16 %v9666_v42  ;;  %v9667_v58 = vunpack.i.l.bf16 %v9666_v42 }
 0xf45   : > { %9264 = vmatpush1.bf16.msra.mxu1 %v9263_v8  ;;  %v7642_v50 = vsel %vm687_vm7, %v9667_v58, %v9652_v12  ;;  %v7643_v48 = vsel %vm687_vm7, %v9668_v3, %v9653_v17  ;;  %v7640_v19 = vsel %vm687_vm7, %v9652_v12, %v9667_v58  ;;  %v7641_v16 = vsel %vm687_vm7, %v9653_v17, %v9668_v3 }
 0xf46   : > { %9266 = vmatprep.subr.bf16.mxu1 %v9265_v54  ;;  %v9269_v52 = vpack.c.bf16 %v7643_v48, %v7642_v50  ;;  %v9271_v62 = vpack.c.bf16 %v7641_v16, %v7640_v19 }
 0xf49   : > { %9268 = vmatpush1.bf16.msra.mxu1 %v9267_v0 }
 0xf4a   : > { %9270 = vmatprep.subr.bf16.mxu1 %v9269_v52 }
 0xf4d   : > { %9272 = vmatpush1.bf16.msra.mxu1 %v9271_v62 }
 0xf50   : > { %7974 = vmatmul.mubr.msk.f32.vlgmr.msra.gmra.mrb[18].mxu1 %vm7654_vm11, %v7568_v38 }
 0xf51   : > { %7731 = vmatprep.mubr.f32.mxu1 %v12880_v51 }
 0xf52   : > { %v7647_v53 = vpop.permute.xlu0 %7646 }
 0xf53   : > { %v7652_v11 = vpop.permute.xlu1 %7651 }
 0xf54   : > { %7975 = vmatmul.mubr.msk.f32.gmra.mrb[20].mxu1 %vm7654_vm11, %v7569_v14 }
0x1023   : > { %v7727_v39 = vpop.f32.mrb[18].mxu1 }
0x1024   : > { %v7728_v22 = vadd.f32 %v7727_v39, %v7647_v53  ;;  %v7729_v43 = vpop.f32.mrb[19].mxu1 }
0x1025   : > { %v7730_v33 = vadd.f32 %v7729_v43, %v7647_v53 }
0x1026   : > { %v7738_v7 = vmul.f32 0.2, %v7728_v22 }
0x1027   : > { %v7739_v21 = vmul.f32 0.2, %v7730_v33  ;;  %v7733_v27 = vpop.f32.mrb[20].mxu1 }
0x1028   : > { %v7734_v60 = vadd.f32 %v7733_v27, %v7652_v11  ;;  %v7735_v15 = vpop.f32.mrb[21].mxu1  ;;  %v7742_v32 = vmax.f32 %v7728_v22, %v7738_v7 }
0x1029   : > { %v7736_v41 = vadd.f32 %v7735_v15, %v7652_v11  ;;  %v7743_v51 = vmax.f32 %v7730_v33, %v7739_v21 }
0x102a   : > { %v7740_v25 = vmul.f32 0.2, %v7734_v60  ;;  %v12624_v13 = vmul.f32 %v7742_v32, %v12391_v61 }
0x102b   : > { %v7741_v59 = vmul.f32 0.2, %v7736_v41  ;;  %v7747_v37 = vmul.f32 %v7743_v51, %v12395_v1 }
0x102c   : > { %v7744_v30 = vmax.f32 %v7734_v60, %v7740_v25  ;;  %v7750_v25 = vld [vmem:[%s12745_s18] sm:$0x1] }
0x102d   : > { %v7745_v24 = vmax.f32 %v7736_v41, %v7741_v59 }
0x102e   : > { %v12627_v55 = vmul.f32 %v7744_v30, %v12391_v61  ;;  %v7751_v61 = vld [vmem:[#allocation2] sm:$0x1] }
0x102f   : > { %v7749_v29 = vmul.f32 %v7745_v24, %v12395_v1 }
0x1030   : > { %v9669_v47 = vpack.i.bf16 %v12627_v55, %v12624_v13  ;;  %v9283_v2 = vpack.c.bf16 %v12627_v55, %v12624_v13 }
0x1031   : > { %v9679_v45 = vpack.i.bf16 %v7749_v29, %v7747_v37  ;;  %v9281_v44 = vpack.c.bf16 %v7749_v29, %v7747_v37 }
0x1032   : > { %9670 = vrot.lane.b32.xlu0 %v9669_v47, %s12963_s22 }
0x1033   : > { %9680 = vrot.lane.b32.xlu1 %v9679_v45, %s12963_s22  ;;  %s620_s22 = sand.u32 1, %s9771_s24  }
0x1034   : > { %s7890_s6 = scalar_lea.sflag [#allocation4], %s620_s22 }
0x1036   : > { %9675 = vrot.lane.b32.xlu0 %v9669_v47, %s12964_s9 }
0x1037   : > { %9685 = vrot.lane.b32.xlu1 %v9679_v45, %s12964_s9  ;;  %s7966_s9 = sshll.u32 %s620_s22, 1 }
0x1038   : > { %s622_s27 = scalar_lea.vmem [#allocation3], %s7966_s9 }
0x1039   : > { %s7903_s3 = sshll.u32 %s622_s27, 4  ;;  %s12686_s3 = int_to_ptr.vmem [resolvable:$true] %s7903_s3 }
0x103a   : > { %9690 = vrot.lane.b32.xlu0 %v9669_v47, %s12958_s8  ;;  %s9717_s28 = scalar_lea.vmem %s12686_s3, 32 }
0x103b   : > { %9700 = vrot.lane.b32.xlu1 %v9679_v45, %s12958_s8  ;;  %p9718_p11 = scmp.ne.s32.totalorder %s12686_s3, %s9717_s28 }
0x103d   : > { %p9719_p12 = pnand %p9718_p11, %p9952_p5 }
0x103e   : > { %9695 = vrot.lane.b32.xlu0 %v9669_v47, %s12942_s0 }
0x103f   : > { %9705 = vrot.lane.b32.xlu1 %v9679_v45, %s12942_s0  ;;  %p9720_p13 = pneg %p9719_p12  ;;  %s9721_s0 = sshll.u32 %s9805_s19, 4  ;;  %s9722_s0 = int_to_ptr.vmem [resolvable:$false] %s9721_s0 }
0x1040   : > { %s9723_s8 = scalar_lea.vmem %s9722_s0, 64  ;;  %p9724_p0 = scmp.lt.s32.totalorder %s12686_s3, %s9722_s0 }
0x1041   : > { %p9725_p1 = scmp.lt.s32.totalorder %s9723_s8, %s9717_s28 }
0x1042   : > { %7802 = vperm.xlu0 %9482, %v7751_v61  }
0x1043   : > { %p9726_p2 = por %p9725_p1, %p9724_p0 }
0x1045   : > { %p9727_p3 = pnand %p9726_p2, %p9720_p13 }
0x10a4   : > { %v9671_v1 = vpop.permute.xlu0 %9670 }
0x10a5   : > { %v9673_v6 = vunpack.i.h.bf16 %v9671_v1  ;;  %v9672_v46 = vunpack.i.l.bf16 %v9671_v1  ;;  %v9681_v56 = vpop.permute.xlu1 %9680 }
0x10a6   : > { %v9683_v20 = vunpack.i.h.bf16 %v9681_v56  ;;  %v9682_v49 = vunpack.i.l.bf16 %v9681_v56 }
0x10a8   : > { %v7762_v28 = vsel %vm7203_vm8, %v9682_v49, %v9672_v46  ;;  %v7763_v36 = vsel %vm7203_vm8, %v9683_v20, %v9673_v6  ;;  %v9676_v4 = vpop.permute.xlu0 %9675  ;;  %v7760_v40 = vsel %vm7203_vm8, %v9672_v46, %v9682_v49  ;;  %v7761_v35 = vsel %vm7203_vm8, %v9673_v6, %v9683_v20 }
0x10a9   : > { %v9275_v63 = vpack.c.bf16 %v7763_v36, %v7762_v28  ;;  %v9678_v5 = vunpack.i.h.bf16 %v9676_v4  ;;  %v9677_v10 = vunpack.i.l.bf16 %v9676_v4  ;;  %v9686_v57 = vpop.permute.xlu1 %9685  ;;  %v9273_v23 = vpack.c.bf16 %v7761_v35, %v7760_v40 }
0x10aa   : > { %v9688_v18 = vunpack.i.h.bf16 %v9686_v57  ;;  %v9687_v17 = vunpack.i.l.bf16 %v9686_v57 }
0x10ab   : > { %9274 = vmatprep.subr.bf16.mxu0 %v9273_v23 }
0x10ac   : > { %v7774_v12 = vsel %vm7210_vm14, %v9687_v17, %v9677_v10  ;;  %v7775_v42 = vsel %vm7210_vm14, %v9688_v18, %v9678_v5  ;;  %v9691_v8 = vpop.permute.xlu0 %9690  ;;  %9276 = vmatpush1.bf16.msra.mxu0 %v9275_v63  ;;  %v7772_v3 = vsel %vm7210_vm14, %v9677_v10, %v9687_v17  ;;  %v7773_v58 = vsel %vm7210_vm14, %v9678_v5, %v9688_v18 }
0x10ad   : > { %v9279_v26 = vpack.c.bf16 %v7775_v42, %v7774_v12  ;;  %v9693_v31 = vunpack.i.h.bf16 %v9691_v8  ;;  %v9692_v54 = vunpack.i.l.bf16 %v9691_v8  ;;  %v9701_v50 = vpop.permute.xlu1 %9700  ;;  %v9277_v48 = vpack.c.bf16 %v7773_v58, %v7772_v3 }
0x10ae   : > { %v9703_v0 = vunpack.i.h.bf16 %v9701_v50  ;;  %v9702_v19 = vunpack.i.l.bf16 %v9701_v50 }
0x10af   : > { %9278 = vmatprep.subr.bf16.mxu0 %v9277_v48 }
0x10b0   : > { %v9696_v16 = vpop.permute.xlu0 %9695  ;;  %9280 = vmatpush1.bf16.msra.mxu0 %v9279_v26  ;;  %v7786_v52 = vsel %vm661_vm1, %v9702_v19, %v9692_v54  ;;  %v7787_v62 = vsel %vm661_vm1, %v9703_v0, %v9693_v31  ;;  %v7784_v43 = vsel %vm661_vm1, %v9692_v54, %v9702_v19  ;;  %v7785_v33 = vsel %vm661_vm1, %v9693_v31, %v9703_v0 }
0x10b1   : > { %v9698_v38 = vunpack.i.h.bf16 %v9696_v16  ;;  %v9697_v14 = vunpack.i.l.bf16 %v9696_v16  ;;  %v9706_v53 = vpop.permute.xlu1 %9705  ;;  %9282 = vmatprep.subr.bf16.mxu0 %v9281_v44  ;;  %v9285_v7 = vpack.c.bf16 %v7787_v62, %v7786_v52  ;;  %v9287_v27 = vpack.c.bf16 %v7785_v33, %v7784_v43 }
0x10b2   : > { %v9708_v39 = vunpack.i.h.bf16 %v9706_v53  ;;  %v9707_v22 = vunpack.i.l.bf16 %v9706_v53  ;;  %vm7809_vm1 = vcmask 654336  }
0x10b4   : > { %9284 = vmatpush1.bf16.msra.mxu0 %v9283_v2  ;;  %v7798_v11 = vsel %vm674_vm2, %v9707_v22, %v9697_v14  ;;  %v7799_v21 = vsel %vm674_vm2, %v9708_v39, %v9698_v38  ;;  %v7796_v60 = vsel %vm674_vm2, %v9697_v14, %v9707_v22  ;;  %v7797_v15 = vsel %vm674_vm2, %v9698_v38, %v9708_v39 }
0x10b5   : > { %9286 = vmatprep.subr.bf16.mxu0 %v9285_v7  ;;  %v9289_v41 = vpack.c.bf16 %v7799_v21, %v7798_v11  ;;  %v9291_v32 = vpack.c.bf16 %v7797_v15, %v7796_v60  ;;  %vm12965_vm2 = vcmask 1040384  }
0x10b8   : > { %9288 = vmatpush1.bf16.msra.mxu0 %v9287_v27 }
0x10b9   : > { %9290 = vmatprep.subr.bf16.mxu0 %v9289_v41 }
0x10bc   : > { %9292 = vmatpush1.bf16.msra.mxu0 %v9291_v32 }
0x10bf   : > { %7976 = vmatmul.mubr.msk.f32.vlgmr.msra.gmra.mrb[12].mxu0 %vm7809_vm1, %v7750_v25 }
0x10c1   : > { %v7803_v51 = vpop.permute.xlu0 %7802 }
0x10c2   : > { %v7808_v59 = vrot.slane %v7803_v51, %v12960_v9 }
0x1192   : > { %v7879_v34 = vpop.f32.mrb[12].mxu0 }
0x1193   : > { %v7881_v30 = vpop.f32.mrb[13].mxu0  ;;  %v7880_v13 = vadd.f32 %v7879_v34, %v7808_v59 }
0x1194   : > { %v7882_v24 = vadd.f32 %v7881_v30, %v7808_v59 }
0x1196   : > { %v7885_v55 = vrot.slane %v7882_v24, 7 }
0x1198   : > { %v7887_v9 = vsel %vm12965_vm2, %v7880_v13, %v7885_v55 }
0x1199   : > { %7888 = vst [vmem:[%s622_s27] sm:$0x3] %v7887_v9 }
0x119a   : > { %9730 = shalt.err (!%p9727_p3)
}
0x119b   : > { %s9731_s22 = scalar_lea.hbm %s12684_s5, 32  ;;  %s9735_s27 = scalar_lea.hbm %s12747_s20, 64 }
0x119c   : > { %p9732_p4 = scmp.ne.s32.totalorder %s12684_s5, %s9731_s22  ;;  %p9736_p9 = scmp.lt.u32.totalorder %s12684_s5, %s12747_s20 }
0x119d   : > { %p9737_p10 = scmp.lt.u32.totalorder %s9735_s27, %s9731_s22  ;;  %p9739_p12 = scmp.lt.u32.totalorder %s9731_s22, %s12684_s5 }
0x119e   : > { %p9733_p7 = pnand %p9732_p4, %p9952_p5 }
0x119f   : > { %p9738_p11 = por %p9737_p10, %p9736_p9 }
0x11a0   : > { %p9734_p8 = pneg %p9733_p7 }
0x11a1   : > { %p9740_p13 = por %p9739_p12, %p9738_p11 }
0x11a3   : > { %p9741_p0 = pnand %p9740_p13, %p9734_p8 }
0x11a5   : > { %9744 = shalt.err (!%p9741_p0)
}
0x11a6   : > { %9419 = dma.vmem_to_hbm [thread:$0]  (%p9952_p5), %s12686_s3, 32, %s12684_s5, %s7890_s6  }
0x11a7 PF: > { %p9425_p1 = scmp.ge.s32.totalorder %s9779_s25, 2  ;;  %s7915_s28 = sand.u32 1, %s9767_s23  }
0x11a8   : > { %s7916_s19 = scalar_lea.sflag [#allocation4], %s7915_s28 }
0x11a9   : > { %p9422_p2 = pnand %p9425_p1, %p9956_p6 }
0x11ab   : > { %9762 = dma.done.wait (!%p9422_p2), %s7916_s19, 32  }
0x11ac   : > { %9764 = vsyncadd (!%p9422_p2), %s7916_s19, 4294967264  ;;  %s12966_s0 = sld [smem:[#allocation6_spill]]  ;;  %p32_p3 = scmp.ge.s32.totalorder %s9939_s26, 4  }
0x11ad   : > { %s12967_s23 = smov %s9771_s24  ;;  %s12968_s24 = smov %s9775_s2 }
0x11ae   : > { %s12970_s25 = smov %s9939_s26  ;;  %34 = sbr.rel (!%p32_p3) target bundleno = 15 (0xf), region = 135 }
0x11b2   : > { %s12969_s2 = smov %s12966_s0 }
0x11b5   :  { %7921 = vsyncpa [#allocation4], 1 }
0x11b6   :  { %7923 = vsyncpa [#allocation4 + $0x1], 1 }

</bundles_post_ra>
